<compile_context>
chip_gen: v6e
topology: v6e:2x2x1
jax: 0.10.0
libtpu: 0.0.40
codegen_flags: <defaults>
</compile_context>

<pallas_src>
import functools

import numpy as np
import jax
import jax.numpy as jnp
from jax.experimental import pallas as pl
from jax.experimental.pallas import tpu as pltpu


# ----------------------------------------------------------------------------
# Fused Block35 kernel: one grid step == `bpg` images.
# ----------------------------------------------------------------------------
def _block35_kernel(x_ref, w_stem_ref, s_stem_ref, t_stem_ref,
                    w_mid_ref, s_mid_ref, t_mid_ref,
                    w_b22_ref, s_b22_ref, t_b22_ref,
                    w_fin_ref, b_fin_ref,
                    o_ref,
                    padab_ref, padc_ref, cat_ref, *, scale):
    nb, h, w, cin = x_ref.shape          # (bpg, H, W, 320)
    m = nb * h * w
    f32 = jnp.float32
    bf16 = jnp.bfloat16

    # bf16 copy of the input for the stem matmul only; the f32 residual is
    # re-read from x_ref in the epilogue (no long-lived (M,320) f32 value).
    x_bf = x_ref[...].reshape(m, cin).astype(bf16)

    # Zero the bf16 halo scratches.  Dense full-scratch clear is cheaper than
    # border-only strips at these sizes (column strips are 1-sublane strided
    # stores); the interior is fully overwritten below.
    padab_ref[...] = jnp.zeros(padab_ref.shape, bf16)
    padc_ref[...] = jnp.zeros(padc_ref.shape, bf16)

    # ---- fused stem: branch1[0] | branch2[0] | branch0 1x1 convs -----------
    # Column order: [b1_0 0:32 | b2_0 32:64 | b0 64:96] so the 64 channels
    # feeding the merged 3x3 are lane-aligned and b0's cat write is aligned.
    stem = jnp.dot(x_bf, w_stem_ref[...], preferred_element_type=f32)
    stem = jnp.maximum(stem * s_stem_ref[...] + t_stem_ref[...], 0.0)    # (M, 96)
    cat_ref[:, 64:96] = stem[:, 64:96].astype(bf16)                      # branch0 out
    padab_ref[:, 1:h + 1, 1:w + 1, :] = (
        stem[:, 0:64].astype(bf16).reshape(nb, h, w, 64))

    def conv3x3_bn_relu(pad_ref, w_taps_ref, s_ref, t_ref):
        c = pad_ref.shape[-1]
        cout = w_taps_ref.shape[-1]
        acc = jnp.zeros((m, cout), f32)
        # 9 per-tap matmuls accumulating into a single target, nothing
        # interleaved (v7x MRB keeps the running sum in the MXU result RAM).
        for ky in range(3):
            for kx in range(3):
                win = pad_ref[:, ky:ky + h, kx:kx + w, :].reshape(m, c)
                acc = acc + jnp.dot(win, w_taps_ref[3 * ky + kx],
                                    preferred_element_type=f32)
        return jnp.maximum(acc * s_ref[...] + t_ref[...], 0.0)

    # ---- merged branch2[1] | branch1[1] 3x3 (block-diagonal weights) --------
    # Output order [b2_mid 0:48 | b1 48:80]: the 48 channels feeding the next
    # 3x3 are lane-aligned.
    mid = conv3x3_bn_relu(padab_ref, w_mid_ref, s_mid_ref, t_mid_ref)     # (M, 80)
    cat_ref[:, 96:128] = mid[:, 48:80].astype(bf16)                       # branch1 out
    padc_ref[:, 1:h + 1, 1:w + 1, :] = (
        mid[:, 0:48].astype(bf16).reshape(nb, h, w, 48))

    # ---- branch2 second 3x3 --------------------------------------------------
    b2 = conv3x3_bn_relu(padc_ref, w_b22_ref, s_b22_ref, t_b22_ref)       # (M, 64)
    cat_ref[:, 0:64] = b2.astype(bf16)

    # ---- single K=128 final 1x1 conv -> (+bias)*scale + residual -> ReLU -----
    y = jnp.dot(cat_ref[...], w_fin_ref[...], preferred_element_type=f32)
    y = (y + b_fin_ref[...]) * scale + x_ref[...].reshape(m, cin)
    o_ref[...] = jnp.maximum(y, 0.0).reshape(nb, h, w, cin)


# ----------------------------------------------------------------------------
# Host-side weight packing (bf16 matmul weights, f32 folded BN scale/shift).
# Call ONCE and reuse; do not call per forward.
# ----------------------------------------------------------------------------
def pack_block35_params(p):
    bf16 = jnp.bfloat16

    def w1x1(wp):  # (1,1,cin,cout) -> (cin, cout)
        return wp.reshape(wp.shape[2], wp.shape[3])

    # Stem columns: [branch1[0] 0:32 | branch2[0] 32:64 | branch0 64:96]
    w_stem = jnp.concatenate(
        [w1x1(p["b1_0"][0]), w1x1(p["b2_0"][0]), w1x1(p["b0"][0])], axis=1)
    s_stem = jnp.concatenate([p["b1_0"][1], p["b2_0"][1], p["b0"][1]], axis=1)
    t_stem = jnp.concatenate([p["b1_0"][2], p["b2_0"][2], p["b0"][2]], axis=1)

    # Merged 3x3: input ch [b1_0 0:32 | b2_0 32:64], output ch [b2_mid 0:48 | b1 48:80]
    w_b11 = p["b1_1"][0].reshape(9, 32, 32)
    w_b21 = p["b2_1"][0].reshape(9, 32, 48)
    w_mid = jnp.zeros((9, 64, 80), jnp.float32)
    w_mid = w_mid.at[:, 32:64, 0:48].set(w_b21)
    w_mid = w_mid.at[:, 0:32, 48:80].set(w_b11)
    s_mid = jnp.concatenate([p["b2_1"][1], p["b1_1"][1]], axis=1)
    t_mid = jnp.concatenate([p["b2_1"][2], p["b1_1"][2]], axis=1)

    w_b22 = p["b2_2"][0].reshape(9, 48, 64)

    # Final 1x1 conv: cat layout is [b2 0:64 | b0 64:96 | b1 96:128];
    # reorder the K rows of w_fin accordingly (reference order is [b0|b1|b2]).
    wf, b_fin = p["final"]
    w_fin = jnp.concatenate([wf[64:128], wf[0:32], wf[32:64]], axis=0)

    return dict(
        w_stem=w_stem.astype(bf16), s_stem=s_stem, t_stem=t_stem,
        w_mid=w_mid.astype(bf16), s_mid=s_mid, t_mid=t_mid,
        w_b22=w_b22.astype(bf16), s_b22=p["b2_2"][1], t_b22=p["b2_2"][2],
        w_fin=w_fin.astype(bf16), b_fin=b_fin)


def _batch_per_step(n, hw, max_rows=1024, min_rows=256):
    """Images folded into one grid step (divisor of n)."""
    best = 1
    for d in range(1, n + 1):
        if n % d == 0 and d * hw <= max_rows:
            best = d
    # keep >=2 grid steps (v7x has 2 TensorCores) as long as each step still
    # has a reasonably fat matmul M
    if best == n and n > 1:
        for d in range(best - 1, 0, -1):
            if n % d == 0 and d * hw >= min_rows:
                best = d
                break
    return best


@functools.partial(jax.jit, static_argnames=("scale",))
def block35_forward_nhwc(x_nhwc, packed, scale=1.0):
    x = x_nhwc.astype(jnp.float32)
    n, h, w, c = x.shape
    hw = h * w
    bpg = _batch_per_step(n, hw)
    grid = (n // bpg,)

    flops = 2 * n * hw * (320 * 96 + 9 * 64 * 80 + 9 * 48 * 64 + 128 * 320)
    weight_bytes = sum(int(v.size) * v.dtype.itemsize for v in packed.values())
    bytes_accessed = 2 * n * hw * c * 4 + weight_bytes

    out = pl.pallas_call(
        functools.partial(_block35_kernel, scale=float(scale)),
        out_shape=jax.ShapeDtypeStruct((n, h, w, c), jnp.float32),
        grid=grid,
        in_specs=[
            pl.BlockSpec((bpg, h, w, c), lambda b: (b, 0, 0, 0)),
            pl.BlockSpec(packed["w_stem"].shape, lambda b: (0, 0)),
            pl.BlockSpec(packed["s_stem"].shape, lambda b: (0, 0)),
            pl.BlockSpec(packed["t_stem"].shape, lambda b: (0, 0)),
            pl.BlockSpec(packed["w_mid"].shape, lambda b: (0, 0, 0)),
            pl.BlockSpec(packed["s_mid"].shape, lambda b: (0, 0)),
            pl.BlockSpec(packed["t_mid"].shape, lambda b: (0, 0)),
            pl.BlockSpec(packed["w_b22"].shape, lambda b: (0, 0, 0)),
            pl.BlockSpec(packed["s_b22"].shape, lambda b: (0, 0)),
            pl.BlockSpec(packed["t_b22"].shape, lambda b: (0, 0)),
            pl.BlockSpec(packed["w_fin"].shape, lambda b: (0, 0)),
            pl.BlockSpec(packed["b_fin"].shape, lambda b: (0, 0)),
        ],
        out_specs=pl.BlockSpec((bpg, h, w, c), lambda b: (b, 0, 0, 0)),
        scratch_shapes=[
            pltpu.VMEM((bpg, h + 2, w + 2, 64), jnp.bfloat16),  # merged-mid halo
            pltpu.VMEM((bpg, h + 2, w + 2, 48), jnp.bfloat16),  # branch2[2] halo
            pltpu.VMEM((bpg * hw, 128), jnp.bfloat16),          # K=128 cat buffer
        ],
        compiler_params=pltpu.CompilerParams(
            dimension_semantics=("parallel",),
            vmem_limit_bytes=32 * 1024 * 1024),
        cost_estimate=pl.CostEstimate(
            flops=flops, transcendentals=0, bytes_accessed=bytes_accessed),
    )(x, packed["w_stem"], packed["s_stem"], packed["t_stem"],
      packed["w_mid"], packed["s_mid"], packed["t_mid"],
      packed["w_b22"], packed["s_b22"], packed["t_b22"],
      packed["w_fin"], packed["b_fin"])
    return out


@functools.partial(jax.jit, static_argnames=("scale",))
def block35_forward(x_nchw, packed, scale=1.0):
    # TODO(synk): in a real model keep activations NHWC end-to-end to avoid
    # these two full HBM transpose passes (most expensive on v5e).
    x = jnp.transpose(x_nchw, (0, 2, 3, 1))
    out = block35_forward_nhwc(x, packed, scale=scale)
    return jnp.transpose(out, (0, 3, 1, 2))


# ----------------------------------------------------------------------------
# Deterministic synthetic parameters (BN folded, eval semantics).
# ----------------------------------------------------------------------------
def make_basic_conv_params(key, cin, cout, k):
    k1, k2, k3, k4, k5 = jax.random.split(key, 5)
    w = jax.random.normal(k1, (k, k, cin, cout), jnp.float32) * 0.05   # HWIO
    gamma = jax.random.uniform(k2, (cout,), jnp.float32, 0.5, 1.5)
    beta = jax.random.normal(k3, (cout,), jnp.float32) * 0.1
    mean = jax.random.normal(k4, (cout,), jnp.float32) * 0.1
    var = jax.random.uniform(k5, (cout,), jnp.float32, 0.5, 1.5)
    s = gamma / jnp.sqrt(var + 1e-3)            # BN eps = 0.001
    t = beta - mean * s
    return w, s.reshape(1, cout), t.reshape(1, cout)


def make_block35_params(key):
    keys = jax.random.split(key, 8)
    p = {}
    p["b0"] = make_basic_conv_params(keys[0], 320, 32, 1)
    p["b1_0"] = make_basic_conv_params(keys[1], 320, 32, 1)
    p["b1_1"] = make_basic_conv_params(keys[2], 32, 32, 3)
    p["b2_0"] = make_basic_conv_params(keys[3], 320, 32, 1)
    p["b2_1"] = make_basic_conv_params(keys[4], 32, 48, 3)
    p["b2_2"] = make_basic_conv_params(keys[5], 48, 64, 3)
    wf = jax.random.normal(keys[6], (128, 320), jnp.float32) * 0.05
    bf = jax.random.normal(keys[7], (320,), jnp.float32) * 0.1
    p["final"] = (wf, bf.reshape(1, 320))
    return p


# ----------------------------------------------------------------------------
# Pure-JAX reference (same bf16 matmul inputs / f32 accumulation & epilogue).
# ----------------------------------------------------------------------------
def _ref_bcb(x, wp, s, t, pad):
    y = jax.lax.conv_general_dilated(
        x.astype(jnp.bfloat16), wp.astype(jnp.bfloat16), (1, 1),
        [(pad, pad), (pad, pad)],
        dimension_numbers=("NHWC", "HWIO", "NHWC"),
        preferred_element_type=jnp.float32)
    return jnp.maximum(y * s.reshape(1, 1, 1, -1) + t.reshape(1, 1, 1, -1), 0.0)


def block35_reference(x_nchw, p, scale=1.0):
    x = jnp.transpose(x_nchw, (0, 2, 3, 1)).astype(jnp.float32)
    n, h, w, c = x.shape
    b0 = _ref_bcb(x, p["b0"][0], p["b0"][1], p["b0"][2], 0)
    b1 = _ref_bcb(x, p["b1_0"][0], p["b1_0"][1], p["b1_0"][2], 0)
    b1 = _ref_bcb(b1, p["b1_1"][0], p["b1_1"][1], p["b1_1"][2], 1)
    b2 = _ref_bcb(x, p["b2_0"][0], p["b2_0"][1], p["b2_0"][2], 0)
    b2 = _ref_bcb(b2, p["b2_1"][0], p["b2_1"][1], p["b2_1"][2], 1)
    b2 = _ref_bcb(b2, p["b2_2"][0], p["b2_2"][1], p["b2_2"][2], 1)
    cat = jnp.concatenate([b0, b1, b2], axis=-1)                # (N,H,W,128)
    wf, bf = p["final"]
    out = jnp.dot(cat.reshape(-1, 128).astype(jnp.bfloat16),
                  wf.astype(jnp.bfloat16),
                  preferred_element_type=jnp.float32)
    out = out.reshape(n, h, w, c) + bf.reshape(1, 1, 1, -1)
    out = jnp.maximum(out * scale + x, 0.0)
    return jnp.transpose(out, (0, 3, 1, 2))


if __name__ == "__main__":
    key = jax.random.PRNGKey(0)
    kp, kx = jax.random.split(key)
    params = make_block35_params(kp)
    packed = pack_block35_params(params)     # pack once, reuse (hoisted)

    # Channel count (320) is fixed by the module; small batch/spatial dims.
    x = jax.random.normal(kx, (2, 320, 8, 8), jnp.float32)   # NCHW like PyTorch
    scale = 0.17

    out = jax.block_until_ready(block35_forward(x, packed, scale=scale))
    ref = jax.block_until_ready(block35_reference(x, params, scale))

    np.testing.assert_allclose(np.asarray(out), np.asarray(ref),
                               rtol=5e-3, atol=5e-3)
    print("KERNEL_OK")
</pallas_src>

<mosaic_0001>
module attributes {stable_mosaic.version = 11 : i64} {
  func.func @_block35_kernel(%arg0: i32, %arg1: memref<2x8x8x320xf32, #tpu.memory_space<vmem>>, %arg2: memref<320x96xbf16, #tpu.memory_space<vmem>>, %arg3: memref<1x96xf32, #tpu.memory_space<vmem>>, %arg4: memref<1x96xf32, #tpu.memory_space<vmem>>, %arg5: memref<9x64x80xbf16, #tpu.memory_space<vmem>>, %arg6: memref<1x80xf32, #tpu.memory_space<vmem>>, %arg7: memref<1x80xf32, #tpu.memory_space<vmem>>, %arg8: memref<9x48x64xbf16, #tpu.memory_space<vmem>>, %arg9: memref<1x64xf32, #tpu.memory_space<vmem>>, %arg10: memref<1x64xf32, #tpu.memory_space<vmem>>, %arg11: memref<128x320xbf16, #tpu.memory_space<vmem>>, %arg12: memref<1x320xf32, #tpu.memory_space<vmem>>, %arg13: memref<2x8x8x320xf32, #tpu.memory_space<vmem>>, %arg14: memref<2x10x10x64xbf16, #tpu.memory_space<vmem>>, %arg15: memref<2x10x10x48xbf16, #tpu.memory_space<vmem>>, %arg16: memref<128x128xbf16, #tpu.memory_space<vmem>>) attributes {dimension_semantics = [#tpu.dimension_semantics<parallel>], iteration_bounds = array<i64: 1>, scalar_prefetch = 0 : i64, scratch_operands = 3 : i64, tpu.core_type = #tpu.core_type<tc>, window_params = [{transform_indices = @transform_0, window_bounds = array<i64: 2, 8, 8, 320>}, {pipeline_mode = #tpu.pipeline_mode<synchronous>, transform_indices = @transform_1, window_bounds = array<i64: 320, 96>}, {pipeline_mode = #tpu.pipeline_mode<synchronous>, transform_indices = @transform_2, window_bounds = array<i64: 1, 96>}, {pipeline_mode = #tpu.pipeline_mode<synchronous>, transform_indices = @transform_3, window_bounds = array<i64: 1, 96>}, {pipeline_mode = #tpu.pipeline_mode<synchronous>, transform_indices = @transform_4, window_bounds = array<i64: 9, 64, 80>}, {pipeline_mode = #tpu.pipeline_mode<synchronous>, transform_indices = @transform_5, window_bounds = array<i64: 1, 80>}, {pipeline_mode = #tpu.pipeline_mode<synchronous>, transform_indices = @transform_6, window_bounds = array<i64: 1, 80>}, {pipeline_mode = #tpu.pipeline_mode<synchronous>, transform_indices = @transform_7, window_bounds = array<i64: 9, 48, 64>}, {pipeline_mode = #tpu.pipeline_mode<synchronous>, transform_indices = @transform_8, window_bounds = array<i64: 1, 64>}, {pipeline_mode = #tpu.pipeline_mode<synchronous>, transform_indices = @transform_9, window_bounds = array<i64: 1, 64>}, {pipeline_mode = #tpu.pipeline_mode<synchronous>, transform_indices = @transform_10, window_bounds = array<i64: 128, 320>}, {pipeline_mode = #tpu.pipeline_mode<synchronous>, transform_indices = @transform_11, window_bounds = array<i64: 1, 320>}, {transform_indices = @transform_12, window_bounds = array<i64: 2, 8, 8, 320>}]} {
    %c0 = arith.constant 0 : index
    %c0_0 = arith.constant 0 : index
    %c0_1 = arith.constant 0 : index
    %c0_2 = arith.constant 0 : index
    %0 = vector.load %arg1[%c0, %c0_0, %c0_1, %c0_2] : memref<2x8x8x320xf32, #tpu.memory_space<vmem>>, vector<2x8x8x320xf32>
    %1 = vector.shape_cast %0 : vector<2x8x8x320xf32> to vector<128x320xf32>
    %2 = arith.truncf %1 : vector<128x320xf32> to vector<128x320xbf16>
    %cst = arith.constant 0.000000e+00 : bf16
    %3 = vector.broadcast %cst : bf16 to vector<2x10x10x64xbf16>
    %c0_3 = arith.constant 0 : index
    %c0_4 = arith.constant 0 : index
    %c0_5 = arith.constant 0 : index
    %c0_6 = arith.constant 0 : index
    %4 = vector.load %arg14[%c0_3, %c0_4, %c0_5, %c0_6] : memref<2x10x10x64xbf16, #tpu.memory_space<vmem>>, vector<2x10x10x64xbf16>
    tpu.vector_store %arg14[%c0_3, %c0_4, %c0_5, %c0_6], %3 {strides = array<i32>} : memref<2x10x10x64xbf16, #tpu.memory_space<vmem>>, vector<2x10x10x64xbf16>,
    %cst_7 = arith.constant 0.000000e+00 : bf16
    %5 = vector.broadcast %cst_7 : bf16 to vector<2x10x10x48xbf16>
    %c0_8 = arith.constant 0 : index
    %c0_9 = arith.constant 0 : index
    %c0_10 = arith.constant 0 : index
    %c0_11 = arith.constant 0 : index
    %6 = vector.load %arg15[%c0_8, %c0_9, %c0_10, %c0_11] : memref<2x10x10x48xbf16, #tpu.memory_space<vmem>>, vector<2x10x10x48xbf16>
    tpu.vector_store %arg15[%c0_8, %c0_9, %c0_10, %c0_11], %5 {strides = array<i32>} : memref<2x10x10x48xbf16, #tpu.memory_space<vmem>>, vector<2x10x10x48xbf16>,
    %c0_12 = arith.constant 0 : index
    %c0_13 = arith.constant 0 : index
    %7 = vector.load %arg2[%c0_12, %c0_13] : memref<320x96xbf16, #tpu.memory_space<vmem>>, vector<320x96xbf16>
    %cst_14 = arith.constant dense<0.000000e+00> : vector<128x96xf32>
    %8 = tpu.matmul %2, %7, %cst_14 {dimension_numbers = #tpu.dot_dimension_numbers<[1], [0], [0], [1], [0, 0, 1, 1], [], []>} : vector<128x320xbf16>, vector<320x96xbf16>, vector<128x96xf32> -> vector<128x96xf32>
    %c0_15 = arith.constant 0 : index
    %c0_16 = arith.constant 0 : index
    %9 = vector.load %arg3[%c0_15, %c0_16] : memref<1x96xf32, #tpu.memory_space<vmem>>, vector<1x96xf32>
    %10 = vector.broadcast %9 : vector<1x96xf32> to vector<128x96xf32>
    %11 = arith.mulf %8, %10 : vector<128x96xf32>
    %c0_17 = arith.constant 0 : index
    %c0_18 = arith.constant 0 : index
    %12 = vector.load %arg4[%c0_17, %c0_18] : memref<1x96xf32, #tpu.memory_space<vmem>>, vector<1x96xf32>
    %13 = vector.broadcast %12 : vector<1x96xf32> to vector<128x96xf32>
    %14 = arith.addf %11, %13 : vector<128x96xf32>
    %cst_19 = arith.constant 0.000000e+00 : f32
    %15 = vector.broadcast %cst_19 : f32 to vector<128x96xf32>
    %16 = arith.maximumf %14, %15 : vector<128x96xf32>
    %17 = vector.extract_strided_slice %16 {offsets = [0, 64], sizes = [128, 32], strides = [1, 1]} : vector<128x96xf32> to vector<128x32xf32>
    %18 = arith.truncf %17 : vector<128x32xf32> to vector<128x32xbf16>
    %c0_20 = arith.constant 0 : index
    %c64 = arith.constant 64 : index
    %19 = vector.load %arg16[%c0_20, %c64] : memref<128x128xbf16, #tpu.memory_space<vmem>>, vector<128x32xbf16>
    tpu.vector_store %arg16[%c0_20, %c64], %18 {strides = array<i32>} : memref<128x128xbf16, #tpu.memory_space<vmem>>, vector<128x32xbf16>,
    %20 = vector.extract_strided_slice %16 {offsets = [0, 0], sizes = [128, 64], strides = [1, 1]} : vector<128x96xf32> to vector<128x64xf32>
    %21 = arith.truncf %20 : vector<128x64xf32> to vector<128x64xbf16>
    %22 = vector.shape_cast %21 : vector<128x64xbf16> to vector<2x8x8x64xbf16>
    %c0_21 = arith.constant 0 : index
    %c1 = arith.constant 1 : index
    %c1_22 = arith.constant 1 : index
    %c0_23 = arith.constant 0 : index
    %23 = vector.load %arg14[%c0_21, %c1, %c1_22, %c0_23] : memref<2x10x10x64xbf16, #tpu.memory_space<vmem>>, vector<2x8x8x64xbf16>
    tpu.vector_store %arg14[%c0_21, %c1, %c1_22, %c0_23], %22 {strides = array<i32>} : memref<2x10x10x64xbf16, #tpu.memory_space<vmem>>, vector<2x8x8x64xbf16>,
    %cst_24 = arith.constant 0.000000e+00 : f32
    %24 = vector.broadcast %cst_24 : f32 to vector<128x80xf32>
    %c0_25 = arith.constant 0 : index
    %c0_26 = arith.constant 0 : index
    %c0_27 = arith.constant 0 : index
    %c0_28 = arith.constant 0 : index
    %25 = vector.load %arg14[%c0_25, %c0_26, %c0_27, %c0_28] : memref<2x10x10x64xbf16, #tpu.memory_space<vmem>>, vector<2x8x8x64xbf16>
    %26 = vector.shape_cast %25 : vector<2x8x8x64xbf16> to vector<128x64xbf16>
    %c0_29 = arith.constant 0 : index
    %c0_30 = arith.constant 0 : index
    %c0_31 = arith.constant 0 : index
    %27 = vector.load %arg5[%c0_29, %c0_30, %c0_31] : memref<9x64x80xbf16, #tpu.memory_space<vmem>>, vector<1x64x80xbf16>
    %28 = vector.shape_cast %27 : vector<1x64x80xbf16> to vector<64x80xbf16>
    %cst_32 = arith.constant dense<0.000000e+00> : vector<128x80xf32>
    %29 = tpu.matmul %26, %28, %cst_32 {dimension_numbers = #tpu.dot_dimension_numbers<[1], [0], [0], [1], [0, 0, 1, 1], [], []>} : vector<128x64xbf16>, vector<64x80xbf16>, vector<128x80xf32> -> vector<128x80xf32>
    %30 = arith.addf %24, %29 : vector<128x80xf32>
    %c0_33 = arith.constant 0 : index
    %c0_34 = arith.constant 0 : index
    %c1_35 = arith.constant 1 : index
    %c0_36 = arith.constant 0 : index
    %31 = vector.load %arg14[%c0_33, %c0_34, %c1_35, %c0_36] : memref<2x10x10x64xbf16, #tpu.memory_space<vmem>>, vector<2x8x8x64xbf16>
    %32 = vector.shape_cast %31 : vector<2x8x8x64xbf16> to vector<128x64xbf16>
    %c1_37 = arith.constant 1 : index
    %c0_38 = arith.constant 0 : index
    %c0_39 = arith.constant 0 : index
    %33 = vector.load %arg5[%c1_37, %c0_38, %c0_39] : memref<9x64x80xbf16, #tpu.memory_space<vmem>>, vector<1x64x80xbf16>
    %34 = vector.shape_cast %33 : vector<1x64x80xbf16> to vector<64x80xbf16>
    %cst_40 = arith.constant dense<0.000000e+00> : vector<128x80xf32>
    %35 = tpu.matmul %32, %34, %cst_40 {dimension_numbers = #tpu.dot_dimension_numbers<[1], [0], [0], [1], [0, 0, 1, 1], [], []>} : vector<128x64xbf16>, vector<64x80xbf16>, vector<128x80xf32> -> vector<128x80xf32>
    %36 = arith.addf %30, %35 : vector<128x80xf32>
    %c0_41 = arith.constant 0 : index
    %c0_42 = arith.constant 0 : index
    %c2 = arith.constant 2 : index
    %c0_43 = arith.constant 0 : index
    %37 = vector.load %arg14[%c0_41, %c0_42, %c2, %c0_43] : memref<2x10x10x64xbf16, #tpu.memory_space<vmem>>, vector<2x8x8x64xbf16>
    %38 = vector.shape_cast %37 : vector<2x8x8x64xbf16> to vector<128x64xbf16>
    %c2_44 = arith.constant 2 : index
    %c0_45 = arith.constant 0 : index
    %c0_46 = arith.constant 0 : index
    %39 = vector.load %arg5[%c2_44, %c0_45, %c0_46] : memref<9x64x80xbf16, #tpu.memory_space<vmem>>, vector<1x64x80xbf16>
    %40 = vector.shape_cast %39 : vector<1x64x80xbf16> to vector<64x80xbf16>
    %cst_47 = arith.constant dense<0.000000e+00> : vector<128x80xf32>
    %41 = tpu.matmul %38, %40, %cst_47 {dimension_numbers = #tpu.dot_dimension_numbers<[1], [0], [0], [1], [0, 0, 1, 1], [], []>} : vector<128x64xbf16>, vector<64x80xbf16>, vector<128x80xf32> -> vector<128x80xf32>
    %42 = arith.addf %36, %41 : vector<128x80xf32>
    %c0_48 = arith.constant 0 : index
    %c1_49 = arith.constant 1 : index
    %c0_50 = arith.constant 0 : index
    %c0_51 = arith.constant 0 : index
    %43 = vector.load %arg14[%c0_48, %c1_49, %c0_50, %c0_51] : memref<2x10x10x64xbf16, #tpu.memory_space<vmem>>, vector<2x8x8x64xbf16>
    %44 = vector.shape_cast %43 : vector<2x8x8x64xbf16> to vector<128x64xbf16>
    %c3 = arith.constant 3 : index
    %c0_52 = arith.constant 0 : index
    %c0_53 = arith.constant 0 : index
    %45 = vector.load %arg5[%c3, %c0_52, %c0_53] : memref<9x64x80xbf16, #tpu.memory_space<vmem>>, vector<1x64x80xbf16>
    %46 = vector.shape_cast %45 : vector<1x64x80xbf16> to vector<64x80xbf16>
    %cst_54 = arith.constant dense<0.000000e+00> : vector<128x80xf32>
    %47 = tpu.matmul %44, %46, %cst_54 {dimension_numbers = #tpu.dot_dimension_numbers<[1], [0], [0], [1], [0, 0, 1, 1], [], []>} : vector<128x64xbf16>, vector<64x80xbf16>, vector<128x80xf32> -> vector<128x80xf32>
    %48 = arith.addf %42, %47 : vector<128x80xf32>
    %c0_55 = arith.constant 0 : index
    %c1_56 = arith.constant 1 : index
    %c1_57 = arith.constant 1 : index
    %c0_58 = arith.constant 0 : index
    %49 = vector.load %arg14[%c0_55, %c1_56, %c1_57, %c0_58] : memref<2x10x10x64xbf16, #tpu.memory_space<vmem>>, vector<2x8x8x64xbf16>
    %50 = vector.shape_cast %49 : vector<2x8x8x64xbf16> to vector<128x64xbf16>
    %c4 = arith.constant 4 : index
    %c0_59 = arith.constant 0 : index
    %c0_60 = arith.constant 0 : index
    %51 = vector.load %arg5[%c4, %c0_59, %c0_60] : memref<9x64x80xbf16, #tpu.memory_space<vmem>>, vector<1x64x80xbf16>
    %52 = vector.shape_cast %51 : vector<1x64x80xbf16> to vector<64x80xbf16>
    %cst_61 = arith.constant dense<0.000000e+00> : vector<128x80xf32>
    %53 = tpu.matmul %50, %52, %cst_61 {dimension_numbers = #tpu.dot_dimension_numbers<[1], [0], [0], [1], [0, 0, 1, 1], [], []>} : vector<128x64xbf16>, vector<64x80xbf16>, vector<128x80xf32> -> vector<128x80xf32>
    %54 = arith.addf %48, %53 : vector<128x80xf32>
    %c0_62 = arith.constant 0 : index
    %c1_63 = arith.constant 1 : index
    %c2_64 = arith.constant 2 : index
    %c0_65 = arith.constant 0 : index
    %55 = vector.load %arg14[%c0_62, %c1_63, %c2_64, %c0_65] : memref<2x10x10x64xbf16, #tpu.memory_space<vmem>>, vector<2x8x8x64xbf16>
    %56 = vector.shape_cast %55 : vector<2x8x8x64xbf16> to vector<128x64xbf16>
    %c5 = arith.constant 5 : index
    %c0_66 = arith.constant 0 : index
    %c0_67 = arith.constant 0 : index
    %57 = vector.load %arg5[%c5, %c0_66, %c0_67] : memref<9x64x80xbf16, #tpu.memory_space<vmem>>, vector<1x64x80xbf16>
    %58 = vector.shape_cast %57 : vector<1x64x80xbf16> to vector<64x80xbf16>
    %cst_68 = arith.constant dense<0.000000e+00> : vector<128x80xf32>
    %59 = tpu.matmul %56, %58, %cst_68 {dimension_numbers = #tpu.dot_dimension_numbers<[1], [0], [0], [1], [0, 0, 1, 1], [], []>} : vector<128x64xbf16>, vector<64x80xbf16>, vector<128x80xf32> -> vector<128x80xf32>
    %60 = arith.addf %54, %59 : vector<128x80xf32>
    %c0_69 = arith.constant 0 : index
    %c2_70 = arith.constant 2 : index
    %c0_71 = arith.constant 0 : index
    %c0_72 = arith.constant 0 : index
    %61 = vector.load %arg14[%c0_69, %c2_70, %c0_71, %c0_72] : memref<2x10x10x64xbf16, #tpu.memory_space<vmem>>, vector<2x8x8x64xbf16>
    %62 = vector.shape_cast %61 : vector<2x8x8x64xbf16> to vector<128x64xbf16>
    %c6 = arith.constant 6 : index
    %c0_73 = arith.constant 0 : index
    %c0_74 = arith.constant 0 : index
    %63 = vector.load %arg5[%c6, %c0_73, %c0_74] : memref<9x64x80xbf16, #tpu.memory_space<vmem>>, vector<1x64x80xbf16>
    %64 = vector.shape_cast %63 : vector<1x64x80xbf16> to vector<64x80xbf16>
    %cst_75 = arith.constant dense<0.000000e+00> : vector<128x80xf32>
    %65 = tpu.matmul %62, %64, %cst_75 {dimension_numbers = #tpu.dot_dimension_numbers<[1], [0], [0], [1], [0, 0, 1, 1], [], []>} : vector<128x64xbf16>, vector<64x80xbf16>, vector<128x80xf32> -> vector<128x80xf32>
    %66 = arith.addf %60, %65 : vector<128x80xf32>
    %c0_76 = arith.constant 0 : index
    %c2_77 = arith.constant 2 : index
    %c1_78 = arith.constant 1 : index
    %c0_79 = arith.constant 0 : index
    %67 = vector.load %arg14[%c0_76, %c2_77, %c1_78, %c0_79] : memref<2x10x10x64xbf16, #tpu.memory_space<vmem>>, vector<2x8x8x64xbf16>
    %68 = vector.shape_cast %67 : vector<2x8x8x64xbf16> to vector<128x64xbf16>
    %c7 = arith.constant 7 : index
    %c0_80 = arith.constant 0 : index
    %c0_81 = arith.constant 0 : index
    %69 = vector.load %arg5[%c7, %c0_80, %c0_81] : memref<9x64x80xbf16, #tpu.memory_space<vmem>>, vector<1x64x80xbf16>
    %70 = vector.shape_cast %69 : vector<1x64x80xbf16> to vector<64x80xbf16>
    %cst_82 = arith.constant dense<0.000000e+00> : vector<128x80xf32>
    %71 = tpu.matmul %68, %70, %cst_82 {dimension_numbers = #tpu.dot_dimension_numbers<[1], [0], [0], [1], [0, 0, 1, 1], [], []>} : vector<128x64xbf16>, vector<64x80xbf16>, vector<128x80xf32> -> vector<128x80xf32>
    %72 = arith.addf %66, %71 : vector<128x80xf32>
    %c0_83 = arith.constant 0 : index
    %c2_84 = arith.constant 2 : index
    %c2_85 = arith.constant 2 : index
    %c0_86 = arith.constant 0 : index
    %73 = vector.load %arg14[%c0_83, %c2_84, %c2_85, %c0_86] : memref<2x10x10x64xbf16, #tpu.memory_space<vmem>>, vector<2x8x8x64xbf16>
    %74 = vector.shape_cast %73 : vector<2x8x8x64xbf16> to vector<128x64xbf16>
    %c8 = arith.constant 8 : index
    %c0_87 = arith.constant 0 : index
    %c0_88 = arith.constant 0 : index
    %75 = vector.load %arg5[%c8, %c0_87, %c0_88] : memref<9x64x80xbf16, #tpu.memory_space<vmem>>, vector<1x64x80xbf16>
    %76 = vector.shape_cast %75 : vector<1x64x80xbf16> to vector<64x80xbf16>
    %cst_89 = arith.constant dense<0.000000e+00> : vector<128x80xf32>
    %77 = tpu.matmul %74, %76, %cst_89 {dimension_numbers = #tpu.dot_dimension_numbers<[1], [0], [0], [1], [0, 0, 1, 1], [], []>} : vector<128x64xbf16>, vector<64x80xbf16>, vector<128x80xf32> -> vector<128x80xf32>
    %78 = arith.addf %72, %77 : vector<128x80xf32>
    %c0_90 = arith.constant 0 : index
    %c0_91 = arith.constant 0 : index
    %79 = vector.load %arg6[%c0_90, %c0_91] : memref<1x80xf32, #tpu.memory_space<vmem>>, vector<1x80xf32>
    %80 = vector.broadcast %79 : vector<1x80xf32> to vector<128x80xf32>
    %81 = arith.mulf %78, %80 : vector<128x80xf32>
    %c0_92 = arith.constant 0 : index
    %c0_93 = arith.constant 0 : index
    %82 = vector.load %arg7[%c0_92, %c0_93] : memref<1x80xf32, #tpu.memory_space<vmem>>, vector<1x80xf32>
    %83 = vector.broadcast %82 : vector<1x80xf32> to vector<128x80xf32>
    %84 = arith.addf %81, %83 : vector<128x80xf32>
    %cst_94 = arith.constant 0.000000e+00 : f32
    %85 = vector.broadcast %cst_94 : f32 to vector<128x80xf32>
    %86 = arith.maximumf %84, %85 : vector<128x80xf32>
    %87 = vector.extract_strided_slice %86 {offsets = [0, 48], sizes = [128, 32], strides = [1, 1]} : vector<128x80xf32> to vector<128x32xf32>
    %88 = arith.truncf %87 : vector<128x32xf32> to vector<128x32xbf16>
    %c0_95 = arith.constant 0 : index
    %c96 = arith.constant 96 : index
    %89 = vector.load %arg16[%c0_95, %c96] : memref<128x128xbf16, #tpu.memory_space<vmem>>, vector<128x32xbf16>
    tpu.vector_store %arg16[%c0_95, %c96], %88 {strides = array<i32>} : memref<128x128xbf16, #tpu.memory_space<vmem>>, vector<128x32xbf16>,
    %90 = vector.extract_strided_slice %86 {offsets = [0, 0], sizes = [128, 48], strides = [1, 1]} : vector<128x80xf32> to vector<128x48xf32>
    %91 = arith.truncf %90 : vector<128x48xf32> to vector<128x48xbf16>
    %92 = vector.shape_cast %91 : vector<128x48xbf16> to vector<2x8x8x48xbf16>
    %c0_96 = arith.constant 0 : index
    %c1_97 = arith.constant 1 : index
    %c1_98 = arith.constant 1 : index
    %c0_99 = arith.constant 0 : index
    %93 = vector.load %arg15[%c0_96, %c1_97, %c1_98, %c0_99] : memref<2x10x10x48xbf16, #tpu.memory_space<vmem>>, vector<2x8x8x48xbf16>
    tpu.vector_store %arg15[%c0_96, %c1_97, %c1_98, %c0_99], %92 {strides = array<i32>} : memref<2x10x10x48xbf16, #tpu.memory_space<vmem>>, vector<2x8x8x48xbf16>,
    %cst_100 = arith.constant 0.000000e+00 : f32
    %94 = vector.broadcast %cst_100 : f32 to vector<128x64xf32>
    %c0_101 = arith.constant 0 : index
    %c0_102 = arith.constant 0 : index
    %c0_103 = arith.constant 0 : index
    %c0_104 = arith.constant 0 : index
    %95 = vector.load %arg15[%c0_101, %c0_102, %c0_103, %c0_104] : memref<2x10x10x48xbf16, #tpu.memory_space<vmem>>, vector<2x8x8x48xbf16>
    %96 = vector.shape_cast %95 : vector<2x8x8x48xbf16> to vector<128x48xbf16>
    %c0_105 = arith.constant 0 : index
    %c0_106 = arith.constant 0 : index
    %c0_107 = arith.constant 0 : index
    %97 = vector.load %arg8[%c0_105, %c0_106, %c0_107] : memref<9x48x64xbf16, #tpu.memory_space<vmem>>, vector<1x48x64xbf16>
    %98 = vector.shape_cast %97 : vector<1x48x64xbf16> to vector<48x64xbf16>
    %cst_108 = arith.constant dense<0.000000e+00> : vector<128x64xf32>
    %99 = tpu.matmul %96, %98, %cst_108 {dimension_numbers = #tpu.dot_dimension_numbers<[1], [0], [0], [1], [0, 0, 1, 1], [], []>} : vector<128x48xbf16>, vector<48x64xbf16>, vector<128x64xf32> -> vector<128x64xf32>
    %100 = arith.addf %94, %99 : vector<128x64xf32>
    %c0_109 = arith.constant 0 : index
    %c0_110 = arith.constant 0 : index
    %c1_111 = arith.constant 1 : index
    %c0_112 = arith.constant 0 : index
    %101 = vector.load %arg15[%c0_109, %c0_110, %c1_111, %c0_112] : memref<2x10x10x48xbf16, #tpu.memory_space<vmem>>, vector<2x8x8x48xbf16>
    %102 = vector.shape_cast %101 : vector<2x8x8x48xbf16> to vector<128x48xbf16>
    %c1_113 = arith.constant 1 : index
    %c0_114 = arith.constant 0 : index
    %c0_115 = arith.constant 0 : index
    %103 = vector.load %arg8[%c1_113, %c0_114, %c0_115] : memref<9x48x64xbf16, #tpu.memory_space<vmem>>, vector<1x48x64xbf16>
    %104 = vector.shape_cast %103 : vector<1x48x64xbf16> to vector<48x64xbf16>
    %cst_116 = arith.constant dense<0.000000e+00> : vector<128x64xf32>
    %105 = tpu.matmul %102, %104, %cst_116 {dimension_numbers = #tpu.dot_dimension_numbers<[1], [0], [0], [1], [0, 0, 1, 1], [], []>} : vector<128x48xbf16>, vector<48x64xbf16>, vector<128x64xf32> -> vector<128x64xf32>
    %106 = arith.addf %100, %105 : vector<128x64xf32>
    %c0_117 = arith.constant 0 : index
    %c0_118 = arith.constant 0 : index
    %c2_119 = arith.constant 2 : index
    %c0_120 = arith.constant 0 : index
    %107 = vector.load %arg15[%c0_117, %c0_118, %c2_119, %c0_120] : memref<2x10x10x48xbf16, #tpu.memory_space<vmem>>, vector<2x8x8x48xbf16>
    %108 = vector.shape_cast %107 : vector<2x8x8x48xbf16> to vector<128x48xbf16>
    %c2_121 = arith.constant 2 : index
    %c0_122 = arith.constant 0 : index
    %c0_123 = arith.constant 0 : index
    %109 = vector.load %arg8[%c2_121, %c0_122, %c0_123] : memref<9x48x64xbf16, #tpu.memory_space<vmem>>, vector<1x48x64xbf16>
    %110 = vector.shape_cast %109 : vector<1x48x64xbf16> to vector<48x64xbf16>
    %cst_124 = arith.constant dense<0.000000e+00> : vector<128x64xf32>
    %111 = tpu.matmul %108, %110, %cst_124 {dimension_numbers = #tpu.dot_dimension_numbers<[1], [0], [0], [1], [0, 0, 1, 1], [], []>} : vector<128x48xbf16>, vector<48x64xbf16>, vector<128x64xf32> -> vector<128x64xf32>
    %112 = arith.addf %106, %111 : vector<128x64xf32>
    %c0_125 = arith.constant 0 : index
    %c1_126 = arith.constant 1 : index
    %c0_127 = arith.constant 0 : index
    %c0_128 = arith.constant 0 : index
    %113 = vector.load %arg15[%c0_125, %c1_126, %c0_127, %c0_128] : memref<2x10x10x48xbf16, #tpu.memory_space<vmem>>, vector<2x8x8x48xbf16>
    %114 = vector.shape_cast %113 : vector<2x8x8x48xbf16> to vector<128x48xbf16>
    %c3_129 = arith.constant 3 : index
    %c0_130 = arith.constant 0 : index
    %c0_131 = arith.constant 0 : index
    %115 = vector.load %arg8[%c3_129, %c0_130, %c0_131] : memref<9x48x64xbf16, #tpu.memory_space<vmem>>, vector<1x48x64xbf16>
    %116 = vector.shape_cast %115 : vector<1x48x64xbf16> to vector<48x64xbf16>
    %cst_132 = arith.constant dense<0.000000e+00> : vector<128x64xf32>
    %117 = tpu.matmul %114, %116, %cst_132 {dimension_numbers = #tpu.dot_dimension_numbers<[1], [0], [0], [1], [0, 0, 1, 1], [], []>} : vector<128x48xbf16>, vector<48x64xbf16>, vector<128x64xf32> -> vector<128x64xf32>
    %118 = arith.addf %112, %117 : vector<128x64xf32>
    %c0_133 = arith.constant 0 : index
    %c1_134 = arith.constant 1 : index
    %c1_135 = arith.constant 1 : index
    %c0_136 = arith.constant 0 : index
    %119 = vector.load %arg15[%c0_133, %c1_134, %c1_135, %c0_136] : memref<2x10x10x48xbf16, #tpu.memory_space<vmem>>, vector<2x8x8x48xbf16>
    %120 = vector.shape_cast %119 : vector<2x8x8x48xbf16> to vector<128x48xbf16>
    %c4_137 = arith.constant 4 : index
    %c0_138 = arith.constant 0 : index
    %c0_139 = arith.constant 0 : index
    %121 = vector.load %arg8[%c4_137, %c0_138, %c0_139] : memref<9x48x64xbf16, #tpu.memory_space<vmem>>, vector<1x48x64xbf16>
    %122 = vector.shape_cast %121 : vector<1x48x64xbf16> to vector<48x64xbf16>
    %cst_140 = arith.constant dense<0.000000e+00> : vector<128x64xf32>
    %123 = tpu.matmul %120, %122, %cst_140 {dimension_numbers = #tpu.dot_dimension_numbers<[1], [0], [0], [1], [0, 0, 1, 1], [], []>} : vector<128x48xbf16>, vector<48x64xbf16>, vector<128x64xf32> -> vector<128x64xf32>
    %124 = arith.addf %118, %123 : vector<128x64xf32>
    %c0_141 = arith.constant 0 : index
    %c1_142 = arith.constant 1 : index
    %c2_143 = arith.constant 2 : index
    %c0_144 = arith.constant 0 : index
    %125 = vector.load %arg15[%c0_141, %c1_142, %c2_143, %c0_144] : memref<2x10x10x48xbf16, #tpu.memory_space<vmem>>, vector<2x8x8x48xbf16>
    %126 = vector.shape_cast %125 : vector<2x8x8x48xbf16> to vector<128x48xbf16>
    %c5_145 = arith.constant 5 : index
    %c0_146 = arith.constant 0 : index
    %c0_147 = arith.constant 0 : index
    %127 = vector.load %arg8[%c5_145, %c0_146, %c0_147] : memref<9x48x64xbf16, #tpu.memory_space<vmem>>, vector<1x48x64xbf16>
    %128 = vector.shape_cast %127 : vector<1x48x64xbf16> to vector<48x64xbf16>
    %cst_148 = arith.constant dense<0.000000e+00> : vector<128x64xf32>
    %129 = tpu.matmul %126, %128, %cst_148 {dimension_numbers = #tpu.dot_dimension_numbers<[1], [0], [0], [1], [0, 0, 1, 1], [], []>} : vector<128x48xbf16>, vector<48x64xbf16>, vector<128x64xf32> -> vector<128x64xf32>
    %130 = arith.addf %124, %129 : vector<128x64xf32>
    %c0_149 = arith.constant 0 : index
    %c2_150 = arith.constant 2 : index
    %c0_151 = arith.constant 0 : index
    %c0_152 = arith.constant 0 : index
    %131 = vector.load %arg15[%c0_149, %c2_150, %c0_151, %c0_152] : memref<2x10x10x48xbf16, #tpu.memory_space<vmem>>, vector<2x8x8x48xbf16>
    %132 = vector.shape_cast %131 : vector<2x8x8x48xbf16> to vector<128x48xbf16>
    %c6_153 = arith.constant 6 : index
    %c0_154 = arith.constant 0 : index
    %c0_155 = arith.constant 0 : index
    %133 = vector.load %arg8[%c6_153, %c0_154, %c0_155] : memref<9x48x64xbf16, #tpu.memory_space<vmem>>, vector<1x48x64xbf16>
    %134 = vector.shape_cast %133 : vector<1x48x64xbf16> to vector<48x64xbf16>
    %cst_156 = arith.constant dense<0.000000e+00> : vector<128x64xf32>
    %135 = tpu.matmul %132, %134, %cst_156 {dimension_numbers = #tpu.dot_dimension_numbers<[1], [0], [0], [1], [0, 0, 1, 1], [], []>} : vector<128x48xbf16>, vector<48x64xbf16>, vector<128x64xf32> -> vector<128x64xf32>
    %136 = arith.addf %130, %135 : vector<128x64xf32>
    %c0_157 = arith.constant 0 : index
    %c2_158 = arith.constant 2 : index
    %c1_159 = arith.constant 1 : index
    %c0_160 = arith.constant 0 : index
    %137 = vector.load %arg15[%c0_157, %c2_158, %c1_159, %c0_160] : memref<2x10x10x48xbf16, #tpu.memory_space<vmem>>, vector<2x8x8x48xbf16>
    %138 = vector.shape_cast %137 : vector<2x8x8x48xbf16> to vector<128x48xbf16>
    %c7_161 = arith.constant 7 : index
    %c0_162 = arith.constant 0 : index
    %c0_163 = arith.constant 0 : index
    %139 = vector.load %arg8[%c7_161, %c0_162, %c0_163] : memref<9x48x64xbf16, #tpu.memory_space<vmem>>, vector<1x48x64xbf16>
    %140 = vector.shape_cast %139 : vector<1x48x64xbf16> to vector<48x64xbf16>
    %cst_164 = arith.constant dense<0.000000e+00> : vector<128x64xf32>
    %141 = tpu.matmul %138, %140, %cst_164 {dimension_numbers = #tpu.dot_dimension_numbers<[1], [0], [0], [1], [0, 0, 1, 1], [], []>} : vector<128x48xbf16>, vector<48x64xbf16>, vector<128x64xf32> -> vector<128x64xf32>
    %142 = arith.addf %136, %141 : vector<128x64xf32>
    %c0_165 = arith.constant 0 : index
    %c2_166 = arith.constant 2 : index
    %c2_167 = arith.constant 2 : index
    %c0_168 = arith.constant 0 : index
    %143 = vector.load %arg15[%c0_165, %c2_166, %c2_167, %c0_168] : memref<2x10x10x48xbf16, #tpu.memory_space<vmem>>, vector<2x8x8x48xbf16>
    %144 = vector.shape_cast %143 : vector<2x8x8x48xbf16> to vector<128x48xbf16>
    %c8_169 = arith.constant 8 : index
    %c0_170 = arith.constant 0 : index
    %c0_171 = arith.constant 0 : index
    %145 = vector.load %arg8[%c8_169, %c0_170, %c0_171] : memref<9x48x64xbf16, #tpu.memory_space<vmem>>, vector<1x48x64xbf16>
    %146 = vector.shape_cast %145 : vector<1x48x64xbf16> to vector<48x64xbf16>
    %cst_172 = arith.constant dense<0.000000e+00> : vector<128x64xf32>
    %147 = tpu.matmul %144, %146, %cst_172 {dimension_numbers = #tpu.dot_dimension_numbers<[1], [0], [0], [1], [0, 0, 1, 1], [], []>} : vector<128x48xbf16>, vector<48x64xbf16>, vector<128x64xf32> -> vector<128x64xf32>
    %148 = arith.addf %142, %147 : vector<128x64xf32>
    %c0_173 = arith.constant 0 : index
    %c0_174 = arith.constant 0 : index
    %149 = vector.load %arg9[%c0_173, %c0_174] : memref<1x64xf32, #tpu.memory_space<vmem>>, vector<1x64xf32>
    %150 = vector.broadcast %149 : vector<1x64xf32> to vector<128x64xf32>
    %151 = arith.mulf %148, %150 : vector<128x64xf32>
    %c0_175 = arith.constant 0 : index
    %c0_176 = arith.constant 0 : index
    %152 = vector.load %arg10[%c0_175, %c0_176] : memref<1x64xf32, #tpu.memory_space<vmem>>, vector<1x64xf32>
    %153 = vector.broadcast %152 : vector<1x64xf32> to vector<128x64xf32>
    %154 = arith.addf %151, %153 : vector<128x64xf32>
    %cst_177 = arith.constant 0.000000e+00 : f32
    %155 = vector.broadcast %cst_177 : f32 to vector<128x64xf32>
    %156 = arith.maximumf %154, %155 : vector<128x64xf32>
    %157 = arith.truncf %156 : vector<128x64xf32> to vector<128x64xbf16>
    %c0_178 = arith.constant 0 : index
    %c0_179 = arith.constant 0 : index
    %158 = vector.load %arg16[%c0_178, %c0_179] : memref<128x128xbf16, #tpu.memory_space<vmem>>, vector<128x64xbf16>
    tpu.vector_store %arg16[%c0_178, %c0_179], %157 {strides = array<i32>} : memref<128x128xbf16, #tpu.memory_space<vmem>>, vector<128x64xbf16>,
    %c0_180 = arith.constant 0 : index
    %c0_181 = arith.constant 0 : index
    %159 = vector.load %arg16[%c0_180, %c0_181] : memref<128x128xbf16, #tpu.memory_space<vmem>>, vector<128x128xbf16>
    %c0_182 = arith.constant 0 : index
    %c0_183 = arith.constant 0 : index
    %160 = vector.load %arg11[%c0_182, %c0_183] : memref<128x320xbf16, #tpu.memory_space<vmem>>, vector<128x320xbf16>
    %cst_184 = arith.constant dense<0.000000e+00> : vector<128x320xf32>
    %161 = tpu.matmul %159, %160, %cst_184 {dimension_numbers = #tpu.dot_dimension_numbers<[1], [0], [0], [1], [0, 0, 1, 1], [], []>} : vector<128x128xbf16>, vector<128x320xbf16>, vector<128x320xf32> -> vector<128x320xf32>
    %c0_185 = arith.constant 0 : index
    %c0_186 = arith.constant 0 : index
    %162 = vector.load %arg12[%c0_185, %c0_186] : memref<1x320xf32, #tpu.memory_space<vmem>>, vector<1x320xf32>
    %163 = vector.broadcast %162 : vector<1x320xf32> to vector<128x320xf32>
    %164 = arith.addf %161, %163 : vector<128x320xf32>
    %cst_187 = arith.constant 1.700000e-01 : f32
    %165 = vector.broadcast %cst_187 : f32 to vector<128x320xf32>
    %166 = arith.mulf %164, %165 : vector<128x320xf32>
    %c0_188 = arith.constant 0 : index
    %c0_189 = arith.constant 0 : index
    %c0_190 = arith.constant 0 : index
    %c0_191 = arith.constant 0 : index
    %167 = vector.load %arg1[%c0_188, %c0_189, %c0_190, %c0_191] : memref<2x8x8x320xf32, #tpu.memory_space<vmem>>, vector<2x8x8x320xf32>
    %168 = vector.shape_cast %167 : vector<2x8x8x320xf32> to vector<128x320xf32>
    %169 = arith.addf %166, %168 : vector<128x320xf32>
    %cst_192 = arith.constant 0.000000e+00 : f32
    %170 = vector.broadcast %cst_192 : f32 to vector<128x320xf32>
    %171 = arith.maximumf %169, %170 : vector<128x320xf32>
    %172 = vector.shape_cast %171 : vector<128x320xf32> to vector<2x8x8x320xf32>
    %c0_193 = arith.constant 0 : index
    %c0_194 = arith.constant 0 : index
    %c0_195 = arith.constant 0 : index
    %c0_196 = arith.constant 0 : index
    %173 = vector.load %arg13[%c0_193, %c0_194, %c0_195, %c0_196] : memref<2x8x8x320xf32, #tpu.memory_space<vmem>>, vector<2x8x8x320xf32>
    tpu.vector_store %arg13[%c0_193, %c0_194, %c0_195, %c0_196], %172 {strides = array<i32>} : memref<2x8x8x320xf32, #tpu.memory_space<vmem>>, vector<2x8x8x320xf32>,
    return
  }
  func.func @transform_0(%arg0: i32) -> (i32, i32, i32, i32) {
    %c0_i32 = arith.constant 0 : i32
    %c0_i32_0 = arith.constant 0 : i32
    %c0_i32_1 = arith.constant 0 : i32
    %c0_i32_2 = arith.constant 0 : i32
    return %arg0, %c0_i32, %c0_i32_0, %c0_i32_1 : i32, i32, i32, i32
  }
  func.func @transform_1(%arg0: i32) -> (i32, i32) {
    %c0_i32 = arith.constant 0 : i32
    %c0_i32_0 = arith.constant 0 : i32
    %c0_i32_1 = arith.constant 0 : i32
    return %c0_i32, %c0_i32_0 : i32, i32
  }
  func.func @transform_2(%arg0: i32) -> (i32, i32) {
    %c0_i32 = arith.constant 0 : i32
    %c0_i32_0 = arith.constant 0 : i32
    %c0_i32_1 = arith.constant 0 : i32
    return %c0_i32, %c0_i32_0 : i32, i32
  }
  func.func @transform_3(%arg0: i32) -> (i32, i32) {
    %c0_i32 = arith.constant 0 : i32
    %c0_i32_0 = arith.constant 0 : i32
    %c0_i32_1 = arith.constant 0 : i32
    return %c0_i32, %c0_i32_0 : i32, i32
  }
  func.func @transform_4(%arg0: i32) -> (i32, i32, i32) {
    %c0_i32 = arith.constant 0 : i32
    %c0_i32_0 = arith.constant 0 : i32
    %c0_i32_1 = arith.constant 0 : i32
    %c0_i32_2 = arith.constant 0 : i32
    return %c0_i32, %c0_i32_0, %c0_i32_1 : i32, i32, i32
  }
  func.func @transform_5(%arg0: i32) -> (i32, i32) {
    %c0_i32 = arith.constant 0 : i32
    %c0_i32_0 = arith.constant 0 : i32
    %c0_i32_1 = arith.constant 0 : i32
    return %c0_i32, %c0_i32_0 : i32, i32
  }
  func.func @transform_6(%arg0: i32) -> (i32, i32) {
    %c0_i32 = arith.constant 0 : i32
    %c0_i32_0 = arith.constant 0 : i32
    %c0_i32_1 = arith.constant 0 : i32
    return %c0_i32, %c0_i32_0 : i32, i32
  }
  func.func @transform_7(%arg0: i32) -> (i32, i32, i32) {
    %c0_i32 = arith.constant 0 : i32
    %c0_i32_0 = arith.constant 0 : i32
    %c0_i32_1 = arith.constant 0 : i32
    %c0_i32_2 = arith.constant 0 : i32
    return %c0_i32, %c0_i32_0, %c0_i32_1 : i32, i32, i32
  }
  func.func @transform_8(%arg0: i32) -> (i32, i32) {
    %c0_i32 = arith.constant 0 : i32
    %c0_i32_0 = arith.constant 0 : i32
    %c0_i32_1 = arith.constant 0 : i32
    return %c0_i32, %c0_i32_0 : i32, i32
  }
  func.func @transform_9(%arg0: i32) -> (i32, i32) {
    %c0_i32 = arith.constant 0 : i32
    %c0_i32_0 = arith.constant 0 : i32
    %c0_i32_1 = arith.constant 0 : i32
    return %c0_i32, %c0_i32_0 : i32, i32
  }
  func.func @transform_10(%arg0: i32) -> (i32, i32) {
    %c0_i32 = arith.constant 0 : i32
    %c0_i32_0 = arith.constant 0 : i32
    %c0_i32_1 = arith.constant 0 : i32
    return %c0_i32, %c0_i32_0 : i32, i32
  }
  func.func @transform_11(%arg0: i32) -> (i32, i32) {
    %c0_i32 = arith.constant 0 : i32
    %c0_i32_0 = arith.constant 0 : i32
    %c0_i32_1 = arith.constant 0 : i32
    return %c0_i32, %c0_i32_0 : i32, i32
  }
  func.func @transform_12(%arg0: i32) -> (i32, i32, i32, i32) {
    %c0_i32 = arith.constant 0 : i32
    %c0_i32_0 = arith.constant 0 : i32
    %c0_i32_1 = arith.constant 0 : i32
    %c0_i32_2 = arith.constant 0 : i32
    return %arg0, %c0_i32, %c0_i32_0, %c0_i32_1 : i32, i32, i32, i32
  }
}

</mosaic_0001>

<bundles_post_ra>
// kernel: block35_forward_nhwc.1
= control target key start
LH: loop header
LB: loop body
LE: loop exit
PB: predicated region body
PF: predicated region fallthrough
CT: control target
= control target key end

     0   :  { %17 = vsyncpa [#allocation6], 0  ;;  %s13299_s0 = inlined_call_operand.vmem [shape: f32[2,8,8,320], index: 0, kind: input, shape index: {}]   ;;  %s13300_s1 = inlined_call_operand.vmem [shape: bf16[320,96], index: 1, kind: input, shape index: {}]   ;;  %s13301_s2 = inlined_call_operand.hbm [shape: f32[1,96], index: 2, kind: input, shape index: {}]   ;;  %s13302_s3 = inlined_call_operand.hbm [shape: f32[1,96], index: 3, kind: input, shape index: {}]   ;;  %s13303_s4 = inlined_call_operand.vmem [shape: bf16[9,64,80], index: 4, kind: input, shape index: {}]   ;;  %s13304_s5 = inlined_call_operand.hbm [shape: f32[1,80], index: 5, kind: input, shape index: {}]   ;;  %s13305_s6 = inlined_call_operand.hbm [shape: f32[1,80], index: 6, kind: input, shape index: {}]   ;;  %s13306_s7 = inlined_call_operand.hbm [shape: bf16[9,48,64], index: 7, kind: input, shape index: {}]   ;;  %s13307_s8 = inlined_call_operand.hbm [shape: f32[1,64], index: 8, kind: input, shape index: {}]   ;;  %s13308_s9 = inlined_call_operand.hbm [shape: f32[1,64], index: 9, kind: input, shape index: {}]   ;;  %s13309_s10 = inlined_call_operand.vmem [shape: bf16[128,320], index: 10, kind: input, shape index: {}]   ;;  %s13310_s11 = inlined_call_operand.hbm [shape: f32[1,320], index: 11, kind: input, shape index: {}]   ;;  %s13311_s12 = inlined_call_operand.hbm [shape: f32[2,8,8,320], index: 12, kind: output, shape index: {}]  }
   0x1   :  { %18 = vsyncpa [#allocation9], 0 }
   0x2   :  { %19 = vsyncpa [#allocation12], 0 }
   0x3   :  { %20 = vsyncpa [#allocation15], 0 }
   0x4   :  { %21 = vsyncpa [#allocation18], 0 }
   0x5   :  { %22 = vsyncpa [#allocation7], 0  ;;  %s9924_s21 = smov [#allocation8]   ;;  %s9925_s23 = smov [#allocation11]  }
   0x6   :  { %s43_s22 = sshll.u32 %s9924_s21, 4  ;;  %s65_s24 = sshll.u32 %s9925_s23, 4  ;;  %s44_s22 = int_to_ptr.vmem [resolvable:$true] %s43_s22  ;;  %s66_s24 = int_to_ptr.vmem [resolvable:$true] %s65_s24 }
   0x7   :  { %s9740_s25 = scalar_lea.vmem %s44_s22, 16  ;;  %s9744_s26 = scalar_lea.vmem %s44_s22, 32 }
   0x8   :  { %p9741_p0 = scmp.ne.s32.totalorder %s44_s22, %s9740_s25  ;;  %p9745_p1 = scmp.lt.s32.totalorder %s44_s22, %s44_s22 }
   0x9   :  { %p9746_p2 = scmp.lt.s32.totalorder %s9744_s26, %s9740_s25 }
   0xb   :  { %p9747_p3 = por %p9746_p2, %p9745_p1 }
   0xd   :  { %p9748_p4 = pnand %p9747_p3, %p9741_p0 }
   0xf   :  { %9751 = shalt.err (!%p9748_p4)
}
  0x10   :  { %46 = dma.hbm_to_vmem [thread:$0]  %s13302_s3, 16, %s44_s22, [#allocation9]  }
  0x11   :  { %s9760_s29 = scalar_lea.vmem %s66_s24, 16  ;;  %s9764_s30 = scalar_lea.vmem %s66_s24, 32 }
  0x12   :  { %p9761_p5 = scmp.ne.s32.totalorder %s66_s24, %s9760_s29  ;;  %p9765_p6 = scmp.lt.s32.totalorder %s66_s24, %s66_s24 }
  0x13   :  { %p9766_p7 = scmp.lt.s32.totalorder %s9764_s30, %s9760_s29 }
  0x15   :  { %p9767_p8 = por %p9766_p7, %p9765_p6 }
  0x17   :  { %p9768_p9 = pnand %p9767_p8, %p9761_p5 }
  0x19   :  { %9771 = shalt.err (!%p9768_p9)
}
  0x1a   :  { %68 = dma.hbm_to_vmem [thread:$0]  %s13305_s6, 16, %s66_s24, [#allocation12]  }
  0x1b   :  { %s9926_s15 = smov [#allocation14]   ;;  %s9927_s17 = smov [#allocation5]  }
  0x1c   :  { %s87_s16 = sshll.u32 %s9926_s15, 4  ;;  %s33_s18 = sshll.u32 %s9927_s17, 4  ;;  %s88_s16 = int_to_ptr.vmem [resolvable:$true] %s87_s16  ;;  %s34_s18 = int_to_ptr.vmem [resolvable:$true] %s33_s18 }
  0x1d   :  { %s9780_s19 = scalar_lea.vmem %s88_s16, 16  ;;  %s9784_s3 = scalar_lea.vmem %s88_s16, 32 }
  0x1e   :  { %p9781_p10 = scmp.ne.s32.totalorder %s88_s16, %s9780_s19  ;;  %p9785_p11 = scmp.lt.s32.totalorder %s88_s16, %s88_s16 }
  0x1f   :  { %p9786_p12 = scmp.lt.s32.totalorder %s9784_s3, %s9780_s19 }
  0x21   :  { %p9787_p13 = por %p9786_p12, %p9785_p11 }
  0x23   :  { %p9788_p0 = pnand %p9787_p13, %p9781_p10 }
  0x25   :  { %9791 = shalt.err (!%p9788_p0)
}
  0x26   :  { %90 = dma.hbm_to_vmem [thread:$0]  %s13307_s8, 16, %s88_s16, [#allocation15]  }
  0x27   :  { %s9800_s22 = scalar_lea.vmem %s34_s18, 16  ;;  %s9804_s6 = scalar_lea.vmem %s34_s18, 32 }
  0x28   :  { %p9801_p1 = scmp.ne.s32.totalorder %s34_s18, %s9800_s22  ;;  %p9805_p2 = scmp.lt.s32.totalorder %s34_s18, %s34_s18 }
  0x29   :  { %p9806_p3 = scmp.lt.s32.totalorder %s9804_s6, %s9800_s22 }
  0x2b   :  { %p9807_p4 = por %p9806_p3, %p9805_p2 }
  0x2d   :  { %p9808_p5 = pnand %p9807_p4, %p9801_p1 }
  0x2f   :  { %9811 = shalt.err (!%p9808_p5)
}
  0x30   :  { %36 = dma.hbm_to_vmem [thread:$0]  %s13301_s2, 16, %s34_s18, [#allocation6]  }
  0x31   :  { %s9928_s25 = smov [#allocation10]   ;;  %s9929_s27 = smov [#allocation13]  }
  0x32   :  { %s55_s26 = sshll.u32 %s9928_s25, 4  ;;  %s74_s28 = sshll.u32 %s9929_s27, 4  ;;  %s56_s26 = int_to_ptr.vmem [resolvable:$true] %s55_s26  ;;  %s75_s28 = int_to_ptr.vmem [resolvable:$true] %s74_s28 }
  0x33   :  { %s9820_s29 = scalar_lea.vmem %s56_s26, 16  ;;  %s9824_s8 = scalar_lea.vmem %s56_s26, 32 }
  0x34   :  { %p9821_p6 = scmp.ne.s32.totalorder %s56_s26, %s9820_s29  ;;  %p9825_p7 = scmp.lt.s32.totalorder %s56_s26, %s56_s26 }
  0x35   :  { %p9826_p8 = scmp.lt.s32.totalorder %s9824_s8, %s9820_s29 }
  0x37   :  { %p9827_p9 = por %p9826_p8, %p9825_p7 }
  0x39   :  { %p9828_p10 = pnand %p9827_p9, %p9821_p6 }
  0x3b   :  { %9831 = shalt.err (!%p9828_p10)
}
  0x3c   :  { %58 = dma.hbm_to_vmem [thread:$0]  %s13304_s5, 16, %s56_s26, [#allocation9]  }
  0x3d   :  { %s9840_s14 = scalar_lea.vmem %s75_s28, 3456  ;;  %p9845_p12 = scmp.lt.s32.totalorder %s75_s28, %s75_s28 }
  0x3e   :  { %p9841_p11 = scmp.ne.s32.totalorder %s75_s28, %s9840_s14  ;;  %p9846_p13 = scmp.lt.s32.totalorder %s9840_s14, %s9840_s14 }
  0x40   :  { %p9847_p0 = por %p9846_p13, %p9845_p12 }
  0x42   :  { %p9848_p1 = pnand %p9847_p0, %p9841_p11 }
  0x44   :  { %9851 = shalt.err (!%p9848_p1)
}
  0x45   :  { %s9930_s2 = smov 64   ;;  %s9931_s15 = smov 4  }
  0x46   :  { %80 = dma.hbm_to_vmem [thread:$0]  %s13306_s7, 3456, %s75_s28, [#allocation12], %s9930_s2, %s9930_s2, %s9931_s15  }
  0x47   :  { %s9932_s18 = smov [#allocation16]   ;;  %s9933_s3 = smov [#allocation17]  }
  0x48   :  { %s97_s19 = sshll.u32 %s9932_s18, 4  ;;  %s109_s20 = sshll.u32 %s9933_s3, 4  ;;  %s98_s19 = int_to_ptr.vmem [resolvable:$true] %s97_s19  ;;  %s110_s20 = int_to_ptr.vmem [resolvable:$true] %s109_s20 }
  0x49   :  { %s9860_s5 = scalar_lea.vmem %s98_s19, 16  ;;  %s9864_s21 = scalar_lea.vmem %s98_s19, 32 }
  0x4a   :  { %p9861_p2 = scmp.ne.s32.totalorder %s98_s19, %s9860_s5  ;;  %p9865_p3 = scmp.lt.s32.totalorder %s98_s19, %s98_s19 }
  0x4b   :  { %p9866_p4 = scmp.lt.s32.totalorder %s9864_s21, %s9860_s5 }
  0x4d   :  { %p9867_p5 = por %p9866_p4, %p9865_p3 }
  0x4f   :  { %p9868_p6 = pnand %p9867_p5, %p9861_p2 }
  0x51   :  { %9871 = shalt.err (!%p9868_p6)
}
  0x52   :  { %100 = dma.hbm_to_vmem [thread:$0]  %s13308_s9, 16, %s98_s19, [#allocation15]  }
  0x53   :  { %s9880_s23 = scalar_lea.vmem %s110_s20, 48  ;;  %s9884_s7 = scalar_lea.vmem %s110_s20, 64 }
  0x54   :  { %p9881_p7 = scmp.ne.s32.totalorder %s110_s20, %s9880_s23  ;;  %p9885_p8 = scmp.lt.s32.totalorder %s110_s20, %s110_s20 }
  0x55   :  { %p9886_p9 = scmp.lt.s32.totalorder %s9884_s7, %s9880_s23 }
  0x57   :  { %p9887_p10 = por %p9886_p9, %p9885_p8 }
  0x59   :  { %p9888_p11 = pnand %p9887_p10, %p9881_p7 }
  0x5b   :  { %9891 = shalt.err (!%p9888_p11)
}
  0x5c   :  { %112 = dma.hbm_to_vmem [thread:$0]  %s13310_s11, 48, %s110_s20, [#allocation18]  }
  0x5d   :  { %9912 = dma.done.wait [#allocation6], 16  }
  0x5e   :  { %9913 = vsyncadd [#allocation6], 4294967280 }
  0x5f   :  { %9914 = dma.done.wait [#allocation9], 32  }
  0x60   :  { %9915 = vsyncadd [#allocation9], 4294967264 }
  0x61   :  { %9916 = dma.done.wait [#allocation12], 3472  }
  0x62   :  { %9917 = vsyncadd [#allocation12], 4294963824 }
  0x63   :  { %9918 = dma.done.wait [#allocation15], 32  }
  0x64   :  { %9919 = vsyncadd [#allocation15], 4294967264 }
  0x65   :  { %9920 = dma.done.wait [#allocation18], 48  }
  0x66   :  { %9921 = vsyncadd [#allocation18], 4294967248  ;;  %v9557_v0 = vld [vmem:[%s13300_s1 + $0x78] sm:$0xff]   ;;  %v9559_v2 = vld [vmem:[%s13300_s1 + $0x70] sm:$0xff]   ;;  %vm454_vm0 = vcmask 523264   ;;  %vm210_vm1 = vcmask 519168  }
  0x67   :  { %v9558_v1 = vld [vmem:[%s13300_s1 + $0x38] sm:$0xff]   ;;  %8773 = vmatprep.subr.bf16.mxu0 %v9557_v0  ;;  %v9560_v3 = vld [vmem:[%s13300_s1 + $0x30] sm:$0xff]   ;;  %v9561_v4 = vld [vmem:[%s13300_s1 + $0x68] sm:$0xff]   ;;  %vm212_vm2 = vcmask 516096   ;;  %vm1757_vm3 = vcmask 1042432   ;;  %vm1758_vm4 = vcmask 1046532  }
  0x68   :  { %8774 = vmatpush3.bf16.msra.mxu0 %v9558_v1  ;;  %v9562_v5 = vld [vmem:[%s13300_s1 + $0x28] sm:$0xff]   ;;  %v9563_v6 = vld [vmem:[%s13300_s1 + $0x60] sm:$0xff]   ;;  %v9567_v7 = vld [vmem:[%s13300_s1 + $0x98] sm:$0xff]   ;;  %vm978_vm5 = vsmask.f32 7938  ;;  %vm799_vm13 = vcmask 781824  }
  0x69   :  { %8775 = vmatprep.subr.bf16.mxu0 %v9559_v2  ;;  %v9564_v8 = vld [vmem:[%s13300_s1 + $0x20] sm:$0xff]   ;;  %v9565_v9 = vld [vmem:[%s13300_s1 + $0x58] sm:$0xff]   ;;  %9072 = vmatprep.subr.bf16.mxu1 %v9567_v7  ;;  %v9570_v10 = vld [vmem:[%s13300_s1 + $0x90] sm:$0xff]   ;;  %vm984_vm7 = vsmask.f32 256  ;;  %vm252_vm14 = vcmask 388096  }
  0x6a   :  { %9073 = vmatpush3.bf16.msra.mxu1 %v9567_v7  ;;  %v9566_v11 = vld [vmem:[%s13300_s1 + $0x18] sm:$0xff]   ;;  %v9568_v12 = vld [vmem:[%s13300_s1 + $0x50] sm:$0xff]   ;;  %v9573_v13 = vld [vmem:[%s13300_s1 + $0x88] sm:$0xff]   ;;  %vm1119_vm8 = vsmask.f32 3328  ;;  %vm254_vm15 = vcmask 385024  }
  0x6b   :  { %9074 = vmatprep.subr.bf16.mxu1 %v9570_v10  ;;  %v9569_v14 = vld [vmem:[%s13300_s1 + $0x10] sm:$0xff]   ;;  %v9576_v15 = vld [vmem:[%s13300_s1 + $0x80] sm:$0xff]   ;;  %v9571_v16 = vld [vmem:[%s13300_s1 + $0x48] sm:$0xff]   ;;  %vm1120_vm9 = vsmask.f32 7440  ;;  %s9936_s22 = smov [#allocation19]  }
  0x6c   :  { %8776 = vmatpush3.bf16.msra.mxu0 %v9560_v3  ;;  %v139_v17 = vld [vmem:[%s13299_s0 + $0x8] sm:$0xff]  ;;  %v142_v18 = vld [vmem:[%s13299_s0 + $0x20] sm:$0xff]  ;;  %v140_v20 = vld [vmem:[%s13299_s0 + $0x10] sm:$0xff]  ;;  %s8084_s6 = sshll.u32 %s9936_s22, 4  ;;  %s8085_s6 = int_to_ptr.vmem [resolvable:$true] %s8084_s6 }
  0x6d   :  { %8777 = vmatprep.subr.bf16.mxu0 %v9561_v4  ;;  %v187_v19 = vpack.c.bf16 %v142_v18, %v139_v17  ;;  %v143_v21 = vld [vmem:[%s13299_s0 + $0x28] sm:$0xff]  ;;  %v146_v23 = vld [vmem:[%s13299_s0 + $0x40] sm:$0xff]  ;;  %v149_v24 = vld [vmem:[%s13299_s0 + $0x58] sm:$0xff]  ;;  %s9892_s23 = scalar_lea.vmem %s8085_s6, 6144  ;;  %p9897_p13 = scmp.lt.s32.totalorder %s8085_s6, %s8085_s6 }
  0x6e   :  { %9075 = vmatpush3.bf16.msra.mxu1 %v9570_v10  ;;  %v188_v22 = vpack.c.bf16 %v143_v21, %v140_v20  ;;  %v9572_v25 = vld [vmem:[%s13300_s1 + $0x8] sm:$0xff]   ;;  %v9574_v26 = vld [vmem:[%s13300_s1 + $0x40] sm:$0xff]   ;;  %v191_v27 = vpack.c.bf16 %v149_v24, %v146_v23  ;;  %v152_v28 = vld [vmem:[%s13299_s0 + $0x70] sm:$0xff]  ;;  %p9893_p12 = scmp.ne.s32.totalorder %s8085_s6, %s9892_s23  ;;  %p9898_p0 = scmp.lt.s32.totalorder %s9892_s23, %s9892_s23 }
  0x6f   :  { %9076 = vmatprep.subr.bf16.mxu1 %v9573_v13  ;;  %511 = vmatprep.mubr.bf16.mxu0 %v187_v19  ;;  %v155_v29 = vld [vmem:[%s13299_s0 + $0x88] sm:$0xff]  ;;  %v9575_v31 = vld [vmem:[%s13300_s1] sm:$0xff]   ;;  %v141_v33 = vld [vmem:[%s13299_s0 + $0x18] sm:$0xff] }
  0x70   :  { %8778 = vmatpush3.bf16.msra.mxu0 %v9562_v5  ;;  %9080 = vmatprep.mubr.msk.bf16.mxu1 %vm454_vm0, %v188_v22  ;;  %v194_v30 = vpack.c.bf16 %v155_v29, %v152_v28  ;;  %v138_v32 = vld [vmem:[%s13299_s0] sm:$0xff]  ;;  %v145_v34 = vld [vmem:[%s13299_s0 + $0x38] sm:$0xff]  ;;  %v148_v35 = vld [vmem:[%s13299_s0 + $0x50] sm:$0xff]  ;;  %v13312_v28 = vmov 0   ;;  %p9899_p1 = por %p9898_p0, %p9897_p13 }
  0x71   :  { %8779 = vmatprep.subr.bf16.mxu0 %v9563_v6  ;;  %v158_v36 = vld [vmem:[%s13299_s0 + $0xa0] sm:$0xff]  ;;  %v161_v37 = vld [vmem:[%s13299_s0 + $0xb8] sm:$0xff]  ;;  %v186_v38 = vpack.c.bf16 %v141_v33, %v138_v32  ;;  %v164_v39 = vld [vmem:[%s13299_s0 + $0xd0] sm:$0xff]  ;;  %v190_v41 = vpack.c.bf16 %v148_v35, %v145_v34  ;;  %214 = vst.msk [vmem:[#allocation2 + $0x8] sm:$0xf] %vm210_vm1, %v13312_v28 }
  0x72   :  { %9077 = vmatpush3.bf16.msra.mxu1 %v9573_v13  ;;  %v167_v40 = vld [vmem:[%s13299_s0 + $0xe8] sm:$0xff]  ;;  %v197_v42 = vpack.c.bf16 %v161_v37, %v158_v36  ;;  %v144_v44 = vld [vmem:[%s13299_s0 + $0x30] sm:$0xff]  ;;  %v154_v47 = vld [vmem:[%s13299_s0 + $0x80] sm:$0xff]  ;;  %215 = vst.msk [vmem:[#allocation2 + $0xc] sm:$0x1] %vm212_vm2, %v13312_v28  ;;  %p9900_p2 = pnand %p9899_p1, %p9893_p12 }
  0x73   :  { %9078 = vmatprep.subr.bf16.mxu1 %v9576_v15  ;;  %v200_v43 = vpack.c.bf16 %v167_v40, %v164_v39  ;;  %v147_v45 = vld [vmem:[%s13299_s0 + $0x48] sm:$0xff]  ;;  %v170_v48 = vld [vmem:[%s13299_s0 + $0x100] sm:$0xff]  ;;  %v173_v49 = vld [vmem:[%s13299_s0 + $0x118] sm:$0xff]  ;;  %211 = vst.msk [vmem:[#allocation2] sm:$0xf] %vm210_vm1, %v13312_v28 }
  0x74   :  { %8780 = vmatpush3.bf16.msra.mxu0 %v9564_v8  ;;  %v151_v46 = vld [vmem:[%s13299_s0 + $0x68] sm:$0xff]  ;;  %v176_v50 = vld [vmem:[%s13299_s0 + $0x130] sm:$0xff]  ;;  %v189_v52 = vpack.c.bf16 %v147_v45, %v144_v44  ;;  %v203_v54 = vpack.c.bf16 %v173_v49, %v170_v48  ;;  %v150_v55 = vld [vmem:[%s13299_s0 + $0x60] sm:$0xff]  ;;  %213 = vst.msk [vmem:[#allocation2 + $0x4] sm:$0x1] %vm212_vm2, %v13312_v28 }
  0x75   :  { %8781 = vmatprep.subr.bf16.mxu0 %v9565_v9  ;;  %v179_v51 = vld [vmem:[%s13299_s0 + $0x148] sm:$0xff]  ;;  %v193_v53 = vpack.c.bf16 %v154_v47, %v151_v46  ;;  %v153_v56 = vld [vmem:[%s13299_s0 + $0x78] sm:$0xff]  ;;  %v160_v59 = vld [vmem:[%s13299_s0 + $0xb0] sm:$0xff]  ;;  %216 = vst.msk [vmem:[#allocation2 + $0x10] sm:$0xf] %vm210_vm1, %v13312_v28 }
  0x76   :  { %9079 = vmatpush3.bf16.msra.mxu1 %v9576_v15  ;;  %v206_v57 = vpack.c.bf16 %v179_v51, %v176_v50  ;;  %v157_v58 = vld [vmem:[%s13299_s0 + $0x98] sm:$0xff]  ;;  %v182_v60 = vld [vmem:[%s13299_s0 + $0x160] sm:$0xff]  ;;  %v192_v62 = vpack.c.bf16 %v153_v56, %v150_v55  ;;  %v156_v1 = vld [vmem:[%s13299_s0 + $0x90] sm:$0xff]  ;;  %217 = vst.msk [vmem:[#allocation2 + $0x14] sm:$0x1] %vm212_vm2, %v13312_v28 }
  0x77   :  { %v185_v61 = vld [vmem:[%s13299_s0 + $0x178] sm:$0xff]  ;;  %v196_v63 = vpack.c.bf16 %v160_v59, %v157_v58  ;;  %v159_v2 = vld [vmem:[%s13299_s0 + $0xa8] sm:$0xff]  ;;  %v166_v4 = vld [vmem:[%s13299_s0 + $0xe0] sm:$0xff]  ;;  %218 = vst.msk [vmem:[#allocation2 + $0x18] sm:$0xf] %vm210_vm1, %v13312_v28 }
  0x78   :  { %8782 = vmatpush3.bf16.msra.mxu0 %v9566_v11  ;;  %v209_v0 = vpack.c.bf16 %v185_v61, %v182_v60  ;;  %v163_v3 = vld [vmem:[%s13299_s0 + $0xc8] sm:$0xff]  ;;  %v195_v5 = vpack.c.bf16 %v159_v2, %v156_v1  ;;  %v162_v7 = vld [vmem:[%s13299_s0 + $0xc0] sm:$0xff]  ;;  %v165_v8 = vld [vmem:[%s13299_s0 + $0xd8] sm:$0xff]  ;;  %219 = vst.msk [vmem:[#allocation2 + $0x1c] sm:$0x1] %vm212_vm2, %v13312_v28 }
  0x79   :  { %8783 = vmatprep.subr.bf16.mxu0 %v9568_v12  ;;  %9081 = vmatmul.mubr.msk.bf16.vlgmr.msra.gmra.mxu1 %vm454_vm0, %v191_v27  ;;  %v199_v6 = vpack.c.bf16 %v166_v4, %v163_v3  ;;  %v169_v9 = vld [vmem:[%s13299_s0 + $0xf8] sm:$0xff]  ;;  %v172_v10 = vld [vmem:[%s13299_s0 + $0x110] sm:$0xff]  ;;  %v198_v11 = vpack.c.bf16 %v165_v8, %v162_v7  ;;  %v175_v15 = vld [vmem:[%s13299_s0 + $0x128] sm:$0xff]  ;;  %220 = vst.msk [vmem:[#allocation2 + $0x20] sm:$0xf] %vm210_vm1, %v13312_v28 }
  0x7a   :  { %9084 = vmatprep.mubr.msk.bf16.mxu1 %vm454_vm0, %v194_v30  ;;  %v202_v12 = vpack.c.bf16 %v172_v10, %v169_v9  ;;  %v168_v13 = vld [vmem:[%s13299_s0 + $0xf0] sm:$0xff]  ;;  %v174_v19 = vld [vmem:[%s13299_s0 + $0x120] sm:$0xff]  ;;  %v177_v20 = vld [vmem:[%s13299_s0 + $0x138] sm:$0xff]  ;;  %221 = vst.msk [vmem:[#allocation2 + $0x24] sm:$0x1] %vm212_vm2, %v13312_v28 }
  0x7b   :  { %v181_v21 = vld [vmem:[%s13299_s0 + $0x158] sm:$0xff]  ;;  %v184_v22 = vld [vmem:[%s13299_s0 + $0x170] sm:$0xff]  ;;  %v204_v23 = vpack.c.bf16 %v177_v20, %v174_v19  ;;  %222 = vst.msk [vmem:[#allocation2 + $0x28] sm:$0xf] %vm210_vm1, %v13312_v28  ;;  %224 = vst.msk [vmem:[#allocation2 + $0x30] sm:$0xf] %vm210_vm1, %v13312_v28 }
  0x7c   :  { %8784 = vmatpush3.bf16.msra.mxu0 %v9569_v14  ;;  %v171_v14 = vld [vmem:[%s13299_s0 + $0x108] sm:$0xff]  ;;  %v208_v24 = vpack.c.bf16 %v184_v22, %v181_v21  ;;  %223 = vst.msk [vmem:[#allocation2 + $0x2c] sm:$0x1] %vm212_vm2, %v13312_v28  ;;  %225 = vst.msk [vmem:[#allocation2 + $0x34] sm:$0x1] %vm212_vm2, %v13312_v28  ;;  %v9577_v29 = vld [vmem:[%s13303_s4 + $0x58] sm:$0xff]  }
  0x7d   :  { %8785 = vmatprep.subr.bf16.mxu0 %v9571_v16  ;;  %v178_v16 = vld [vmem:[%s13299_s0 + $0x140] sm:$0xff]  ;;  %v201_v17 = vpack.c.bf16 %v171_v14, %v168_v13  ;;  %226 = vst.msk [vmem:[#allocation2 + $0x38] sm:$0xf] %vm210_vm1, %v13312_v28  ;;  %228 = vst.msk [vmem:[#allocation2 + $0x40] sm:$0xf] %vm210_vm1, %v13312_v28  ;;  %v9578_v30 = vld [vmem:[%s13303_s4 + $0x50] sm:$0xff]  }
  0x7e   :  { %v205_v18 = vpack.c.bf16 %v178_v16, %v175_v15  ;;  %227 = vst.msk [vmem:[#allocation2 + $0x3c] sm:$0x1] %vm212_vm2, %v13312_v28  ;;  %229 = vst.msk [vmem:[#allocation2 + $0x44] sm:$0x1] %vm212_vm2, %v13312_v28  ;;  %v9580_v32 = vld [vmem:[%s13303_s4 + $0x48] sm:$0xff]   ;;  %v9581_v33 = vld [vmem:[%s13303_s4 + $0x30] sm:$0xff]  }
  0x7f   :  { %230 = vst.msk [vmem:[#allocation2 + $0x48] sm:$0xf] %vm210_vm1, %v13312_v28  ;;  %232 = vst.msk [vmem:[#allocation2 + $0x50] sm:$0xf] %vm210_vm1, %v13312_v28  ;;  %v9582_v34 = vld [vmem:[%s13303_s4 + $0x40] sm:$0xff]   ;;  %v9583_v35 = vld [vmem:[%s13303_s4 + $0x28] sm:$0xff]  }
  0x80   :  { %8786 = vmatpush3.bf16.msra.mxu0 %v9572_v25  ;;  %v180_v25 = vld [vmem:[%s13299_s0 + $0x150] sm:$0xff]  ;;  %231 = vst.msk [vmem:[#allocation2 + $0x4c] sm:$0x1] %vm212_vm2, %v13312_v28  ;;  %233 = vst.msk [vmem:[#allocation2 + $0x54] sm:$0x1] %vm212_vm2, %v13312_v28  ;;  %v9584_v36 = vld [vmem:[%s13303_s4 + $0x20] sm:$0xff]  }
  0x81   :  { %8787 = vmatprep.subr.bf16.mxu0 %v9574_v26  ;;  %9085 = vmatmul.mubr.msk.bf16.gmra.mxu1 %vm454_vm0, %v197_v42  ;;  %v183_v26 = vld [vmem:[%s13299_s0 + $0x168] sm:$0xff]  ;;  %234 = vst.msk [vmem:[#allocation2 + $0x58] sm:$0xf] %vm210_vm1, %v13312_v28  ;;  %236 = vst.msk [vmem:[#allocation2 + $0x60] sm:$0xf] %vm210_vm1, %v13312_v28  ;;  %v10347_v37 = vld [vmem:[%s13303_s4 + $0x18] sm:$0xff]  }
  0x82   :  { %9088 = vmatprep.mubr.msk.bf16.mxu1 %vm454_vm0, %v200_v43  ;;  %v207_v27 = vpack.c.bf16 %v183_v26, %v180_v25  ;;  %235 = vst.msk [vmem:[#allocation2 + $0x5c] sm:$0x1] %vm212_vm2, %v13312_v28  ;;  %237 = vst.msk [vmem:[#allocation2 + $0x64] sm:$0x1] %vm212_vm2, %v13312_v28  ;;  %v1079_v45 = vld [vmem:[#allocation2] sm:$0xf] }
  0x83   :  { %238 = vst.msk [vmem:[#allocation2 + $0x68] sm:$0xf] %vm210_vm1, %v13312_v28  ;;  %240 = vst.msk [vmem:[#allocation2 + $0x70] sm:$0xf] %vm210_vm1, %v13312_v28  ;;  %v10356_v47 = vld [vmem:[#allocation5] ss:$0 sm:$0xff] }
  0x84   :  { %8788 = vmatpush3.bf16.msra.mxu0 %v9575_v31  ;;  %239 = vst.msk [vmem:[#allocation2 + $0x6c] sm:$0x1] %vm212_vm2, %v13312_v28  ;;  %241 = vst.msk [vmem:[#allocation2 + $0x74] sm:$0x1] %vm212_vm2, %v13312_v28  ;;  %v9579_v31 = vld [vmem:[%s13303_s4 + $0x38] sm:$0xff]  }
  0x85   :  { %242 = vst.msk [vmem:[#allocation2 + $0x78] sm:$0xf] %vm210_vm1, %v13312_v28  ;;  %244 = vst.msk [vmem:[#allocation2 + $0x80] sm:$0xf] %vm210_vm1, %v13312_v28  ;;  %9144 = vmatprep.subr.bf16.mxu0 %v9577_v29  ;;  %9096 = vmatprep.subr.bf16.mxu1 %v9579_v31  ;;  %v10358_v49 = vld [vmem:[#allocation8] ss:$0 sm:$0xff] }
  0x86   :  { %243 = vst.msk [vmem:[#allocation2 + $0x7c] sm:$0x1] %vm212_vm2, %v13312_v28  ;;  %245 = vst.msk [vmem:[#allocation2 + $0x84] sm:$0x1] %vm212_vm2, %v13312_v28  ;;  %9097 = vmatpush3.bf16.msra.mxu1 %v9579_v31  ;;  %v1103_v59 = vld [vmem:[#allocation2 + $0x4] sm:$0x1] }
  0x87   :  { %512 = vmatmul.mubr.bf16.vlgmr.msra.gmra.mxu0 %v186_v38  ;;  %246 = vst.msk [vmem:[#allocation2 + $0x88] sm:$0xf] %vm210_vm1, %v13312_v28  ;;  %248 = vst.msk [vmem:[#allocation2 + $0x90] sm:$0xf] %vm210_vm1, %v13312_v28  ;;  %9098 = vmatprep.subr.bf16.mxu1 %v9581_v33  ;;  %v10353_v38 = vld [vmem:[%s13303_s4 + $0x98] sm:$0xff]   ;;  %v1762_v7 = vrot.slane %v1103_v59, 5 }
  0x88   :  { %519 = vmatprep.mubr.bf16.mxu0 %v190_v41  ;;  %247 = vst.msk [vmem:[#allocation2 + $0x8c] sm:$0x1] %vm212_vm2, %v13312_v28  ;;  %249 = vst.msk [vmem:[#allocation2 + $0x94] sm:$0x1] %vm212_vm2, %v13312_v28  ;;  %9145 = vmatpush3.bf16.msra.mxu0 %v9577_v29  ;;  %v1709_v60 = vld [vmem:[#allocation2] sm:$0xe] }
  0x89   :  { %9089 = vmatmul.mubr.msk.bf16.gmra.mxu1 %vm454_vm0, %v203_v54  ;;  %250 = vst.msk [vmem:[#allocation2 + $0x98] sm:$0xf] %vm210_vm1, %v13312_v28  ;;  %9146 = vmatprep.subr.bf16.mxu0 %v9578_v30  ;;  %v1087_v4 = vld [vmem:[#allocation2 + $0x50] sm:$0xf]  ;;  %vm10369_vm6 = vmor %vm1757_vm3, %vm1758_vm4  ;;  %v1132_v15 = vshll.u32 %v1103_v59, 16  ;;  %vm4730_vm4 = vcmask 392192  }
  0x8a   :  { %9092 = vmatprep.mubr.msk.bf16.mxu1 %vm454_vm0, %v206_v57  ;;  %251 = vst.msk [vmem:[#allocation2 + $0x9c] sm:$0x1] %vm212_vm2, %v13312_v28  ;;  %9099 = vmatpush3.bf16.msra.mxu1 %v9581_v33  ;;  %v1235_v16 = vshrl.u32 %v1087_v4, 16  ;;  %v1238_v20 = vshll.u32 %v1087_v4, 16  ;;  %vm10382_vm10 = vmand %vm210_vm1, %vm978_vm5  ;;  %v1717_v31 = vld [vmem:[#allocation2 + $0x50] sm:$0xe] }
  0x8b   :  { %9100 = vmatprep.subr.bf16.mxu1 %v9583_v35  ;;  %vm10391_vm11 = vmand %vm212_vm2, %vm984_vm7  ;;  %v986_v33 = vld [vmem:[#allocation2 + $0xc] sm:$0x1]  ;;  %v992_v59 = vld [vmem:[#allocation2 + $0x14] sm:$0x1] }
  0x8c   :  { %9147 = vmatpush3.bf16.msra.mxu0 %v9578_v30  ;;  %vm10413_vm12 = vmor %vm1119_vm8, %vm1120_vm9 }
  0x8d   :  { %9148 = vmatprep.subr.bf16.mxu0 %v9580_v32  ;;  %vm11813_vm2 = vmand %vm252_vm14, %vm978_vm5  ;;  %vm4141_vm5 = vcmask 1044224  }
  0x8e   :  { %9101 = vmatpush3.bf16.msra.mxu1 %v9583_v35  ;;  %vm11822_vm3 = vmand %vm254_vm15, %vm984_vm7 }
  0x8f   :  { %520 = vmatmul.mubr.bf16.gmra.mxu0 %v189_v52  ;;  %9102 = vmatprep.subr.bf16.mxu1 %v9584_v36  ;;  %v1123_v52 = vshrl.u32 %v1079_v45, 16 }
  0x90   :  { %527 = vmatprep.mubr.bf16.mxu0 %v193_v53  ;;  %9149 = vmatpush3.bf16.msra.mxu0 %v9580_v32  ;;  %v1126_v53 = vshll.u32 %v1079_v45, 16 }
  0x91   :  { %9093 = vmatmul.mubr.msk.bf16.gmra.mxu1 %vm454_vm0, %v209_v0  ;;  %9150 = vmatprep.subr.bf16.mxu0 %v9582_v34 }
  0x92   :  { %9103 = vmatpush3.bf16.msra.mxu1 %v9584_v36  ;;  %v1128_v0 = vrot.slane %v1126_v53, 5 }
  0x93   :  { %9120 = vmatprep.subr.bf16.mxu1 %v10347_v37 }
  0x94   :  { %9151 = vmatpush3.bf16.msra.mxu0 %v9582_v34 }
  0x95   :  { %9192 = vmatprep.subr.bf16.mxu0 %v10353_v38 }
  0x97   :  { %528 = vmatmul.mubr.bf16.gmra.mxu0 %v192_v62 }
  0x98   :  { %535 = vmatprep.mubr.bf16.mxu0 %v196_v63  ;;  %v1125_v63 = vrot.slane %v1123_v52, 4 }
  0x9a   :  { %v1129_v14 = vor.u32 %v1128_v0, %v1125_v63 }
  0x9f   :  { %536 = vmatmul.mubr.bf16.gmra.mxu0 %v195_v5 }
  0xa0   :  { %543 = vmatprep.mubr.bf16.mxu0 %v199_v6  ;;  %v8194_v6 = vrot.slane %v1709_v60, 9 }
  0xa7   :  { %544 = vmatmul.mubr.bf16.gmra.mxu0 %v198_v11  ;;  %v13333_v11 = vmov 0 }
  0xa8   :  { %551 = vmatprep.mubr.bf16.mxu0 %v202_v12  ;;  %v13334_v11 = vsel %vm10369_vm6, 4294967295, %v13333_v11 }
  0xa9   :  { %13335 = vst [vmem:[#allocation26_spill] sm:$0xff] %v13334_v11 }
  0xaf   :  { %552 = vmatmul.mubr.bf16.gmra.mxu0 %v201_v17 }
  0xb0   :  { %559 = vmatprep.mubr.bf16.mxu0 %v205_v18 }
  0xb7   :  { %560 = vmatmul.mubr.bf16.gmra.mxu0 %v204_v23  ;;  %v10377_v23 = vsel %vm10369_vm6, %v8194_v6, %v1762_v7 }
  0xb8   :  { %567 = vmatprep.mubr.bf16.mxu0 %v208_v24 }
  0xbf   :  { %568 = vmatmul.mubr.bf16.gmra.mxu0 %v207_v27  ;;  %v980_v27 = vld [vmem:[#allocation2 + $0x8] sm:$0xf] }
 0x139   :  { %v9082_v39 = vpop.f32.mrf.mxu1 }
 0x13b   :  { %v610_v40 = vpop.f32.mrf.mxu1 }
 0x13d   :  { %v9083_v43 = vpop.f32.mrf.mxu1 }
 0x13f   :  { %v613_v51 = vpop.f32.mrf.mxu1 }
 0x141   :  { %v10362_v62 = vpop.f32.mrf.mxu1 }
 0x143   :  { %v626_v13 = vpop.f32.mrf.mxu1 }
 0x145   :  { %v10395_v36 = vpop.f32.mrf.mxu1 }
 0x147   :  { %v8789_v41 = vpop.f32.mrf.mxu0 }
 0x149   :  { %v8790_v42 = vpop.f32.mrf.mxu0 }
 0x14a   :  { %v8791_v44 = vadd.f32 %v8790_v42, %v8789_v41  ;;  %v1237_v41 = vrot.slane %v1235_v16, 4 }
 0x14b   :  { %v8792_v46 = vpop.f32.mrf.mxu0 }
 0x14c   :  { %v611_v48 = vadd.f32 %v8791_v44, %v610_v40  ;;  %v10399_v40 = vrot.slane %v1132_v15, 5 }
 0x14d   :  { %v8793_v50 = vpop.f32.mrf.mxu0 }
 0x14e   :  { %v680_v54 = vmul.f32 %v10356_v47, %v611_v48  ;;  %v8794_v55 = vadd.f32 %v8793_v50, %v8792_v46  ;;  %v1111_v46 = vld [vmem:[#allocation2 + $0x54] sm:$0x1]  ;;  %v1240_v48 = vrot.slane %v1238_v20, 5 }
 0x14f   :  { %v8795_v56 = vpop.f32.mrf.mxu0 }
 0x150   :  { %v703_v57 = vadd.f32 %v10358_v49, %v680_v54  ;;  %v614_v58 = vadd.f32 %v8794_v55, %v613_v51  ;;  %v1241_v7 = vor.u32 %v1240_v48, %v1237_v41 }
 0x151   :  { %v8796_v61 = vpop.f32.mrf.mxu0 }
 0x152   :  { %v719_v1 = vmax.f32 %v703_v57, 0.0  ;;  %v681_v2 = vmul.f32 %v10356_v47, %v614_v58  ;;  %v8797_v3 = vadd.f32 %v8796_v61, %v8795_v56  ;;  %v989_v58 = vld [vmem:[#allocation2 + $0x10] sm:$0xf] }
 0x153   :  { %v8798_v5 = vpop.f32.mrf.mxu0 }
 0x154   :  { %v10365_v8 = vpack.c.bf16 %v719_v1, %v719_v1  ;;  %v704_v9 = vadd.f32 %v10358_v49, %v681_v2  ;;  %v619_v10 = vadd.f32 %v9082_v39, %v8797_v3  ;;  %v10397_v39 = vrot.slane %v1129_v14, 4  ;;  %v629_v1 = vpop.f32.mrf.mxu1 }
 0x155   :  { %v8799_v12 = vpop.f32.mrf.mxu0  ;;  %v1794_v3 = vrot.slane %v1111_v46, 5  ;;  %v13433_v2 = vmov 0  }
 0x156   :  { %v817_v17 = vshrl.u32 %v10365_v8, 16  ;;  %v720_v18 = vmax.f32 %v704_v9, 0.0  ;;  %v682_v19 = vmul.f32 %v10356_v47, %v619_v10  ;;  %v8800_v21 = vadd.f32 %v8799_v12, %v8798_v5  ;;  %800 = vst.msk [vmem:[#allocation4] sm:$0xf] %vm799_vm13, %v10365_v8 }
 0x157   :  { %v8801_v22 = vpop.f32.mrf.mxu0  ;;  %v820_v25 = vshll.u32 %v10365_v8, 16 }
 0x158   :  { %v819_v24 = vrot.slane %v817_v17, 7  ;;  %v10386_v29 = vpack.c.bf16 %v720_v18, %v720_v18  ;;  %v705_v30 = vadd.f32 %v10358_v49, %v682_v19  ;;  %v622_v34 = vadd.f32 %v9083_v43, %v8800_v21 }
 0x159   :  { %v8802_v35 = vpop.f32.mrf.mxu0  ;;  %v8202_v43 = vrot.slane %v1717_v31, 9  ;;  %v1135_v18 = vsel %vm10413_vm12, %v10397_v39, %v10399_v40 }
 0x15a   :  { %v822_v42 = vor.u32 %v820_v25, %v819_v24  ;;  %v823_v44 = vrot.slane %v819_v24, 4  ;;  %v825_v45 = vshrl.u32 %v10386_v29, 16  ;;  %v721_v50 = vmax.f32 %v705_v30, 0.0  ;;  %v995_v25 = vld [vmem:[#allocation2 + $0x18] sm:$0xf] }
 0x15b   :  { %v683_v51 = vmul.f32 %v10356_v47, %v622_v34  ;;  %v8803_v52 = vadd.f32 %v8802_v35, %v8801_v22  ;;  %v8804_v53 = vpop.f32.mrf.mxu0  ;;  %v828_v57 = vshll.u32 %v10386_v29, 16  ;;  %v10436_v34 = vrot.slane %v1241_v7, 4  ;;  %801 = vst.msk [vmem:[#allocation4 + $0x4] sm:$0xf] %vm799_vm13, %v10386_v29 }
 0x15c   :  { %v981_v54 = vsel %vm10382_vm10, %v822_v42, %v980_v27  ;;  %v987_v55 = vsel %vm10391_vm11, %v823_v44, %v986_v33  ;;  %v827_v56 = vrot.slane %v825_v45, 7  ;;  %v10408_v60 = vpack.c.bf16 %v721_v50, %v721_v50  ;;  %v998_v27 = vld [vmem:[#allocation2 + $0x1c] sm:$0x1]  ;;  %v10439_v45 = vpop.f32.mrf.mxu1 }
 0x15d   :  { %982 = vst [vmem:[#allocation2 + $0x8] sm:$0xf] %v981_v54  ;;  %988 = vst [vmem:[#allocation2 + $0xc] sm:$0x1] %v987_v55  ;;  %v706_v61 = vadd.f32 %v10358_v49, %v683_v51  ;;  %v627_v63 = vadd.f32 %v8803_v52, %v626_v13  ;;  %v8805_v0 = vpop.f32.mrf.mxu0  ;;  %v1244_v13 = vshll.u32 %v1111_v46, 16  ;;  %v10434_v33 = vsel %vm10369_vm6, %v8202_v43, %v1794_v3 }
 0x15e   :  { %v830_v4 = vor.u32 %v828_v57, %v827_v56  ;;  %v831_v5 = vrot.slane %v827_v56, 4  ;;  %v8806_v6 = vadd.f32 %v8805_v0, %v8804_v53  ;;  %v833_v9 = vshrl.u32 %v10408_v60, 16  ;;  %v1001_v57 = vld [vmem:[#allocation2 + $0x20] sm:$0xf]  ;;  %802 = vst.msk [vmem:[#allocation4 + $0x8] sm:$0xf] %vm799_vm13, %v10408_v60 }
 0x15f   :  { %v722_v10 = vmax.f32 %v706_v61, 0.0  ;;  %v684_v12 = vmul.f32 %v10356_v47, %v627_v63  ;;  %v8807_v14 = vpop.f32.mrf.mxu0  ;;  %v836_v20 = vshll.u32 %v10408_v60, 16  ;;  %v10441_v46 = vrot.slane %v1244_v13, 5  ;;  %v1004_v63 = vld [vmem:[#allocation2 + $0x24] sm:$0x1] }
 0x160   :  { %v990_v15 = vsel %vm10382_vm10, %v830_v4, %v989_v58  ;;  %v993_v16 = vsel %vm10391_vm11, %v831_v5, %v992_v59  ;;  %v630_v17 = vadd.f32 %v8806_v6, %v629_v1  ;;  %v835_v19 = vrot.slane %v833_v9, 7  ;;  %v642_v9 = vpop.f32.mrf.mxu1 }
 0x161   :  { %991 = vst [vmem:[#allocation2 + $0x10] sm:$0xf] %v990_v15  ;;  %994 = vst [vmem:[#allocation2 + $0x14] sm:$0x1] %v993_v16  ;;  %v10428_v21 = vpack.c.bf16 %v722_v10, %v722_v10  ;;  %v707_v22 = vadd.f32 %v10358_v49, %v684_v12  ;;  %v8808_v24 = vpop.f32.mrf.mxu0 }
 0x162   :  { %v685_v30 = vmul.f32 %v10356_v47, %v630_v17  ;;  %v8809_v31 = vadd.f32 %v8808_v24, %v8807_v14  ;;  %v838_v35 = vor.u32 %v836_v20, %v835_v19  ;;  %v839_v41 = vrot.slane %v835_v19, 4  ;;  %v1007_v19 = vld [vmem:[#allocation2 + $0x28] sm:$0xf] }
 0x163   :  { %v841_v42 = vshrl.u32 %v10428_v21, 16  ;;  %v8810_v44 = vpop.f32.mrf.mxu0  ;;  %v844_v48 = vshll.u32 %v10428_v21, 16  ;;  %v723_v50 = vmax.f32 %v707_v22, 0.0  ;;  %803 = vst.msk [vmem:[#allocation4 + $0xc] sm:$0xf] %vm799_vm13, %v10428_v21 }
 0x164   :  { %v708_v51 = vadd.f32 %v10358_v49, %v685_v30  ;;  %v635_v52 = vadd.f32 %v10362_v62, %v8809_v31  ;;  %v10446_v53 = vld [vmem:[#allocation2 + $0xc] sm:$0x1]  ;;  %v1710_v43 = vld [vmem:[#allocation2 + $0x8] sm:$0xe]  ;;  %v996_v54 = vsel %vm10382_vm10, %v838_v35, %v995_v25  ;;  %v999_v55 = vsel %vm10391_vm11, %v839_v41, %v998_v27 }
 0x165   :  { %v843_v56 = vrot.slane %v841_v42, 7  ;;  %v8811_v58 = vpop.f32.mrf.mxu0  ;;  %v8195_v59 = vrot.slane %v1710_v43, 9  ;;  %v10452_v61 = vld [vmem:[#allocation2 + $0x8] sm:$0xf]  ;;  %997 = vst [vmem:[#allocation2 + $0x18] sm:$0xf] %v996_v54  ;;  %v10454_v0 = vpack.c.bf16 %v723_v50, %v723_v50 }
 0x166   :  { %1000 = vst [vmem:[#allocation2 + $0x1c] sm:$0x1] %v999_v55  ;;  %v724_v62 = vmax.f32 %v708_v51, 0.0  ;;  %v686_v1 = vmul.f32 %v10356_v47, %v635_v52  ;;  %v8812_v3 = vadd.f32 %v8811_v58, %v8810_v44  ;;  %v1766_v7 = vrot.slane %v10446_v53, 5  ;;  %v1010_v27 = vld [vmem:[#allocation2 + $0x2c] sm:$0x1] }
 0x167   :  { %v846_v4 = vor.u32 %v844_v48, %v843_v56  ;;  %v847_v5 = vrot.slane %v843_v56, 4  ;;  %v8813_v6 = vpop.f32.mrf.mxu0  ;;  %v1137_v10 = vshrl.u32 %v10452_v61, 16  ;;  %v849_v12 = vshrl.u32 %v10454_v0, 16  ;;  %v1013_v55 = vld [vmem:[#allocation2 + $0x30] sm:$0xf] }
 0x168   :  { %v852_v14 = vshll.u32 %v10454_v0, 16  ;;  %v10461_v13 = vpack.c.bf16 %v724_v62, %v724_v62  ;;  %v709_v15 = vadd.f32 %v10358_v49, %v686_v1  ;;  %v638_v20 = vadd.f32 %v10395_v36, %v8812_v3  ;;  %v10475_v36 = vpop.f32.mrf.mxu1  ;;  %v1016_v56 = vld [vmem:[#allocation2 + $0x34] sm:$0x1]  ;;  %804 = vst.msk [vmem:[#allocation4 + $0x10] sm:$0xf] %vm799_vm13, %v10454_v0 }
 0x169   :  { %v1002_v16 = vsel %vm10382_vm10, %v846_v4, %v1001_v57  ;;  %v1005_v17 = vsel %vm10391_vm11, %v847_v5, %v1004_v63  ;;  %v8814_v22 = vpop.f32.mrf.mxu0  ;;  %v1767_v24 = vsel %vm10369_vm6, %v8195_v59, %v1766_v7  ;;  %v851_v25 = vrot.slane %v849_v12, 7 }
 0x16a   :  { %1003 = vst [vmem:[#allocation2 + $0x20] sm:$0xf] %v1002_v16  ;;  %1006 = vst [vmem:[#allocation2 + $0x24] sm:$0x1] %v1005_v17  ;;  %v857_v30 = vshrl.u32 %v10461_v13, 16  ;;  %v860_v31 = vshll.u32 %v10461_v13, 16  ;;  %v687_v41 = vmul.f32 %v10356_v47, %v638_v20  ;;  %v8815_v42 = vadd.f32 %v8814_v22, %v8813_v6 }
 0x16b   :  { %v725_v35 = vmax.f32 %v709_v15, 0.0  ;;  %v8218_v44 = vcombine.low %v10377_v23, %v1767_v24  ;;  %v8816_v48 = vpop.f32.mrf.mxu0  ;;  %v1139_v50 = vrot.slane %v1137_v10, 4  ;;  %v854_v51 = vor.u32 %v852_v14, %v851_v25  ;;  %v645_v10 = vpop.f32.mrf.mxu1  ;;  %805 = vst.msk [vmem:[#allocation4 + $0x14] sm:$0xf] %vm799_vm13, %v10461_v13 }
 0x16c   :  { %v855_v52 = vrot.slane %v851_v25, 4  ;;  %v859_v43 = vrot.slane %v857_v30, 7  ;;  %v710_v57 = vadd.f32 %v10358_v49, %v687_v41  ;;  %v643_v58 = vadd.f32 %v8815_v42, %v642_v9  ;;  %v10497_v41 = vld [vmem:[#allocation2 + $0x14] sm:$0x1] }
 0x16d   :  { %v10477_v54 = vpack.c.bf16 %v725_v35, %v725_v35  ;;  %9152 = vmatprep.mubr.msk.bf16.mxu0 %vm454_vm0, %v8218_v44  ;;  %v8817_v59 = vpop.f32.mrf.mxu0  ;;  %v1140_v63 = vshll.u32 %v10452_v61, 16  ;;  %v1146_v23 = vshll.u32 %v10446_v53, 16  ;;  %v1008_v62 = vsel %vm10382_vm10, %v854_v51, %v1007_v19  ;;  %v1711_v53 = vld [vmem:[#allocation2 + $0x10] sm:$0xe]  ;;  %v1019_v19 = vld [vmem:[#allocation2 + $0x38] sm:$0xf] }
 0x16e   :  { %v1011_v1 = vsel %vm10391_vm11, %v855_v52, %v1010_v27  ;;  %v862_v3 = vor.u32 %v860_v31, %v859_v43  ;;  %v863_v4 = vrot.slane %v859_v43, 4  ;;  %1009 = vst [vmem:[#allocation2 + $0x28] sm:$0xf] %v1008_v62  ;;  %v726_v7 = vmax.f32 %v710_v57, 0.0  ;;  %v1022_v27 = vld [vmem:[#allocation2 + $0x3c] sm:$0x1] }
 0x16f   :  { %13342 = vst [vmem:[#allocation27_spill] sm:$0xff] %v10477_v54  ;;  %1012 = vst [vmem:[#allocation2 + $0x2c] sm:$0x1] %v1011_v1  ;;  %v865_v5 = vshrl.u32 %v10477_v54, 16  ;;  %v868_v6 = vshll.u32 %v10477_v54, 16  ;;  %v688_v9 = vmul.f32 %v10356_v47, %v643_v58  ;;  %v8819_v61 = vpop.f32.mrf.mxu0  ;;  %v8818_v15 = vadd.f32 %v8817_v59, %v8816_v48 }
 0x170   :  { %v1014_v12 = vsel %vm10382_vm10, %v862_v3, %v1013_v55  ;;  %v1017_v14 = vsel %vm10391_vm11, %v863_v4, %v1016_v56  ;;  %v1142_v16 = vrot.slane %v1140_v63, 5  ;;  %v10494_v20 = vpack.c.bf16 %v726_v7, %v726_v7  ;;  %v1028_v3 = vld [vmem:[#allocation2 + $0x44] sm:$0x1]  ;;  %v10514_v7 = vld [vmem:[#allocation2 + $0x1c] sm:$0x1] }
 0x171   :  { %1015 = vst [vmem:[#allocation2 + $0x30] sm:$0xf] %v1014_v12  ;;  %1018 = vst [vmem:[#allocation2 + $0x34] sm:$0x1] %v1017_v14  ;;  %v867_v17 = vrot.slane %v865_v5, 7  ;;  %v711_v22 = vadd.f32 %v10358_v49, %v688_v9  ;;  %v1148_v24 = vrot.slane %v1146_v23, 5  ;;  %v8820_v25 = vpop.f32.mrf.mxu0  ;;  %v646_v30 = vadd.f32 %v8818_v15, %v645_v10 }
 0x172   :  { %13343 = vst [vmem:[#allocation28_spill] sm:$0xff] %v10494_v20  ;;  %v1143_v31 = vor.u32 %v1142_v16, %v1139_v50  ;;  %v8821_v35 = vadd.f32 %v8820_v25, %v8819_v61  ;;  %v8196_v42 = vrot.slane %v1711_v53, 9  ;;  %v873_v51 = vshrl.u32 %v10494_v20, 16  ;;  %v1025_v23 = vld [vmem:[#allocation2 + $0x40] sm:$0xf] }
 0x173   :  { %v870_v44 = vor.u32 %v868_v6, %v867_v17  ;;  %v871_v48 = vrot.slane %v867_v17, 4  ;;  %v876_v52 = vshll.u32 %v10494_v20, 16  ;;  %v8822_v43 = vpop.f32.mrf.mxu0  ;;  %v727_v55 = vmax.f32 %v711_v22, 0.0  ;;  %v1712_v9 = vld [vmem:[#allocation2 + $0x18] sm:$0xe] }
 0x174   :  { %v689_v56 = vmul.f32 %v10356_v47, %v646_v30  ;;  %v1144_v57 = vrot.slane %v1143_v31, 4  ;;  %v651_v58 = vadd.f32 %v10439_v45, %v8821_v35  ;;  %v875_v63 = vrot.slane %v873_v51, 7  ;;  %v10528_v22 = vld [vmem:[#allocation2 + $0x10] sm:$0xf]  ;;  %v1034_v30 = vld [vmem:[#allocation2 + $0x5c] sm:$0x1] }
 0x175   :  { %v1020_v50 = vsel %vm10382_vm10, %v870_v44, %v1019_v19  ;;  %v1023_v59 = vsel %vm10391_vm11, %v871_v48, %v1022_v27  ;;  %v1770_v62 = vrot.slane %v10497_v41, 5  ;;  %v8823_v1 = vpop.f32.mrf.mxu0  ;;  %v10508_v4 = vpack.c.bf16 %v727_v55, %v727_v55  ;;  %v1031_v27 = vld [vmem:[#allocation2 + $0x58] sm:$0xf] }
 0x176   :  { %1021 = vst [vmem:[#allocation2 + $0x38] sm:$0xf] %v1020_v50  ;;  %1024 = vst [vmem:[#allocation2 + $0x3c] sm:$0x1] %v1023_v59  ;;  %v712_v5 = vadd.f32 %v10358_v49, %v689_v56  ;;  %v1149_v45 = vsel %vm10413_vm12, %v1144_v57, %v1148_v24  ;;  %v690_v6 = vmul.f32 %v10356_v47, %v651_v58  ;;  %v879_v10 = vrot.slane %v875_v63, 4  ;;  %v10545_v59 = vpop.f32.mrf.mxu1 }
 0x177   :  { %13344 = vst [vmem:[#allocation29_spill] sm:$0xff] %v10508_v4  ;;  %v878_v61 = vor.u32 %v876_v52, %v875_v63  ;;  %v8154_v53 = vcombine.low %v1135_v18, %v1149_v45  ;;  %v1771_v12 = vsel %vm10369_vm6, %v8196_v42, %v1770_v62  ;;  %v10523_v14 = vpop.f32.mrf.mxu0  ;;  %v881_v15 = vshrl.u32 %v10508_v4, 16  ;;  %v10550_v62 = vld [vmem:[#allocation2 + $0x18] sm:$0xf] }
 0x178   :  { %v884_v16 = vshll.u32 %v10508_v4, 16  ;;  %v728_v17 = vmax.f32 %v712_v5, 0.0  ;;  %v713_v19 = vadd.f32 %v10358_v49, %v690_v6  ;;  %v1029_v39 = vsel %vm10391_vm11, %v879_v10, %v1028_v3  ;;  %v1037_v6 = vld [vmem:[#allocation2 + $0x60] sm:$0xf] }
 0x179   :  { %v1026_v24 = vsel %vm10382_vm10, %v878_v61, %v1025_v23  ;;  %9104 = vmatprep.mubr.msk.bf16.mxu1 %vm454_vm0, %v8154_v53  ;;  %v8197_v40 = vrot.slane %v1712_v9, 9  ;;  %v1774_v18 = vrot.slane %v10514_v7, 5  ;;  %1030 = vst [vmem:[#allocation2 + $0x44] sm:$0x1] %v1029_v39  ;;  %v883_v25 = vrot.slane %v881_v15, 7  ;;  %v8826_v44 = vpop.f32.mrf.mxu0 }
 0x17a   :  { %1027 = vst [vmem:[#allocation2 + $0x40] sm:$0xf] %v1026_v24  ;;  %v10536_v31 = vpack.c.bf16 %v728_v17, %v728_v17  ;;  %v729_v35 = vmax.f32 %v713_v19, 0.0  ;;  %v8824_v42 = vadd.f32 %v8823_v1, %v8822_v43  ;;  %v1151_v51 = vshrl.u32 %v10528_v22, 16  ;;  %v1043_v19 = vld [vmem:[#allocation2 + $0x68] sm:$0xf] }
 0x17b   :  { %v1775_v48 = vsel %vm10369_vm6, %v8197_v40, %v1774_v18  ;;  %v1154_v52 = vshll.u32 %v10528_v22, 16  ;;  %v1160_v55 = vshll.u32 %v10497_v41, 16  ;;  %v886_v56 = vor.u32 %v884_v16, %v883_v25  ;;  %v9588_v41 = vld [vmem:[%s13303_s4 + $0x90] sm:$0xff]   ;;  %v8828_v61 = vpop.f32.mrf.mxu0  ;;  %v1046_v24 = vld [vmem:[#allocation2 + $0x6c] sm:$0x1]  ;;  %v658_v18 = vpop.f32.mrf.mxu1 }
 0x17c   :  { %13345 = vst [vmem:[#allocation30_spill] sm:$0xff] %v10536_v31  ;;  %v887_v57 = vrot.slane %v883_v25, 4  ;;  %v889_v58 = vshrl.u32 %v10536_v31, 16  ;;  %v892_v50 = vshll.u32 %v10536_v31, 16  ;;  %v10547_v63 = vpack.c.bf16 %v729_v35, %v729_v35 }
 0x17d   :  { %v8219_v43 = vcombine.low %v1771_v12, %v1775_v48  ;;  %v654_v23 = vadd.f32 %v10475_v36, %v8824_v42  ;;  %v1153_v1 = vrot.slane %v1151_v51, 4  ;;  %v1032_v3 = vsel %vm10382_vm10, %v886_v56, %v1031_v27  ;;  %v1040_v36 = vld [vmem:[#allocation2 + $0x64] sm:$0x1]  ;;  %v1713_v48 = vld [vmem:[#allocation2 + $0x20] sm:$0xe]  ;;  %v9590_v51 = vld [vmem:[%s13303_s4 + $0x88] sm:$0xff]  }
 0x17e   :  { %13346 = vst [vmem:[#allocation31_spill] sm:$0xff] %v10547_v63  ;;  %v1035_v5 = vsel %vm10391_vm11, %v887_v57, %v1034_v30  ;;  %v891_v45 = vrot.slane %v889_v58, 7  ;;  %v1156_v9 = vrot.slane %v1154_v52, 5  ;;  %1033 = vst [vmem:[#allocation2 + $0x58] sm:$0xf] %v1032_v3  ;;  %v897_v10 = vshrl.u32 %v10547_v63, 16 }
 0x17f   :  { %1036 = vst [vmem:[#allocation2 + $0x5c] sm:$0x1] %v1035_v5  ;;  %v900_v53 = vshll.u32 %v10547_v63, 16  ;;  %9153 = vmatmul.mubr.msk.bf16.vlgmr.msra.gmra.mxu0 %vm454_vm0, %v8219_v43  ;;  %v691_v12 = vmul.f32 %v10356_v47, %v654_v23  ;;  %v10563_v15 = vrot.slane %v1160_v55, 5  ;;  %v1165_v40 = vshrl.u32 %v10550_v62, 16  ;;  %v13366_v60 = vld [vmem:[#allocation29_spill] sm:$0xff] }
 0x180   :  { %v894_v16 = vor.u32 %v892_v50, %v891_v45  ;;  %v895_v17 = vrot.slane %v891_v45, 4  ;;  %v1157_v39 = vor.u32 %v1156_v9, %v1153_v1  ;;  %9193 = vmatpush3.bf16.msra.mxu0 %v10353_v38  ;;  %v899_v25 = vrot.slane %v897_v10, 7  ;;  %v10570_v42 = vld [vmem:[#allocation2 + $0x24] sm:$0x1]  ;;  %v10579_v57 = vld [vmem:[#allocation2 + $0x2c] sm:$0x1]  ;;  %v10585_v9 = vpop.f32.mrf.mxu1 }
 0x181   :  { %v714_v27 = vadd.f32 %v10358_v49, %v691_v12  ;;  %v1168_v30 = vshll.u32 %v10550_v62, 16  ;;  %v1174_v35 = vshll.u32 %v10514_v7, 16  ;;  %9194 = vmatprep.subr.bf16.mxu0 %v9588_v41  ;;  %v1167_v56 = vrot.slane %v1165_v40, 4  ;;  %v1714_v58 = vld [vmem:[#allocation2 + $0x28] sm:$0xe]  ;;  %v8829_v7 = vpop.f32.mrf.mxu0 }
 0x182   :  { %v1038_v52 = vsel %vm10382_vm10, %v894_v16, %v1037_v6  ;;  %v1041_v38 = vsel %vm10391_vm11, %v895_v17, %v1040_v36  ;;  %v1158_v55 = vrot.slane %v1157_v39, 4  ;;  %v902_v50 = vor.u32 %v900_v53, %v899_v25  ;;  %v9591_v36 = vld [vmem:[%s13303_s4 + $0x80] sm:$0xff]   ;;  %808 = vst.msk [vmem:[#allocation4 + $0x20] sm:$0xf] %vm799_vm13, %v13366_v60  ;;  %v3257_v60 = vld [vmem:[#allocation2 + $0x98] sm:$0xf] }
 0x183   :  { %1039 = vst [vmem:[#allocation2 + $0x60] sm:$0xf] %v1038_v52  ;;  %1042 = vst [vmem:[#allocation2 + $0x64] sm:$0x1] %v1041_v38  ;;  %v903_v43 = vrot.slane %v899_v25, 4  ;;  %v730_v23 = vmax.f32 %v714_v27, 0.0  ;;  %v8827_v45 = vadd.f32 %v8826_v44, %v10523_v14  ;;  %v8831_v39 = vpop.f32.mrf.mxu0  ;;  %v8830_v25 = vadd.f32 %v8829_v7, %v8828_v61 }
 0x184   :  { %v1170_v1 = vrot.slane %v1168_v30, 5  ;;  %v1163_v3 = vsel %vm10413_vm12, %v1158_v55, %v10563_v15  ;;  %v1176_v5 = vrot.slane %v1174_v35, 5  ;;  %v8198_v6 = vrot.slane %v1713_v48, 9  ;;  %9195 = vmatpush3.bf16.msra.mxu0 %v9588_v41  ;;  %v10596_v16 = vld [vmem:[#allocation2 + $0x20] sm:$0xf]  ;;  %v661_v48 = vpop.f32.mrf.mxu1  ;;  %v10615_v7 = vld [vmem:[%s13303_s4 + $0xd8] sm:$0xff]  }
 0x185   :  { %v1044_v10 = vsel %vm10382_vm10, %v902_v50, %v1043_v19  ;;  %v1047_v53 = vsel %vm10391_vm11, %v903_v43, %v1046_v24  ;;  %v10594_v12 = vpack.c.bf16 %v730_v23, %v730_v23  ;;  %9196 = vmatprep.subr.bf16.mxu0 %v9590_v51  ;;  %v659_v14 = vadd.f32 %v8827_v45, %v658_v18  ;;  %v1049_v27 = vld [vmem:[#allocation2 + $0x70] sm:$0xf]  ;;  %v10610_v61 = vld [vmem:[#allocation2 + $0x28] sm:$0xf]  ;;  %v1052_v50 = vld [vmem:[#allocation2 + $0x74] sm:$0x1]  ;;  %v8832_v45 = vpop.f32.mrf.mxu0 }
 0x186   :  { %v1171_v15 = vor.u32 %v1170_v1, %v1167_v56  ;;  %1045 = vst [vmem:[#allocation2 + $0x68] sm:$0xf] %v1044_v10  ;;  %1048 = vst [vmem:[#allocation2 + $0x6c] sm:$0x1] %v1047_v53  ;;  %v1778_v44 = vrot.slane %v10570_v42, 5  ;;  %v8199_v41 = vrot.slane %v1714_v58, 9  ;;  %v662_v58 = vadd.f32 %v8830_v25, %v661_v48 }
 0x187   :  { %13347 = vst [vmem:[#allocation32_spill] sm:$0xff] %v10594_v12  ;;  %v1782_v17 = vrot.slane %v10579_v57, 5  ;;  %v905_v19 = vshrl.u32 %v10594_v12, 16  ;;  %v908_v40 = vshll.u32 %v10594_v12, 16  ;;  %v692_v30 = vmul.f32 %v10356_v47, %v659_v14  ;;  %v9589_v48 = vld [vmem:[%s13303_s4 + $0x8] sm:$0xff]   ;;  %v13368_v29 = vld [vmem:[#allocation31_spill] sm:$0xff] }
 0x188   :  { %v1172_v24 = vrot.slane %v1171_v15, 4  ;;  %v1779_v35 = vsel %vm10369_vm6, %v8198_v6, %v1778_v44  ;;  %v1179_v52 = vshrl.u32 %v10596_v16, 16  ;;  %9197 = vmatpush3.bf16.msra.mxu0 %v9590_v51  ;;  %v1182_v51 = vshll.u32 %v10596_v16, 16  ;;  %v13367_v8 = vld [vmem:[#allocation30_spill] sm:$0xff]  ;;  %810 = vst.msk [vmem:[#allocation4 + $0x28] sm:$0xf] %vm799_vm13, %v13368_v29 }
 0x189   :  { %v1783_v18 = vsel %vm10369_vm6, %v8199_v41, %v1782_v17  ;;  %v907_v38 = vrot.slane %v905_v19, 7  ;;  %9198 = vmatprep.subr.bf16.mxu0 %v9591_v36  ;;  %v715_v23 = vadd.f32 %v10358_v49, %v692_v30  ;;  %v693_v53 = vmul.f32 %v10356_v47, %v662_v58  ;;  %v1715_v17 = vld [vmem:[#allocation2 + $0x30] sm:$0xe]  ;;  %809 = vst.msk [vmem:[#allocation4 + $0x24] sm:$0xf] %vm799_vm13, %v13367_v8 }
 0x18a   :  { %v1177_v55 = vsel %vm10413_vm12, %v1172_v24, %v1176_v5  ;;  %v8220_v56 = vcombine.low %v1779_v35, %v1783_v18  ;;  %v1181_v1 = vrot.slane %v1179_v52, 4  ;;  %v9586_v5 = vld [vmem:[%s13303_s4 + $0x10] sm:$0xff]   ;;  %v1188_v15 = vshll.u32 %v10570_v42, 16 }
 0x18b   :  { %v8155_v43 = vcombine.low %v1163_v3, %v1177_v55  ;;  %v910_v6 = vor.u32 %v908_v40, %v907_v38  ;;  %v911_v10 = vrot.slane %v907_v38, 4  ;;  %v731_v3 = vmax.f32 %v715_v23, 0.0  ;;  %v10637_v18 = vld [vmem:[#allocation2 + $0x34] sm:$0x1]  ;;  %v1716_v55 = vld [vmem:[#allocation2 + $0x38] sm:$0xe] }
 0x18c   :  { %9156 = vmatprep.mubr.msk.bf16.mxu0 %vm454_vm0, %v8220_v56  ;;  %v1184_v14 = vrot.slane %v1182_v51, 5  ;;  %v1193_v44 = vshrl.u32 %v10610_v61, 16  ;;  %v1196_v41 = vshll.u32 %v10610_v61, 16  ;;  %9199 = vmatpush3.bf16.msra.mxu0 %v9591_v36  ;;  %v716_v24 = vadd.f32 %v10358_v49, %v693_v53  ;;  %v1058_v51 = vld [vmem:[#allocation2 + $0x7c] sm:$0x1] }
 0x18d   :  { %9105 = vmatmul.mubr.msk.bf16.vlgmr.msra.gmra.mxu1 %vm454_vm0, %v8155_v43  ;;  %v1050_v19 = vsel %vm10382_vm10, %v910_v6, %v1049_v27  ;;  %v1053_v40 = vsel %vm10391_vm11, %v911_v10, %v1052_v50  ;;  %v1190_v25 = vrot.slane %v1188_v15, 5  ;;  %9240 = vmatprep.subr.bf16.mxu0 %v10615_v7  ;;  %v10635_v42 = vpack.c.bf16 %v731_v3, %v731_v3  ;;  %v8834_v27 = vpop.f32.mrf.mxu0  ;;  %v10648_v15 = vld [vmem:[#allocation2 + $0x3c] sm:$0x1] }
 0x18e   :  { %9121 = vmatpush3.bf16.msra.mxu1 %v10347_v37  ;;  %1051 = vst [vmem:[#allocation2 + $0x70] sm:$0xf] %v1050_v19  ;;  %1054 = vst [vmem:[#allocation2 + $0x74] sm:$0x1] %v1053_v40  ;;  %v1185_v30 = vor.u32 %v1184_v14, %v1181_v1  ;;  %v1195_v35 = vrot.slane %v1193_v44, 4  ;;  %v1198_v36 = vrot.slane %v1196_v41, 5  ;;  %v8833_v38 = vadd.f32 %v8832_v45, %v8831_v39 }
 0x18f   :  { %13348 = vst [vmem:[#allocation33_spill] sm:$0xff] %v10635_v42  ;;  %9122 = vmatprep.subr.bf16.mxu1 %v9586_v5  ;;  %v732_v52 = vmax.f32 %v716_v24, 0.0  ;;  %v1202_v37 = vshll.u32 %v10579_v57, 16  ;;  %v8200_v56 = vrot.slane %v1715_v17, 9  ;;  %v913_v58 = vshrl.u32 %v10635_v42, 16  ;;  %v8835_v44 = vpop.f32.mrf.mxu0  ;;  %v9592_v17 = vld [vmem:[%s13303_s4] sm:$0xff]  }
 0x190   :  { %v916_v50 = vshll.u32 %v10635_v42, 16  ;;  %v1186_v43 = vrot.slane %v1185_v30, 4  ;;  %v1199_v23 = vor.u32 %v1198_v36, %v1195_v35  ;;  %v1055_v1 = vld [vmem:[#allocation2 + $0x78] sm:$0xf]  ;;  %v667_v53 = vadd.f32 %v10545_v59, %v8833_v38  ;;  %v10653_v41 = vld [vmem:[#allocation2 + $0x30] sm:$0xf] }
 0x191   :  { %v10645_v6 = vpack.c.bf16 %v732_v52, %v732_v52  ;;  %v1204_v10 = vrot.slane %v1202_v37, 5  ;;  %v1786_v57 = vrot.slane %v10637_v18, 5  ;;  %v915_v39 = vrot.slane %v913_v58, 7  ;;  %v1061_v52 = vld [vmem:[#allocation2 + $0x80] sm:$0xf]  ;;  %v13369_v21 = vld [vmem:[#allocation32_spill] sm:$0xff] }
 0x192   :  { %9123 = vmatpush3.bf16.msra.mxu1 %v9586_v5  ;;  %v1191_v45 = vsel %vm10413_vm12, %v1186_v43, %v1190_v25  ;;  %v1200_v3 = vrot.slane %v1199_v23, 4  ;;  %v8201_v14 = vrot.slane %v1716_v55, 9  ;;  %v694_v5 = vmul.f32 %v10356_v47, %v667_v53  ;;  %v10673_v23 = vld [vmem:[#allocation2 + $0x38] sm:$0xf]  ;;  %811 = vst.msk [vmem:[#allocation4 + $0x2c] sm:$0xf] %vm799_vm13, %v13369_v21 }
 0x193   :  { %13349 = vst [vmem:[#allocation34_spill] sm:$0xff] %v10645_v6  ;;  %9124 = vmatprep.subr.bf16.mxu1 %v9589_v48  ;;  %v921_v59 = vshrl.u32 %v10645_v6, 16  ;;  %v924_v19 = vshll.u32 %v10645_v6, 16  ;;  %v1787_v40 = vsel %vm10369_vm6, %v8200_v56, %v1786_v57  ;;  %v918_v24 = vor.u32 %v916_v50, %v915_v39  ;;  %v1064_v50 = vld [vmem:[#allocation2 + $0x84] sm:$0x1] }
 0x194   :  { %v919_v25 = vrot.slane %v915_v39, 4  ;;  %v1205_v30 = vsel %vm10413_vm12, %v1200_v3, %v1204_v10  ;;  %v1790_v35 = vrot.slane %v10648_v15, 5  ;;  %v717_v38 = vadd.f32 %v10358_v49, %v694_v5  ;;  %v1718_v5 = vld [vmem:[#allocation2 + $0x58] sm:$0xe] }
 0x195   :  { %v923_v36 = vrot.slane %v921_v59, 7  ;;  %v8156_v37 = vcombine.low %v1191_v45, %v1205_v30  ;;  %v8836_v55 = vadd.f32 %v8835_v44, %v8834_v27  ;;  %v1056_v58 = vsel %vm10382_vm10, %v918_v24, %v1055_v1  ;;  %v10679_v27 = vld [vmem:[%s13303_s4 + $0x78] sm:$0xff]   ;;  %v11081_v12 = vld [vmem:[#allocation2 + $0x74] sm:$0x1]  ;;  %v3687_v31 = vld [vmem:[#allocation2 + $0x70] sm:$0xe] }
 0x196   :  { %9125 = vmatpush3.bf16.msra.mxu1 %v9589_v48  ;;  %v1059_v56 = vsel %vm10391_vm11, %v919_v25, %v1058_v51  ;;  %v1791_v43 = vsel %vm10369_vm6, %v8201_v14, %v1790_v35  ;;  %v1207_v10 = vshrl.u32 %v10653_v41, 16  ;;  %1057 = vst [vmem:[#allocation2 + $0x78] sm:$0xf] %v1056_v58  ;;  %v733_v51 = vmax.f32 %v717_v38, 0.0  ;;  %v1112_v24 = vld [vmem:[#allocation2 + $0x5c] sm:$0x1] }
 0x197   :  { %9126 = vmatprep.subr.bf16.mxu1 %v9592_v17  ;;  %1060 = vst [vmem:[#allocation2 + $0x7c] sm:$0x1] %v1059_v56  ;;  %v926_v48 = vor.u32 %v924_v19, %v923_v36  ;;  %v927_v1 = vrot.slane %v923_v36, 4  ;;  %9108 = vmatprep.mubr.msk.bf16.mxu1 %vm454_vm0, %v8156_v37  ;;  %v8221_v53 = vcombine.low %v1787_v40, %v1791_v43  ;;  %v1210_v45 = vshll.u32 %v10653_v41, 16  ;;  %v10695_v25 = vld [vmem:[#allocation2 + $0x58] sm:$0xf] }
 0x198   :  { %v670_v57 = vadd.f32 %v10585_v9, %v8836_v55  ;;  %v1209_v39 = vrot.slane %v1207_v10, 4  ;;  %v1216_v3 = vshll.u32 %v10637_v18, 16  ;;  %v10689_v59 = vpack.c.bf16 %v733_v51, %v733_v51  ;;  %v2702_v42 = vld [vmem:[#allocation2 + $0x58] sm:$0xe]  ;;  %v13370_v0 = vld [vmem:[#allocation33_spill] sm:$0xff] }
 0x199   :  { %v1062_v14 = vsel %vm10382_vm10, %v926_v48, %v1061_v52  ;;  %v1065_v44 = vsel %vm10391_vm11, %v927_v1, %v1064_v50  ;;  %9157 = vmatmul.mubr.msk.bf16.gmra.mxu0 %vm454_vm0, %v8221_v53  ;;  %v1221_v19 = vshrl.u32 %v10673_v23, 16  ;;  %v1212_v40 = vrot.slane %v1210_v45, 5  ;;  %v1067_v50 = vld [vmem:[#allocation2 + $0x88] sm:$0xf]  ;;  %v1070_v48 = vld [vmem:[#allocation2 + $0x8c] sm:$0x1] }
 0x19a   :  { %13350 = vst [vmem:[#allocation35_spill] sm:$0xff] %v10689_v59  ;;  %9127 = vmatpush3.bf16.msra.mxu1 %v9592_v17  ;;  %1063 = vst [vmem:[#allocation2 + $0x80] sm:$0xf] %v1062_v14  ;;  %v695_v9 = vmul.f32 %v10356_v47, %v670_v57  ;;  %v1224_v18 = vshll.u32 %v10673_v23, 16  ;;  %v1247_v30 = vsel %vm10413_vm12, %v10436_v34, %v10441_v46  ;;  %v929_v35 = vshrl.u32 %v10689_v59, 16  ;;  %v13371_v13 = vld [vmem:[#allocation34_spill] sm:$0xff] }
 0x19b   :  { %1066 = vst [vmem:[#allocation2 + $0x84] sm:$0x1] %v1065_v44  ;;  %9168 = vmatprep.subr.bf16.mxu1 %v10679_v27  ;;  %v1218_v17 = vrot.slane %v1216_v3, 5  ;;  %v1223_v36 = vrot.slane %v1221_v19, 4  ;;  %v1230_v52 = vshll.u32 %v10648_v15, 16  ;;  %v1213_v37 = vor.u32 %v1212_v40, %v1209_v39 }
 0x19c   :  { %v718_v47 = vadd.f32 %v10358_v49, %v695_v9  ;;  %v1226_v38 = vrot.slane %v1224_v18, 5  ;;  %v8203_v55 = vrot.slane %v1718_v5, 9  ;;  %v931_v58 = vrot.slane %v929_v35, 7  ;;  %v1719_v3 = vld [vmem:[#allocation2 + $0x60] sm:$0xe] }
 0x19d   :  { %v932_v56 = vshll.u32 %v10689_v59, 16  ;;  %v1798_v43 = vrot.slane %v1112_v24, 5  ;;  %v1249_v10 = vshrl.u32 %v10695_v25, 16  ;;  %v1214_v51 = vrot.slane %v1213_v37, 4  ;;  %v1113_v9 = vld [vmem:[#allocation2 + $0x64] sm:$0x1] }
 0x19e   :  { %v734_v1 = vmax.f32 %v718_v47, 0.0  ;;  %v1227_v53 = vor.u32 %v1226_v38, %v1223_v36  ;;  %v1252_v57 = vshll.u32 %v10695_v25, 16  ;;  %v935_v15 = vrot.slane %v931_v58, 4  ;;  %v10713_v40 = vld [vmem:[#allocation2 + $0x60] sm:$0xf] }
 0x19f   :  { %v934_v45 = vor.u32 %v932_v56, %v931_v58  ;;  %v1799_v49 = vsel %vm10369_vm6, %v8203_v55, %v1798_v43  ;;  %v1251_v39 = vrot.slane %v1249_v10, 4  ;;  %v1232_v19 = vrot.slane %v1230_v52, 5  ;;  %v1114_v37 = vld [vmem:[#allocation2 + $0x6c] sm:$0x1]  ;;  %v1720_v38 = vld [vmem:[#allocation2 + $0x68] sm:$0xe] }
 0x1a0   :  { %v10710_v14 = vpack.c.bf16 %v734_v1, %v734_v1  ;;  %v1228_v44 = vrot.slane %v1227_v53, 4  ;;  %v8222_v5 = vcombine.low %v10434_v33, %v1799_v49  ;;  %v1071_v35 = vsel %vm10391_vm11, %v935_v15, %v1070_v48  ;;  %v1076_v43 = vld [vmem:[#allocation2 + $0x94] sm:$0x1]  ;;  %v10726_v1 = vld [vmem:[#allocation2 + $0x68] sm:$0xf] }
 0x1a1   :  { %v1068_v18 = vsel %vm10382_vm10, %v934_v45, %v1067_v50  ;;  %v1254_v36 = vrot.slane %v1252_v57, 5  ;;  %v1258_v47 = vshll.u32 %v1112_v24, 16  ;;  %1072 = vst [vmem:[#allocation2 + $0x8c] sm:$0x1] %v1071_v35  ;;  %v1219_v33 = vsel %vm10413_vm12, %v1214_v51, %v1218_v17  ;;  %v1073_v50 = vld [vmem:[#allocation2 + $0x90] sm:$0xf] }
 0x1a2   :  { %13351 = vst [vmem:[#allocation36_spill] sm:$0xff] %v10710_v14  ;;  %1069 = vst [vmem:[#allocation2 + $0x88] sm:$0xf] %v1068_v18  ;;  %v937_v55 = vshrl.u32 %v10710_v14, 16  ;;  %v1233_v52 = vsel %vm10413_vm12, %v1228_v44, %v1232_v19  ;;  %9160 = vmatprep.mubr.msk.bf16.mxu0 %vm454_vm0, %v8222_v5  ;;  %v8204_v58 = vrot.slane %v1719_v3, 9  ;;  %v940_v56 = vshll.u32 %v10710_v14, 16 }
 0x1a3   :  { %v8157_v24 = vcombine.low %v1219_v33, %v1233_v52  ;;  %v1255_v10 = vor.u32 %v1254_v36, %v1251_v39  ;;  %v1802_v48 = vrot.slane %v1113_v9, 5  ;;  %v8205_v57 = vrot.slane %v1720_v38, 9  ;;  %v1721_v51 = vld [vmem:[#allocation2 + $0x70] sm:$0xe]  ;;  %v10733_v19 = vld [vmem:[#allocation2 + $0x74] sm:$0x1] }
 0x1a4   :  { %v939_v53 = vrot.slane %v937_v55, 7  ;;  %v1806_v45 = vrot.slane %v1114_v37, 5  ;;  %v1263_v17 = vshrl.u32 %v10713_v40, 16  ;;  %v1260_v49 = vrot.slane %v1258_v47, 5  ;;  %v1116_v39 = vld [vmem:[#allocation2 + $0x7c] sm:$0x1] }
 0x1a5   :  { %9109 = vmatmul.mubr.msk.bf16.gmra.mxu1 %vm454_vm0, %v8157_v24  ;;  %v1256_v15 = vrot.slane %v1255_v10, 4  ;;  %v1803_v3 = vsel %vm10369_vm6, %v8204_v58, %v1802_v48  ;;  %v1266_v44 = vshll.u32 %v10713_v40, 16  ;;  %v1272_v47 = vshll.u32 %v1113_v9, 16  ;;  %v1722_v52 = vld [vmem:[#allocation2 + $0x78] sm:$0xe] }
 0x1a6   :  { %v942_v5 = vor.u32 %v940_v56, %v939_v53  ;;  %v943_v18 = vrot.slane %v939_v53, 4  ;;  %v1807_v35 = vsel %vm10369_vm6, %v8205_v57, %v1806_v45  ;;  %v1265_v36 = vrot.slane %v1263_v17, 4  ;;  %v10749_v48 = vld [vmem:[#allocation2 + $0x70] sm:$0xf]  ;;  %v11092_v54 = vld [vmem:[#allocation2 + $0x84] sm:$0x1] }
 0x1a7   :  { %v1261_v38 = vsel %vm10413_vm12, %v1256_v15, %v1260_v49  ;;  %v8223_v55 = vcombine.low %v1803_v3, %v1807_v35  ;;  %v1268_v33 = vrot.slane %v1266_v44, 5  ;;  %v1277_v10 = vshrl.u32 %v10726_v1, 16  ;;  %v10758_v49 = vld [vmem:[#allocation2 + $0x84] sm:$0x1]  ;;  %812 = vst.msk [vmem:[#allocation4 + $0x30] sm:$0xf] %vm799_vm13, %v13370_v0 }
 0x1a8   :  { %v1074_v58 = vsel %vm10382_vm10, %v942_v5, %v1073_v50  ;;  %v1077_v24 = vsel %vm10391_vm11, %v943_v18, %v1076_v43  ;;  %v8158_v56 = vcombine.low %v1247_v30, %v1261_v38  ;;  %v1280_v26 = vshll.u32 %v10726_v1, 16  ;;  %v10755_v30 = vld [vmem:[#allocation2 + $0x78] sm:$0xf]  ;;  %v10765_v5 = vld [vmem:[#allocation2 + $0x8c] sm:$0x1] }
 0x1a9   :  { %1075 = vst [vmem:[#allocation2 + $0x90] sm:$0xf] %v1074_v58  ;;  %1078 = vst [vmem:[#allocation2 + $0x94] sm:$0x1] %v1077_v24  ;;  %9161 = vmatmul.mubr.msk.bf16.gmra.mxu0 %vm454_vm0, %v8223_v55  ;;  %v1269_v9 = vor.u32 %v1268_v33, %v1265_v36  ;;  %v1286_v50 = vshll.u32 %v1114_v37, 16  ;;  %v8206_v32 = vrot.slane %v1721_v51, 9 }
 0x1aa   :  { %9112 = vmatprep.mubr.msk.bf16.mxu1 %vm454_vm0, %v8158_v56  ;;  %v1279_v43 = vrot.slane %v1277_v10, 4  ;;  %v1810_v53 = vrot.slane %v10733_v19, 5  ;;  %v8207_v34 = vrot.slane %v1722_v52, 9  ;;  %v1814_v46 = vrot.slane %v1116_v39, 5  ;;  %v1723_v18 = vld [vmem:[#allocation2 + $0x80] sm:$0xe] }
 0x1ab   :  { %v1270_v57 = vrot.slane %v1269_v9, 4  ;;  %v1274_v45 = vrot.slane %v1272_v47, 5  ;;  %v1282_v17 = vrot.slane %v1280_v26, 5  ;;  %v1291_v15 = vshrl.u32 %v10749_v48, 16  ;;  %v1724_v33 = vld [vmem:[#allocation2 + $0x88] sm:$0xe] }
 0x1ac   :  { %v1288_v3 = vrot.slane %v1286_v50, 5  ;;  %v1811_v37 = vsel %vm10369_vm6, %v8206_v32, %v1810_v53  ;;  %v1815_v51 = vsel %vm10369_vm6, %v8207_v34, %v1814_v46  ;;  %v1294_v44 = vshll.u32 %v10749_v48, 16  ;;  %v2244_v47 = vld [vmem:[#allocation2 + $0x8] sm:$0xf]  ;;  %v10774_v32 = vld [vmem:[#allocation2 + $0xc] sm:$0x1] }
 0x1ad   :  { %v1283_v35 = vor.u32 %v1282_v17, %v1279_v43  ;;  %v8224_v36 = vcombine.low %v1811_v37, %v1815_v51  ;;  %v1293_v38 = vrot.slane %v1291_v15, 4  ;;  %v1300_v55 = vshll.u32 %v10733_v19, 16  ;;  %v2246_v46 = vld [vmem:[#allocation2 + $0x10] sm:$0xf]  ;;  %813 = vst.msk [vmem:[#allocation4 + $0x34] sm:$0xf] %vm799_vm13, %v13371_v13 }
 0x1ae   :  { %v1275_v52 = vsel %vm10413_vm12, %v1270_v57, %v1274_v45  ;;  %v1296_v58 = vrot.slane %v1294_v44, 5  ;;  %v1305_v24 = vshrl.u32 %v10755_v30, 16  ;;  %v1308_v56 = vshll.u32 %v10755_v30, 16 }
 0x1af   :  { %v1284_v10 = vrot.slane %v1283_v35, 4  ;;  %9164 = vmatprep.mubr.msk.bf16.mxu0 %vm454_vm0, %v8224_v36  ;;  %v1314_v9 = vshll.u32 %v1116_v39, 16  ;;  %v8208_v26 = vrot.slane %v1723_v18, 9  ;;  %v1818_v50 = vrot.slane %v10758_v49, 5  ;;  %v10783_v36 = vld [vmem:[#allocation2 + $0x14] sm:$0x1] }
 0x1b0   :  { %v1297_v19 = vor.u32 %v1296_v58, %v1293_v38  ;;  %v1307_v43 = vrot.slane %v1305_v24, 4  ;;  %v1310_v53 = vrot.slane %v1308_v56, 5  ;;  %v8209_v34 = vrot.slane %v1724_v33, 9  ;;  %v10785_v58 = vld [vmem:[#allocation2 + $0x80] sm:$0xf] }
 0x1b1   :  { %v1289_v57 = vsel %vm10413_vm12, %v1284_v10, %v1288_v3  ;;  %v1302_v45 = vrot.slane %v1300_v55, 5  ;;  %v1316_v17 = vrot.slane %v1314_v9, 5  ;;  %v1822_v15 = vrot.slane %v10765_v5, 5 }
 0x1b2   :  { %v8159_v37 = vcombine.low %v1275_v52, %v1289_v57  ;;  %v1298_v51 = vrot.slane %v1297_v19, 4  ;;  %v1311_v39 = vor.u32 %v1310_v53, %v1307_v43  ;;  %v2277_v44 = vshrl.u32 %v2244_v47, 16 }
 0x1b3   :  { %v1819_v18 = vsel %vm10369_vm6, %v8208_v26, %v1818_v50  ;;  %v1823_v35 = vsel %vm10369_vm6, %v8209_v34, %v1822_v15  ;;  %v2280_v38 = vshll.u32 %v2244_v47, 16  ;;  %v2291_v33 = vshrl.u32 %v2246_v46, 16  ;;  %v10791_v50 = vld [vmem:[#allocation2 + $0x88] sm:$0xf] }
 0x1b4   :  { %9113 = vmatmul.mubr.msk.bf16.gmra.mxu1 %vm454_vm0, %v8159_v37  ;;  %v1312_v3 = vrot.slane %v1311_v39, 4  ;;  %v8225_v55 = vcombine.low %v1819_v18, %v1823_v35  ;;  %v2279_v52 = vrot.slane %v2277_v44, 4  ;;  %v2286_v24 = vshll.u32 %v10774_v32, 16  ;;  %v2248_v39 = vld [vmem:[#allocation2 + $0x18] sm:$0xf] }
 0x1b5   :  { %v1303_v56 = vsel %vm10413_vm12, %v1298_v51, %v1302_v45  ;;  %v2282_v10 = vrot.slane %v2280_v38, 5  ;;  %v2293_v9 = vrot.slane %v2291_v33, 4  ;;  %v2294_v26 = vshll.u32 %v2246_v46, 16 }
 0x1b6   :  { %v1317_v47 = vsel %vm10413_vm12, %v1312_v3, %v1316_v17  ;;  %9165 = vmatmul.mubr.msk.bf16.gmra.mxu0 %vm454_vm0, %v8225_v55  ;;  %v2300_v19 = vshll.u32 %v10783_v36, 16  ;;  %v1319_v43 = vshrl.u32 %v10785_v58, 16  ;;  %v1322_v53 = vshll.u32 %v10785_v58, 16 }
 0x1b7   :  { %v8160_v34 = vcombine.low %v1303_v56, %v1317_v47  ;;  %v2283_v57 = vor.u32 %v2282_v10, %v2279_v52  ;;  %v2296_v15 = vrot.slane %v2294_v26, 5  ;;  %v1328_v45 = vshll.u32 %v10758_v49, 16  ;;  %v2250_v52 = vld [vmem:[#allocation2 + $0x20] sm:$0xf]  ;;  %v10804_v26 = vld [vmem:[#allocation2 + $0x1c] sm:$0x1] }
 0x1b8   :  { %v1321_v37 = vrot.slane %v1319_v43, 4  ;;  %v1324_v46 = vrot.slane %v1322_v53, 5  ;;  %v1333_v51 = vshrl.u32 %v10791_v50, 16  ;;  %v2288_v44 = vrot.slane %v2286_v24, 5  ;;  %v9728_v24 = vld [vmem:[#allocation2] sm:$0xf] }
 0x1b9   :  { %9116 = vmatprep.mubr.msk.bf16.mxu1 %vm454_vm0, %v8160_v34  ;;  %v2284_v17 = vrot.slane %v2283_v57, 4  ;;  %v2297_v18 = vor.u32 %v2296_v15, %v2293_v9  ;;  %v1336_v35 = vshll.u32 %v10791_v50, 16  ;;  %v2302_v38 = vrot.slane %v2300_v19, 5  ;;  %v9729_v9 = vld [vmem:[#allocation2 + $0x8] sm:$0xf] }
 0x1ba   :  { %v1325_v33 = vor.u32 %v1324_v46, %v1321_v37  ;;  %v1335_v3 = vrot.slane %v1333_v51, 4  ;;  %v1342_v55 = vshll.u32 %v10765_v5, 16  ;;  %v1330_v49 = vrot.slane %v1328_v45, 5  ;;  %v10808_v57 = vld [vmem:[#allocation2 + $0x24] sm:$0x1] }
 0x1bb   :  { %v2298_v56 = vrot.slane %v2297_v18, 4  ;;  %v1338_v10 = vrot.slane %v1336_v35, 5  ;;  %v2305_v47 = vshrl.u32 %v2248_v39, 16  ;;  %v2289_v43 = vsel %vm10413_vm12, %v2284_v17, %v2288_v44  ;;  %v2252_v46 = vld [vmem:[#allocation2 + $0x28] sm:$0xf] }
 0x1bc   :  { %v1326_v53 = vrot.slane %v1325_v33, 4  ;;  %v8174_v34 = vcombine.low %v9728_v24, %v9729_v9  ;;  %v2308_v19 = vshll.u32 %v2248_v39, 16  ;;  %v2319_v45 = vshrl.u32 %v2250_v52, 16  ;;  %v10812_v51 = vld [vmem:[#allocation2 + $0x2c] sm:$0x1] }
 0x1bd   :  { %v2303_v5 = vsel %vm10413_vm12, %v2298_v56, %v2302_v38  ;;  %v1339_v15 = vor.u32 %v1338_v10, %v1335_v3  ;;  %v2307_v37 = vrot.slane %v2305_v47, 4  ;;  %v1344_v35 = vrot.slane %v1342_v55, 5  ;;  %v2254_v44 = vld [vmem:[#allocation2 + $0x30] sm:$0xf] }
 0x1be   :  { %v8274_v18 = vcombine.low %v2289_v43, %v2303_v5  ;;  %v2310_v28 = vrot.slane %v2308_v19, 5  ;;  %v2314_v17 = vshll.u32 %v10804_v26, 16  ;;  %v2321_v24 = vrot.slane %v2319_v45, 4  ;;  %v10822_v19 = vld [vmem:[#allocation2 + $0x34] sm:$0x1] }
 0x1bf   :  { %v1340_v33 = vrot.slane %v1339_v15, 4  ;;  %v2322_v9 = vshll.u32 %v2250_v52, 16  ;;  %v2328_v39 = vshll.u32 %v10808_v57, 16  ;;  %v2333_v3 = vshrl.u32 %v2252_v46, 16 }
 0x1c0   :  { %9200 = vmatprep.mubr.msk.bf16.mxu0 %vm454_vm0, %v8274_v18  ;;  %v2311_v38 = vor.u32 %v2310_v28, %v2307_v37  ;;  %v2336_v56 = vshll.u32 %v2252_v46, 16  ;;  %v2342_v10 = vshll.u32 %v10812_v51, 16  ;;  %v1331_v47 = vsel %vm10413_vm12, %v1326_v53, %v1330_v49  ;;  %v2256_v18 = vld [vmem:[#allocation2 + $0x38] sm:$0xf] }
 0x1c1   :  { %v1345_v55 = vsel %vm10413_vm12, %v1340_v33, %v1344_v35  ;;  %v2324_v43 = vrot.slane %v2322_v9, 5  ;;  %v2347_v5 = vshrl.u32 %v2254_v44, 16  ;;  %v2335_v45 = vrot.slane %v2333_v3, 4  ;;  %v2258_v33 = vld [vmem:[#allocation2 + $0x40] sm:$0xf] }
 0x1c2   :  { %v8161_v52 = vcombine.low %v1331_v47, %v1345_v55  ;;  %v2312_v15 = vrot.slane %v2311_v38, 4  ;;  %v2338_v14 = vrot.slane %v2336_v56, 5  ;;  %v2316_v28 = vrot.slane %v2314_v17, 5  ;;  %v10829_v56 = vld [vmem:[#allocation2 + $0x3c] sm:$0x1] }
 0x1c3   :  { %v2325_v37 = vor.u32 %v2324_v43, %v2321_v24  ;;  %v2349_v46 = vrot.slane %v2347_v5, 4  ;;  %v2350_v59 = vshll.u32 %v2254_v44, 16  ;;  %v2330_v6 = vrot.slane %v2328_v39, 5  ;;  %v10835_v39 = vld [vmem:[#allocation2 + $0x44] sm:$0x1] }
 0x1c4   :  { %9117 = vmatmul.mubr.msk.bf16.gmra.mxu1 %vm454_vm0, %v8161_v52  ;;  %v2339_v49 = vor.u32 %v2338_v14, %v2335_v45  ;;  %v2344_v53 = vrot.slane %v2342_v10, 5  ;;  %v2356_v35 = vshll.u32 %v10822_v19, 16  ;;  %v2317_v9 = vsel %vm10413_vm12, %v2312_v15, %v2316_v28  ;;  %v10839_v5 = vld [vmem:[#allocation2 + $0x5c] sm:$0x1] }
 0x1c5   :  { %9128 = vmatprep.mubr.msk.bf16.mxu1 %vm454_vm0, %v8174_v34  ;;  %v2326_v38 = vrot.slane %v2325_v37, 4  ;;  %v2352_v3 = vrot.slane %v2350_v59, 5  ;;  %v2361_v17 = vshrl.u32 %v2256_v18, 16  ;;  %v8175_v44 = vcombine.low %v10528_v22, %v10550_v62  ;;  %v2260_v59 = vld [vmem:[#allocation2 + $0x58] sm:$0xf] }
 0x1c6   :  { %v2340_v24 = vrot.slane %v2339_v49, 4  ;;  %v8176_v14 = vcombine.low %v10596_v16, %v10610_v61  ;;  %v2364_v10 = vshll.u32 %v2256_v18, 16  ;;  %v2375_v43 = vshrl.u32 %v2258_v33, 16  ;;  %v2262_v62 = vld [vmem:[#allocation2 + $0x60] sm:$0xf]  ;;  %v9601_v16 = vld [vmem:[%s13303_s4 + $0xd0] sm:$0xff]  }
 0x1c7   :  { %v2331_v34 = vsel %vm10413_vm12, %v2326_v38, %v2330_v6  ;;  %v2353_v47 = vor.u32 %v2352_v3, %v2349_v46  ;;  %v2363_v55 = vrot.slane %v2361_v17, 4  ;;  %v2358_v15 = vrot.slane %v2356_v35, 5  ;;  %v10855_v17 = vld [vmem:[#allocation2 + $0x64] sm:$0x1] }
 0x1c8   :  { %v8275_v52 = vcombine.low %v2317_v9, %v2331_v34  ;;  %v2366_v45 = vrot.slane %v2364_v10, 5  ;;  %v2370_v22 = vshll.u32 %v10829_v56, 16  ;;  %v2377_v18 = vrot.slane %v2375_v43, 4  ;;  %v9597_v9 = vld [vmem:[%s13303_s4 + $0x70] sm:$0xff]  }
 0x1c9   :  { %v2354_v61 = vrot.slane %v2353_v47, 4  ;;  %v2378_v28 = vshll.u32 %v2258_v33, 16  ;;  %v2384_v6 = vshll.u32 %v10835_v39, 16  ;;  %v2389_v46 = vshrl.u32 %v2260_v59, 16 }
 0x1ca   :  { %9201 = vmatmul.mubr.msk.bf16.vlgmr.msra.gmra.mxu0 %vm454_vm0, %v8275_v52  ;;  %v2367_v37 = vor.u32 %v2366_v45, %v2363_v55  ;;  %v2392_v49 = vshll.u32 %v2260_v59, 16  ;;  %v2398_v35 = vshll.u32 %v10839_v5, 16  ;;  %v2345_v38 = vsel %vm10413_vm12, %v2340_v24, %v2344_v53  ;;  %v2264_v59 = vld [vmem:[#allocation2 + $0x68] sm:$0xf]  ;;  %v10864_v45 = vld [vmem:[#allocation2 + $0x6c] sm:$0x1] }
 0x1cb   :  { %v2359_v3 = vsel %vm10413_vm12, %v2354_v61, %v2358_v15  ;;  %v2380_v33 = vrot.slane %v2378_v28, 5  ;;  %v2403_v10 = vshrl.u32 %v2262_v62, 16  ;;  %9241 = vmatpush3.bf16.msra.mxu0 %v10615_v7  ;;  %v2391_v55 = vrot.slane %v2389_v46, 4  ;;  %v9605_v53 = vld [vmem:[%s13303_s4 + $0xc8] sm:$0xff]   ;;  %v2266_v46 = vld [vmem:[#allocation2 + $0x70] sm:$0xf] }
 0x1cc   :  { %v8276_v34 = vcombine.low %v2345_v38, %v2359_v3  ;;  %9129 = vmatmul.mubr.msk.bf16.vlgmr.msra.gmra.mxu1 %vm454_vm0, %v8175_v44  ;;  %v2368_v47 = vrot.slane %v2367_v37, 4  ;;  %v2394_v43 = vrot.slane %v2392_v49, 5  ;;  %9242 = vmatprep.subr.bf16.mxu0 %v9601_v16  ;;  %v2372_v24 = vrot.slane %v2370_v22, 5 }
 0x1cd   :  { %9169 = vmatpush3.bf16.msra.mxu1 %v10679_v27  ;;  %9132 = vmatprep.mubr.msk.bf16.mxu1 %vm454_vm0, %v8176_v14  ;;  %v2381_v52 = vor.u32 %v2380_v33, %v2377_v18  ;;  %v2405_v15 = vrot.slane %v2403_v10, 4  ;;  %v2406_v7 = vshll.u32 %v2262_v62, 16  ;;  %v2386_v44 = vrot.slane %v2384_v6, 5  ;;  %v9602_v27 = vld [vmem:[%s13303_s4 + $0x68] sm:$0xff]   ;;  %v10878_v10 = vld [vmem:[#allocation2 + $0x74] sm:$0x1] }
 0x1ce   :  { %9204 = vmatprep.mubr.msk.bf16.mxu0 %vm454_vm0, %v8276_v34  ;;  %v2395_v61 = vor.u32 %v2394_v43, %v2391_v55  ;;  %v2400_v28 = vrot.slane %v2398_v35, 5  ;;  %v2412_v37 = vshll.u32 %v10855_v17, 16  ;;  %9170 = vmatprep.subr.bf16.mxu1 %v9597_v9  ;;  %v2373_v14 = vsel %vm10413_vm12, %v2368_v47, %v2372_v24  ;;  %v2268_v55 = vld [vmem:[#allocation2 + $0x78] sm:$0xf]  ;;  %v9730_v24 = vld [vmem:[#allocation2 + $0x50] sm:$0xf] }
 0x1cf   :  { %v2382_v22 = vrot.slane %v2381_v52, 4  ;;  %v2408_v62 = vrot.slane %v2406_v7, 5  ;;  %v2417_v18 = vshrl.u32 %v2264_v59, 16  ;;  %9243 = vmatpush3.bf16.msra.mxu0 %v9601_v16  ;;  %v8177_v6 = vcombine.low %v10653_v41, %v10673_v23  ;;  %v2270_v23 = vld [vmem:[#allocation2 + $0x80] sm:$0xf] }
 0x1d0   :  { %v2396_v49 = vrot.slane %v2395_v61, 4  ;;  %v2420_v35 = vshll.u32 %v2264_v59, 16  ;;  %v2426_v38 = vshll.u32 %v10864_v45, 16  ;;  %9244 = vmatprep.subr.bf16.mxu0 %v9605_v53  ;;  %v2431_v47 = vshrl.u32 %v2266_v46, 16  ;;  %v9607_v59 = vld [vmem:[%s13303_s4 + $0xc0] sm:$0xff]  }
 0x1d1   :  { %v2387_v3 = vsel %vm10413_vm12, %v2382_v22, %v2386_v44  ;;  %v2409_v33 = vor.u32 %v2408_v62, %v2405_v15  ;;  %9171 = vmatpush3.bf16.msra.mxu1 %v9597_v9  ;;  %v2419_v34 = vrot.slane %v2417_v18, 4  ;;  %v2414_v16 = vrot.slane %v2412_v37, 5  ;;  %v9608_v9 = vld [vmem:[%s13303_s4 + $0x60] sm:$0xff]   ;;  %v10897_v18 = vld [vmem:[%s13303_s4 + $0x118] sm:$0xff]  }
 0x1d2   :  { %v8277_v43 = vcombine.low %v2373_v14, %v2387_v3  ;;  %v8178_v52 = vcombine.low %v9730_v24, %v10695_v25  ;;  %v2422_v41 = vrot.slane %v2420_v35, 5  ;;  %9172 = vmatprep.subr.bf16.mxu1 %v9602_v27  ;;  %v2401_v15 = vsel %vm10413_vm12, %v2396_v49, %v2400_v28  ;;  %v10892_v14 = vld [vmem:[#allocation2 + $0x7c] sm:$0x1]  ;;  %v10902_v49 = vld [vmem:[#allocation2 + $0x84] sm:$0x1] }
 0x1d3   :  { %v2410_v7 = vrot.slane %v2409_v33, 4  ;;  %v2433_v44 = vrot.slane %v2431_v47, 4  ;;  %v2434_v61 = vshll.u32 %v2266_v46, 16  ;;  %9245 = vmatpush3.bf16.msra.mxu0 %v9605_v53  ;;  %v2440_v37 = vshll.u32 %v10878_v10, 16  ;;  %v2272_v47 = vld [vmem:[#allocation2 + $0x88] sm:$0xf] }
 0x1d4   :  { %9205 = vmatmul.mubr.msk.bf16.gmra.mxu0 %vm454_vm0, %v8277_v43  ;;  %9133 = vmatmul.mubr.msk.bf16.gmra.mxu1 %vm454_vm0, %v8177_v6  ;;  %v2423_v25 = vor.u32 %v2422_v41, %v2419_v34  ;;  %v2445_v22 = vshrl.u32 %v2268_v55, 16  ;;  %v2448_v62 = vshll.u32 %v2268_v55, 16  ;;  %v2428_v53 = vrot.slane %v2426_v38, 5  ;;  %v10907_v55 = vld [vmem:[%s13303_s4 + $0xb8] sm:$0xff]  }
 0x1d5   :  { %v2415_v28 = vsel %vm10413_vm12, %v2410_v7, %v2414_v16  ;;  %9136 = vmatprep.mubr.msk.bf16.mxu1 %vm454_vm0, %v8178_v52  ;;  %v2436_v46 = vrot.slane %v2434_v61, 5  ;;  %v2459_v6 = vshrl.u32 %v2270_v23, 16  ;;  %9173 = vmatpush3.bf16.msra.mxu1 %v9602_v27  ;;  %v2462_v38 = vshll.u32 %v2270_v23, 16 }
 0x1d6   :  { %v8278_v35 = vcombine.low %v2401_v15, %v2415_v28  ;;  %v2424_v3 = vrot.slane %v2423_v25, 4  ;;  %v2447_v33 = vrot.slane %v2445_v22, 4  ;;  %v2450_v34 = vrot.slane %v2448_v62, 5  ;;  %9246 = vmatprep.subr.bf16.mxu0 %v9607_v59  ;;  %9174 = vmatprep.subr.bf16.mxu1 %v9608_v9  ;;  %v2274_v15 = vld [vmem:[#allocation2 + $0x90] sm:$0xf] }
 0x1d7   :  { %v2437_v43 = vor.u32 %v2436_v46, %v2433_v44  ;;  %v2461_v16 = vrot.slane %v2459_v6, 4  ;;  %9247 = vmatpush3.bf16.msra.mxu0 %v9607_v59  ;;  %v2442_v24 = vrot.slane %v2440_v37, 5  ;;  %v2454_v41 = vshll.u32 %v10892_v14, 16 }
 0x1d8   :  { %9208 = vmatprep.mubr.msk.bf16.mxu0 %vm454_vm0, %v8278_v35  ;;  %v2429_v27 = vsel %vm10413_vm12, %v2424_v3, %v2428_v53  ;;  %v2451_v52 = vor.u32 %v2450_v34, %v2447_v33  ;;  %9288 = vmatprep.subr.bf16.mxu0 %v10897_v18  ;;  %v2464_v61 = vrot.slane %v2462_v38, 5  ;;  %v2468_v25 = vshll.u32 %v10902_v49, 16  ;;  %v10922_v53 = vld [vmem:[#allocation2 + $0x8c] sm:$0x1]  ;;  %v10925_v3 = vld [vmem:[#allocation2 + $0x94] sm:$0x1] }
 0x1d9   :  { %v2438_v7 = vrot.slane %v2437_v43, 4  ;;  %v2473_v44 = vshrl.u32 %v2272_v47, 16  ;;  %9175 = vmatpush3.bf16.msra.mxu1 %v9608_v9  ;;  %v8179_v59 = vcombine.low %v10713_v40, %v10726_v1  ;;  %v8180_v22 = vcombine.low %v10749_v48, %v10755_v30  ;;  %v2694_v43 = vld [vmem:[#allocation2 + $0x8] sm:$0xe] }
 0x1da   :  { %v2452_v23 = vrot.slane %v2451_v52, 4  ;;  %v2476_v37 = vshll.u32 %v2272_v47, 16  ;;  %9216 = vmatprep.subr.bf16.mxu1 %v10907_v55  ;;  %v2465_v28 = vor.u32 %v2464_v61, %v2461_v16  ;;  %v2487_v6 = vshrl.u32 %v2274_v15, 16  ;;  %v2695_v16 = vld [vmem:[#allocation2 + $0x10] sm:$0xe] }
 0x1db   :  { %v2443_v62 = vsel %vm10413_vm12, %v2438_v7, %v2442_v24  ;;  %v2475_v46 = vrot.slane %v2473_v44, 4  ;;  %v2456_v9 = vrot.slane %v2454_v41, 5  ;;  %v2470_v48 = vrot.slane %v2468_v25, 5 }
 0x1dc   :  { %v8279_v35 = vcombine.low %v2429_v27, %v2443_v62  ;;  %9137 = vmatmul.mubr.msk.bf16.gmra.mxu1 %vm454_vm0, %v8179_v59  ;;  %v2478_v40 = vrot.slane %v2476_v37, 5  ;;  %v2466_v1 = vrot.slane %v2465_v28, 4  ;;  %v2489_v30 = vrot.slane %v2487_v6, 4  ;;  %v9610_v28 = vld [vmem:[#allocation2 + $0x8] ss:$8 sps:$4 sm:$0xff]  }
 0x1dd   :  { %9140 = vmatprep.mubr.msk.bf16.mxu1 %vm454_vm0, %v8180_v22  ;;  %v2490_v33 = vshll.u32 %v2274_v15, 16  ;;  %v2482_v47 = vshll.u32 %v10922_v53, 16  ;;  %v2457_v38 = vsel %vm10413_vm12, %v2452_v23, %v2456_v9  ;;  %v2496_v52 = vshll.u32 %v10925_v3, 16  ;;  %v2696_v6 = vld [vmem:[#allocation2 + $0x18] sm:$0xe] }
 0x1de   :  { %9209 = vmatmul.mubr.msk.bf16.gmra.mxu0 %vm454_vm0, %v8279_v35  ;;  %v2479_v34 = vor.u32 %v2478_v40, %v2475_v46  ;;  %v2471_v27 = vsel %vm10413_vm12, %v2466_v1, %v2470_v48  ;;  %v8294_v15 = vrot.slane %v2694_v43, 9  ;;  %v2744_v25 = vrot.slane %v10774_v32, 5  ;;  %v2697_v35 = vld [vmem:[#allocation2 + $0x20] sm:$0xe]  ;;  %v2698_v9 = vld [vmem:[#allocation2 + $0x28] sm:$0xe] }
 0x1df   :  { %v2492_v24 = vrot.slane %v2490_v33, 5  ;;  %v8280_v41 = vcombine.low %v2457_v38, %v2471_v27  ;;  %v8295_v44 = vrot.slane %v2695_v16, 9  ;;  %v8181_v59 = vcombine.low %v10785_v58, %v10791_v50  ;;  %v2699_v1 = vld [vmem:[#allocation2 + $0x30] sm:$0xe]  ;;  %v9614_v27 = vld [vmem:[#allocation2 + $0x18] ss:$8 sps:$4 sm:$0xff]  }
 0x1e0   :  { %v2480_v7 = vrot.slane %v2479_v34, 4  ;;  %v2748_v23 = vrot.slane %v10783_v36, 5  ;;  %v2484_v22 = vrot.slane %v2482_v47, 5  ;;  %v2498_v62 = vrot.slane %v2496_v52, 5  ;;  %v9606_v48 = vld [vmem:[#allocation2 + $0x10] ss:$8 sps:$4 sm:$0xff]  }
 0x1e1   :  { %v2493_v61 = vor.u32 %v2492_v24, %v2489_v30  ;;  %9212 = vmatprep.mubr.msk.bf16.mxu0 %vm454_vm0, %v8280_v41  ;;  %v10943_v46 = vsel %vm10369_vm6, %v8294_v15, %v2744_v25  ;;  %v8296_v30 = vrot.slane %v2696_v6, 9  ;;  %v2752_v33 = vrot.slane %v10804_v26, 5  ;;  %v9618_v24 = vld [vmem:[%s13303_s4 + $0xb0] sm:$0xff]   ;;  %v2701_v25 = vld [vmem:[#allocation2 + $0x40] sm:$0xe] }
 0x1e2   :  { %v10947_v32 = vsel %vm10369_vm6, %v8295_v44, %v2748_v23  ;;  %v2485_v58 = vsel %vm10413_vm12, %v2480_v7, %v2484_v22  ;;  %v8297_v34 = vrot.slane %v2697_v35, 9  ;;  %v2756_v47 = vrot.slane %v10808_v57, 5  ;;  %v9615_v41 = vld [vmem:[#allocation2 + $0x28] ss:$8 sps:$4 sm:$0xff]   ;;  %v2700_v7 = vld [vmem:[#allocation2 + $0x38] sm:$0xe] }
 0x1e3   :  { %v2494_v37 = vrot.slane %v2493_v61, 4  ;;  %v8298_v43 = vrot.slane %v2698_v9, 9  ;;  %v2760_v16 = vrot.slane %v10812_v51, 5  ;;  %v8299_v38 = vrot.slane %v2699_v1, 9  ;;  %v9611_v44 = vld [vmem:[#allocation2 + $0x20] ss:$8 sps:$4 sm:$0xff]  }
 0x1e4   :  { %9141 = vmatmul.mubr.msk.bf16.gmra.mxu1 %vm454_vm0, %v8181_v59  ;;  %v10966_v52 = vsel %vm10369_vm6, %v8296_v30, %v2752_v33  ;;  %v10970_v26 = vsel %vm10369_vm6, %v8297_v34, %v2756_v47  ;;  %v2764_v57 = vrot.slane %v10822_v19, 5  ;;  %v9625_v59 = vld [vmem:[%s13303_s4 + $0xa8] sm:$0xff]   ;;  %v8300_v23 = vrot.slane %v2700_v7, 9  ;;  %v9620_v9 = vld [vmem:[#allocation2 + $0x58] ss:$8 sps:$4 sm:$0xff]  }
 0x1e5   :  { %v2499_v36 = vsel %vm10413_vm12, %v2494_v37, %v2498_v62  ;;  %9176 = vmatprep.mubr.msk.bf16.mxu1 %vm454_vm0, %v9610_v28  ;;  %v10978_v61 = vsel %vm10369_vm6, %v8298_v43, %v2760_v16  ;;  %v2768_v22 = vrot.slane %v10829_v56, 5  ;;  %v9612_v37 = vld [vmem:[#allocation2 + $0x30] ss:$8 sps:$4 sm:$0xff]   ;;  %v2772_v28 = vrot.slane %v10835_v39, 5  ;;  %v9631_v39 = vld [vmem:[%s13303_s4 + $0xa0] sm:$0xff]  }
 0x1e6   :  { %v8281_v40 = vcombine.low %v2485_v58, %v2499_v36  ;;  %v10982_v15 = vsel %vm10369_vm6, %v8299_v38, %v2764_v57  ;;  %v9624_v62 = vld [vmem:[%s13303_s4 + $0x110] sm:$0xff]   ;;  %v9619_v58 = vld [vmem:[#allocation2 + $0x38] ss:$8 sps:$4 sm:$0xff]   ;;  %v2704_v35 = vld [vmem:[#allocation2 + $0x68] sm:$0xe]  ;;  %v2788_v43 = vrot.slane %v10878_v10, 5 }
 0x1e7   :  { %v11000_v6 = vsel %vm10369_vm6, %v8300_v23, %v2768_v22  ;;  %v2705_v1 = vld [vmem:[#allocation2 + $0x70] sm:$0xe]  ;;  %v9616_v30 = vld [vmem:[#allocation2 + $0x40] ss:$8 sps:$4 sm:$0xff]   ;;  %v11024_v34 = vld [vmem:[%s13303_s4 + $0xf8] sm:$0xff]   ;;  %v2780_v20 = vrot.slane %v10855_v17, 5 }
 0x1e8   :  { %9213 = vmatmul.mubr.msk.bf16.gmra.mxu0 %vm454_vm0, %v8281_v40  ;;  %v9629_v40 = vld [vmem:[%s13303_s4 + $0x108] sm:$0xff]   ;;  %v9630_v33 = vld [vmem:[%s13303_s4 + $0x100] sm:$0xff]   ;;  %v8305_v47 = vrot.slane %v2705_v1, 9  ;;  %v11027_v38 = vld [vmem:[#allocation2 + $0x1c] sm:$0x1] }
 0x1e9   :  { %9248 = vmatprep.mubr.msk.bf16.mxu0 %vm454_vm0, %v9606_v48  ;;  %v2784_v48 = vrot.slane %v10864_v45, 5  ;;  %v9617_v16 = vld [vmem:[#allocation2 + $0x60] ss:$8 sps:$4 sm:$0xff]   ;;  %v3678_v45 = vld [vmem:[#allocation2 + $0x18] sm:$0xe] }
 0x1ea   :  { %v11039_v57 = vld [vmem:[#allocation2 + $0x14] sm:$0x1]  ;;  %v3677_v10 = vld [vmem:[#allocation2 + $0x10] sm:$0xe]  ;;  %v11045_v23 = vld [vmem:[#allocation2 + $0x24] sm:$0x1] }
 0x1eb   :  { %v9626_v7 = vld [vmem:[#allocation2 + $0x68] ss:$8 sps:$4 sm:$0xff]   ;;  %v3682_v1 = vld [vmem:[#allocation2 + $0x38] sm:$0xe]  ;;  %v2703_v36 = vld [vmem:[#allocation2 + $0x60] sm:$0xe] }
 0x1ec   :  { %9177 = vmatmul.mubr.msk.bf16.vlgmr.msra.gmra.mxu1 %vm454_vm0, %v9614_v27  ;;  %v9621_v22 = vld [vmem:[#allocation2 + $0x70] ss:$8 sps:$4 sm:$0xff]   ;;  %v11077_v19 = vld [vmem:[#allocation2 + $0x7c] sm:$0x1]  ;;  %v8303_v4 = vrot.slane %v2703_v36, 9 }
 0x1ed   :  { %9217 = vmatpush3.bf16.msra.mxu1 %v10907_v55  ;;  %9180 = vmatprep.mubr.msk.bf16.mxu1 %vm454_vm0, %v9615_v41  ;;  %v8301_v55 = vrot.slane %v2701_v25, 9  ;;  %v8395_v25 = vrot.slane %v3678_v45, 9  ;;  %v9632_v45 = vld [vmem:[#allocation2 + $0x88] ss:$8 sps:$4 sm:$0xff]   ;;  %v11075_v41 = vld [vmem:[#allocation2 + $0x64] sm:$0x1] }
 0x1ee   :  { %9218 = vmatprep.subr.bf16.mxu1 %v9618_v24  ;;  %13354 = vst [vmem:[#allocation39_spill] sm:$0xff] %v11077_v19 }
 0x1ef   :  { %v11004_v56 = vsel %vm10369_vm6, %v8301_v55, %v2772_v28  ;;  %v11049_v55 = vld [vmem:[#allocation2 + $0x2c] sm:$0x1]  ;;  %v3679_v28 = vld [vmem:[#allocation2 + $0x20] sm:$0xe] }
 0x1f0   :  { %9249 = vmatmul.mubr.msk.bf16.vlgmr.msra.gmra.mxu0 %vm454_vm0, %v9611_v44  ;;  %v3731_v44 = vrot.slane %v11027_v38, 5 }
 0x1f1   :  { %9252 = vmatprep.mubr.msk.bf16.mxu0 %vm454_vm0, %v9612_v37  ;;  %9219 = vmatpush3.bf16.msra.mxu1 %v9618_v24  ;;  %v11036_v24 = vsel %vm10369_vm6, %v8305_v47, %v2788_v43  ;;  %v8394_v37 = vrot.slane %v3677_v10, 9  ;;  %v11063_v47 = vld [vmem:[#allocation2 + $0x4c] sm:$0x1]  ;;  %v3683_v43 = vld [vmem:[#allocation2 + $0x40] sm:$0xe] }
 0x1f2   :  { %9289 = vmatpush3.bf16.msra.mxu0 %v10897_v18  ;;  %9220 = vmatprep.subr.bf16.mxu1 %v9625_v59  ;;  %v8304_v18 = vrot.slane %v2704_v35, 9  ;;  %v11052_v35 = vld [vmem:[#allocation2 + $0x3c] sm:$0x1]  ;;  %v11068_v10 = vld [vmem:[#allocation2 + $0x34] sm:$0x1]  ;;  %v8400_v51 = vrot.slane %v3683_v43, 9 }
 0x1f3   :  { %9290 = vmatprep.subr.bf16.mxu0 %v9624_v62  ;;  %v3755_v63 = vrot.slane %v11063_v47, 5 }
 0x1f4   :  { %9181 = vmatmul.mubr.msk.bf16.gmra.mxu1 %vm454_vm0, %v9619_v58  ;;  %v11032_v27 = vsel %vm10369_vm6, %v8304_v18, %v2784_v48  ;;  %v9623_v58 = vld [vmem:[#allocation2 + $0x80] ss:$8 sps:$4 sm:$0xff]   ;;  %v11060_v18 = vld [vmem:[#allocation2 + $0x44] sm:$0x1]  ;;  %v8396_v48 = vrot.slane %v3679_v28, 9  ;;  %v3739_v28 = vrot.slane %v11049_v55, 5 }
 0x1f5   :  { %9184 = vmatprep.mubr.msk.bf16.mxu1 %vm454_vm0, %v9620_v9  ;;  %9221 = vmatpush3.bf16.msra.mxu1 %v9625_v59  ;;  %v9627_v59 = vld [vmem:[#allocation2 + $0x78] ss:$8 sps:$4 sm:$0xff]   ;;  %v11056_v9 = vsel %vm10369_vm6, %v8395_v25, %v3731_v44  ;;  %13352 = vst [vmem:[#allocation37_spill] sm:$0xff] %v11060_v18  ;;  %v3686_v25 = vld [vmem:[#allocation2 + $0x68] sm:$0xe]  ;;  %v3751_v50 = vrot.slane %v11060_v18, 5 }
 0x1f6   :  { %9291 = vmatpush3.bf16.msra.mxu0 %v9624_v62  ;;  %9222 = vmatprep.subr.bf16.mxu1 %v9631_v39  ;;  %v3727_v62 = vrot.slane %v11039_v57, 5  ;;  %v8403_v43 = vrot.slane %v3686_v25, 9  ;;  %v3689_v25 = vld [vmem:[#allocation2 + $0x80] sm:$0xe] }
 0x1f7   :  { %9292 = vmatprep.subr.bf16.mxu0 %v9629_v40  ;;  %v11110_v36 = vsel %vm10369_vm6, %v8400_v51, %v3751_v50  ;;  %v11128_v51 = vsel %vm10369_vm6, %v8303_v4, %v2780_v20  ;;  %v9634_v20 = vld [vmem:[%s13303_s4 + $0xf0] sm:$0xff]   ;;  %v3229_v4 = vld [vmem:[#allocation2 + $0x18] sm:$0xf] }
 0x1f8   :  { %9253 = vmatmul.mubr.msk.bf16.gmra.mxu0 %vm454_vm0, %v9616_v30  ;;  %v3735_v30 = vrot.slane %v11045_v23, 5 }
 0x1f9   :  { %9256 = vmatprep.mubr.msk.bf16.mxu0 %vm454_vm0, %v9617_v16  ;;  %9223 = vmatpush3.bf16.msra.mxu1 %v9631_v39  ;;  %v3680_v39 = vld [vmem:[#allocation2 + $0x28] sm:$0xe]  ;;  %v3728_v16 = vsel %vm10369_vm6, %v8394_v37, %v3727_v62  ;;  %v8399_v37 = vrot.slane %v3682_v1, 9  ;;  %v3747_v62 = vrot.slane %v11052_v35, 5  ;;  %v9628_v1 = vld [vmem:[#allocation2 + $0x90] ss:$8 sps:$4 sm:$0xff]  }
 0x1fa   :  { %9293 = vmatpush3.bf16.msra.mxu0 %v9629_v40  ;;  %9264 = vmatprep.subr.bf16.mxu1 %v11024_v34  ;;  %v11058_v40 = vld [vmem:[#allocation2 + $0x30] sm:$0xe]  ;;  %v8418_v44 = vcombine.low %v3728_v16, %v11056_v9 }
 0x1fb   :  { %9294 = vmatprep.subr.bf16.mxu0 %v9630_v33  ;;  %v8398_v9 = vrot.slane %v11058_v40, 9  ;;  %v11106_v17 = vsel %vm10369_vm6, %v8399_v37, %v3747_v62 }
 0x1fc   :  { %9185 = vmatmul.mubr.msk.bf16.gmra.mxu1 %vm454_vm0, %v9626_v7  ;;  %v11070_v7 = vld [vmem:[#allocation2 + $0x6c] sm:$0x1] }
 0x1fd   :  { %9188 = vmatprep.mubr.msk.bf16.mxu1 %vm454_vm0, %v9627_v59  ;;  %13353 = vst [vmem:[#allocation38_spill] sm:$0xff] %v11070_v7  ;;  %v8397_v59 = vrot.slane %v3680_v39, 9  ;;  %v11085_v39 = vsel %vm10369_vm6, %v8396_v48, %v3735_v30  ;;  %v3763_v18 = vrot.slane %v11070_v7, 5  ;;  %v13355_v48 = vcombine.low %v10943_v46, %v10947_v32 }
 0x1fe   :  { %9295 = vmatpush3.bf16.msra.mxu0 %v9630_v33  ;;  %v3684_v33 = vld [vmem:[#allocation2 + $0x48] sm:$0xe]  ;;  %v3743_v30 = vrot.slane %v11068_v10, 5  ;;  %v3759_v32 = vrot.slane %v11075_v41, 5  ;;  %v8404_v7 = vrot.slane %v3687_v31, 9 }
 0x1ff   :  { %v8401_v16 = vrot.slane %v3684_v33, 9  ;;  %v11100_v40 = vsel %vm10369_vm6, %v8397_v59, %v3739_v28  ;;  %v3771_v33 = vrot.slane %v11077_v19, 5  ;;  %v3690_v59 = vld [vmem:[#allocation2 + $0x88] sm:$0xe]  ;;  %v8302_v28 = vrot.slane %v2702_v42, 9 }
 0x200   :  { %9257 = vmatmul.mubr.msk.bf16.gmra.mxu0 %vm454_vm0, %v9621_v22  ;;  %v3685_v22 = vld [vmem:[#allocation2 + $0x60] sm:$0xe]  ;;  %v3767_v19 = vrot.slane %v11081_v12, 5  ;;  %v11124_v50 = vsel %vm10369_vm6, %v8403_v43, %v3763_v18  ;;  %v8406_v42 = vrot.slane %v3689_v25, 9  ;;  %v8419_v18 = vcombine.low %v11085_v39, %v11100_v40  ;;  %v11157_v40 = vld [vmem:[#allocation2 + $0x94] sm:$0x1] }
 0x201   :  { %9260 = vmatprep.mubr.msk.bf16.mxu0 %vm454_vm0, %v9623_v58  ;;  %v3688_v58 = vld [vmem:[#allocation2 + $0x78] sm:$0xe]  ;;  %v8402_v46 = vrot.slane %v3685_v22, 9  ;;  %v11120_v37 = vsel %vm10369_vm6, %v8401_v16, %v3755_v63  ;;  %v8407_v22 = vrot.slane %v3690_v59, 9  ;;  %v3744_v62 = vsel %vm10369_vm6, %v8398_v9, %v3743_v30  ;;  %v2707_v43 = vld [vmem:[#allocation2 + $0x80] sm:$0xe] }
 0x202   :  { %v11155_v39 = vsel %vm10369_vm6, %v8404_v7, %v3767_v19  ;;  %v2706_v9 = vld [vmem:[#allocation2 + $0x78] sm:$0xe]  ;;  %v13356_v30 = vcombine.low %v10966_v52, %v10970_v26  ;;  %v9635_v7 = vld [vmem:[%s13303_s4 + $0xe8] sm:$0xff]   ;;  %v3691_v52 = vld [vmem:[#allocation2 + $0x90] sm:$0xe] }
 0x203   :  { %v11147_v16 = vsel %vm10369_vm6, %v8402_v46, %v3759_v32  ;;  %v3692_v26 = vld [vmem:[#allocation2 + $0x98] sm:$0xe]  ;;  %v13357_v46 = vcombine.low %v10978_v61, %v10982_v15  ;;  %v2796_v61 = vrot.slane %v10902_v49, 5  ;;  %v3233_v15 = vld [vmem:[#allocation2 + $0x28] sm:$0xf] }
 0x204   :  { %9189 = vmatmul.mubr.msk.bf16.gmra.mxu1 %vm454_vm0, %v9632_v45  ;;  %v8405_v45 = vrot.slane %v3688_v58, 9  ;;  %v2776_v58 = vrot.slane %v10839_v5, 5  ;;  %v3775_v5 = vrot.slane %v11092_v54, 5 }
 0x205   :  { %9224 = vmatprep.mubr.msk.bf16.mxu1 %vm454_vm0, %v13355_v48  ;;  %v11113_v48 = vld [vmem:[#allocation2 + $0x8c] sm:$0x1] }
 0x206   :  { %v11133_v31 = vsel %vm10369_vm6, %v8405_v45, %v3771_v33  ;;  %v3779_v63 = vrot.slane %v11113_v48, 5  ;;  %v11183_v32 = vsel %vm10369_vm6, %v8406_v42, %v3775_v5  ;;  %v3783_v42 = vrot.slane %v11157_v40, 5 }
 0x207   :  { %v8409_v5 = vrot.slane %v3692_v26, 9 }
 0x208   :  { %9261 = vmatmul.mubr.msk.bf16.gmra.mxu0 %vm454_vm0, %v9628_v1  ;;  %v11151_v1 = vsel %vm10369_vm6, %v8302_v28, %v2776_v58  ;;  %v11187_v59 = vsel %vm10369_vm6, %v8407_v22, %v3779_v63  ;;  %v2709_v28 = vld [vmem:[#allocation2 + $0x90] sm:$0xe]  ;;  %v3231_v22 = vld [vmem:[#allocation2 + $0x20] sm:$0xf]  ;;  %v2708_v63 = vld [vmem:[#allocation2 + $0x88] sm:$0xe] }
 0x209   :  { %9296 = vmatprep.mubr.msk.bf16.mxu0 %vm454_vm0, %v8418_v44  ;;  %v8420_v44 = vcombine.low %v3744_v62, %v11106_v17  ;;  %v8322_v25 = vcombine.low %v11151_v1, %v11128_v51  ;;  %v11174_v17 = vld [vmem:[#allocation2 + $0x9c] sm:$0x1]  ;;  %v3227_v58 = vld [vmem:[#allocation2 + $0x10] sm:$0xf]  ;;  %v3274_v51 = vshrl.u32 %v3229_v4, 16  ;;  %v3277_v62 = vshll.u32 %v3229_v4, 16 }
 0x20a   :  { %v8306_v1 = vrot.slane %v2706_v9, 9  ;;  %v3787_v19 = vrot.slane %v11174_v17, 5  ;;  %v8309_v33 = vrot.slane %v2709_v28, 9  ;;  %v2804_v4 = vrot.slane %v10925_v3, 5  ;;  %v9636_v3 = vld [vmem:[%s13303_s4 + $0xe0] sm:$0xff]   ;;  %s9935_s4 = smov 48  }
 0x20b   :  { %v3260_v9 = vshrl.u32 %v3227_v58, 16  ;;  %v3263_v45 = vshll.u32 %v3227_v58, 16  ;;  %v3279_v49 = vrot.slane %v3277_v62, 5  ;;  %v3288_v28 = vshrl.u32 %v3231_v22, 16 }
 0x20c   :  { %9225 = vmatmul.mubr.msk.bf16.vlgmr.msra.gmra.mxu1 %vm454_vm0, %v13356_v30  ;;  %v8307_v30 = vrot.slane %v2707_v43, 9  ;;  %v3302_v43 = vshrl.u32 %v3233_v15, 16  ;;  %v3291_v58 = vshll.u32 %v3231_v22, 16  ;;  %v2800_v62 = vrot.slane %v10922_v53, 5 }
 0x20d   :  { %9265 = vmatpush3.bf16.msra.mxu1 %v11024_v34  ;;  %9228 = vmatprep.mubr.msk.bf16.mxu1 %vm454_vm0, %v13357_v46  ;;  %v2792_v34 = vrot.slane %v10892_v14, 5  ;;  %v8408_v46 = vrot.slane %v3691_v52, 9  ;;  %v3276_v14 = vrot.slane %v3274_v51, 4  ;;  %v3305_v52 = vshll.u32 %v3233_v15, 16  ;;  %v3235_v15 = vld [vmem:[#allocation2 + $0x30] sm:$0xf] }
 0x20e   :  { %9266 = vmatprep.subr.bf16.mxu1 %v9634_v20  ;;  %v8308_v51 = vrot.slane %v2708_v63, 9  ;;  %v3283_v22 = vshll.u32 %v11027_v38, 16  ;;  %v3290_v63 = vrot.slane %v3288_v28, 4  ;;  %v3241_v28 = vld [vmem:[#allocation2 + $0x48] sm:$0xf] }
 0x20f   :  { %v3280_v53 = vor.u32 %v3279_v49, %v3276_v14  ;;  %v3269_v14 = vshll.u32 %v11039_v57, 16  ;;  %v3239_v49 = vld [vmem:[#allocation2 + $0x40] sm:$0xf] }
 0x210   :  { %9297 = vmatmul.mubr.msk.bf16.vlgmr.msra.gmra.mxu0 %vm454_vm0, %v8419_v18  ;;  %v2793_v18 = vsel %vm10369_vm6, %v8306_v1, %v2792_v34  ;;  %v13358_v1 = vcombine.low %v11000_v6, %v11004_v56  ;;  %v11216_v34 = vsel %vm10369_vm6, %v8409_v5, %v3787_v19  ;;  %v3304_v6 = vrot.slane %v3302_v43, 4 }
 0x211   :  { %9300 = vmatprep.mubr.msk.bf16.mxu0 %vm454_vm0, %v8420_v44  ;;  %9267 = vmatpush3.bf16.msra.mxu1 %v9634_v20  ;;  %v2797_v20 = vsel %vm10369_vm6, %v8307_v30, %v2796_v61  ;;  %v11207_v44 = vsel %vm10369_vm6, %v8408_v46, %v3783_v42  ;;  %v11220_v30 = vsel %vm10369_vm6, %v8309_v33, %v2804_v4  ;;  %v3262_v61 = vrot.slane %v3260_v9, 4  ;;  %v3237_v42 = vld [vmem:[#allocation2 + $0x38] sm:$0xf] }
 0x212   :  { %9268 = vmatprep.subr.bf16.mxu1 %v9635_v7  ;;  %v3265_v46 = vrot.slane %v3263_v45, 5  ;;  %v3307_v56 = vrot.slane %v3305_v52, 5  ;;  %v3316_v19 = vshrl.u32 %v3235_v15, 16  ;;  %v3319_v5 = vshll.u32 %v3235_v15, 16 }
 0x213   :  { %v8324_v26 = vcombine.low %v2793_v18, %v2797_v20  ;;  %v11226_v33 = vsel %vm10369_vm6, %v8308_v51, %v2800_v62  ;;  %v3330_v45 = vshrl.u32 %v3237_v42, 16  ;;  %v3333_v4 = vshll.u32 %v3237_v42, 16 }
 0x214   :  { %9229 = vmatmul.mubr.msk.bf16.gmra.mxu1 %vm454_vm0, %v13358_v1  ;;  %v3293_v1 = vrot.slane %v3291_v58, 5  ;;  %v8425_v38 = vcombine.low %v11207_v44, %v11216_v34  ;;  %v3266_v9 = vor.u32 %v3265_v46, %v3262_v61  ;;  %v13360_v43 = vcombine.low %v11147_v16, %v11124_v50  ;;  %v3245_v50 = vld [vmem:[#allocation2 + $0x68] sm:$0xf] }
 0x215   :  { %9232 = vmatprep.mubr.msk.bf16.mxu1 %vm454_vm0, %v8322_v25  ;;  %9269 = vmatpush3.bf16.msra.mxu1 %v9635_v7  ;;  %v13359_v25 = vcombine.low %v11110_v36, %v11120_v37  ;;  %v8325_v7 = vcombine.low %v11226_v33, %v11220_v30  ;;  %v11241_v52 = vrot.slane %v3280_v53, 4  ;;  %v3297_v36 = vshll.u32 %v11045_v23, 16  ;;  %v3247_v33 = vld [vmem:[#allocation2 + $0x70] sm:$0xf] }
 0x216   :  { %9270 = vmatprep.subr.bf16.mxu1 %v9636_v3  ;;  %v3308_v37 = vor.u32 %v3307_v56, %v3304_v6  ;;  %v3311_v18 = vshll.u32 %v11049_v55, 16  ;;  %v3285_v58 = vrot.slane %v3283_v22, 5  ;;  %v3294_v20 = vor.u32 %v3293_v1, %v3290_v63 }
 0x217   :  { %v3318_v51 = vrot.slane %v3316_v19, 4  ;;  %v3321_v62 = vrot.slane %v3319_v5, 5  ;;  %v3332_v57 = vrot.slane %v3330_v45, 4  ;;  %v3335_v15 = vrot.slane %v3333_v4, 5  ;;  %v3243_v19 = vld [vmem:[#allocation2 + $0x60] sm:$0xf] }
 0x218   :  { %9301 = vmatmul.mubr.msk.bf16.gmra.mxu0 %vm454_vm0, %v13359_v25  ;;  %v3344_v61 = vshrl.u32 %v3239_v49, 16  ;;  %v3347_v46 = vshll.u32 %v3239_v49, 16  ;;  %v13361_v16 = vcombine.low %v11032_v27, %v11036_v24  ;;  %v3271_v23 = vrot.slane %v3269_v14, 5 }
 0x219   :  { %9304 = vmatprep.mubr.msk.bf16.mxu0 %vm454_vm0, %v13360_v43  ;;  %9271 = vmatpush3.bf16.msra.mxu1 %v9636_v3  ;;  %v3267_v3 = vrot.slane %v3266_v9, 4  ;;  %v3358_v42 = vshrl.u32 %v3241_v28, 16  ;;  %v3361_v53 = vshll.u32 %v3241_v28, 16  ;;  %v3286_v55 = vsel %vm10413_vm12, %v11241_v52, %v3285_v58 }
 0x21a   :  { %v3299_v22 = vrot.slane %v3297_v36, 5  ;;  %v3309_v6 = vrot.slane %v3308_v37, 4  ;;  %v3313_v56 = vrot.slane %v3311_v18, 5  ;;  %v3322_v63 = vor.u32 %v3321_v62, %v3318_v51  ;;  %v13374_v18 = vld [vmem:[#allocation37_spill] sm:$0xff]  ;;  %v3249_v51 = vld [vmem:[#allocation2 + $0x78] sm:$0xf] }
 0x21b   :  { %v3325_v1 = vshll.u32 %v11068_v10, 16  ;;  %v3386_v27 = vshrl.u32 %v3245_v50, 16  ;;  %v3389_v24 = vshll.u32 %v3245_v50, 16  ;;  %v3295_v5 = vrot.slane %v3294_v20, 4 }
 0x21c   :  { %9233 = vmatmul.mubr.msk.bf16.gmra.mxu1 %vm454_vm0, %v13361_v16  ;;  %v3336_v45 = vor.u32 %v3335_v15, %v3332_v57  ;;  %v3346_v4 = vrot.slane %v3344_v61, 4  ;;  %v3349_v25 = vrot.slane %v3347_v46, 5  ;;  %v3339_v9 = vshll.u32 %v11052_v35, 16  ;;  %v13364_v35 = vld [vmem:[#allocation27_spill] sm:$0xff] }
 0x21d   :  { %9236 = vmatprep.mubr.msk.bf16.mxu1 %vm454_vm0, %v8324_v26  ;;  %v13362_v26 = vcombine.low %v11155_v39, %v11133_v31  ;;  %v3360_v14 = vrot.slane %v3358_v42, 4  ;;  %v3363_v49 = vrot.slane %v3361_v53, 5  ;;  %v13363_v10 = vcombine.low %v11183_v32, %v11187_v59  ;;  %806 = vst.msk [vmem:[#allocation4 + $0x18] sm:$0xf] %vm799_vm13, %v13364_v35  ;;  %v13365_v39 = vld [vmem:[#allocation28_spill] sm:$0xff]  ;;  %v13372_v32 = vld [vmem:[#allocation35_spill] sm:$0xff] }
 0x21e   :  { %v3272_v43 = vsel %vm10413_vm12, %v3267_v3, %v3271_v23  ;;  %v3314_v52 = vsel %vm10413_vm12, %v3309_v6, %v3313_v56  ;;  %v3372_v36 = vshrl.u32 %v3243_v19, 16  ;;  %v3375_v31 = vshll.u32 %v3243_v19, 16  ;;  %807 = vst.msk [vmem:[#allocation4 + $0x1c] sm:$0xf] %vm799_vm13, %v13365_v39  ;;  %814 = vst.msk [vmem:[#allocation4 + $0x38] sm:$0xf] %vm799_vm13, %v13372_v32 }
 0x21f   :  { %v13373_v59 = vld [vmem:[#allocation36_spill] sm:$0xff]  ;;  %v3323_v37 = vrot.slane %v3322_v63, 4  ;;  %v3353_v28 = vshll.u32 %v13374_v18, 16  ;;  %v3388_v58 = vrot.slane %v3386_v27, 4  ;;  %v3391_v20 = vrot.slane %v3389_v24, 5 }
 0x220   :  { %9305 = vmatmul.mubr.msk.bf16.gmra.mxu0 %vm454_vm0, %v13362_v26  ;;  %815 = vst.msk [vmem:[#allocation4 + $0x3c] sm:$0xf] %vm799_vm13, %v13373_v59  ;;  %v8374_v62 = vcombine.low %v3272_v43, %v3286_v55  ;;  %v3337_v57 = vrot.slane %v3336_v45, 4  ;;  %v3350_v15 = vor.u32 %v3349_v25, %v3346_v4  ;;  %v3367_v61 = vshll.u32 %v11063_v47, 16  ;;  %v3253_v6 = vld [vmem:[#allocation2 + $0x88] sm:$0xf] }
 0x221   :  { %9308 = vmatprep.mubr.msk.bf16.mxu0 %vm454_vm0, %v13363_v10  ;;  %v3300_v46 = vsel %vm10413_vm12, %v3295_v5, %v3299_v22  ;;  %v3327_v50 = vrot.slane %v3325_v1, 5  ;;  %v3341_v16 = vrot.slane %v3339_v9, 5  ;;  %v3364_v3 = vor.u32 %v3363_v49, %v3360_v14  ;;  %v3251_v27 = vld [vmem:[#allocation2 + $0x80] sm:$0xf]  ;;  %v13375_v5 = vld [vmem:[#allocation38_spill] sm:$0xff] }
 0x222   :  { %v8375_v23 = vcombine.low %v3300_v46, %v3314_v52  ;;  %v3374_v42 = vrot.slane %v3372_v36, 4  ;;  %v3377_v53 = vrot.slane %v3375_v31, 5  ;;  %v3414_v55 = vshrl.u32 %v3249_v51, 16  ;;  %v3255_v35 = vld [vmem:[#allocation2 + $0x90] sm:$0xf] }
 0x223   :  { %v3328_v47 = vsel %vm10413_vm12, %v3323_v37, %v3327_v50  ;;  %v3355_v56 = vrot.slane %v3353_v28, 5  ;;  %v3392_v30 = vor.u32 %v3391_v20, %v3388_v58  ;;  %v3342_v22 = vsel %vm10413_vm12, %v3337_v57, %v3341_v16  ;;  %v13376_v46 = vld [vmem:[#allocation39_spill] sm:$0xff] }
 0x224   :  { %9237 = vmatmul.mubr.msk.bf16.gmra.mxu1 %vm454_vm0, %v8325_v7  ;;  %v3417_v7 = vshll.u32 %v3249_v51, 16  ;;  %v3351_v63 = vrot.slane %v3350_v15, 4  ;;  %v3369_v1 = vrot.slane %v3367_v61, 5  ;;  %v3381_v19 = vshll.u32 %v11075_v41, 16 }
 0x225   :  { %9272 = vmatprep.mubr.msk.bf16.mxu1 %vm454_vm0, %v8374_v62  ;;  %v3365_v24 = vrot.slane %v3364_v3, 4  ;;  %v3395_v45 = vshll.u32 %v13375_v5, 16  ;;  %v3442_v4 = vshrl.u32 %v3253_v6, 16  ;;  %v3445_v25 = vshll.u32 %v3253_v6, 16 }
 0x226   :  { %v3378_v26 = vor.u32 %v3377_v53, %v3374_v42  ;;  %v3400_v9 = vshrl.u32 %v3247_v33, 16  ;;  %v3403_v14 = vshll.u32 %v3247_v33, 16  ;;  %v3416_v49 = vrot.slane %v3414_v55, 4 }
 0x227   :  { %v3393_v10 = vrot.slane %v3392_v30, 4  ;;  %v3419_v43 = vrot.slane %v3417_v7, 5  ;;  %v3428_v52 = vshrl.u32 %v3251_v27, 16  ;;  %v3431_v36 = vshll.u32 %v3251_v27, 16 }
 0x228   :  { %9309 = vmatmul.mubr.msk.bf16.gmra.mxu0 %vm454_vm0, %v8425_v38  ;;  %v8376_v41 = vcombine.low %v3328_v47, %v3342_v22  ;;  %v3383_v31 = vrot.slane %v3381_v19, 5  ;;  %v3356_v44 = vsel %vm10413_vm12, %v3351_v63, %v3355_v56  ;;  %v3397_v34 = vrot.slane %v3395_v45, 5 }
 0x229   :  { %v3444_v38 = vrot.slane %v3442_v4, 4  ;;  %v3447_v39 = vrot.slane %v3445_v25, 5  ;;  %v3370_v8 = vsel %vm10413_vm12, %v3365_v24, %v3369_v1  ;;  %v3379_v29 = vrot.slane %v3378_v26, 4 }
 0x22a   :  { %v3402_v21 = vrot.slane %v3400_v9, 4  ;;  %v3405_v0 = vrot.slane %v3403_v14, 5  ;;  %v3398_v13 = vsel %vm10413_vm12, %v3393_v10, %v3397_v34  ;;  %v3420_v32 = vor.u32 %v3419_v43, %v3416_v49 }
 0x22b   :  { %v3430_v59 = vrot.slane %v3428_v52, 4  ;;  %v3433_v37 = vrot.slane %v3431_v36, 5  ;;  %v3456_v18 = vshrl.u32 %v3255_v35, 16  ;;  %v3459_v28 = vshll.u32 %v3255_v35, 16 }
 0x22c   :  { %9273 = vmatmul.mubr.msk.bf16.vlgmr.msra.gmra.mxu1 %vm454_vm0, %v8375_v23  ;;  %v3470_v58 = vshrl.u32 %v3257_v60, 16  ;;  %v3473_v20 = vshll.u32 %v3257_v60, 16  ;;  %v3409_v51 = vshll.u32 %v11081_v12, 16  ;;  %v3448_v62 = vor.u32 %v3447_v39, %v3444_v38 }
 0x22d   :  { %9276 = vmatprep.mubr.msk.bf16.mxu1 %vm454_vm0, %v8376_v41  ;;  %v8377_v57 = vcombine.low %v3356_v44, %v3370_v8  ;;  %v3384_v15 = vsel %vm10413_vm12, %v3379_v29, %v3383_v31  ;;  %v3406_v61 = vor.u32 %v3405_v0, %v3402_v21  ;;  %v3423_v50 = vshll.u32 %v13376_v46, 16 }
 0x22e   :  { %v8378_v16 = vcombine.low %v3384_v15, %v3398_v13  ;;  %v3421_v3 = vrot.slane %v3420_v32, 4  ;;  %v3434_v23 = vor.u32 %v3433_v37, %v3430_v59  ;;  %v3451_v42 = vshll.u32 %v11113_v48, 16 }
 0x22f   :  { %v3458_v53 = vrot.slane %v3456_v18, 4  ;;  %v3461_v55 = vrot.slane %v3459_v28, 5  ;;  %v3472_v6 = vrot.slane %v3470_v58, 4  ;;  %v3475_v47 = vrot.slane %v3473_v20, 5 }
 0x230   :  { %v3437_v12 = vshll.u32 %v11092_v54, 16  ;;  %v3449_v56 = vrot.slane %v3448_v62, 4  ;;  %v3407_v30 = vrot.slane %v3406_v61, 4  ;;  %v3425_v33 = vrot.slane %v3423_v50, 5  ;;  %v9637_v62 = vld [vmem:[#allocation13 + $0x28] sm:$0xff]  }
 0x231   :  { %v3411_v7 = vrot.slane %v3409_v51, 5  ;;  %v3435_v22 = vrot.slane %v3434_v23, 4  ;;  %v3453_v63 = vrot.slane %v3451_v42, 5  ;;  %v3462_v48 = vor.u32 %v3461_v55, %v3458_v53  ;;  %9312 = vmatprep.subr.bf16.mxu1 %v9637_v62 }
 0x232   :  { %v3426_v1 = vsel %vm10413_vm12, %v3421_v3, %v3425_v33  ;;  %v3476_v19 = vor.u32 %v3475_v47, %v3472_v6  ;;  %v3479_v27 = vshll.u32 %v11174_v17, 16  ;;  %v3439_v24 = vrot.slane %v3437_v12, 5  ;;  %9313 = vmatpush3.bf16.msra.mxu1 %v9637_v62  ;;  %v9638_v6 = vld [vmem:[#allocation13 + $0x20] sm:$0xff]  }
 0x233   :  { %v3454_v5 = vsel %vm10413_vm12, %v3449_v56, %v3453_v63  ;;  %v3412_v54 = vsel %vm10413_vm12, %v3407_v30, %v3411_v7  ;;  %v3465_v45 = vshll.u32 %v11157_v40, 16  ;;  %v3463_v9 = vrot.slane %v3462_v48, 4  ;;  %9314 = vmatprep.subr.bf16.mxu1 %v9638_v6 }
 0x234   :  { %9277 = vmatmul.mubr.msk.bf16.gmra.mxu1 %vm454_vm0, %v8377_v57  ;;  %v8379_v4 = vcombine.low %v3412_v54, %v3426_v1  ;;  %v3440_v25 = vsel %vm10413_vm12, %v3435_v22, %v3439_v24  ;;  %v3477_v14 = vrot.slane %v3476_v19, 4  ;;  %v3481_v49 = vrot.slane %v3479_v27, 5  ;;  %v9639_v22 = vld [vmem:[#allocation13 + $0x10] sm:$0xff]  }
 0x235   :  { %9280 = vmatprep.mubr.msk.bf16.mxu1 %vm454_vm0, %v8378_v16  ;;  %v8380_v26 = vcombine.low %v3440_v25, %v3454_v5  ;;  %v3467_v17 = vrot.slane %v3465_v45, 5  ;;  %v13377_v61 = vmov 0   ;;  %9334 = vmatprep.subr.bf16.mxu0 %v9639_v22 }
 0x236   :  { %v3482_v43 = vsel %vm10413_vm12, %v3477_v14, %v3481_v49  ;;  %260 = vst.msk [vmem:[#allocation3 + $0x18] sm:$0xf] %vm252_vm14, %v13377_v61  ;;  %253 = vst.msk [vmem:[#allocation3] sm:$0xf] %vm252_vm14, %v13377_v61  ;;  %9315 = vmatpush3.bf16.msra.mxu1 %v9638_v6  ;;  %9335 = vmatpush3.bf16.msra.mxu0 %v9639_v22 }
 0x237   :  { %v3468_v10 = vsel %vm10413_vm12, %v3463_v9, %v3467_v17  ;;  %261 = vst.msk [vmem:[#allocation3 + $0x1c] sm:$0x1] %vm254_vm15, %v13377_v61  ;;  %255 = vst.msk [vmem:[#allocation3 + $0x4] sm:$0x1] %vm254_vm15, %v13377_v61 }
 0x238   :  { %v8381_v40 = vcombine.low %v3468_v10, %v3482_v43  ;;  %256 = vst.msk [vmem:[#allocation3 + $0x8] sm:$0xf] %vm252_vm14, %v13377_v61  ;;  %258 = vst.msk [vmem:[#allocation3 + $0x10] sm:$0xf] %vm252_vm14, %v13377_v61 }
 0x239   :  { %257 = vst.msk [vmem:[#allocation3 + $0xc] sm:$0x1] %vm254_vm15, %v13377_v61  ;;  %259 = vst.msk [vmem:[#allocation3 + $0x14] sm:$0x1] %vm254_vm15, %v13377_v61 }
 0x23a   :  { %262 = vst.msk [vmem:[#allocation3 + $0x20] sm:$0xf] %vm252_vm14, %v13377_v61  ;;  %264 = vst.msk [vmem:[#allocation3 + $0x28] sm:$0xf] %vm252_vm14, %v13377_v61 }
 0x23b   :  { %263 = vst.msk [vmem:[#allocation3 + $0x24] sm:$0x1] %vm254_vm15, %v13377_v61  ;;  %265 = vst.msk [vmem:[#allocation3 + $0x2c] sm:$0x1] %vm254_vm15, %v13377_v61 }
 0x23c   :  { %9281 = vmatmul.mubr.msk.bf16.gmra.mxu1 %vm454_vm0, %v8379_v4  ;;  %266 = vst.msk [vmem:[#allocation3 + $0x30] sm:$0xf] %vm252_vm14, %v13377_v61  ;;  %268 = vst.msk [vmem:[#allocation3 + $0x38] sm:$0xf] %vm252_vm14, %v13377_v61  ;;  %v9640_v4 = vld [vmem:[#allocation13 + $0x8] sm:$0xff]  }
 0x23d   :  { %9284 = vmatprep.mubr.msk.bf16.mxu1 %vm454_vm0, %v8380_v26  ;;  %267 = vst.msk [vmem:[#allocation3 + $0x34] sm:$0x1] %vm254_vm15, %v13377_v61  ;;  %269 = vst.msk [vmem:[#allocation3 + $0x3c] sm:$0x1] %vm254_vm15, %v13377_v61  ;;  %9336 = vmatprep.subr.bf16.mxu0 %v9640_v4 }
 0x23e   :  { %270 = vst.msk [vmem:[#allocation3 + $0x40] sm:$0xf] %vm252_vm14, %v13377_v61  ;;  %272 = vst.msk [vmem:[#allocation3 + $0x48] sm:$0xf] %vm252_vm14, %v13377_v61  ;;  %9337 = vmatpush3.bf16.msra.mxu0 %v9640_v4 }
 0x23f   :  { %v11351_v52 = vpop.f32.mrf.mxu0  ;;  %271 = vst.msk [vmem:[#allocation3 + $0x44] sm:$0x1] %vm254_vm15, %v13377_v61  ;;  %273 = vst.msk [vmem:[#allocation3 + $0x4c] sm:$0x1] %vm254_vm15, %v13377_v61 }
 0x240   :  { %274 = vst.msk [vmem:[#allocation3 + $0x50] sm:$0xf] %vm252_vm14, %v13377_v61  ;;  %276 = vst.msk [vmem:[#allocation3 + $0x58] sm:$0xf] %vm252_vm14, %v13377_v61 }
 0x241   :  { %v11353_v36 = vpop.f32.mrf.mxu0  ;;  %275 = vst.msk [vmem:[#allocation3 + $0x54] sm:$0x1] %vm254_vm15, %v13377_v61  ;;  %277 = vst.msk [vmem:[#allocation3 + $0x5c] sm:$0x1] %vm254_vm15, %v13377_v61 }
 0x242   :  { %278 = vst.msk [vmem:[#allocation3 + $0x60] sm:$0xf] %vm252_vm14, %v13377_v61  ;;  %280 = vst.msk [vmem:[#allocation3 + $0x68] sm:$0xf] %vm252_vm14, %v13377_v61 }
 0x243   :  { %v11355_v41 = vpop.f32.mrf.mxu0  ;;  %279 = vst.msk [vmem:[#allocation3 + $0x64] sm:$0x1] %vm254_vm15, %v13377_v61  ;;  %281 = vst.msk [vmem:[#allocation3 + $0x6c] sm:$0x1] %vm254_vm15, %v13377_v61 }
 0x244   :  { %9285 = vmatmul.mubr.msk.bf16.gmra.mxu1 %vm454_vm0, %v8381_v40  ;;  %282 = vst.msk [vmem:[#allocation3 + $0x70] sm:$0xf] %vm252_vm14, %v13377_v61  ;;  %284 = vst.msk [vmem:[#allocation3 + $0x78] sm:$0xf] %vm252_vm14, %v13377_v61  ;;  %v9641_v40 = vld [vmem:[#allocation13] sm:$0xff]  }
 0x245   :  { %v11359_v35 = vpop.f32.mrf.mxu0  ;;  %283 = vst.msk [vmem:[#allocation3 + $0x74] sm:$0x1] %vm254_vm15, %v13377_v61  ;;  %285 = vst.msk [vmem:[#allocation3 + $0x7c] sm:$0x1] %vm254_vm15, %v13377_v61  ;;  %9338 = vmatprep.subr.bf16.mxu0 %v9641_v40 }
 0x246   :  { %286 = vst.msk [vmem:[#allocation3 + $0x80] sm:$0xf] %vm252_vm14, %v13377_v61  ;;  %288 = vst.msk [vmem:[#allocation3 + $0x88] sm:$0xf] %vm252_vm14, %v13377_v61  ;;  %9339 = vmatpush3.bf16.msra.mxu0 %v9641_v40 }
 0x247   :  { %287 = vst.msk [vmem:[#allocation3 + $0x84] sm:$0x1] %vm254_vm15, %v13377_v61  ;;  %289 = vst.msk [vmem:[#allocation3 + $0x8c] sm:$0x1] %vm254_vm15, %v13377_v61 }
 0x248   :  { %290 = vst.msk [vmem:[#allocation3 + $0x90] sm:$0xf] %vm252_vm14, %v13377_v61  ;;  %292 = vst.msk [vmem:[#allocation3 + $0x98] sm:$0xf] %vm252_vm14, %v13377_v61 }
 0x249   :  { %291 = vst.msk [vmem:[#allocation3 + $0x94] sm:$0x1] %vm254_vm15, %v13377_v61  ;;  %293 = vst.msk [vmem:[#allocation3 + $0x9c] sm:$0x1] %vm254_vm15, %v13377_v61 }
 0x24d   :  { %v11357_v31 = vpop.f32.mrf.mxu1 }
 0x24f   :  { %v11361_v44 = vpop.f32.mrf.mxu1 }
 0x251   :  { %v11365_v38 = vpop.f32.mrf.mxu1 }
 0x253   :  { %v11369_v60 = vpop.f32.mrf.mxu1 }
 0x259   :  { %v11363_v34 = vpop.f32.mrf.mxu0 }
 0x25b   :  { %v11367_v39 = vpop.f32.mrf.mxu0 }
 0x25d   :  { %v11371_v8 = vpop.f32.mrf.mxu0 }
 0x25f   :  { %v11375_v21 = vpop.f32.mrf.mxu0 }
 0x265   :  { %v11373_v29 = vpop.f32.mrf.mxu1 }
 0x267   :  { %v11377_v0 = vpop.f32.mrf.mxu1 }
 0x269   :  { %v11379_v13 = vpop.f32.mrf.mxu0  ;;  %v11381_v32 = vpop.f32.mrf.mxu1 }
 0x26b   :  { %v11383_v59 = vpop.f32.mrf.mxu0  ;;  %v11385_v37 = vpop.f32.mrf.mxu1 }
 0x26d   :  { %v11387_v18 = vpop.f32.mrf.mxu0 }
 0x26f   :  { %v11391_v58 = vpop.f32.mrf.mxu0 }
 0x274   :  { %v11389_v28 = vpop.f32.mrf.mxu1 }
 0x276   :  { %v11393_v20 = vpop.f32.mrf.mxu1  ;;  %v11395_v51 = vpop.f32.mrf.mxu0 }
 0x278   :  { %v11397_v57 = vpop.f32.mrf.mxu1  ;;  %v11399_v15 = vpop.f32.mrf.mxu0 }
 0x27a   :  { %v11481_v46 = vpop.f32.mrf.mxu1  ;;  %v11483_v50 = vpop.f32.mrf.mxu0 }
 0x27c   :  { %v11485_v3 = vpop.f32.mrf.mxu0 }
 0x284   :  { %v9118_v16 = vpop.f32.mrf.mxu1 }
 0x286   :  { %v1509_v23 = vpop.f32.mrf.mxu1 }
 0x288   :  { %v11487_v42 = vpop.f32.mrf.mxu1 }
 0x28a   :  { %v11489_v53 = vpop.f32.mrf.mxu0  ;;  %v11491_v55 = vpop.f32.mrf.mxu1 }
 0x28c   :  { %v11493_v47 = vpop.f32.mrf.mxu0  ;;  %v9130_v12 = vpop.f32.mrf.mxu1 }
 0x28d   :  { %v11496_v56 = vadd.f32 %v9130_v12, %v11357_v31 }
 0x28e   :  { %v11498_v30 = vpop.f32.mrf.mxu0  ;;  %v1646_v33 = vpop.f32.mrf.mxu1 }
 0x28f   :  { %v11501_v7 = vadd.f32 %v1646_v33, %v11361_v44  ;;  %v9643_v44 = vld [vmem:[#allocation13 + $0x18] sm:$0xff]  }
 0x290   :  { %v11503_v63 = vpop.f32.mrf.mxu0  ;;  %v9131_v1 = vpop.f32.mrf.mxu1  ;;  %9316 = vmatprep.subr.bf16.mxu1 %v9643_v44 }
 0x291   :  { %v11506_v48 = vadd.f32 %v9131_v1, %v11365_v38  ;;  %9317 = vmatpush3.bf16.msra.mxu1 %v9643_v44 }
 0x292   :  { %v11508_v19 = vpop.f32.mrf.mxu1 }
 0x294   :  { %v11510_v27 = vpop.f32.mrf.mxu0  ;;  %v9134_v24 = vpop.f32.mrf.mxu1 }
 0x295   :  { %v1671_v5 = vadd.f32 %v9134_v24, %v11373_v29 }
 0x296   :  { %v11513_v54 = vpop.f32.mrf.mxu0  ;;  %v1662_v45 = vpop.f32.mrf.mxu1 }
 0x297   :  { %v1663_v25 = vadd.f32 %v1662_v45, %v11377_v0  ;;  %v2008_v26 = vadd.f32 %v11363_v34, %v1671_v5 }
 0x298   :  { %v9207_v9 = vpop.f32.mrf.mxu0  ;;  %v9135_v14 = vpop.f32.mrf.mxu1 }
 0x299   :  { %v1674_v49 = vadd.f32 %v9135_v14, %v11381_v32  ;;  %v11519_v17 = vadd.f32 %v11367_v39, %v1663_v25 }
 0x29a   :  { %v11521_v10 = vpop.f32.mrf.mxu0  ;;  %v11523_v43 = vpop.f32.mrf.mxu1 }
 0x29b   :  { %v2009_v31 = vadd.f32 %v11371_v8, %v1674_v49 }
 0x29c   :  { %v9138_v38 = vpop.f32.mrf.mxu1 }
 0x29d   :  { %v1687_v34 = vadd.f32 %v9138_v38, %v11389_v28 }
 0x29e   :  { %v9210_v29 = vpop.f32.mrf.mxu0  ;;  %v1678_v0 = vpop.f32.mrf.mxu1 }
 0x29f   :  { %v1679_v39 = vadd.f32 %v1678_v0, %v11393_v20  ;;  %v2012_v32 = vadd.f32 %v11379_v13, %v1687_v34 }
 0x2a0   :  { %v2647_v62 = vpop.f32.mrf.mxu0  ;;  %v9139_v6 = vpop.f32.mrf.mxu1 }
 0x2a1   :  { %v1690_v12 = vadd.f32 %v9139_v6, %v11397_v57  ;;  %v2010_v8 = vadd.f32 %v11383_v59, %v1679_v39 }
 0x2a2   :  { %v9211_v33 = vpop.f32.mrf.mxu0  ;;  %v11531_v22 = vpop.f32.mrf.mxu1 }
 0x2a3   :  { %v2013_v28 = vadd.f32 %v11387_v18, %v1690_v12 }
 0x2a4   :  { %v11534_v1 = vpop.f32.mrf.mxu0  ;;  %v9142_v24 = vpop.f32.mrf.mxu1 }
 0x2a5   :  { %v1703_v5 = vadd.f32 %v9142_v24, %v9118_v16 }
 0x2a6   :  { %v1694_v45 = vpop.f32.mrf.mxu1 }
 0x2a7   :  { %v1695_v4 = vadd.f32 %v1694_v45, %v1509_v23  ;;  %v2016_v20 = vadd.f32 %v11395_v51, %v1703_v5 }
 0x2a8   :  { %v9214_v13 = vpop.f32.mrf.mxu0  ;;  %v9143_v25 = vpop.f32.mrf.mxu1 }
 0x2a9   :  { %v1706_v14 = vadd.f32 %v9143_v25, %v11487_v42  ;;  %v2014_v57 = vadd.f32 %v11399_v15, %v1695_v4  ;;  %v9647_v15 = vld [vmem:[#allocation13 + $0x40] sm:$0xff]  }
 0x2aa   :  { %v2663_v59 = vpop.f32.mrf.mxu0  ;;  %v11539_v49 = vpop.f32.mrf.mxu1  ;;  %9356 = vmatprep.subr.bf16.mxu1 %v9647_v15 }
 0x2ab   :  { %v2017_v40 = vadd.f32 %v11483_v50, %v1706_v14 }
 0x2ac   :  { %v9215_v18 = vpop.f32.mrf.mxu0  ;;  %v11542_v44 = vpop.f32.mrf.mxu1 }
 0x2ae   :  { %v11544_v38 = vpop.f32.mrf.mxu0  ;;  %v11546_v16 = vpop.f32.mrf.mxu1 }
 0x2b0   :  { %v11548_v23 = vpop.f32.mrf.mxu0  ;;  %v11550_v51 = vpop.f32.mrf.mxu1 }
 0x2b2   :  { %v11552_v34 = vpop.f32.mrf.mxu0  ;;  %v11554_v42 = vpop.f32.mrf.mxu1 }
 0x2b4   :  { %v11556_v0 = vpop.f32.mrf.mxu0  ;;  %v9182_v39 = vpop.f32.mrf.mxu1 }
 0x2b5   :  { %13378 = vst [vmem:[#allocation27_spill] sm:$0xff] %v11556_v0  ;;  %v2234_v50 = vadd.f32 %v9182_v39, %v2008_v26 }
 0x2b6   :  { %v11558_v6 = vpop.f32.mrf.mxu0  ;;  %v11560_v12 = vpop.f32.mrf.mxu1 }
 0x2b7   :  { %13379 = vst [vmem:[#allocation28_spill] sm:$0xff] %v11558_v6  ;;  %v11563_v24 = vadd.f32 %v11510_v27, %v2234_v50 }
 0x2b8   :  { %v11565_v5 = vpop.f32.mrf.mxu0  ;;  %v9183_v45 = vpop.f32.mrf.mxu1 }
 0x2b9   :  { %13380 = vst [vmem:[#allocation29_spill] sm:$0xff] %v11565_v5  ;;  %v2235_v4 = vadd.f32 %v9183_v45, %v2009_v31 }
 0x2ba   :  { %v11567_v25 = vpop.f32.mrf.mxu0  ;;  %v11569_v14 = vpop.f32.mrf.mxu1 }
 0x2bb   :  { %13381 = vst [vmem:[#allocation30_spill] sm:$0xff] %v11567_v25  ;;  %v11571_v61 = vadd.f32 %v9207_v9, %v2235_v4  ;;  %v11583_v25 = vld [vmem:[#allocation13 + $0x58] sm:$0xff]  }
 0x2bc   :  { %v11573_v11 = vpop.f32.mrf.mxu0  ;;  %v9186_v26 = vpop.f32.mrf.mxu1  ;;  %13385 = vst [vmem:[#allocation34_spill] sm:$0xff] %v11583_v25  ;;  %9378 = vmatprep.subr.bf16.mxu0 %v11583_v25 }
 0x2bd   :  { %13382 = vst [vmem:[#allocation31_spill] sm:$0xff] %v11573_v11  ;;  %v2238_v15 = vadd.f32 %v9186_v26, %v2012_v32 }
 0x2be   :  { %v11575_v39 = vpop.f32.mrf.mxu0  ;;  %v2197_v6 = vpop.f32.mrf.mxu1 }
 0x2bf   :  { %13383 = vst [vmem:[#allocation32_spill] sm:$0xff] %v11575_v39  ;;  %v2236_v0 = vadd.f32 %v2197_v6, %v2010_v8  ;;  %v11577_v27 = vadd.f32 %v9210_v29, %v2238_v15 }
 0x2c0   :  { %v11579_v50 = vpop.f32.mrf.mxu0  ;;  %v9187_v5 = vpop.f32.mrf.mxu1 }
 0x2c1   :  { %13384 = vst [vmem:[#allocation33_spill] sm:$0xff] %v11579_v50  ;;  %v2239_v31 = vadd.f32 %v9187_v5, %v2013_v28  ;;  %v11581_v45 = vadd.f32 %v2647_v62, %v2236_v0 }
 0x2c2   :  { %v11585_v9 = vpop.f32.mrf.mxu0  ;;  %v11587_v4 = vpop.f32.mrf.mxu1 }
 0x2c3   :  { %13386 = vst [vmem:[#allocation35_spill] sm:$0xff] %v11585_v9  ;;  %v11589_v11 = vadd.f32 %v9211_v33, %v2239_v31 }
 0x2c4   :  { %v11592_v32 = vpop.f32.mrf.mxu0  ;;  %v9190_v29 = vpop.f32.mrf.mxu1 }
 0x2c5   :  { %13387 = vst [vmem:[#allocation36_spill] sm:$0xff] %v11589_v11  ;;  %13388 = vst [vmem:[#allocation37_spill] sm:$0xff] %v11592_v32  ;;  %v2242_v8 = vadd.f32 %v9190_v29, %v2016_v20  ;;  %v2004_v11 = vadd.f32 %v11351_v52, %v11496_v56  ;;  %v1682_v52 = vadd.f32 %v11531_v22, %v11481_v46 }
 0x2c6   :  { %v11594_v6 = vpop.f32.mrf.mxu0  ;;  %v2213_v26 = vpop.f32.mrf.mxu1 }
 0x2c7   :  { %13389 = vst [vmem:[#allocation38_spill] sm:$0xff] %v11594_v6  ;;  %v2240_v28 = vadd.f32 %v2213_v26, %v2014_v57  ;;  %v11596_v62 = vadd.f32 %v9214_v13, %v2242_v8 }
 0x2c8   :  { %v11598_v0 = vpop.f32.mrf.mxu0  ;;  %v9191_v5 = vpop.f32.mrf.mxu1 }
 0x2c9   :  { %13390 = vst [vmem:[#allocation39_spill] sm:$0xff] %v11596_v62  ;;  %13391 = vst [vmem:[#allocation40_spill] sm:$0xff] %v11598_v0  ;;  %v2243_v15 = vadd.f32 %v9191_v5, %v2017_v40  ;;  %v11600_v9 = vadd.f32 %v2663_v59, %v2240_v28  ;;  %v11636_v0 = vld [vmem:[#allocation3 + $0x50] sm:$0xf] }
 0x2ca   :  { %v11602_v33 = vpop.f32.mrf.mxu0  ;;  %v11604_v31 = vpop.f32.mrf.mxu1  ;;  %13401 = vst [vmem:[#allocation50_spill] sm:$0xff] %v11636_v0  ;;  %v4570_v62 = vshrl.u32 %v11636_v0, 16 }
 0x2cb   :  { %13392 = vst [vmem:[#allocation41_spill] sm:$0xff] %v11600_v9  ;;  %13393 = vst [vmem:[#allocation42_spill] sm:$0xff] %v11602_v33  ;;  %v11606_v25 = vadd.f32 %v9215_v18, %v2243_v15  ;;  %v11626_v18 = vld [vmem:[#allocation3] sm:$0xf]  ;;  %v1650_v9 = vadd.f32 %v11508_v19, %v11369_v60  ;;  %v2005_v60 = vadd.f32 %v11355_v41, %v11506_v48 }
 0x2cc   :  { %v11608_v32 = vpop.f32.mrf.mxu0  ;;  %v9226_v20 = vpop.f32.mrf.mxu1  ;;  %13399 = vst [vmem:[#allocation48_spill] sm:$0xff] %v11626_v18  ;;  %v4461_v33 = vshll.u32 %v11626_v18, 16  ;;  %v1698_v48 = vadd.f32 %v11539_v49, %v11491_v55 }
 0x2cd   :  { %13394 = vst [vmem:[#allocation43_spill] sm:$0xff] %v11606_v25  ;;  %13395 = vst [vmem:[#allocation44_spill] sm:$0xff] %v11608_v32  ;;  %v4458_v32 = vshrl.u32 %v11626_v18, 16 }
 0x2ce   :  { %v11610_v29 = vpop.f32.mrf.mxu0  ;;  %v11612_v57 = vpop.f32.mrf.mxu1  ;;  %v4463_v18 = vrot.slane %v4461_v33, 5 }
 0x2cf   :  { %13396 = vst [vmem:[#allocation45_spill] sm:$0xff] %v11610_v29  ;;  %v4460_v39 = vrot.slane %v4458_v32, 4  ;;  %v4572_v32 = vrot.slane %v4570_v62, 4 }
 0x2d0   :  { %v11614_v13 = vpop.f32.mrf.mxu0  ;;  %v11616_v8 = vpop.f32.mrf.mxu1 }
 0x2d1   :  { %13397 = vst [vmem:[#allocation46_spill] sm:$0xff] %v11614_v13  ;;  %v4464_v41 = vor.u32 %v4463_v18, %v4460_v39  ;;  %v11682_v39 = vld [vmem:[#allocation3 + $0x54] sm:$0x1]  ;;  %v5031_v18 = vld [vmem:[#allocation3] sm:$0xe] }
 0x2d2   :  { %v11618_v40 = vpop.f32.mrf.mxu1  ;;  %v11620_v59 = vpop.f32.mrf.mxu0  ;;  %v4579_v49 = vshll.u32 %v11682_v39, 16 }
 0x2d3   :  { %13398 = vst [vmem:[#allocation47_spill] sm:$0xff] %v11620_v59  ;;  %v1666_v59 = vadd.f32 %v11523_v43, %v11385_v37  ;;  %v2003_v37 = vadd.f32 %v11359_v35, %v1650_v9  ;;  %v11662_v43 = vld [vmem:[#allocation3 + $0x4] sm:$0x1]  ;;  %v2231_v35 = vadd.f32 %v11550_v51, %v2005_v60  ;;  %v2232_v9 = vadd.f32 %v11560_v12, %v11519_v17 }
 0x2d4   :  { %v11622_v26 = vpop.f32.mrf.mxu1  ;;  %v11628_v5 = vpop.f32.mrf.mxu0  ;;  %v2015_v12 = vadd.f32 %v11485_v3, %v1698_v48 }
 0x2d5   :  { %13400 = vst [vmem:[#allocation49_spill] sm:$0xff] %v11628_v5  ;;  %v4573_v5 = vshll.u32 %v11636_v0, 16  ;;  %v2230_v0 = vadd.f32 %v11542_v44, %v2004_v11  ;;  %v2229_v44 = vadd.f32 %v11554_v42, %v2003_v37  ;;  %v11689_v42 = vrot.slane %v4464_v41, 4 }
 0x2d6   :  { %v11624_v28 = vpop.f32.mrf.mxu1  ;;  %v11638_v6 = vpop.f32.mrf.mxu0 }
 0x2d7   :  { %13402 = vst [vmem:[#allocation51_spill] sm:$0xff] %v11638_v6  ;;  %v2002_v6 = vadd.f32 %v11353_v36, %v11501_v7  ;;  %v4575_v33 = vrot.slane %v4573_v5, 5  ;;  %v2007_v36 = vadd.f32 %v11375_v21, %v1666_v59  ;;  %v4467_v7 = vshll.u32 %v11662_v43, 16 }
 0x2d8   :  { %v11630_v15 = vpop.f32.mrf.mxu1  ;;  %v11656_v19 = vpop.f32.mrf.mxu0  ;;  %v2680_v62 = vadd.f32 %v11489_v53, %v2230_v0  ;;  %v2681_v59 = vadd.f32 %v11498_v30, %v2231_v35  ;;  %v2679_v0 = vadd.f32 %v11503_v63, %v2229_v44  ;;  %v13407_v44 = vld [vmem:[#allocation29_spill] sm:$0xff] }
 0x2d9   :  { %v2228_v11 = vadd.f32 %v11546_v16, %v2002_v6  ;;  %v2233_v46 = vadd.f32 %v11569_v14, %v2007_v36  ;;  %v4576_v55 = vor.u32 %v4575_v33, %v4572_v32  ;;  %v2011_v16 = vadd.f32 %v11391_v58, %v1682_v52 }
 0x2da   :  { %v11632_v29 = vpop.f32.mrf.mxu1  ;;  %v11678_v21 = vpop.f32.mrf.mxu0  ;;  %v11691_v17 = vrot.slane %v4467_v7, 5  ;;  %v2986_v14 = vadd.f32 %v9226_v20, %v2680_v62  ;;  %v2682_v58 = vadd.f32 %v11513_v54, %v2232_v9  ;;  %v2241_v32 = vadd.f32 %v11604_v31, %v2015_v12 }
 0x2db   :  { %v2678_v6 = vadd.f32 %v11493_v47, %v2228_v11  ;;  %v2237_v53 = vadd.f32 %v11587_v4, %v2011_v16  ;;  %v2683_v60 = vadd.f32 %v11521_v10, %v2233_v46  ;;  %v11704_v20 = vrot.slane %v4576_v55, 4  ;;  %v13408_v46 = vld [vmem:[#allocation30_spill] sm:$0xff]  ;;  %v5039_v55 = vld [vmem:[#allocation3 + $0x50] sm:$0xe] }
 0x2dc   :  { %v11640_v25 = vpop.f32.mrf.mxu1  ;;  %v11698_v5 = vpop.f32.mrf.mxu0  ;;  %v11706_v47 = vrot.slane %v4579_v49, 5  ;;  %v2987_v30 = vadd.f32 %v11616_v8, %v2681_v59  ;;  %v2985_v4 = vadd.f32 %v11618_v40, %v2679_v0  ;;  %v8494_v33 = vrot.slane %v5031_v18, 9  ;;  %v13409_v49 = vld [vmem:[#allocation36_spill] sm:$0xff]  ;;  %v11751_v59 = vld [vmem:[#allocation11] ss:$0 sm:$0xff] }
 0x2dd   :  { %v2984_v3 = vadd.f32 %v11612_v57, %v2678_v6  ;;  %v5081_v52 = vrot.slane %v11662_v43, 5  ;;  %v2990_v54 = vadd.f32 %v11622_v26, %v11563_v24  ;;  %v2988_v10 = vadd.f32 %v11624_v28, %v2682_v58  ;;  %v13411_v18 = vld [vmem:[#allocation32_spill] sm:$0xff]  ;;  %v13412_v0 = vld [vmem:[#allocation33_spill] sm:$0xff] }
 0x2de   :  { %v11648_v50 = vpop.f32.mrf.mxu1  ;;  %v3213_v31 = vadd.f32 %v11548_v23, %v2986_v14  ;;  %v4470_v57 = vsel %vm10413_vm12, %v11689_v42, %v11691_v17  ;;  %v11719_v36 = vpop.f32.mrf.mxu0  ;;  %v2991_v8 = vadd.f32 %v11630_v15, %v11571_v61  ;;  %v2989_v40 = vadd.f32 %v11632_v29, %v2683_v60  ;;  %v11735_v29 = vld [vmem:[#allocation10] ss:$0 sm:$0xff]  ;;  %v13410_v14 = vld [vmem:[#allocation31_spill] sm:$0xff] }
 0x2df   :  { %v2994_v43 = vadd.f32 %v11640_v25, %v11577_v27  ;;  %v2687_v24 = vadd.f32 %v11534_v1, %v2237_v53  ;;  %v2992_v23 = vadd.f32 %v11648_v50, %v11581_v45  ;;  %v3211_v41 = vadd.f32 %v11552_v34, %v2984_v3  ;;  %v13403_v25 = vld [vmem:[#allocation27_spill] sm:$0xff]  ;;  %v13404_v1 = vld [vmem:[#allocation28_spill] sm:$0xff]  ;;  %v13406_v45 = vld [vmem:[#allocation46_spill] sm:$0xff] }
 0x2e0   :  { %v11658_v13 = vpop.f32.mrf.mxu1  ;;  %v4582_v7 = vsel %vm10413_vm12, %v11704_v20, %v11706_v47  ;;  %v2691_v61 = vadd.f32 %v11544_v38, %v2241_v32  ;;  %v3214_v27 = vadd.f32 %v13403_v25, %v2987_v30  ;;  %v3212_v48 = vadd.f32 %v13404_v1, %v2985_v4  ;;  %v11746_v38 = vpop.f32.mrf.mxu0  ;;  %v13413_v32 = vld [vmem:[#allocation47_spill] sm:$0xff]  ;;  %v13419_v1 = vld [vmem:[#allocation37_spill] sm:$0xff] }
 0x2e1   :  { %v11741_v50 = vsel %vm10369_vm6, %v8494_v33, %v5081_v52  ;;  %v3217_v9 = vadd.f32 %v13407_v44, %v2990_v54  ;;  %v3215_v62 = vadd.f32 %v13408_v46, %v2988_v10  ;;  %v2995_v16 = vadd.f32 %v11658_v13, %v13409_v49  ;;  %v13414_v4 = vld [vmem:[#allocation35_spill] sm:$0xff]  ;;  %v13421_v49 = vld [vmem:[#allocation38_spill] sm:$0xff] }
 0x2e2   :  { %v11667_v56 = vpop.f32.mrf.mxu1  ;;  %v3218_v6 = vadd.f32 %v13410_v14, %v2991_v8  ;;  %v3216_v53 = vadd.f32 %v13411_v18, %v2989_v40  ;;  %v11755_v58 = vadd.f32 %v13412_v0, %v2994_v43  ;;  %v11760_v33 = vadd.f32 %v13414_v4, %v2992_v23  ;;  %v13415_v52 = vld [vmem:[#allocation39_spill] sm:$0xff]  ;;  %v13416_v43 = vld [vmem:[#allocation49_spill] sm:$0xff]  ;;  %v13424_v4 = vld [vmem:[#allocation44_spill] sm:$0xff] }
 0x2e3   :  { %v2993_v13 = vadd.f32 %v11667_v56, %v2687_v24  ;;  %v5113_v8 = vrot.slane %v11682_v39, 5  ;;  %v13417_v23 = vld [vmem:[#allocation41_spill] sm:$0xff]  ;;  %v13418_v56 = vld [vmem:[#allocation43_spill] sm:$0xff] }
 0x2e4   :  { %v11680_v22 = vpop.f32.mrf.mxu1 }
 0x2e5   :  { %v2998_v54 = vadd.f32 %v11680_v22, %v13415_v52 }
 0x2e6   :  { %v11687_v51 = vpop.f32.mrf.mxu1 }
 0x2e7   :  { %v2996_v25 = vadd.f32 %v11687_v51, %v13417_v23  ;;  %v13422_v51 = vld [vmem:[#allocation40_spill] sm:$0xff] }
 0x2e8   :  { %v9239_v37 = vpop.f32.mrf.mxu1  ;;  %v11784_v14 = vadd.f32 %v13422_v51, %v2998_v54 }
 0x2e9   :  { %v2999_v24 = vadd.f32 %v9239_v37, %v13418_v56 }
 0x2ea   :  { %v2972_v63 = vpop.f32.mrf.mxu1 }
 0x2ec   :  { %v9274_v26 = vpop.f32.mrf.mxu1 }
 0x2ed   :  { %v3663_v28 = vadd.f32 %v9274_v26, %v3213_v31  ;;  %v8502_v31 = vrot.slane %v5039_v55, 9 }
 0x2ee   :  { %v3598_v15 = vpop.f32.mrf.mxu1 }
 0x2ef   :  { %v3969_v34 = vadd.f32 %v13406_v45, %v3663_v28  ;;  %v3661_v35 = vadd.f32 %v3598_v15, %v3211_v41  ;;  %v11769_v15 = vpop.f32.mrf.mxu0  ;;  %v11775_v45 = vadd.f32 %v13419_v1, %v2995_v16  ;;  %v11788_v37 = vsel %vm10369_vm6, %v8502_v31, %v5113_v8 }
 0x2f0   :  { %v9275_v12 = vpop.f32.mrf.mxu1 }
 0x2f1   :  { %v3992_v60 = vmul.f32 %v11735_v29, %v3969_v34  ;;  %v3967_v3 = vadd.f32 %v13413_v32, %v3661_v35  ;;  %v3664_v30 = vadd.f32 %v9275_v12, %v3214_v27  ;;  %v2997_v27 = vadd.f32 %v2972_v63, %v2691_v61  ;;  %v13420_v34 = vld [vmem:[#allocation51_spill] sm:$0xff]  ;;  %v11792_v18 = vpop.f32.mrf.mxu0 }
 0x2f2   :  { %v3601_v10 = vpop.f32.mrf.mxu1  ;;  %v11781_v12 = vadd.f32 %v13421_v49, %v2993_v13  ;;  %v11799_v13 = vadd.f32 %v13424_v4, %v2999_v24 }
 0x2f3   :  { %v3990_v40 = vmul.f32 %v11735_v29, %v3967_v3  ;;  %v3970_v26 = vadd.f32 %v13416_v43, %v3664_v30  ;;  %v3662_v28 = vadd.f32 %v3601_v10, %v3212_v48  ;;  %v4015_v41 = vadd.f32 %v11751_v59, %v3992_v60  ;;  %v13423_v3 = vld [vmem:[#allocation42_spill] sm:$0xff] }
 0x2f4   :  { %v9278_v22 = vpop.f32.mrf.mxu1  ;;  %v11796_v30 = vadd.f32 %v13423_v3, %v2996_v25  ;;  %v11817_v25 = vpop.f32.mrf.mxu0 }
 0x2f5   :  { %v3993_v39 = vmul.f32 %v11735_v29, %v3970_v26  ;;  %v3968_v35 = vadd.f32 %v13420_v34, %v3662_v28  ;;  %v3667_v44 = vadd.f32 %v9278_v22, %v3217_v9  ;;  %v4031_v48 = vmax.f32 %v4015_v41, 0.0 }
 0x2f6   :  { %v3614_v46 = vpop.f32.mrf.mxu1  ;;  %v4013_v55 = vadd.f32 %v11751_v59, %v3990_v40 }
 0x2f7   :  { %v3991_v63 = vmul.f32 %v11735_v29, %v3968_v35  ;;  %v3973_v61 = vadd.f32 %v11656_v19, %v3667_v44  ;;  %v3665_v16 = vadd.f32 %v3614_v46, %v3215_v62  ;;  %v8743_v9 = vpack.c.bf16 %v4031_v48, %v4031_v48  ;;  %v13425_v62 = vld [vmem:[#allocation45_spill] sm:$0xff] }
 0x2f8   :  { %v9279_v0 = vpop.f32.mrf.mxu1  ;;  %v4029_v60 = vmax.f32 %v4013_v55, 0.0  ;;  %v4016_v32 = vadd.f32 %v11751_v59, %v3993_v39  ;;  %v11804_v10 = vadd.f32 %v13425_v62, %v2997_v27  ;;  %v4338_v27 = vld [vmem:[#allocation3 + $0x1c] sm:$0x1]  ;;  %v4341_v62 = vld [vmem:[#allocation3 + $0x20] sm:$0xf] }
 0x2f9   :  { %v3971_v52 = vadd.f32 %v11678_v21, %v3665_v16  ;;  %v3668_v54 = vadd.f32 %v9279_v0, %v3218_v6  ;;  %4097 = vrot.lane.b32.xlu1 %v8743_v9, %s9935_s4  ;;  %v4175_v19 = vshrl.u32 %v8743_v9, 16  ;;  %v11807_v31 = vmul.f32 %v11735_v29, %v3973_v61  ;;  %v4326_v0 = vld [vmem:[#allocation3 + $0xc] sm:$0x1] }
 0x2fa   :  { %v3617_v8 = vpop.f32.mrf.mxu1  ;;  %v8741_v40 = vpack.c.bf16 %v4029_v60, %v4029_v60  ;;  %v4032_v43 = vmax.f32 %v4016_v32, 0.0  ;;  %v4014_v26 = vadd.f32 %v11751_v59, %v3991_v63  ;;  %v4178_v41 = vshll.u32 %v8743_v9, 16  ;;  %v4321_v9 = vld [vmem:[#allocation3 + $0x8] sm:$0xf]  ;;  %v9310_v32 = vpop.f32.mrf.mxu0 }
 0x2fb   :  { %v3974_v28 = vadd.f32 %v11698_v5, %v3668_v54  ;;  %v4177_v6 = vrot.slane %v4175_v19, 7  ;;  %v3666_v23 = vadd.f32 %v3617_v8, %v3216_v53  ;;  %v3994_v56 = vmul.f32 %v11735_v29, %v3971_v52  ;;  %v4335_v5 = vld [vmem:[#allocation3 + $0x18] sm:$0xf] }
 0x2fc   :  { %4093 = vrot.lane.b32.xlu0 %v8741_v40, %s9935_s4  ;;  %v4159_v22 = vshrl.u32 %v8741_v40, 16  ;;  %v4162_v1 = vshll.u32 %v8741_v40, 16  ;;  %v9282_v39 = vpop.f32.mrf.mxu1  ;;  %v8744_v34 = vpack.c.bf16 %v4032_v43, %v4032_v43  ;;  %v4030_v48 = vmax.f32 %v4014_v26, 0.0 }
 0x2fd   :  { %v4180_v35 = vor.u32 %v4178_v41, %v4177_v6  ;;  %v4181_v53 = vrot.slane %v4177_v6, 4  ;;  %v3972_v44 = vadd.f32 %v11719_v36, %v3666_v23  ;;  %v11829_v46 = vmul.f32 %v11735_v29, %v3974_v28  ;;  %v4344_v28 = vld [vmem:[#allocation3 + $0x24] sm:$0x1] }
 0x2fe   :  { %v4161_v55 = vrot.slane %v4159_v22, 7  ;;  %v3671_v49 = vadd.f32 %v9282_v39, %v11755_v58  ;;  %4099 = vrot.lane.b32.xlu1 %v8744_v34, %s9935_s4  ;;  %v4183_v51 = vshrl.u32 %v8744_v34, 16  ;;  %v3630_v63 = vpop.f32.mrf.mxu1  ;;  %v4186_v36 = vshll.u32 %v8744_v34, 16 }
 0x2ff   :  { %v4336_v61 = vsel %vm11813_vm2, %v4180_v35, %v4335_v5  ;;  %v4339_v16 = vsel %vm11822_vm3, %v4181_v53, %v4338_v27  ;;  %v3669_v60 = vadd.f32 %v3630_v63, %v11760_v33  ;;  %v3995_v19 = vmul.f32 %v11735_v29, %v3972_v44 }
 0x300   :  { %4337 = vst [vmem:[#allocation3 + $0x18] sm:$0xf] %v4336_v61  ;;  %4340 = vst [vmem:[#allocation3 + $0x1c] sm:$0x1] %v4339_v16  ;;  %v4164_v3 = vor.u32 %v4162_v1, %v4161_v55  ;;  %v4165_v58 = vrot.slane %v4161_v55, 4  ;;  %v3977_v4 = vadd.f32 %v11746_v38, %v3671_v49  ;;  %v4185_v52 = vrot.slane %v4183_v51, 7  ;;  %v9283_v54 = vpop.f32.mrf.mxu1 }
 0x301   :  { %v8742_v8 = vpack.c.bf16 %v4030_v48, %v4030_v48  ;;  %v3672_v40 = vadd.f32 %v9283_v54, %v11775_v45  ;;  %v4017_v43 = vadd.f32 %v11751_v59, %v3994_v56  ;;  %v3975_v38 = vadd.f32 %v11769_v15, %v3669_v60  ;;  %v3952_v56 = vpop.f32.mrf.mxu0  ;;  %v4329_v49 = vld [vmem:[#allocation3 + $0x10] sm:$0xf]  ;;  %v4332_v51 = vld [vmem:[#allocation3 + $0x14] sm:$0x1] }
 0x302   :  { %v4322_v33 = vsel %vm11813_vm2, %v4164_v3, %v4321_v9  ;;  %v4327_v26 = vsel %vm11822_vm3, %v4165_v58, %v4326_v0  ;;  %v4188_v6 = vor.u32 %v4186_v36, %v4185_v52  ;;  %v3633_v41 = vpop.f32.mrf.mxu1  ;;  %v11848_v23 = vmul.f32 %v11735_v29, %v3977_v4 }
 0x303   :  { %4323 = vst [vmem:[#allocation3 + $0x8] sm:$0xf] %v4322_v33  ;;  %4328 = vst [vmem:[#allocation3 + $0xc] sm:$0x1] %v4327_v26  ;;  %v4189_v5 = vrot.slane %v4185_v52, 4  ;;  %v4167_v45 = vshrl.u32 %v8742_v8, 16  ;;  %4095 = vrot.lane.b32.xlu0 %v8742_v8, %s9935_s4  ;;  %v3978_v1 = vadd.f32 %v11792_v18, %v3672_v40  ;;  %v3670_v39 = vadd.f32 %v3633_v41, %v11781_v12 }
 0x304   :  { %v4170_v27 = vshll.u32 %v8742_v8, 16  ;;  %v4342_v22 = vsel %vm11813_vm2, %v4188_v6, %v4341_v62  ;;  %v4033_v15 = vmax.f32 %v4017_v43, 0.0  ;;  %v9286_v34 = vpop.f32.mrf.mxu1  ;;  %v4018_v48 = vadd.f32 %v11751_v59, %v3995_v19  ;;  %v4347_v43 = vld [vmem:[#allocation3 + $0x28] sm:$0xf]  ;;  %v4350_v33 = vld [vmem:[#allocation3 + $0x2c] sm:$0x1] }
 0x305   :  { %4343 = vst [vmem:[#allocation3 + $0x20] sm:$0xf] %v4342_v22  ;;  %v4345_v35 = vsel %vm11822_vm3, %v4189_v5, %v4344_v28  ;;  %v4169_v53 = vrot.slane %v4167_v45, 7  ;;  %v3675_v44 = vadd.f32 %v9286_v34, %v11784_v14  ;;  %v3998_v55 = vmul.f32 %v11735_v29, %v3975_v38  ;;  %v9311_v14 = vpop.f32.mrf.mxu0 }
 0x306   :  { %4346 = vst [vmem:[#allocation3 + $0x24] sm:$0x1] %v4345_v35  ;;  %v3976_v18 = vadd.f32 %v11817_v25, %v3670_v39  ;;  %v8745_v63 = vpack.c.bf16 %v4033_v15, %v4033_v15  ;;  %v3646_v12 = vpop.f32.mrf.mxu1  ;;  %v4019_v61 = vadd.f32 %v11751_v59, %v11807_v31  ;;  %v11865_v60 = vmul.f32 %v11735_v29, %v3978_v1 }
 0x307   :  { %v4172_v16 = vor.u32 %v4170_v27, %v4169_v53  ;;  %v4173_v9 = vrot.slane %v4169_v53, 4  ;;  %v3981_v0 = vadd.f32 %v9310_v32, %v3675_v44  ;;  %v3673_v36 = vadd.f32 %v3646_v12, %v11796_v30  ;;  %v3955_v41 = vpop.f32.mrf.mxu0  ;;  %v4353_v44 = vld [vmem:[#allocation3 + $0x30] sm:$0xf]  ;;  %v12004_v17 = vld [vmem:[#allocation3 + $0x1c] sm:$0x1] }
 0x308   :  { %v11868_v3 = vmul.f32 %v11735_v29, %v3976_v18  ;;  %v4191_v58 = vshrl.u32 %v8745_v63, 16  ;;  %4101 = vrot.lane.b32.xlu0 %v8745_v63, %s9935_s4  ;;  %v4034_v25 = vmax.f32 %v4018_v48, 0.0  ;;  %v9287_v4 = vpop.f32.mrf.mxu1  ;;  %v4194_v30 = vshll.u32 %v8745_v63, 16  ;;  %v4356_v48 = vld [vmem:[#allocation3 + $0x34] sm:$0x1] }
 0x309   :  { %v4330_v31 = vsel %vm11813_vm2, %v4172_v16, %v4329_v49  ;;  %v4333_v32 = vsel %vm11822_vm3, %v4173_v9, %v4332_v51  ;;  %v11876_v52 = vmul.f32 %v11735_v29, %v3981_v0  ;;  %v4035_v62 = vmax.f32 %v4019_v61, 0.0  ;;  %v4359_v9 = vld [vmem:[#allocation3 + $0x38] sm:$0xf] }
 0x30a   :  { %4331 = vst [vmem:[#allocation3 + $0x10] sm:$0xf] %v4330_v31  ;;  %4334 = vst [vmem:[#allocation3 + $0x14] sm:$0x1] %v4333_v32  ;;  %v4193_v54 = vrot.slane %v4191_v58, 7  ;;  %v8746_v19 = vpack.c.bf16 %v4034_v25, %v4034_v25  ;;  %v3676_v8 = vadd.f32 %v9287_v4, %v11799_v13  ;;  %v3649_v40 = vpop.f32.mrf.mxu1  ;;  %v3979_v26 = vadd.f32 %v3952_v56, %v3673_v36 }
 0x30b   :  { %v3674_v28 = vadd.f32 %v3649_v40, %v11804_v10  ;;  %v4020_v6 = vadd.f32 %v11751_v59, %v11829_v46  ;;  %v4021_v38 = vadd.f32 %v11751_v59, %v3998_v55  ;;  %v8747_v1 = vpack.c.bf16 %v4035_v62, %v4035_v62  ;;  %v4420_v35 = vld [vmem:[#allocation3 + $0x8] sm:$0xf]  ;;  %v4362_v31 = vld [vmem:[#allocation3 + $0x3c] sm:$0x1] }
 0x30c   :  { %v4196_v5 = vor.u32 %v4194_v30, %v4193_v54  ;;  %v4197_v45 = vrot.slane %v4193_v54, 4  ;;  %4103 = vrot.lane.b32.xlu1 %v8746_v19, %s9935_s4  ;;  %v4199_v27 = vshrl.u32 %v8746_v19, 16  ;;  %v4202_v22 = vshll.u32 %v8746_v19, 16  ;;  %v9658_v20 = vld [vmem:[#allocation3 + $0x18] ss:$8 sps:$4 sm:$0xff]  }
 0x30d   :  { %v3982_v13 = vadd.f32 %v9311_v14, %v3676_v8  ;;  %v3980_v39 = vadd.f32 %v3955_v41, %v3674_v28  ;;  %v4036_v15 = vmax.f32 %v4020_v6, 0.0  ;;  %v4037_v34 = vmax.f32 %v4021_v38, 0.0  ;;  %4105 = vrot.lane.b32.xlu0 %v8747_v1, %s9935_s4  ;;  %v13430_v14 = vld [vmem:[#allocation48_spill] sm:$0xff]  ;;  %v4368_v41 = vld [vmem:[#allocation3 + $0x44] sm:$0x1] }
 0x30e   :  { %v4348_v56 = vsel %vm11813_vm2, %v4196_v5, %v4347_v43  ;;  %v4351_v10 = vsel %vm11822_vm3, %v4197_v45, %v4350_v33  ;;  %v4201_v46 = vrot.slane %v4199_v27, 7  ;;  %v11889_v53 = vmul.f32 %v11735_v29, %v3979_v26  ;;  %v4365_v43 = vld [vmem:[#allocation3 + $0x40] sm:$0xf]  ;;  %v4371_v45 = vld [vmem:[#allocation3 + $0x58] sm:$0xf] }
 0x30f   :  { %4349 = vst [vmem:[#allocation3 + $0x28] sm:$0xf] %v4348_v56  ;;  %4352 = vst [vmem:[#allocation3 + $0x2c] sm:$0x1] %v4351_v10  ;;  %v4207_v55 = vshrl.u32 %v8747_v1, 16  ;;  %v4210_v49 = vshll.u32 %v8747_v1, 16  ;;  %v11893_v51 = vmul.f32 %v11735_v29, %v3982_v13  ;;  %v8748_v12 = vpack.c.bf16 %v4036_v15, %v4036_v15 }
 0x310   :  { %v4204_v18 = vor.u32 %v4202_v22, %v4201_v46  ;;  %v4205_v63 = vrot.slane %v4201_v46, 4  ;;  %v8749_v61 = vpack.c.bf16 %v4037_v34, %v4037_v34  ;;  %v11896_v0 = vmul.f32 %v11735_v29, %v3980_v39  ;;  %v4374_v13 = vld [vmem:[#allocation3 + $0x5c] sm:$0x1]  ;;  %v4422_v46 = vld [vmem:[#allocation3 + $0x18] sm:$0xf] }
 0x311   :  { %v4209_v16 = vrot.slane %v4207_v55, 7  ;;  %v4472_v36 = vshrl.u32 %v4420_v35, 16  ;;  %v8475_v58 = vcombine.low %v13430_v14, %v4420_v35  ;;  %v4215_v32 = vshrl.u32 %v8748_v12, 16  ;;  %4107 = vrot.lane.b32.xlu1 %v8748_v12, %s9935_s4  ;;  %v4421_v8 = vld [vmem:[#allocation3 + $0x10] sm:$0xf] }
 0x312   :  { %v4354_v25 = vsel %vm11813_vm2, %v4204_v18, %v4353_v44  ;;  %v4357_v4 = vsel %vm11822_vm3, %v4205_v63, %v4356_v48  ;;  %v4475_v30 = vshll.u32 %v4420_v35, 16  ;;  %v4218_v29 = vshll.u32 %v8748_v12, 16  ;;  %4109 = vrot.lane.b32.xlu0 %v8749_v61, %s9935_s4  ;;  %v9654_v12 = vld [vmem:[#allocation13 + $0x50] sm:$0xff]   ;;  %v11931_v14 = vld [vmem:[#allocation3 + $0x20] sm:$0xf] }
 0x313   :  { %4355 = vst [vmem:[#allocation3 + $0x30] sm:$0xf] %v4354_v25  ;;  %4358 = vst [vmem:[#allocation3 + $0x34] sm:$0x1] %v4357_v4  ;;  %v4212_v54 = vor.u32 %v4210_v49, %v4209_v16  ;;  %v4213_v19 = vrot.slane %v4209_v16, 4  ;;  %v4223_v62 = vshrl.u32 %v8749_v61, 16  ;;  %9340 = vmatprep.mubr.msk.bf16.mxu0 %vm4730_vm4, %v8475_v58  ;;  %v4022_v28 = vadd.f32 %v11751_v59, %v11868_v3 }
 0x314   :  { %v4217_v40 = vrot.slane %v4215_v32, 7  ;;  %v4226_v33 = vshll.u32 %v8749_v61, 16  ;;  %v11906_v26 = vrot.slane %v4472_v36, 4  ;;  %v4023_v27 = vadd.f32 %v11751_v59, %v11848_v23  ;;  %v4377_v58 = vld [vmem:[#allocation3 + $0x60] sm:$0xf] }
 0x315   :  { %v4360_v6 = vsel %vm11813_vm2, %v4212_v54, %v4359_v9  ;;  %v4363_v38 = vsel %vm11822_vm3, %v4213_v19, %v4362_v31  ;;  %v4225_v5 = vrot.slane %v4223_v62, 7  ;;  %v4038_v39 = vmax.f32 %v4022_v28, 0.0  ;;  %v4380_v19 = vld [vmem:[#allocation3 + $0x64] sm:$0x1] }
 0x316   :  { %4361 = vst [vmem:[#allocation3 + $0x38] sm:$0xf] %v4360_v6  ;;  %4364 = vst [vmem:[#allocation3 + $0x3c] sm:$0x1] %v4363_v38  ;;  %v4220_v22 = vor.u32 %v4218_v29, %v4217_v40  ;;  %v4221_v1 = vrot.slane %v4217_v40, 4  ;;  %v4486_v15 = vshrl.u32 %v4421_v8, 16  ;;  %v8476_v31 = vcombine.low %v4421_v8, %v4422_v46 }
 0x317   :  { %v4228_v3 = vor.u32 %v4226_v33, %v4225_v5  ;;  %v4229_v56 = vrot.slane %v4225_v5, 4  ;;  %v4039_v10 = vmax.f32 %v4023_v27, 0.0  ;;  %v4489_v34 = vshll.u32 %v4421_v8, 16  ;;  %v4383_v33 = vld [vmem:[#allocation3 + $0x68] sm:$0xf] }
 0x318   :  { %v4366_v35 = vsel %vm11813_vm2, %v4220_v22, %v4365_v43  ;;  %v4369_v44 = vsel %vm11822_vm3, %v4221_v1, %v4368_v41  ;;  %v11920_v48 = vrot.slane %v4475_v30, 5  ;;  %v8750_v23 = vpack.c.bf16 %v4038_v39, %v4038_v39  ;;  %v11936_v30 = vld [vmem:[#allocation3 + $0x28] sm:$0xf]  ;;  %9341 = vmatmul.mubr.msk.bf16.vlgmr.msra.gmra.mxu0 %vm4730_vm4, %v8476_v31  ;;  %v4386_v41 = vld [vmem:[#allocation3 + $0x6c] sm:$0x1]  ;;  %v9656_v39 = vld [vmem:[#allocation13 + $0x48] sm:$0xff]  }
 0x319   :  { %4367 = vst [vmem:[#allocation3 + $0x40] sm:$0xf] %v4366_v35  ;;  %4370 = vst [vmem:[#allocation3 + $0x44] sm:$0x1] %v4369_v44  ;;  %v4372_v55 = vsel %vm11813_vm2, %v4228_v3, %v4371_v45  ;;  %v4375_v49 = vsel %vm11822_vm3, %v4229_v56, %v4374_v13  ;;  %v8751_v18 = vpack.c.bf16 %v4039_v10, %v4039_v10  ;;  %v11926_v63 = vrot.slane %v4486_v15, 4  ;;  %v13431_v27 = vld [vmem:[#allocation34_spill] sm:$0xff] }
 0x31a   :  { %4373 = vst [vmem:[#allocation3 + $0x58] sm:$0xf] %v4372_v55  ;;  %4376 = vst [vmem:[#allocation3 + $0x5c] sm:$0x1] %v4375_v49  ;;  %v4231_v61 = vshrl.u32 %v8750_v23, 16  ;;  %v4234_v16 = vshll.u32 %v8750_v23, 16  ;;  %4111 = vrot.lane.b32.xlu1 %v8750_v23, %s9935_s4  ;;  %v4024_v32 = vadd.f32 %v11751_v59, %v11865_v60  ;;  %v4025_v40 = vadd.f32 %v11751_v59, %v11889_v53 }
 0x31b   :  { %v11929_v9 = vrot.slane %v4489_v34, 5  ;;  %v4500_v36 = vshrl.u32 %v4422_v46, 16  ;;  %v4239_v25 = vshrl.u32 %v8751_v18, 16  ;;  %4113 = vrot.lane.b32.xlu0 %v8751_v18, %s9935_s4  ;;  %v4503_v4 = vshll.u32 %v4422_v46, 16  ;;  %9379 = vmatpush3.bf16.msra.mxu0 %v13431_v27  ;;  %v11955_v46 = vld [vmem:[#allocation3 + $0xc] sm:$0x1] }
 0x31c   :  { %v4233_v54 = vrot.slane %v4231_v61, 7  ;;  %v4242_v29 = vshll.u32 %v8751_v18, 16  ;;  %v4040_v28 = vmax.f32 %v4024_v32, 0.0  ;;  %v4514_v8 = vshrl.u32 %v11931_v14, 16  ;;  %9380 = vmatprep.subr.bf16.mxu0 %v9654_v12  ;;  %v4389_v49 = vld [vmem:[#allocation3 + $0x70] sm:$0xf] }
 0x31d   :  { %v11938_v62 = vrot.slane %v4500_v36, 4  ;;  %v4241_v43 = vrot.slane %v4239_v25, 7  ;;  %v4517_v6 = vshll.u32 %v11931_v14, 16  ;;  %v4041_v5 = vmax.f32 %v4025_v40, 0.0  ;;  %v11972_v32 = vld [vmem:[#allocation13 + $0x88] sm:$0xff]  }
 0x31e   :  { %v4236_v60 = vor.u32 %v4234_v16, %v4233_v54  ;;  %v4237_v38 = vrot.slane %v4233_v54, 4  ;;  %v4528_v45 = vshrl.u32 %v11936_v30, 16  ;;  %v11947_v53 = vrot.slane %v4503_v4, 5 }
 0x31f   :  { %v4244_v22 = vor.u32 %v4242_v29, %v4241_v43  ;;  %v4245_v1 = vrot.slane %v4241_v43, 4  ;;  %v8752_v13 = vpack.c.bf16 %v4040_v28, %v4040_v28  ;;  %v8753_v56 = vpack.c.bf16 %v4041_v5, %v4041_v5  ;;  %9381 = vmatpush3.bf16.msra.mxu0 %v9654_v12  ;;  %v4425_v43 = vld [vmem:[#allocation3 + $0x30] sm:$0xf]  ;;  %v4398_v28 = vld [vmem:[#allocation3 + $0x7c] sm:$0x1] }
 0x320   :  { %v4378_v15 = vsel %vm11813_vm2, %v4236_v60, %v4377_v58  ;;  %v4381_v3 = vsel %vm11822_vm3, %v4237_v38, %v4380_v19  ;;  %v11953_v10 = vrot.slane %v4514_v8, 4  ;;  %v11962_v23 = vrot.slane %v4517_v6, 5  ;;  %v4392_v58 = vld [vmem:[#allocation3 + $0x74] sm:$0x1]  ;;  %9382 = vmatprep.subr.bf16.mxu0 %v9656_v39  ;;  %v4395_v19 = vld [vmem:[#allocation3 + $0x78] sm:$0xf] }
 0x321   :  { %4379 = vst [vmem:[#allocation3 + $0x60] sm:$0xf] %v4378_v15  ;;  %4382 = vst [vmem:[#allocation3 + $0x64] sm:$0x1] %v4381_v3  ;;  %v4384_v34 = vsel %vm11813_vm2, %v4244_v22, %v4383_v33  ;;  %v4387_v35 = vsel %vm11822_vm3, %v4245_v1, %v4386_v41  ;;  %v4247_v44 = vshrl.u32 %v8752_v13, 16  ;;  %4115 = vrot.lane.b32.xlu1 %v8752_v13, %s9935_s4  ;;  %v4250_v55 = vshll.u32 %v8752_v13, 16 }
 0x322   :  { %4385 = vst [vmem:[#allocation3 + $0x68] sm:$0xf] %v4384_v34  ;;  %4388 = vst [vmem:[#allocation3 + $0x6c] sm:$0x1] %v4387_v35  ;;  %v4255_v18 = vshrl.u32 %v8753_v56, 16  ;;  %v4258_v61 = vshll.u32 %v8753_v56, 16  ;;  %4117 = vrot.lane.b32.xlu0 %v8753_v56, %s9935_s4  ;;  %v8477_v25 = vcombine.low %v11931_v14, %v11936_v30  ;;  %v4478_v4 = vor.u32 %v11920_v48, %v11906_v26 }
 0x323   :  { %v11965_v16 = vrot.slane %v4528_v45, 4  ;;  %v4249_v36 = vrot.slane %v4247_v44, 7  ;;  %v4481_v31 = vshll.u32 %v11955_v46, 16  ;;  %v4531_v29 = vshll.u32 %v11936_v30, 16  ;;  %v4426_v41 = vld [vmem:[#allocation3 + $0x38] sm:$0xf]  ;;  %9383 = vmatpush3.bf16.msra.mxu0 %v9656_v39 }
 0x324   :  { %v4257_v54 = vrot.slane %v4255_v18, 7  ;;  %v4026_v12 = vadd.f32 %v11751_v59, %v11896_v0  ;;  %v4027_v40 = vadd.f32 %v11751_v59, %v11876_v52  ;;  %9344 = vmatprep.mubr.msk.bf16.mxu0 %vm4730_vm4, %v8477_v25  ;;  %v4479_v26 = vrot.slane %v4478_v4, 4  ;;  %9422 = vmatprep.subr.bf16.mxu0 %v11972_v32  ;;  %v11998_v56 = vld [vmem:[#allocation3 + $0x14] sm:$0x1] }
 0x325   :  { %v4252_v14 = vor.u32 %v4250_v55, %v4249_v36  ;;  %v4253_v33 = vrot.slane %v4249_v36, 4  ;;  %v4483_v48 = vrot.slane %v4481_v31, 5  ;;  %v4542_v5 = vshrl.u32 %v4425_v43, 16  ;;  %v4401_v55 = vld [vmem:[#allocation3 + $0x80] sm:$0xf] }
 0x326   :  { %v4260_v8 = vor.u32 %v4258_v61, %v4257_v54  ;;  %v4261_v6 = vrot.slane %v4257_v54, 4  ;;  %v4042_v60 = vmax.f32 %v4026_v12, 0.0  ;;  %v4043_v38 = vmax.f32 %v4027_v40, 0.0 }
 0x327   :  { %v4390_v0 = vsel %vm11813_vm2, %v4252_v14, %v4389_v49  ;;  %v4393_v52 = vsel %vm11822_vm3, %v4253_v33, %v4392_v58  ;;  %v4484_v30 = vsel %vm10413_vm12, %v4479_v26, %v4483_v48  ;;  %v11996_v13 = vrot.slane %v4531_v29, 5  ;;  %v4404_v49 = vld [vmem:[#allocation3 + $0x84] sm:$0x1]  ;;  %v4410_v33 = vld [vmem:[#allocation3 + $0x8c] sm:$0x1] }
 0x328   :  { %4391 = vst [vmem:[#allocation3 + $0x70] sm:$0xf] %v4390_v0  ;;  %4394 = vst [vmem:[#allocation3 + $0x74] sm:$0x1] %v4393_v52  ;;  %v4396_v45 = vsel %vm11813_vm2, %v4260_v8, %v4395_v19  ;;  %v4399_v27 = vsel %vm11822_vm3, %v4261_v6, %v4398_v28  ;;  %v8456_v22 = vcombine.low %v4470_v57, %v4484_v30  ;;  %v4545_v15 = vshll.u32 %v4425_v43, 16 }
 0x329   :  { %v8754_v1 = vpack.c.bf16 %v4042_v60, %v4042_v60  ;;  %4397 = vst [vmem:[#allocation3 + $0x78] sm:$0xf] %v4396_v45  ;;  %4400 = vst [vmem:[#allocation3 + $0x7c] sm:$0x1] %v4399_v27  ;;  %v8755_v39 = vpack.c.bf16 %v4043_v38, %v4043_v38  ;;  %v4556_v3 = vshrl.u32 %v4426_v41, 16  ;;  %v12002_v35 = vrot.slane %v4542_v5, 4 }
 0x32a   :  { %9318 = vmatprep.mubr.msk.bf16.mxu1 %vm4730_vm4, %v8456_v22  ;;  %v4559_v44 = vshll.u32 %v4426_v41, 16  ;;  %v8478_v42 = vcombine.low %v4425_v43, %v4426_v41  ;;  %v12007_v36 = vrot.slane %v4545_v15, 5  ;;  %v4492_v4 = vor.u32 %v11929_v9, %v11926_v63  ;;  %v4407_v19 = vld [vmem:[#allocation3 + $0x88] sm:$0xf]  ;;  %v4428_v9 = vld [vmem:[#allocation3 + $0x58] sm:$0xf] }
 0x32b   :  { %v4263_v34 = vshrl.u32 %v8754_v1, 16  ;;  %4119 = vrot.lane.b32.xlu1 %v8754_v1, %s9935_s4  ;;  %v4266_v57 = vshll.u32 %v8754_v1, 16  ;;  %v4271_v18 = vshrl.u32 %v8755_v39, 16  ;;  %v4274_v61 = vshll.u32 %v8755_v39, 16  ;;  %4121 = vrot.lane.b32.xlu0 %v8755_v39, %s9935_s4  ;;  %v12027_v41 = vld [vmem:[#allocation3 + $0x24] sm:$0x1] }
 0x32c   :  { %v12009_v25 = vrot.slane %v4556_v3, 4  ;;  %9345 = vmatmul.mubr.msk.bf16.gmra.mxu0 %vm4730_vm4, %v8478_v42  ;;  %v4495_v31 = vshll.u32 %v11998_v56, 16  ;;  %v12015_v29 = vrot.slane %v4559_v44, 5  ;;  %v4506_v12 = vor.u32 %v11947_v53, %v11938_v62  ;;  %v12037_v45 = vld [vmem:[#allocation3 + $0x2c] sm:$0x1] }
 0x32d   :  { %v4265_v58 = vrot.slane %v4263_v34, 7  ;;  %v4273_v54 = vrot.slane %v4271_v18, 7  ;;  %v4509_v40 = vshll.u32 %v12004_v17, 16  ;;  %v4493_v28 = vrot.slane %v4492_v4, 4  ;;  %v4429_v27 = vld [vmem:[#allocation3 + $0x60] sm:$0xf] }
 0x32e   :  { %v4497_v26 = vrot.slane %v4495_v31, 5  ;;  %v4507_v6 = vrot.slane %v4506_v12, 4  ;;  %v5089_v53 = vrot.slane %v11998_v56, 5  ;;  %v4028_v5 = vadd.f32 %v11751_v59, %v11893_v51  ;;  %v13432_v15 = vld [vmem:[#allocation50_spill] sm:$0xff]  ;;  %v9650_v34 = vld [vmem:[#allocation13 + $0x38] sm:$0xff]  }
 0x32f   :  { %v4268_v43 = vor.u32 %v4266_v57, %v4265_v58  ;;  %v4269_v14 = vrot.slane %v4265_v58, 4  ;;  %v4276_v48 = vor.u32 %v4274_v61, %v4273_v54  ;;  %v4277_v8 = vrot.slane %v4273_v54, 4  ;;  %v4430_v51 = vld [vmem:[#allocation3 + $0x68] sm:$0xf] }
 0x330   :  { %v4511_v63 = vrot.slane %v4509_v40, 5  ;;  %v4498_v62 = vsel %vm10413_vm12, %v4493_v28, %v4497_v26  ;;  %v4584_v1 = vshrl.u32 %v4428_v9, 16  ;;  %v4587_v39 = vshll.u32 %v4428_v9, 16  ;;  %v9731_v58 = vld [vmem:[#allocation13 + $0x40] sm:$0xff]   ;;  %v12053_v40 = vld [vmem:[#allocation3 + $0x34] sm:$0x1] }
 0x331   :  { %v4402_v60 = vsel %vm11813_vm2, %v4268_v43, %v4401_v55  ;;  %v4405_v38 = vsel %vm11822_vm3, %v4269_v14, %v4404_v49  ;;  %v4408_v0 = vsel %vm11813_vm2, %v4276_v48, %v4407_v19  ;;  %v4411_v52 = vsel %vm11822_vm3, %v4277_v8, %v4410_v33  ;;  %v12058_v26 = vld [vmem:[#allocation3 + $0x3c] sm:$0x1]  ;;  %v4413_v48 = vld [vmem:[#allocation3 + $0x90] sm:$0xf]  ;;  %v4416_v8 = vld [vmem:[#allocation3 + $0x94] sm:$0x1] }
 0x332   :  { %4403 = vst [vmem:[#allocation3 + $0x80] sm:$0xf] %v4402_v60  ;;  %4406 = vst [vmem:[#allocation3 + $0x84] sm:$0x1] %v4405_v38  ;;  %v4512_v30 = vsel %vm10413_vm12, %v4507_v6, %v4511_v63  ;;  %v8479_v3 = vcombine.low %v13432_v15, %v4428_v9  ;;  %v4044_v44 = vmax.f32 %v4028_v5, 0.0  ;;  %v4520_v42 = vor.u32 %v11962_v23, %v11953_v10  ;;  %v12077_v15 = vld [vmem:[#allocation13 + $0x70] sm:$0xff]  }
 0x333   :  { %4409 = vst [vmem:[#allocation3 + $0x88] sm:$0xf] %v4408_v0  ;;  %4412 = vst [vmem:[#allocation3 + $0x8c] sm:$0x1] %v4411_v52  ;;  %v8457_v22 = vcombine.low %v4498_v62, %v4512_v30  ;;  %v4523_v57 = vshll.u32 %v12027_v41, 16  ;;  %v4534_v59 = vor.u32 %v11996_v13, %v11965_v16  ;;  %v5093_v55 = vrot.slane %v12004_v17, 5 }
 0x334   :  { %v12047_v49 = vrot.slane %v4584_v1, 4  ;;  %9348 = vmatprep.mubr.msk.bf16.mxu0 %vm4730_vm4, %v8479_v3  ;;  %v4537_v18 = vshll.u32 %v12037_v45, 16  ;;  %v4598_v61 = vshrl.u32 %v4429_v27, 16  ;;  %v8756_v10 = vpack.c.bf16 %v4044_v44, %v4044_v44  ;;  %v9657_v16 = vld [vmem:[#allocation13 + $0x30] sm:$0xff]   ;;  %v4431_v30 = vld [vmem:[#allocation3 + $0x70] sm:$0xf] }
 0x335   :  { %9319 = vmatmul.mubr.msk.bf16.vlgmr.msra.gmra.mxu1 %vm4730_vm4, %v8457_v22  ;;  %v12051_v23 = vrot.slane %v4587_v39, 5  ;;  %v4521_v4 = vrot.slane %v4520_v42, 4  ;;  %v4535_v31 = vrot.slane %v4534_v59, 4  ;;  %v4525_v13 = vrot.slane %v4523_v57, 5  ;;  %v4432_v5 = vld [vmem:[#allocation3 + $0x78] sm:$0xf] }
 0x336   :  { %9357 = vmatpush3.bf16.msra.mxu1 %v9731_v58  ;;  %v4539_v54 = vrot.slane %v4537_v18, 5  ;;  %v4601_v19 = vshll.u32 %v4429_v27, 16  ;;  %v4612_v12 = vshrl.u32 %v4430_v51, 16  ;;  %v4279_v43 = vshrl.u32 %v8756_v10, 16  ;;  %4123 = vrot.lane.b32.xlu1 %v8756_v10, %s9935_s4  ;;  %v5990_v17 = vld [vmem:[#allocation3 + $0x10] sm:$0xe] }
 0x337   :  { %9358 = vmatprep.subr.bf16.mxu1 %v9650_v34  ;;  %v4282_v14 = vshll.u32 %v8756_v10, 16  ;;  %v12056_v33 = vrot.slane %v4598_v61, 4  ;;  %v4615_v28 = vshll.u32 %v4430_v51, 16  ;;  %v4526_v6 = vsel %vm10413_vm12, %v4521_v4, %v4525_v13  ;;  %v12085_v61 = vld [vmem:[#allocation3 + $0x5c] sm:$0x1] }
 0x338   :  { %v4540_v63 = vsel %vm10413_vm12, %v4535_v31, %v4539_v54  ;;  %v12064_v9 = vrot.slane %v4601_v19, 5  ;;  %v8480_v60 = vcombine.low %v4429_v27, %v4430_v51  ;;  %v4281_v38 = vrot.slane %v4279_v43, 7 }
 0x339   :  { %v8458_v62 = vcombine.low %v4526_v6, %v4540_v63  ;;  %v12066_v0 = vrot.slane %v4612_v12, 4  ;;  %v4548_v52 = vor.u32 %v12007_v36, %v12002_v35  ;;  %v12070_v22 = vrot.slane %v4615_v28, 5  ;;  %v4433_v58 = vld [vmem:[#allocation3 + $0x80] sm:$0xf] }
 0x33a   :  { %9359 = vmatpush3.bf16.msra.mxu1 %v9650_v34  ;;  %9349 = vmatmul.mubr.msk.bf16.gmra.mxu0 %vm4730_vm4, %v8480_v60  ;;  %v4551_v1 = vshll.u32 %v12053_v40, 16  ;;  %v4562_v39 = vor.u32 %v12015_v29, %v12009_v25  ;;  %v4565_v27 = vshll.u32 %v12058_v26, 16  ;;  %v4284_v3 = vor.u32 %v4282_v14, %v4281_v38  ;;  %v4434_v13 = vld [vmem:[#allocation3 + $0x88] sm:$0xf]  ;;  %v12129_v47 = vld [vmem:[#allocation3 + $0x8c] sm:$0x1] }
 0x33b   :  { %9360 = vmatprep.subr.bf16.mxu1 %v9657_v16  ;;  %v4285_v44 = vrot.slane %v4281_v38, 4  ;;  %9322 = vmatprep.mubr.msk.bf16.mxu1 %vm4730_vm4, %v8458_v62  ;;  %v4549_v35 = vrot.slane %v4548_v52, 4  ;;  %v5105_v36 = vrot.slane %v12053_v40, 5  ;;  %v4626_v59 = vshrl.u32 %v4431_v30, 16  ;;  %v12100_v38 = vld [vmem:[#allocation3 + $0x6c] sm:$0x1] }
 0x33c   :  { %v4553_v34 = vrot.slane %v4551_v1, 5  ;;  %v4563_v42 = vrot.slane %v4562_v39, 4  ;;  %v4567_v57 = vrot.slane %v4565_v27, 5  ;;  %v4414_v51 = vsel %vm11813_vm2, %v4284_v3, %v4413_v48  ;;  %v12096_v48 = vld [vmem:[#allocation3 + $0x64] sm:$0x1] }
 0x33d   :  { %v4417_v25 = vsel %vm11822_vm3, %v4285_v44, %v4416_v8  ;;  %v4629_v29 = vshll.u32 %v4431_v30, 16  ;;  %v4640_v18 = vshrl.u32 %v4432_v5, 16  ;;  %4415 = vst [vmem:[#allocation3 + $0x90] sm:$0xf] %v4414_v51  ;;  %v5109_v21 = vrot.slane %v12058_v26, 5 }
 0x33e   :  { %9361 = vmatpush3.bf16.msra.mxu1 %v9657_v16  ;;  %4418 = vst [vmem:[#allocation3 + $0x94] sm:$0x1] %v4417_v25  ;;  %v4554_v10 = vsel %vm10413_vm12, %v4549_v35, %v4553_v34  ;;  %v4568_v4 = vsel %vm10413_vm12, %v4563_v42, %v4567_v57  ;;  %v4643_v31 = vshll.u32 %v4432_v5, 16  ;;  %v4628_v54 = vrot.slane %v4626_v59, 4  ;;  %v12106_v3 = vld [vmem:[#allocation3 + $0x74] sm:$0x1] }
 0x33f   :  { %9400 = vmatprep.subr.bf16.mxu1 %v12077_v15  ;;  %v8459_v24 = vcombine.low %v4554_v10, %v4568_v4  ;;  %v4631_v19 = vrot.slane %v4629_v29, 5  ;;  %v8481_v12 = vcombine.low %v4431_v30, %v4432_v5  ;;  %v4642_v43 = vrot.slane %v4640_v18, 4 }
 0x340   :  { %v4590_v16 = vor.u32 %v12051_v23, %v12047_v49  ;;  %v4593_v14 = vshll.u32 %v12085_v61, 16  ;;  %v4654_v28 = vshrl.u32 %v4433_v58, 16  ;;  %v4657_v8 = vshll.u32 %v4433_v58, 16  ;;  %v9655_v23 = vld [vmem:[#allocation3 + $0x8] ss:$8 sps:$4 sm:$0xff]  }
 0x341   :  { %9323 = vmatmul.mubr.msk.bf16.gmra.mxu1 %vm4730_vm4, %v8459_v24  ;;  %9352 = vmatprep.mubr.msk.bf16.mxu0 %vm4730_vm4, %v8481_v12  ;;  %v4668_v6 = vshrl.u32 %v4434_v13, 16  ;;  %v4671_v63 = vshll.u32 %v4434_v13, 16  ;;  %v8482_v60 = vcombine.low %v4433_v58, %v4434_v13  ;;  %v4645_v62 = vrot.slane %v4643_v31, 5  ;;  %v5032_v58 = vld [vmem:[#allocation3 + $0x8] sm:$0xe] }
 0x342   :  { %v4591_v52 = vrot.slane %v4590_v16, 4  ;;  %v4595_v30 = vrot.slane %v4593_v14, 5  ;;  %v4604_v49 = vor.u32 %v12064_v9, %v12056_v33  ;;  %v4656_v5 = vrot.slane %v4654_v28, 4  ;;  %v12114_v33 = vld [vmem:[#allocation3 + $0x7c] sm:$0x1] }
 0x343   :  { %v4659_v1 = vrot.slane %v4657_v8, 5  ;;  %v4670_v39 = vrot.slane %v4668_v6, 4  ;;  %9353 = vmatmul.mubr.msk.bf16.gmra.mxu0 %vm4730_vm4, %v8482_v60  ;;  %v4607_v27 = vshll.u32 %v12096_v48, 16  ;;  %v4618_v34 = vor.u32 %v12070_v22, %v12066_v0  ;;  %v12116_v9 = vld [vmem:[#allocation3 + $0x84] sm:$0x1] }
 0x344   :  { %v4596_v44 = vsel %vm10413_vm12, %v4591_v52, %v4595_v30  ;;  %v4605_v35 = vrot.slane %v4604_v49, 4  ;;  %v4621_v42 = vshll.u32 %v12100_v38, 16  ;;  %9384 = vmatprep.mubr.msk.bf16.mxu0 %vm4730_vm4, %v9655_v23  ;;  %v4673_v59 = vrot.slane %v4671_v63, 5  ;;  %v5034_v12 = vld [vmem:[#allocation3 + $0x18] sm:$0xe]  ;;  %v9668_v63 = vld [vmem:[#allocation13 + $0x80] sm:$0xff]  }
 0x345   :  { %v8460_v57 = vcombine.low %v4582_v7, %v4596_v44  ;;  %v4609_v51 = vrot.slane %v4607_v27, 5  ;;  %v5121_v25 = vrot.slane %v12096_v48, 5  ;;  %v4619_v29 = vrot.slane %v4618_v34, 4  ;;  %v5035_v16 = vld [vmem:[#allocation3 + $0x20] sm:$0xe] }
 0x346   :  { %v4623_v0 = vrot.slane %v4621_v42, 5  ;;  %v4632_v22 = vor.u32 %v4631_v19, %v4628_v54  ;;  %v4635_v18 = vshll.u32 %v12106_v3, 16  ;;  %v4646_v4 = vor.u32 %v4645_v62, %v4642_v43  ;;  %v5033_v43 = vld [vmem:[#allocation3 + $0x10] sm:$0xe]  ;;  %v5036_v44 = vld [vmem:[#allocation3 + $0x28] sm:$0xe] }
 0x347   :  { %9326 = vmatprep.mubr.msk.bf16.mxu1 %vm4730_vm4, %v8460_v57  ;;  %v4610_v10 = vsel %vm10413_vm12, %v4605_v35, %v4609_v51  ;;  %v4649_v31 = vshll.u32 %v12114_v33, 16  ;;  %v4660_v7 = vor.u32 %v4659_v1, %v4656_v5  ;;  %v4663_v19 = vshll.u32 %v12116_v9, 16  ;;  %v9659_v49 = vld [vmem:[#allocation3 + $0x28] ss:$8 sps:$4 sm:$0xff]  }
 0x348   :  { %v4624_v13 = vsel %vm10413_vm12, %v4619_v29, %v4623_v0  ;;  %v4633_v24 = vrot.slane %v4632_v22, 4  ;;  %v4637_v54 = vrot.slane %v4635_v18, 5  ;;  %v4647_v28 = vrot.slane %v4646_v4, 4  ;;  %v5037_v57 = vld [vmem:[#allocation3 + $0x30] sm:$0xe] }
 0x349   :  { %v8461_v14 = vcombine.low %v4610_v10, %v4624_v13  ;;  %v4651_v8 = vrot.slane %v4649_v31, 5  ;;  %v4661_v6 = vrot.slane %v4660_v7, 4  ;;  %v5125_v60 = vrot.slane %v12100_v38, 5  ;;  %v5038_v18 = vld [vmem:[#allocation3 + $0x38] sm:$0xe] }
 0x34a   :  { %v4665_v62 = vrot.slane %v4663_v19, 5  ;;  %v4674_v52 = vor.u32 %v4673_v59, %v4670_v39  ;;  %v4677_v30 = vshll.u32 %v12129_v47, 16  ;;  %v4638_v23 = vsel %vm10413_vm12, %v4633_v24, %v4637_v54  ;;  %v9669_v59 = vld [vmem:[#allocation13 + $0x78] sm:$0xff]   ;;  %v12153_v7 = vld [vmem:[#allocation3 + $0xc] sm:$0x1] }
 0x34b   :  { %9327 = vmatmul.mubr.msk.bf16.gmra.mxu1 %vm4730_vm4, %v8461_v14  ;;  %v4652_v5 = vsel %vm10413_vm12, %v4647_v28, %v4651_v8  ;;  %9385 = vmatmul.mubr.msk.bf16.vlgmr.msra.gmra.mxu0 %vm4730_vm4, %v9658_v20  ;;  %v5137_v1 = vrot.slane %v12116_v9, 5  ;;  %v8495_v27 = vrot.slane %v5032_v58, 9  ;;  %v5085_v51 = vrot.slane %v11955_v46, 5  ;;  %v5989_v58 = vld [vmem:[#allocation3 + $0x8] sm:$0xe] }
 0x34c   :  { %v8462_v35 = vcombine.low %v4638_v23, %v4652_v5  ;;  %v4666_v39 = vsel %vm10413_vm12, %v4661_v6, %v4665_v62  ;;  %v4675_v34 = vrot.slane %v4674_v52, 4  ;;  %v4679_v42 = vrot.slane %v4677_v30, 5  ;;  %9388 = vmatprep.mubr.msk.bf16.mxu0 %vm4730_vm4, %v9659_v49  ;;  %9423 = vmatpush3.bf16.msra.mxu0 %v11972_v32  ;;  %v5040_v32 = vld [vmem:[#allocation3 + $0x58] sm:$0xe]  ;;  %v5042_v54 = vld [vmem:[#allocation3 + $0x68] sm:$0xe] }
 0x34d   :  { %v8496_v29 = vrot.slane %v5033_v43, 9  ;;  %v8497_v0 = vrot.slane %v5034_v12, 9  ;;  %v8498_v22 = vrot.slane %v5035_v16, 9  ;;  %9424 = vmatprep.subr.bf16.mxu0 %v9668_v63  ;;  %v5097_v4 = vrot.slane %v12027_v41, 5  ;;  %v12169_v19 = vld [vmem:[#allocation3 + $0x14] sm:$0x1] }
 0x34e   :  { %9330 = vmatprep.mubr.msk.bf16.mxu1 %vm4730_vm4, %v8462_v35  ;;  %v4680_v10 = vsel %vm10413_vm12, %v4675_v34, %v4679_v42  ;;  %v8499_v31 = vrot.slane %v5036_v44, 9  ;;  %v5101_v20 = vrot.slane %v12037_v45, 5  ;;  %v5086_v13 = vsel %vm10369_vm6, %v8495_v27, %v5085_v51  ;;  %v5041_v45 = vld [vmem:[#allocation3 + $0x60] sm:$0xe]  ;;  %v5043_v23 = vld [vmem:[#allocation3 + $0x70] sm:$0xe] }
 0x34f   :  { %v8463_v46 = vcombine.low %v4666_v39, %v4680_v10  ;;  %v12161_v24 = vsel %vm10369_vm6, %v8496_v29, %v5089_v53  ;;  %v12167_v41 = vsel %vm10369_vm6, %v8497_v0, %v5093_v55  ;;  %v5141_v12 = vrot.slane %v12129_v47, 5  ;;  %v9660_v14 = vld [vmem:[#allocation3 + $0x38] ss:$8 sps:$4 sm:$0xff]   ;;  %v12186_v5 = vld [vmem:[#allocation3 + $0x1c] sm:$0x1] }
 0x350   :  { %v8510_v16 = vcombine.low %v11741_v50, %v5086_v13  ;;  %v8511_v56 = vcombine.low %v12161_v24, %v12167_v41  ;;  %v12177_v53 = vsel %vm10369_vm6, %v8499_v31, %v5101_v20  ;;  %9425 = vmatpush3.bf16.msra.mxu0 %v9668_v63  ;;  %v9662_v55 = vld [vmem:[#allocation3 + $0x58] ss:$8 sps:$4 sm:$0xff]   ;;  %v12181_v28 = vsel %vm10369_vm6, %v8498_v22, %v5097_v4  ;;  %v12230_v0 = vld [vmem:[#allocation3 + $0x2c] sm:$0x1]  ;;  %v5993_v22 = vld [vmem:[#allocation3 + $0x28] sm:$0xe] }
 0x351   :  { %v8500_v8 = vrot.slane %v5037_v57, 9  ;;  %v8501_v6 = vrot.slane %v5038_v18, 9  ;;  %v8503_v43 = vrot.slane %v5040_v32, 9  ;;  %9426 = vmatprep.subr.bf16.mxu0 %v9669_v59  ;;  %v12183_v50 = vld [vmem:[#allocation13 + $0xb8] sm:$0xff]   ;;  %v5117_v62 = vrot.slane %v12085_v61, 5 }
 0x352   :  { %v8504_v52 = vrot.slane %v5041_v45, 9  ;;  %v8505_v30 = vrot.slane %v5042_v54, 9  ;;  %v8567_v49 = vrot.slane %v5989_v58, 9  ;;  %v8512_v63 = vcombine.low %v12181_v28, %v12177_v53  ;;  %v5044_v35 = vld [vmem:[#allocation3 + $0x78] sm:$0xe]  ;;  %v9665_v45 = vld [vmem:[#allocation13 + $0x68] sm:$0xff]  }
 0x353   :  { %9331 = vmatmul.mubr.msk.bf16.gmra.mxu1 %vm4730_vm4, %v8463_v46  ;;  %9389 = vmatmul.mubr.msk.bf16.gmra.mxu0 %vm4730_vm4, %v9660_v14  ;;  %v12196_v27 = vsel %vm10369_vm6, %v8500_v8, %v5105_v36  ;;  %v6039_v61 = vrot.slane %v12153_v7, 5  ;;  %v8568_v44 = vrot.slane %v5990_v17, 9  ;;  %v5991_v39 = vld [vmem:[#allocation3 + $0x18] sm:$0xe]  ;;  %v12205_v34 = vsel %vm10369_vm6, %v8501_v6, %v5109_v21  ;;  %v12218_v57 = vld [vmem:[#allocation3 + $0x24] sm:$0x1] }
 0x354   :  { %9362 = vmatprep.mubr.msk.bf16.mxu1 %vm4730_vm4, %v8510_v16  ;;  %9392 = vmatprep.mubr.msk.bf16.mxu0 %vm4730_vm4, %v9662_v55  ;;  %v12209_v40 = vsel %vm10369_vm6, %v8503_v43, %v5117_v62  ;;  %v12215_v36 = vsel %vm10369_vm6, %v8504_v52, %v5121_v25  ;;  %v6043_v42 = vrot.slane %v12169_v19, 5  ;;  %v5992_v51 = vld [vmem:[#allocation3 + $0x20] sm:$0xe]  ;;  %v8513_v26 = vcombine.low %v12196_v27, %v12205_v34  ;;  %v5046_v4 = vld [vmem:[#allocation3 + $0x88] sm:$0xe] }
 0x355   :  { %v8514_v21 = vcombine.low %v11788_v37, %v12209_v40  ;;  %v12228_v48 = vsel %vm10369_vm6, %v8505_v30, %v5125_v60  ;;  %v8506_v29 = vrot.slane %v5043_v23, 9  ;;  %9427 = vmatpush3.bf16.msra.mxu0 %v9669_v59  ;;  %v5045_v25 = vld [vmem:[#allocation3 + $0x80] sm:$0xe]  ;;  %v12234_v18 = vsel %vm10369_vm6, %v8567_v49, %v6039_v61  ;;  %v12241_v60 = vld [vmem:[#allocation3 + $0x34] sm:$0x1] }
 0x356   :  { %v12238_v58 = vsel %vm10369_vm6, %v8568_v44, %v6043_v42  ;;  %v5129_v38 = vrot.slane %v12106_v3, 5  ;;  %v8507_v10 = vrot.slane %v5044_v35, 9  ;;  %9466 = vmatprep.subr.bf16.mxu0 %v12183_v50  ;;  %v8515_v59 = vcombine.low %v12215_v36, %v12228_v48  ;;  %v5994_v46 = vld [vmem:[#allocation3 + $0x30] sm:$0xe]  ;;  %v5547_v13 = vld [vmem:[#allocation3 + $0x8] sm:$0xf] }
 0x357   :  { %v5133_v31 = vrot.slane %v12114_v33, 5  ;;  %v8569_v20 = vrot.slane %v5991_v39, 9  ;;  %v6047_v32 = vrot.slane %v12186_v5, 5  ;;  %v8583_v3 = vcombine.low %v12234_v18, %v12238_v58  ;;  %v9663_v53 = vld [vmem:[#allocation3 + $0x68] ss:$8 sps:$4 sm:$0xff]  }
 0x358   :  { %v8570_v54 = vrot.slane %v5992_v51, 9  ;;  %v6051_v16 = vrot.slane %v12218_v57, 5  ;;  %v8508_v14 = vrot.slane %v5045_v25, 9  ;;  %v12253_v17 = vsel %vm10369_vm6, %v8506_v29, %v5129_v38  ;;  %v5549_v52 = vld [vmem:[#allocation3 + $0x10] sm:$0xf]  ;;  %v9670_v35 = vld [vmem:[#allocation13 + $0x60] sm:$0xff]  }
 0x359   :  { %v12257_v33 = vsel %vm10369_vm6, %v8507_v10, %v5133_v31  ;;  %v8509_v55 = vrot.slane %v5046_v4, 9  ;;  %v8571_v28 = vrot.slane %v5993_v22, 9  ;;  %v12261_v8 = vsel %vm10369_vm6, %v8569_v20, %v6047_v32  ;;  %v9664_v30 = vld [vmem:[#allocation3 + $0x78] ss:$8 sps:$4 sm:$0xff]   ;;  %v12288_v61 = vld [vmem:[#allocation3 + $0x3c] sm:$0x1] }
 0x35a   :  { %v12265_v6 = vsel %vm10369_vm6, %v8570_v54, %v6051_v16  ;;  %v12271_v43 = vsel %vm10369_vm6, %v8508_v14, %v5137_v1  ;;  %v6055_v62 = vrot.slane %v12230_v0, 5  ;;  %v8516_v49 = vcombine.low %v12253_v17, %v12257_v33  ;;  %v5995_v24 = vld [vmem:[#allocation3 + $0x38] sm:$0xe]  ;;  %v5996_v51 = vld [vmem:[#allocation3 + $0x40] sm:$0xe] }
 0x35b   :  { %9363 = vmatmul.mubr.msk.bf16.vlgmr.msra.gmra.mxu1 %vm4730_vm4, %v8511_v56  ;;  %9393 = vmatmul.mubr.msk.bf16.gmra.mxu0 %vm4730_vm4, %v9663_v53  ;;  %v12285_v9 = vsel %vm10369_vm6, %v8509_v55, %v5141_v12  ;;  %v8572_v1 = vrot.slane %v5994_v46, 9  ;;  %v6059_v23 = vrot.slane %v12241_v60, 5  ;;  %v8584_v41 = vcombine.low %v12261_v8, %v12265_v6  ;;  %v12296_v12 = vld [vmem:[#allocation3 + $0x44] sm:$0x1]  ;;  %v5551_v10 = vld [vmem:[#allocation3 + $0x18] sm:$0xf] }
 0x35c   :  { %9401 = vmatpush3.bf16.msra.mxu1 %v12077_v15  ;;  %9366 = vmatprep.mubr.msk.bf16.mxu1 %vm4730_vm4, %v8512_v63  ;;  %v8517_v47 = vcombine.low %v12271_v43, %v12285_v9  ;;  %v5580_v56 = vshrl.u32 %v5547_v13, 16  ;;  %v5583_v44 = vshll.u32 %v5547_v13, 16  ;;  %v12301_v39 = vsel %vm10369_vm6, %v8571_v28, %v6055_v62  ;;  %v5553_v46 = vld [vmem:[#allocation3 + $0x20] sm:$0xf]  ;;  %v9667_v14 = vld [vmem:[#allocation3 + $0x88] ss:$8 sps:$4 sm:$0xff]  }
 0x35d   :  { %9396 = vmatprep.mubr.msk.bf16.mxu0 %vm4730_vm4, %v9664_v30  ;;  %9402 = vmatprep.subr.bf16.mxu1 %v9665_v45  ;;  %v5589_v15 = vshll.u32 %v12153_v7, 16  ;;  %v5594_v63 = vshrl.u32 %v5549_v52, 16  ;;  %v5597_v42 = vshll.u32 %v5549_v52, 16  ;;  %v12306_v29 = vsel %vm10369_vm6, %v8572_v1, %v6059_v23  ;;  %v5997_v52 = vld [vmem:[#allocation3 + $0x58] sm:$0xe]  ;;  %v12317_v23 = vld [vmem:[#allocation13 + $0xa0] sm:$0xff]  }
 0x35e   :  { %v5582_v25 = vrot.slane %v5580_v56, 4  ;;  %v5585_v22 = vrot.slane %v5583_v44, 5  ;;  %v5603_v38 = vshll.u32 %v12169_v19, 16  ;;  %v8573_v32 = vrot.slane %v5995_v24, 9  ;;  %v12311_v19 = vld [vmem:[#allocation3 + $0x5c] sm:$0x1] }
 0x35f   :  { %v5591_v4 = vrot.slane %v5589_v15, 5  ;;  %v5596_v31 = vrot.slane %v5594_v63, 4  ;;  %v5599_v20 = vrot.slane %v5597_v42, 5  ;;  %v6063_v54 = vrot.slane %v12288_v61, 5  ;;  %v5998_v30 = vld [vmem:[#allocation3 + $0x60] sm:$0xe] }
 0x360   :  { %9403 = vmatpush3.bf16.msra.mxu1 %v9665_v45  ;;  %v5586_v13 = vor.u32 %v5585_v22, %v5582_v25  ;;  %v5605_v7 = vrot.slane %v5603_v38, 5  ;;  %v8574_v16 = vrot.slane %v5996_v51, 9  ;;  %v6067_v55 = vrot.slane %v12296_v12, 5  ;;  %v12343_v51 = vld [vmem:[#allocation3 + $0x64] sm:$0x1] }
 0x361   :  { %9404 = vmatprep.subr.bf16.mxu1 %v9670_v35  ;;  %v5600_v53 = vor.u32 %v5599_v20, %v5596_v31  ;;  %v5608_v28 = vshrl.u32 %v5551_v10, 16  ;;  %v5611_v62 = vshll.u32 %v5551_v10, 16  ;;  %v12315_v45 = vsel %vm10369_vm6, %v8573_v32, %v6063_v54  ;;  %v5555_v58 = vld [vmem:[#allocation3 + $0x28] sm:$0xf]  ;;  %v5557_v22 = vld [vmem:[#allocation3 + $0x30] sm:$0xf] }
 0x362   :  { %v5587_v1 = vrot.slane %v5586_v13, 4  ;;  %v5617_v24 = vshll.u32 %v12186_v5, 16  ;;  %v5622_v56 = vshrl.u32 %v5553_v46, 16  ;;  %v12327_v15 = vsel %vm10369_vm6, %v8574_v16, %v6067_v55  ;;  %v9674_v13 = vld [vmem:[#allocation13 + $0xb0] sm:$0xff]   ;;  %v6000_v55 = vld [vmem:[#allocation3 + $0x70] sm:$0xe] }
 0x363   :  { %9367 = vmatmul.mubr.msk.bf16.gmra.mxu1 %vm4730_vm4, %v8513_v26  ;;  %9397 = vmatmul.mubr.msk.bf16.gmra.mxu0 %vm4730_vm4, %v9667_v14  ;;  %v5601_v44 = vrot.slane %v5600_v53, 4  ;;  %v5610_v63 = vrot.slane %v5608_v28, 4  ;;  %v5613_v42 = vrot.slane %v5611_v62, 5  ;;  %v8585_v5 = vcombine.low %v12301_v39, %v12306_v29  ;;  %v5999_v53 = vld [vmem:[#allocation3 + $0x68] sm:$0xe] }
 0x364   :  { %9370 = vmatprep.mubr.msk.bf16.mxu1 %vm4730_vm4, %v8514_v21  ;;  %9428 = vmatprep.mubr.msk.bf16.mxu0 %vm4730_vm4, %v8583_v3  ;;  %v5592_v27 = vsel %vm10413_vm12, %v5587_v1, %v5591_v4  ;;  %v8586_v34 = vcombine.low %v12315_v45, %v12327_v15  ;;  %v5624_v26 = vrot.slane %v5622_v56, 4  ;;  %v5625_v21 = vshll.u32 %v5553_v46, 16  ;;  %v12357_v46 = vld [vmem:[#allocation3 + $0x6c] sm:$0x1]  ;;  %v12368_v1 = vld [vmem:[#allocation3 + $0x74] sm:$0x1] }
 0x365   :  { %9405 = vmatpush3.bf16.msra.mxu1 %v9670_v35  ;;  %v5606_v37 = vsel %vm10413_vm12, %v5601_v44, %v5605_v7  ;;  %v5614_v40 = vor.u32 %v5613_v42, %v5610_v63  ;;  %v5631_v18 = vshll.u32 %v12218_v57, 16  ;;  %v5619_v3 = vrot.slane %v5617_v24, 5  ;;  %v5559_v24 = vld [vmem:[#allocation3 + $0x38] sm:$0xf]  ;;  %v5561_v42 = vld [vmem:[#allocation3 + $0x40] sm:$0xf] }
 0x366   :  { %9444 = vmatprep.subr.bf16.mxu1 %v12317_v23  ;;  %v8575_v39 = vrot.slane %v5997_v52, 9  ;;  %v6071_v29 = vrot.slane %v12311_v19, 5  ;;  %v8576_v25 = vrot.slane %v5998_v30, 9  ;;  %v12350_v38 = vcombine.low %v5592_v27, %v5606_v37  ;;  %v9675_v37 = vld [vmem:[#allocation13 + $0xa8] sm:$0xff]  }
 0x367   :  { %v5615_v10 = vrot.slane %v5614_v40, 4  ;;  %v5627_v35 = vrot.slane %v5625_v21, 5  ;;  %v6075_v4 = vrot.slane %v12343_v51, 5  ;;  %v5633_v31 = vrot.slane %v5631_v18, 5 }
 0x368   :  { %v12355_v20 = vsel %vm10369_vm6, %v8575_v39, %v6071_v29  ;;  %v5636_v57 = vshrl.u32 %v5555_v58, 16  ;;  %v5639_v32 = vshll.u32 %v5555_v58, 16  ;;  %v5645_v16 = vshll.u32 %v12230_v0, 16  ;;  %v6002_v39 = vld [vmem:[#allocation3 + $0x80] sm:$0xe] }
 0x369   :  { %v5628_v7 = vor.u32 %v5627_v35, %v5624_v26  ;;  %v12361_v54 = vsel %vm10369_vm6, %v8576_v25, %v6075_v4  ;;  %v5650_v14 = vshrl.u32 %v5557_v22, 16  ;;  %v5620_v28 = vsel %vm10413_vm12, %v5615_v10, %v5619_v3  ;;  %v6001_v3 = vld [vmem:[#allocation3 + $0x78] sm:$0xe] }
 0x36a   :  { %v8587_v62 = vcombine.low %v12355_v20, %v12361_v54  ;;  %v5638_v52 = vrot.slane %v5636_v57, 4  ;;  %v5641_v30 = vrot.slane %v5639_v32, 5  ;;  %v5653_v44 = vshll.u32 %v5557_v22, 16  ;;  %v5563_v4 = vld [vmem:[#allocation3 + $0x58] sm:$0xf] }
 0x36b   :  { %9371 = vmatmul.mubr.msk.bf16.gmra.mxu1 %vm4730_vm4, %v8515_v59  ;;  %9429 = vmatmul.mubr.msk.bf16.vlgmr.msra.gmra.mxu0 %vm4730_vm4, %v8584_v41  ;;  %v5629_v0 = vrot.slane %v5628_v7, 4  ;;  %v5652_v56 = vrot.slane %v5650_v14, 4  ;;  %v5659_v63 = vshll.u32 %v12241_v60, 16  ;;  %v8577_v48 = vrot.slane %v5999_v53, 9  ;;  %v5565_v53 = vld [vmem:[#allocation3 + $0x60] sm:$0xf] }
 0x36c   :  { %9374 = vmatprep.mubr.msk.bf16.mxu1 %vm4730_vm4, %v8516_v49  ;;  %9432 = vmatprep.mubr.msk.bf16.mxu0 %vm4730_vm4, %v8585_v5  ;;  %v5642_v36 = vor.u32 %v5641_v30, %v5638_v52  ;;  %v6079_v59 = vrot.slane %v12357_v46, 5  ;;  %v8578_v8 = vrot.slane %v6000_v55, 9  ;;  %v5647_v41 = vrot.slane %v5645_v16, 5  ;;  %v12391_v5 = vld [vmem:[#allocation3 + $0x7c] sm:$0x1] }
 0x36d   :  { %v5634_v6 = vsel %vm10413_vm12, %v5629_v0, %v5633_v31  ;;  %v5655_v27 = vrot.slane %v5653_v44, 5  ;;  %v6083_v60 = vrot.slane %v12368_v1, 5  ;;  %9467 = vmatpush3.bf16.msra.mxu0 %v12183_v50  ;;  %v5661_v33 = vrot.slane %v5659_v63, 5  ;;  %v12401_v50 = vld [vmem:[#allocation3 + $0x84] sm:$0x1]  ;;  %v12433_v63 = vpop.permute.xlu1 %4097 }
 0x36e   :  { %v12389_v26 = vcombine.low %v5620_v28, %v5634_v6  ;;  %v5643_v17 = vrot.slane %v5642_v36, 4  ;;  %v5664_v49 = vshrl.u32 %v5559_v24, 16  ;;  %9468 = vmatprep.subr.bf16.mxu0 %v9674_v13  ;;  %v12395_v21 = vsel %vm10369_vm6, %v8577_v48, %v6079_v59  ;;  %v12403_v29 = vpop.permute.xlu0 %4093  ;;  %v12426_v30 = vld [vmem:[#allocation3 + $0x8c] sm:$0x1]  ;;  %v6003_v44 = vld [vmem:[#allocation3 + $0x88] sm:$0xe] }
 0x36f   :  { %v5656_v40 = vor.u32 %v5655_v27, %v5652_v56  ;;  %v12399_v18 = vsel %vm10369_vm6, %v8578_v8, %v6083_v60  ;;  %v5667_v58 = vshll.u32 %v5559_v24, 16  ;;  %v5673_v10 = vshll.u32 %v12288_v61, 16  ;;  %v12439_v8 = vld [vmem:[#allocation3 + $0x94] sm:$0x1]  ;;  %v6004_v6 = vld [vmem:[#allocation3 + $0x90] sm:$0xe] }
 0x370   :  { %v5648_v25 = vsel %vm10413_vm12, %v5643_v17, %v5647_v41  ;;  %v5666_v22 = vrot.slane %v5664_v49, 4  ;;  %v5678_v35 = vshrl.u32 %v5561_v42, 16  ;;  %v8588_v20 = vcombine.low %v12395_v21, %v12399_v18  ;;  %v5567_v17 = vld [vmem:[#allocation3 + $0x68] sm:$0xf]  ;;  %4144 = vst.msk [vmem:[#allocation4 + $0x8] sm:$0xf] %vm4141_vm5, %v12433_v63 }
 0x371   :  { %v5657_v31 = vrot.slane %v5656_v40, 4  ;;  %v5669_v57 = vrot.slane %v5667_v58, 5  ;;  %v5681_v32 = vshll.u32 %v5561_v42, 16  ;;  %9469 = vmatpush3.bf16.msra.mxu0 %v9674_v13  ;;  %v5687_v54 = vshll.u32 %v12296_v12, 16  ;;  %4142 = vst.msk [vmem:[#allocation4] sm:$0xf] %vm4141_vm5, %v12403_v29 }
 0x372   :  { %v5680_v7 = vrot.slane %v5678_v35, 4  ;;  %v8579_v16 = vrot.slane %v6001_v3, 9  ;;  %v6087_v14 = vrot.slane %v12391_v5, 5  ;;  %9470 = vmatprep.subr.bf16.mxu0 %v9675_v37  ;;  %v8580_v55 = vrot.slane %v6002_v39, 9 }
 0x373   :  { %9375 = vmatmul.mubr.msk.bf16.gmra.mxu1 %vm4730_vm4, %v8517_v47  ;;  %9433 = vmatmul.mubr.msk.bf16.gmra.mxu0 %vm4730_vm4, %v8586_v34  ;;  %v5662_v61 = vsel %vm10413_vm12, %v5657_v31, %v5661_v33  ;;  %v5670_v13 = vor.u32 %v5669_v57, %v5666_v22  ;;  %v5683_v12 = vrot.slane %v5681_v32, 5  ;;  %v5675_v43 = vrot.slane %v5673_v10, 5 }
 0x374   :  { %9406 = vmatprep.mubr.msk.bf16.mxu1 %vm4730_vm4, %v12350_v38  ;;  %9436 = vmatprep.mubr.msk.bf16.mxu0 %vm4730_vm4, %v8587_v62  ;;  %v8550_v28 = vcombine.low %v5648_v25, %v5662_v61  ;;  %v5689_v9 = vrot.slane %v5687_v54, 5  ;;  %v6091_v47 = vrot.slane %v12401_v50, 5  ;;  %v5692_v15 = vshrl.u32 %v5563_v4, 16  ;;  %v5569_v25 = vld [vmem:[#allocation3 + $0x70] sm:$0xf] }
 0x375   :  { %v5671_v52 = vrot.slane %v5670_v13, 4  ;;  %v5684_v45 = vor.u32 %v5683_v12, %v5680_v7  ;;  %v5695_v34 = vshll.u32 %v5563_v4, 16  ;;  %9471 = vmatpush3.bf16.msra.mxu0 %v9675_v37  ;;  %v12428_v24 = vpop.permute.xlu0 %4095  ;;  %v5701_v38 = vshll.u32 %v12311_v19, 16  ;;  %v9672_v37 = vld [vmem:[#allocation13 + $0x98] sm:$0xff]  }
 0x376   :  { %v6092_v0 = vsel %vm10369_vm6, %v8580_v55, %v6091_v47  ;;  %v5706_v62 = vshrl.u32 %v5565_v53, 16  ;;  %v5709_v56 = vshll.u32 %v5565_v53, 16  ;;  %v6088_v48 = vsel %vm10369_vm6, %v8579_v16, %v6087_v14  ;;  %v9676_v53 = vld [vmem:[#allocation13 + $0x90] sm:$0xff]   ;;  %4143 = vst.msk [vmem:[#allocation4 + $0x4] sm:$0xf] %vm4141_vm5, %v12428_v24 }
 0x377   :  { %v5676_v42 = vsel %vm10413_vm12, %v5671_v52, %v5675_v43  ;;  %v5685_v36 = vrot.slane %v5684_v45, 4  ;;  %v5694_v59 = vrot.slane %v5692_v15, 4  ;;  %v8589_v41 = vcombine.low %v6088_v48, %v6092_v0  ;;  %v6508_v43 = vld [vmem:[#allocation3 + $0x18] sm:$0xf]  ;;  %v12468_v0 = vld [vmem:[#allocation3 + $0x1c] sm:$0x1] }
 0x378   :  { %v5697_v27 = vrot.slane %v5695_v34, 5  ;;  %v5708_v60 = vrot.slane %v5706_v62, 4  ;;  %v5711_v19 = vrot.slane %v5709_v56, 5  ;;  %v5715_v49 = vshll.u32 %v12343_v51, 16  ;;  %v5571_v48 = vld [vmem:[#allocation3 + $0x78] sm:$0xf] }
 0x379   :  { %v5690_v33 = vsel %vm10413_vm12, %v5685_v36, %v5689_v9  ;;  %v8581_v40 = vrot.slane %v6003_v44, 9  ;;  %v6095_v21 = vrot.slane %v12426_v30, 5  ;;  %v5703_v58 = vrot.slane %v5701_v38, 5 }
 0x37a   :  { %v5698_v18 = vor.u32 %v5697_v27, %v5694_v59  ;;  %v5712_v3 = vor.u32 %v5711_v19, %v5708_v60  ;;  %v8582_v39 = vrot.slane %v6004_v6, 9  ;;  %v8551_v22 = vcombine.low %v5676_v42, %v5690_v33  ;;  %v12449_v51 = vpop.permute.xlu0 %4101  ;;  %v12471_v59 = vld [vmem:[#allocation13 + $0xd0] sm:$0xff]  }
 0x37b   :  { %9407 = vmatmul.mubr.msk.bf16.vlgmr.msra.gmra.mxu1 %vm4730_vm4, %v12389_v26  ;;  %9437 = vmatmul.mubr.msk.bf16.gmra.mxu0 %vm4730_vm4, %v8588_v20  ;;  %v5717_v10 = vrot.slane %v5715_v49, 5  ;;  %v6099_v35 = vrot.slane %v12439_v8, 5  ;;  %v5720_v4 = vshrl.u32 %v5567_v17, 16  ;;  %v6096_v32 = vsel %vm10369_vm6, %v8581_v40, %v6095_v21  ;;  %v12455_v26 = vpop.permute.xlu1 %4099  ;;  %4146 = vst.msk [vmem:[#allocation4 + $0x10] sm:$0xf] %vm4141_vm5, %v12449_v51 }
 0x37c   :  { %9445 = vmatpush3.bf16.msra.mxu1 %v12317_v23  ;;  %9410 = vmatprep.mubr.msk.bf16.mxu1 %vm4730_vm4, %v8550_v28  ;;  %v5699_v31 = vrot.slane %v5698_v18, 4  ;;  %v5713_v57 = vrot.slane %v5712_v3, 4  ;;  %v5723_v7 = vshll.u32 %v5567_v17, 16  ;;  %v5734_v16 = vshrl.u32 %v5569_v25, 16  ;;  %v6506_v23 = vld [vmem:[#allocation3 + $0x10] sm:$0xf] }
 0x37d   :  { %9440 = vmatprep.mubr.msk.bf16.mxu0 %vm4730_vm4, %v8589_v41  ;;  %9446 = vmatprep.subr.bf16.mxu1 %v9672_v37  ;;  %v6100_v20 = vsel %vm10369_vm6, %v8582_v39, %v6099_v35  ;;  %v5722_v54 = vrot.slane %v5720_v4, 4  ;;  %v5737_v14 = vshll.u32 %v5569_v25, 16  ;;  %v5729_v55 = vshll.u32 %v12357_v46, 16  ;;  %v12465_v28 = vld [vmem:[#allocation3 + $0x14] sm:$0x1] }
 0x37e   :  { %v5704_v61 = vsel %vm10413_vm12, %v5699_v31, %v5703_v58  ;;  %v5718_v13 = vsel %vm10413_vm12, %v5713_v57, %v5717_v10  ;;  %v5725_v12 = vrot.slane %v5723_v7, 5  ;;  %v8590_v47 = vcombine.low %v6096_v32, %v6100_v20  ;;  %v5573_v18 = vld [vmem:[#allocation3 + $0x80] sm:$0xf]  ;;  %4145 = vst.msk [vmem:[#allocation4 + $0xc] sm:$0xf] %vm4141_vm5, %v12455_v26 }
 0x37f   :  { %v8552_v9 = vcombine.low %v5704_v61, %v5718_v13  ;;  %v5736_v52 = vrot.slane %v5734_v16, 4  ;;  %v5739_v45 = vrot.slane %v5737_v14, 5  ;;  %v5743_v34 = vshll.u32 %v12368_v1, 16  ;;  %v4104_v56 = vpop.permute.xlu1 %4103  ;;  %v4106_v6 = vpop.permute.xlu0 %4105  ;;  %v6510_v57 = vld [vmem:[#allocation3 + $0x20] sm:$0xf] }
 0x380   :  { %9447 = vmatpush3.bf16.msra.mxu1 %v9672_v37  ;;  %v5726_v15 = vor.u32 %v5725_v12, %v5722_v54  ;;  %v6539_v38 = vshrl.u32 %v6506_v23, 16  ;;  %v6542_v62 = vshll.u32 %v6506_v23, 16  ;;  %v6548_v42 = vshll.u32 %v12465_v28, 16  ;;  %v12483_v23 = vld [vmem:[#allocation3 + $0x24] sm:$0x1] }
 0x381   :  { %v5740_v44 = vor.u32 %v5739_v45, %v5736_v52  ;;  %v6553_v46 = vshrl.u32 %v6508_v43, 16  ;;  %v6556_v36 = vshll.u32 %v6508_v43, 16  ;;  %9448 = vmatprep.subr.bf16.mxu1 %v9676_v53  ;;  %v5731_v27 = vrot.slane %v5729_v55, 5  ;;  %v6512_v12 = vld [vmem:[#allocation3 + $0x28] sm:$0xf] }
 0x382   :  { %v5727_v41 = vrot.slane %v5726_v15, 4  ;;  %v6541_v60 = vrot.slane %v6539_v38, 4  ;;  %v6544_v19 = vrot.slane %v6542_v62, 5  ;;  %v5745_v17 = vrot.slane %v5743_v34, 5  ;;  %4147 = vst.msk [vmem:[#allocation4 + $0x14] sm:$0xf] %vm4141_vm5, %v4104_v56 }
 0x383   :  { %9411 = vmatmul.mubr.msk.bf16.gmra.mxu1 %vm4730_vm4, %v8551_v22  ;;  %9441 = vmatmul.mubr.msk.bf16.gmra.mxu0 %vm4730_vm4, %v8590_v47  ;;  %v5741_v1 = vrot.slane %v5740_v44, 4  ;;  %v6555_v33 = vrot.slane %v6553_v46, 4  ;;  %v6558_v49 = vrot.slane %v6556_v36, 5  ;;  %v6550_v40 = vrot.slane %v6548_v42, 5  ;;  %v4108_v32 = vpop.permute.xlu1 %4107  ;;  %4148 = vst.msk [vmem:[#allocation4 + $0x18] sm:$0xf] %vm4141_vm5, %v4106_v6 }
 0x384   :  { %9414 = vmatprep.mubr.msk.bf16.mxu1 %vm4730_vm4, %v8552_v9  ;;  %v6545_v37 = vor.u32 %v6544_v19, %v6541_v60  ;;  %v6562_v21 = vshll.u32 %v12468_v0, 16  ;;  %v5748_v58 = vshrl.u32 %v5571_v48, 16  ;;  %9449 = vmatpush3.bf16.msra.mxu1 %v9676_v53  ;;  %v5732_v3 = vsel %vm10413_vm12, %v5727_v41, %v5731_v27  ;;  %v4110_v7 = vpop.permute.xlu0 %4109  ;;  %v12496_v9 = vld [vmem:[#allocation3 + $0x2c] sm:$0x1]  ;;  %4149 = vst.msk [vmem:[#allocation4 + $0x1c] sm:$0xf] %vm4141_vm5, %v4108_v32 }
 0x385   :  { %v5746_v39 = vsel %vm10413_vm12, %v5741_v1, %v5745_v17  ;;  %v6559_v25 = vor.u32 %v6558_v49, %v6555_v33  ;;  %v5751_v22 = vshll.u32 %v5571_v48, 16  ;;  %9488 = vmatprep.subr.bf16.mxu1 %v12471_v59  ;;  %v5757_v31 = vshll.u32 %v12391_v5, 16  ;;  %4150 = vst.msk [vmem:[#allocation4 + $0x20] sm:$0xf] %vm4141_vm5, %v4110_v7  ;;  %v5575_v52 = vld [vmem:[#allocation3 + $0x88] sm:$0xf] }
 0x386   :  { %v8553_v10 = vcombine.low %v5732_v3, %v5746_v39  ;;  %v6546_v35 = vrot.slane %v6545_v37, 4  ;;  %v5750_v4 = vrot.slane %v5748_v58, 4  ;;  %v6564_v54 = vrot.slane %v6562_v21, 5  ;;  %v5577_v44 = vld [vmem:[#allocation3 + $0x90] sm:$0xf] }
 0x387   :  { %v6560_v20 = vrot.slane %v6559_v25, 4  ;;  %v5753_v16 = vrot.slane %v5751_v22, 5  ;;  %v5762_v14 = vshrl.u32 %v5573_v18, 16  ;;  %v5765_v61 = vshll.u32 %v5573_v18, 16  ;;  %v6514_v3 = vld [vmem:[#allocation3 + $0x30] sm:$0xf] }
 0x388   :  { %v6551_v53 = vsel %vm10413_vm12, %v6546_v35, %v6550_v40  ;;  %v5771_v13 = vshll.u32 %v12401_v50, 16  ;;  %v6567_v47 = vshrl.u32 %v6510_v57, 16  ;;  %v5759_v29 = vrot.slane %v5757_v31, 5  ;;  %v12517_v39 = vld [vmem:[#allocation3 + $0x34] sm:$0x1] }
 0x389   :  { %v6565_v5 = vsel %vm10413_vm12, %v6560_v20, %v6564_v54  ;;  %v5754_v55 = vor.u32 %v5753_v16, %v5750_v4  ;;  %v5764_v43 = vrot.slane %v5762_v14, 4  ;;  %v5767_v63 = vrot.slane %v5765_v61, 5  ;;  %v6516_v4 = vld [vmem:[#allocation3 + $0x38] sm:$0xf] }
 0x38a   :  { %v8621_v50 = vcombine.low %v6551_v53, %v6565_v5  ;;  %v6570_v26 = vshll.u32 %v6510_v57, 16  ;;  %v6569_v24 = vrot.slane %v6567_v47, 4  ;;  %v6576_v15 = vshll.u32 %v12483_v23, 16 }
 0x38b   :  { %9415 = vmatmul.mubr.msk.bf16.gmra.mxu1 %vm4730_vm4, %v8553_v10  ;;  %v5755_v45 = vrot.slane %v5754_v55, 4  ;;  %v6581_v51 = vshrl.u32 %v6512_v12, 16  ;;  %v5768_v34 = vor.u32 %v5767_v63, %v5764_v43  ;;  %v5773_v38 = vrot.slane %v5771_v13, 5  ;;  %v6518_v55 = vld [vmem:[#allocation3 + $0x40] sm:$0xf] }
 0x38c   :  { %9472 = vmatprep.mubr.msk.bf16.mxu0 %vm4730_vm4, %v8621_v50  ;;  %v6572_v62 = vrot.slane %v6570_v26, 5  ;;  %v6584_v56 = vshll.u32 %v6512_v12, 16  ;;  %v4112_v42 = vpop.permute.xlu1 %4111  ;;  %v6590_v48 = vshll.u32 %v12496_v9, 16  ;;  %v5776_v6 = vshrl.u32 %v5575_v52, 16  ;;  %v12526_v12 = vld [vmem:[#allocation3 + $0x3c] sm:$0x1] }
 0x38d   :  { %v5760_v46 = vsel %vm10413_vm12, %v5755_v45, %v5759_v29  ;;  %v6583_v36 = vrot.slane %v6581_v51, 4  ;;  %4151 = vst.msk [vmem:[#allocation4 + $0x24] sm:$0xf] %vm4141_vm5, %v4112_v42  ;;  %v4114_v41 = vpop.permute.xlu0 %4113  ;;  %v5769_v27 = vrot.slane %v5768_v34, 4  ;;  %v6578_v19 = vrot.slane %v6576_v15, 5 }
 0x38e   :  { %v6573_v60 = vor.u32 %v6572_v62, %v6569_v24  ;;  %v6586_v1 = vrot.slane %v6584_v56, 5  ;;  %4152 = vst.msk [vmem:[#allocation4 + $0x28] sm:$0xf] %vm4141_vm5, %v4114_v41  ;;  %v5778_v17 = vrot.slane %v5776_v6, 4  ;;  %v5779_v33 = vshll.u32 %v5575_v52, 16 }
 0x38f   :  { %v5785_v49 = vshll.u32 %v12426_v30, 16  ;;  %v5790_v37 = vshrl.u32 %v5577_v44, 16  ;;  %v5774_v40 = vsel %vm10413_vm12, %v5769_v27, %v5773_v38  ;;  %v5793_v58 = vshll.u32 %v5577_v44, 16  ;;  %v12530_v24 = vld [vmem:[#allocation3 + $0x44] sm:$0x1] }
 0x390   :  { %v6574_v21 = vrot.slane %v6573_v60, 4  ;;  %v6587_v18 = vor.u32 %v6586_v1, %v6583_v36  ;;  %v8554_v25 = vcombine.low %v5760_v46, %v5774_v40  ;;  %v6592_v22 = vrot.slane %v6590_v48, 5  ;;  %v6520_v38 = vld [vmem:[#allocation3 + $0x48] sm:$0xf]  ;;  %v9677_v46 = vld [vmem:[#allocation3 + $0x10] ss:$8 sps:$4 sm:$0xff]  }
 0x391   :  { %v5781_v10 = vrot.slane %v5779_v33, 5  ;;  %v5792_v35 = vrot.slane %v5790_v37, 4  ;;  %v5787_v57 = vrot.slane %v5785_v49, 5  ;;  %v5795_v32 = vrot.slane %v5793_v58, 5  ;;  %v6522_v48 = vld [vmem:[#allocation3 + $0x60] sm:$0xf] }
 0x392   :  { %v6588_v31 = vrot.slane %v6587_v18, 4  ;;  %v5799_v30 = vshll.u32 %v12439_v8, 16  ;;  %9418 = vmatprep.mubr.msk.bf16.mxu1 %vm4730_vm4, %v8554_v25  ;;  %v6595_v20 = vshrl.u32 %v6514_v3, 16  ;;  %v6598_v54 = vshll.u32 %v6514_v3, 16  ;;  %v12538_v27 = vld [vmem:[#allocation3 + $0x4c] sm:$0x1] }
 0x393   :  { %v5782_v7 = vor.u32 %v5781_v10, %v5778_v17  ;;  %v6604_v16 = vshll.u32 %v12517_v39, 16  ;;  %v4116_v14 = vpop.permute.xlu1 %4115  ;;  %v6579_v53 = vsel %vm10413_vm12, %v6574_v21, %v6578_v19  ;;  %v5796_v13 = vor.u32 %v5795_v32, %v5792_v35  ;;  %v12541_v37 = vld [vmem:[#allocation3 + $0x64] sm:$0x1]  ;;  %v6524_v58 = vld [vmem:[#allocation3 + $0x68] sm:$0xf] }
 0x394   :  { %v6593_v61 = vsel %vm10413_vm12, %v6588_v31, %v6592_v22  ;;  %v6609_v5 = vshrl.u32 %v6516_v4, 16  ;;  %4153 = vst.msk [vmem:[#allocation4 + $0x2c] sm:$0xf] %vm4141_vm5, %v4116_v14  ;;  %v4118_v8 = vpop.permute.xlu0 %4117  ;;  %v6597_v50 = vrot.slane %v6595_v20, 4  ;;  %v6600_v29 = vrot.slane %v6598_v54, 5 }
 0x395   :  { %v8622_v43 = vcombine.low %v6579_v53, %v6593_v61  ;;  %v5783_v47 = vrot.slane %v5782_v7, 4  ;;  %4154 = vst.msk [vmem:[#allocation4 + $0x30] sm:$0xf] %vm4141_vm5, %v4118_v8  ;;  %v5797_v63 = vrot.slane %v5796_v13, 4  ;;  %v5801_v26 = vrot.slane %v5799_v30, 5 }
 0x396   :  { %v6611_v52 = vrot.slane %v6609_v5, 4  ;;  %v6612_v45 = vshll.u32 %v6516_v4, 16  ;;  %v6601_v15 = vor.u32 %v6600_v29, %v6597_v50  ;;  %v6606_v51 = vrot.slane %v6604_v16, 5  ;;  %v12548_v32 = vld [vmem:[#allocation3 + $0x6c] sm:$0x1] }
 0x397   :  { %9473 = vmatmul.mubr.msk.bf16.vlgmr.msra.gmra.mxu0 %vm4730_vm4, %v8622_v43  ;;  %v6618_v34 = vshll.u32 %v12526_v12, 16  ;;  %v6623_v62 = vshrl.u32 %v6518_v55, 16  ;;  %v5788_v56 = vsel %vm10413_vm12, %v5783_v47, %v5787_v57  ;;  %v5802_v44 = vsel %vm10413_vm12, %v5797_v63, %v5801_v26  ;;  %v6526_v61 = vld [vmem:[#allocation3 + $0x70] sm:$0xf]  ;;  %v12555_v43 = vld [vmem:[#allocation3 + $0x74] sm:$0x1] }
 0x398   :  { %v6614_v42 = vrot.slane %v6612_v45, 5  ;;  %v6626_v36 = vshll.u32 %v6518_v55, 16  ;;  %v8555_v6 = vcombine.low %v5788_v56, %v5802_v44  ;;  %v6602_v41 = vrot.slane %v6601_v15, 4  ;;  %v6528_v47 = vld [vmem:[#allocation3 + $0x78] sm:$0xf]  ;;  %v9683_v45 = vld [vmem:[#allocation13 + $0xc8] sm:$0xff]  }
 0x399   :  { %v6625_v60 = vrot.slane %v6623_v62, 4  ;;  %v6632_v19 = vshll.u32 %v12530_v24, 16  ;;  %v6620_v17 = vrot.slane %v6618_v34, 5  ;;  %v6637_v49 = vshrl.u32 %v6520_v38, 16  ;;  %v9679_v29 = vld [vmem:[#allocation3 + $0x20] ss:$8 sps:$4 sm:$0xff]  }
 0x39a   :  { %v6615_v1 = vor.u32 %v6614_v42, %v6611_v52  ;;  %v6628_v33 = vrot.slane %v6626_v36, 5  ;;  %9419 = vmatmul.mubr.msk.bf16.gmra.mxu1 %vm4730_vm4, %v8555_v6  ;;  %v6607_v40 = vsel %vm10413_vm12, %v6602_v41, %v6606_v51  ;;  %v6640_v21 = vshll.u32 %v6520_v38, 16  ;;  %v9680_v34 = vld [vmem:[#allocation3 + $0x30] ss:$8 sps:$4 sm:$0xff]   ;;  %v12561_v42 = vld [vmem:[#allocation3 + $0x7c] sm:$0x1] }
 0x39b   :  { %v6646_v18 = vshll.u32 %v12538_v27, 16  ;;  %v6651_v3 = vshrl.u32 %v6522_v48, 16  ;;  %9450 = vmatprep.mubr.msk.bf16.mxu1 %vm4730_vm4, %v9677_v46  ;;  %v6639_v10 = vrot.slane %v6637_v49, 4  ;;  %v6654_v35 = vshll.u32 %v6522_v48, 16 }
 0x39c   :  { %v6616_v25 = vrot.slane %v6615_v1, 4  ;;  %v6629_v22 = vor.u32 %v6628_v33, %v6625_v60  ;;  %v6634_v31 = vrot.slane %v6632_v19, 5  ;;  %v6642_v57 = vrot.slane %v6640_v21, 5  ;;  %v6530_v19 = vld [vmem:[#allocation3 + $0x80] sm:$0xf] }
 0x39d   :  { %v4120_v4 = vpop.permute.xlu1 %4119  ;;  %v6653_v30 = vrot.slane %v6651_v3, 4  ;;  %v6660_v7 = vshll.u32 %v12541_v37, 16  ;;  %v4122_v20 = vpop.permute.xlu0 %4121  ;;  %v6656_v14 = vrot.slane %v6654_v35, 5  ;;  %v6665_v53 = vshrl.u32 %v6524_v58, 16  ;;  %v6532_v1 = vld [vmem:[#allocation3 + $0x88] sm:$0xf] }
 0x39e   :  { %4155 = vst.msk [vmem:[#allocation4 + $0x34] sm:$0xf] %vm4141_vm5, %v4120_v4  ;;  %v6621_v54 = vsel %vm10413_vm12, %v6616_v25, %v6620_v17  ;;  %v6630_v16 = vrot.slane %v6629_v22, 4  ;;  %4156 = vst.msk [vmem:[#allocation4 + $0x38] sm:$0xf] %vm4141_vm5, %v4122_v20  ;;  %v6643_v5 = vor.u32 %v6642_v57, %v6639_v10  ;;  %v6648_v55 = vrot.slane %v6646_v18, 5 }
 0x39f   :  { %v8623_v13 = vcombine.low %v6607_v40, %v6621_v54  ;;  %v6668_v8 = vshll.u32 %v6524_v58, 16  ;;  %v6657_v63 = vor.u32 %v6656_v14, %v6653_v30  ;;  %v6667_v26 = vrot.slane %v6665_v53, 4  ;;  %v12571_v3 = vld [vmem:[#allocation3 + $0x84] sm:$0x1]  ;;  %v9686_v25 = vld [vmem:[#allocation13 + $0xc0] sm:$0xff]  }
 0x3a0   :  { %v6635_v50 = vsel %vm10413_vm12, %v6630_v16, %v6634_v31  ;;  %v6674_v52 = vshll.u32 %v12548_v32, 16  ;;  %v6644_v15 = vrot.slane %v6643_v5, 4  ;;  %v6679_v38 = vshrl.u32 %v6526_v61, 16  ;;  %v9681_v30 = vld [vmem:[#allocation3 + $0x40] ss:$8 sps:$4 sm:$0xff]  }
 0x3a1   :  { %9476 = vmatprep.mubr.msk.bf16.mxu0 %vm4730_vm4, %v8623_v13  ;;  %v6670_v51 = vrot.slane %v6668_v8, 5  ;;  %v6682_v62 = vshll.u32 %v6526_v61, 16  ;;  %v6658_v56 = vrot.slane %v6657_v63, 4  ;;  %v6662_v44 = vrot.slane %v6660_v7, 5  ;;  %v12577_v7 = vld [vmem:[#allocation3 + $0x8c] sm:$0x1] }
 0x3a2   :  { %v6688_v46 = vshll.u32 %v12555_v43, 16  ;;  %v6693_v36 = vshrl.u32 %v6528_v47, 16  ;;  %v6649_v48 = vsel %vm10413_vm12, %v6644_v15, %v6648_v55  ;;  %9451 = vmatmul.mubr.msk.bf16.vlgmr.msra.gmra.mxu1 %vm4730_vm4, %v9679_v29  ;;  %v6681_v41 = vrot.slane %v6679_v38, 4  ;;  %v6534_v20 = vld [vmem:[#allocation3 + $0x90] sm:$0xf] }
 0x3a3   :  { %v6671_v6 = vor.u32 %v6670_v51, %v6667_v26  ;;  %v6684_v60 = vrot.slane %v6682_v62, 5  ;;  %v8624_v17 = vcombine.low %v6635_v50, %v6649_v48  ;;  %v6663_v33 = vsel %vm10413_vm12, %v6658_v56, %v6662_v44  ;;  %9489 = vmatpush3.bf16.msra.mxu1 %v12471_v59  ;;  %9454 = vmatprep.mubr.msk.bf16.mxu1 %vm4730_vm4, %v9680_v34  ;;  %v6536_v61 = vld [vmem:[#allocation3 + $0x98] sm:$0xf]  ;;  %v12581_v26 = vld [vmem:[#allocation3 + $0x94] sm:$0x1] }
 0x3a4   :  { %v6676_v49 = vrot.slane %v6674_v52, 5  ;;  %v6695_v18 = vrot.slane %v6693_v36, 4  ;;  %v6696_v58 = vshll.u32 %v6528_v47, 16  ;;  %9490 = vmatprep.subr.bf16.mxu1 %v9683_v45  ;;  %v6702_v22 = vshll.u32 %v12561_v42, 16  ;;  %v9682_v47 = vld [vmem:[#allocation3 + $0x60] ss:$8 sps:$4 sm:$0xff]  }
 0x3a5   :  { %v6672_v40 = vrot.slane %v6671_v6, 4  ;;  %v6685_v21 = vor.u32 %v6684_v60, %v6681_v41  ;;  %9477 = vmatmul.mubr.msk.bf16.gmra.mxu0 %vm4730_vm4, %v8624_v17  ;;  %v6707_v10 = vshrl.u32 %v6530_v19, 16  ;;  %v6710_v35 = vshll.u32 %v6530_v19, 16  ;;  %v12592_v19 = vld [vmem:[#allocation3 + $0x9c] sm:$0x1] }
 0x3a6   :  { %v6721_v4 = vshrl.u32 %v6532_v1, 16  ;;  %v6690_v31 = vrot.slane %v6688_v46, 5  ;;  %v6698_v57 = vrot.slane %v6696_v58, 5  ;;  %v6716_v53 = vshll.u32 %v12571_v3, 16 }
 0x3a7   :  { %v6677_v59 = vsel %vm10413_vm12, %v6672_v40, %v6676_v49  ;;  %v6709_v16 = vrot.slane %v6707_v10, 4  ;;  %v6712_v14 = vrot.slane %v6710_v35, 5  ;;  %9491 = vmatpush3.bf16.msra.mxu1 %v9683_v45  ;;  %v6686_v13 = vrot.slane %v6685_v21, 4  ;;  %v9684_v35 = vld [vmem:[#allocation3 + $0x70] ss:$8 sps:$4 sm:$0xff]  }
 0x3a8   :  { %v8625_v54 = vcombine.low %v6663_v33, %v6677_v59  ;;  %v6699_v5 = vor.u32 %v6698_v57, %v6695_v18  ;;  %v6723_v55 = vrot.slane %v6721_v4, 4  ;;  %v6724_v8 = vshll.u32 %v6532_v1, 16  ;;  %v4124_v50 = vpop.permute.xlu1 %4123  ;;  %9492 = vmatprep.subr.bf16.mxu1 %v9686_v25 }
 0x3a9   :  { %v6704_v29 = vrot.slane %v6702_v22, 5  ;;  %v6713_v63 = vor.u32 %v6712_v14, %v6709_v16  ;;  %v6735_v52 = vshrl.u32 %v6534_v20, 16  ;;  %v6738_v15 = vshll.u32 %v6534_v20, 16  ;;  %4157 = vst.msk [vmem:[#allocation4 + $0x3c] sm:$0xf] %vm4141_vm5, %v4124_v50 }
 0x3aa   :  { %9480 = vmatprep.mubr.msk.bf16.mxu0 %vm4730_vm4, %v8625_v54  ;;  %v6700_v51 = vrot.slane %v6699_v5, 4  ;;  %9455 = vmatmul.mubr.msk.bf16.gmra.mxu1 %vm4730_vm4, %v9681_v30  ;;  %v6726_v45 = vrot.slane %v6724_v8, 5  ;;  %v6730_v34 = vshll.u32 %v12577_v7, 16  ;;  %v6749_v38 = vshrl.u32 %v6536_v61, 16  ;;  %v6948_v22 = vld [vmem:[#allocation3 + $0x10] sm:$0xe] }
 0x3ab   :  { %v6714_v62 = vrot.slane %v6713_v63, 4  ;;  %v6718_v56 = vrot.slane %v6716_v53, 5  ;;  %9458 = vmatprep.mubr.msk.bf16.mxu1 %vm4730_vm4, %v9682_v47  ;;  %v6737_v44 = vrot.slane %v6735_v52, 4  ;;  %v6740_v46 = vrot.slane %v6738_v15, 5  ;;  %9493 = vmatpush3.bf16.msra.mxu1 %v9686_v25  ;;  %v9685_v30 = vld [vmem:[#allocation3 + $0x80] ss:$8 sps:$4 sm:$0xff]  }
 0x3ac   :  { %v6691_v36 = vsel %vm10413_vm12, %v6686_v13, %v6690_v31  ;;  %v6705_v48 = vsel %vm10413_vm12, %v6700_v51, %v6704_v29  ;;  %v6727_v6 = vor.u32 %v6726_v45, %v6723_v55  ;;  %v6744_v41 = vshll.u32 %v12581_v26, 16  ;;  %v6949_v20 = vld [vmem:[#allocation3 + $0x18] sm:$0xe]  ;;  %v6951_v47 = vld [vmem:[#allocation3 + $0x28] sm:$0xe] }
 0x3ad   :  { %v8626_v60 = vcombine.low %v6691_v36, %v6705_v48  ;;  %v6741_v1 = vor.u32 %v6740_v46, %v6737_v44  ;;  %v6751_v17 = vrot.slane %v6749_v38, 4  ;;  %v6752_v33 = vshll.u32 %v6536_v61, 16  ;;  %v9687_v50 = vld [vmem:[#allocation3 + $0x90] ss:$8 sps:$4 sm:$0xff]   ;;  %v6950_v63 = vld [vmem:[#allocation3 + $0x20] sm:$0xe] }
 0x3ae   :  { %v6719_v49 = vsel %vm10413_vm12, %v6714_v62, %v6718_v56  ;;  %v6728_v40 = vrot.slane %v6727_v6, 4  ;;  %v6732_v21 = vrot.slane %v6730_v34, 5  ;;  %v6758_v18 = vshll.u32 %v12592_v19, 16  ;;  %v6953_v51 = vld [vmem:[#allocation3 + $0x38] sm:$0xe] }
 0x3af   :  { %9481 = vmatmul.mubr.msk.bf16.gmra.mxu0 %vm4730_vm4, %v8626_v60  ;;  %v6742_v58 = vrot.slane %v6741_v1, 4  ;;  %v6754_v25 = vrot.slane %v6752_v33, 5  ;;  %v6746_v59 = vrot.slane %v6744_v41, 5  ;;  %v8640_v54 = vrot.slane %v6948_v22, 9  ;;  %v6955_v48 = vld [vmem:[#allocation3 + $0x48] sm:$0xe] }
 0x3b0   :  { %v6733_v10 = vsel %vm10413_vm12, %v6728_v40, %v6732_v21  ;;  %v6760_v57 = vrot.slane %v6758_v18, 5  ;;  %v6998_v16 = vrot.slane %v12465_v28, 5  ;;  %v8641_v61 = vrot.slane %v6949_v20, 9  ;;  %v6952_v28 = vld [vmem:[#allocation3 + $0x30] sm:$0xe] }
 0x3b1   :  { %v8627_v4 = vcombine.low %v6719_v49, %v6733_v10  ;;  %v6755_v31 = vor.u32 %v6754_v25, %v6751_v17  ;;  %v6747_v14 = vsel %vm10413_vm12, %v6742_v58, %v6746_v59  ;;  %v7002_v13 = vrot.slane %v12468_v0, 5  ;;  %v6957_v49 = vld [vmem:[#allocation3 + $0x68] sm:$0xe]  ;;  %v6959_v22 = vld [vmem:[#allocation3 + $0x78] sm:$0xe] }
 0x3b2   :  { %9459 = vmatmul.mubr.msk.bf16.gmra.mxu1 %vm4730_vm4, %v9684_v35  ;;  %v6999_v8 = vsel %vm10369_vm6, %v8640_v54, %v6998_v16  ;;  %v8643_v15 = vrot.slane %v6951_v47, 9  ;;  %v7010_v0 = vrot.slane %v12496_v9, 5  ;;  %v8644_v45 = vrot.slane %v6952_v28, 9  ;;  %v6954_v9 = vld [vmem:[#allocation3 + $0x40] sm:$0xe] }
 0x3b3   :  { %9484 = vmatprep.mubr.msk.bf16.mxu0 %vm4730_vm4, %v8627_v4  ;;  %v6756_v53 = vrot.slane %v6755_v31, 4  ;;  %9462 = vmatprep.mubr.msk.bf16.mxu1 %vm4730_vm4, %v9685_v30  ;;  %v7003_v29 = vsel %vm10369_vm6, %v8641_v61, %v7002_v13  ;;  %v7014_v34 = vrot.slane %v12517_v39, 5  ;;  %v8642_v38 = vrot.slane %v6950_v63, 9  ;;  %v6956_v39 = vld [vmem:[#allocation3 + $0x60] sm:$0xe] }
 0x3b4   :  { %v8656_v52 = vcombine.low %v6999_v8, %v7003_v29  ;;  %v7006_v62 = vrot.slane %v12483_v23, 5  ;;  %v8645_v56 = vrot.slane %v6953_v51, 9  ;;  %v7018_v44 = vrot.slane %v12526_v12, 5  ;;  %v6960_v10 = vld [vmem:[#allocation3 + $0x80] sm:$0xe] }
 0x3b5   :  { %v6761_v5 = vsel %vm10413_vm12, %v6756_v53, %v6760_v57  ;;  %v7011_v46 = vsel %vm10369_vm6, %v8643_v15, %v7010_v0  ;;  %v7015_v36 = vsel %vm10369_vm6, %v8644_v45, %v7014_v34  ;;  %v8646_v23 = vrot.slane %v6954_v9, 9  ;;  %v6958_v4 = vld [vmem:[#allocation3 + $0x70] sm:$0xe]  ;;  %v6961_v57 = vld [vmem:[#allocation3 + $0x88] sm:$0xe] }
 0x3b6   :  { %v8628_v55 = vcombine.low %v6747_v14, %v6761_v5  ;;  %v7007_v6 = vsel %vm10369_vm6, %v8642_v38, %v7006_v62  ;;  %v7019_v60 = vsel %vm10369_vm6, %v8645_v56, %v7018_v44  ;;  %v7022_v12 = vrot.slane %v12530_v24, 5  ;;  %v6962_v13 = vld [vmem:[#allocation3 + $0x90] sm:$0xe]  ;;  %v6963_v5 = vld [vmem:[#allocation3 + $0x98] sm:$0xe] }
 0x3b7   :  { %v8657_v41 = vcombine.low %v7007_v6, %v7011_v46  ;;  %v8658_v1 = vcombine.low %v7015_v36, %v7019_v60  ;;  %v8647_v17 = vrot.slane %v6955_v48, 9  ;;  %v7026_v33 = vrot.slane %v12538_v27, 5  ;;  %v9688_v60 = vld [vmem:[%s13309_s10 + $0xa8] ss:$12 sps:$4 sm:$0xff]  }
 0x3b8   :  { %9485 = vmatmul.mubr.msk.bf16.gmra.mxu0 %vm4730_vm4, %v8628_v55  ;;  %v8648_v40 = vrot.slane %v6956_v39, 9  ;;  %v7030_v21 = vrot.slane %v12541_v37, 5  ;;  %v8649_v18 = vrot.slane %v6957_v49, 9  ;;  %v7034_v58 = vrot.slane %v12548_v32, 5  ;;  %v9692_v49 = vld [vmem:[%s13309_s10 + $0x90] ss:$12 sps:$4 sm:$0xff]  }
 0x3b9   :  { %7661 = vmatprep.mubr.bf16.mxu0 %v13433_v2  ;;  %v7023_v25 = vsel %vm10369_vm6, %v8646_v23, %v7022_v12  ;;  %v7027_v24 = vsel %vm10369_vm6, %v8647_v17, %v7026_v33  ;;  %v8651_v31 = vrot.slane %v6959_v22, 9  ;;  %v7042_v32 = vrot.slane %v12561_v42, 5  ;;  %v9690_v23 = vld [vmem:[%s13309_s10 + $0xac] ss:$12 sps:$4 sm:$0xff]   ;;  %v9691_v12 = vld [vmem:[%s13309_s10 + $0xb0] ss:$12 sps:$4 sm:$0xff]  }
 0x3ba   :  { %9463 = vmatmul.mubr.msk.bf16.gmra.mxu1 %vm4730_vm4, %v9687_v50  ;;  %v7031_v27 = vsel %vm10369_vm6, %v8648_v40, %v7030_v21  ;;  %v8659_v35 = vcombine.low %v7023_v25, %v7027_v24  ;;  %v7035_v37 = vsel %vm10369_vm6, %v8649_v18, %v7034_v58  ;;  %v8652_v30 = vrot.slane %v6960_v10, 9  ;;  %7629 = vmatprep.subr.bf16.mxu0 %v9690_v23  ;;  %v9694_v40 = vld [vmem:[%s13309_s10 + $0x94] ss:$12 sps:$4 sm:$0xff]  }
 0x3bb   :  { %9494 = vmatprep.mubr.msk.bf16.mxu1 %vm4730_vm4, %v8656_v52  ;;  %v8660_v59 = vcombine.low %v7031_v27, %v7035_v37  ;;  %v7046_v20 = vrot.slane %v12571_v3, 5  ;;  %v8650_v54 = vrot.slane %v6958_v4, 9  ;;  %v7038_v16 = vrot.slane %v12555_v43, 5  ;;  %7630 = vmatpush1.bf16.msra.mxu0 %v9688_v60 }
 0x3bc   :  { %v8653_v14 = vrot.slane %v6961_v57, 9  ;;  %v7050_v53 = vrot.slane %v12577_v7, 5  ;;  %v7043_v61 = vsel %vm10369_vm6, %v8651_v31, %v7042_v32  ;;  %v8654_v47 = vrot.slane %v6962_v13, 9  ;;  %9510 = vmatprep.subr.bf16.mxu1 %v9691_v12  ;;  %7631 = vmatprep.subr.bf16.mxu0 %v9694_v40  ;;  %v9714_v40 = vld [vmem:[%s13309_s10 + $0x1c] ss:$12 sps:$4 sm:$0xff]  }
 0x3bd   :  { %v7047_v42 = vsel %vm10369_vm6, %v8652_v30, %v7046_v20  ;;  %v7039_v55 = vsel %vm10369_vm6, %v8650_v54, %v7038_v16  ;;  %v7054_v28 = vrot.slane %v12581_v26, 5  ;;  %v8655_v7 = vrot.slane %v6963_v5, 9  ;;  %v9695_v20 = vld [vmem:[%s13309_s10 + $0x98] ss:$12 sps:$4 sm:$0xff]  }
 0x3be   :  { %v8661_v3 = vcombine.low %v7039_v55, %v7043_v61  ;;  %v7051_v8 = vsel %vm10369_vm6, %v8653_v14, %v7050_v53  ;;  %v7058_v50 = vrot.slane %v12592_v19, 5  ;;  %v9696_v53 = vld [vmem:[%s13309_s10 + $0x78] ss:$12 sps:$4 sm:$0xff]   ;;  %v9698_v61 = vld [vmem:[%s13309_s10 + $0x7c] ss:$12 sps:$4 sm:$0xff]  }
 0x3bf   :  { %v8662_v43 = vcombine.low %v7047_v42, %v7051_v8  ;;  %v7055_v29 = vsel %vm10369_vm6, %v8654_v47, %v7054_v28  ;;  %7632 = vmatpush1.bf16.msra.mxu0 %v9692_v49  ;;  %v9699_v55 = vld [vmem:[%s13309_s10 + $0x80] ss:$12 sps:$4 sm:$0xff]   ;;  %v9702_v28 = vld [vmem:[%s13309_s10 + $0x64] ss:$12 sps:$4 sm:$0xff]  }
 0x3c0   :  { %v7059_v63 = vsel %vm10369_vm6, %v8655_v7, %v7058_v50  ;;  %7633 = vmatprep.subr.bf16.mxu0 %v9698_v61 }
 0x3c1   :  { %v8663_v52 = vcombine.low %v7055_v29, %v7059_v63 }
 0x3c2   :  { %9495 = vmatmul.mubr.msk.bf16.vlgmr.msra.gmra.mxu1 %vm4730_vm4, %v8657_v41 }
 0x3c3   :  { %9498 = vmatprep.mubr.msk.bf16.mxu1 %vm4730_vm4, %v8658_v1  ;;  %9511 = vmatpush3.bf16.msra.mxu1 %v9691_v12 }
 0x3c4   :  { %9512 = vmatprep.subr.bf16.mxu1 %v9695_v20  ;;  %7634 = vmatpush1.bf16.msra.mxu0 %v9696_v53 }
 0x3c5   :  { %7635 = vmatprep.subr.bf16.mxu0 %v9702_v28 }
 0x3c7   :  { %9513 = vmatpush3.bf16.msra.mxu1 %v9695_v20 }
 0x3c8   :  { %9514 = vmatprep.subr.bf16.mxu1 %v9699_v55 }
 0x3ca   :  { %9499 = vmatmul.mubr.msk.bf16.gmra.mxu1 %vm4730_vm4, %v8659_v35 }
 0x3cb   :  { %9502 = vmatprep.mubr.msk.bf16.mxu1 %vm4730_vm4, %v8660_v59  ;;  %9515 = vmatpush3.bf16.msra.mxu1 %v9699_v55 }
 0x3d2   :  { %9503 = vmatmul.mubr.msk.bf16.gmra.mxu1 %vm4730_vm4, %v8661_v3 }
 0x3d3   :  { %9506 = vmatprep.mubr.msk.bf16.mxu1 %vm4730_vm4, %v8662_v43  ;;  %v9700_v43 = vld [vmem:[%s13309_s10 + $0x60] ss:$12 sps:$4 sm:$0xff]  }
 0x3d4   :  { %7636 = vmatpush1.bf16.msra.mxu0 %v9700_v43 }
 0x3d8   :  { %v9342_v15 = vpop.f32.mrf.mxu0 }
 0x3da   :  { %9507 = vmatmul.mubr.msk.bf16.gmra.mxu1 %vm4730_vm4, %v8663_v52  ;;  %v4968_v0 = vpop.f32.mrf.mxu0 }
 0x3dc   :  { %v9343_v51 = vpop.f32.mrf.mxu0 }
 0x3de   :  { %v4971_v26 = vpop.f32.mrf.mxu0 }
 0x3ec   :  { %v9346_v45 = vpop.f32.mrf.mxu0 }
 0x3ee   :  { %v4984_v34 = vpop.f32.mrf.mxu0 }
 0x3f0   :  { %v9347_v19 = vpop.f32.mrf.mxu0 }
 0x3f2   :  { %v4987_v44 = vpop.f32.mrf.mxu0 }
 0x3f5   :  { %v9320_v38 = vpop.f32.mrf.mxu1 }
 0x3f6   :  { %v12666_v62 = vadd.f32 %v9342_v15, %v9320_v38  ;;  %v9703_v15 = vld [vmem:[%s13309_s10 + $0x68] ss:$12 sps:$4 sm:$0xff]   ;;  %v9707_v38 = vld [vmem:[%s13309_s10 + $0x50] ss:$12 sps:$4 sm:$0xff]  }
 0x3f7   :  { %v4789_v56 = vpop.f32.mrf.mxu1  ;;  %9516 = vmatprep.subr.bf16.mxu1 %v9703_v15 }
 0x3f8   :  { %v12668_v46 = vadd.f32 %v4968_v0, %v4789_v56  ;;  %9517 = vmatpush3.bf16.msra.mxu1 %v9703_v15 }
 0x3f9   :  { %v9321_v9 = vpop.f32.mrf.mxu1  ;;  %9518 = vmatprep.subr.bf16.mxu1 %v9707_v38 }
 0x3fa   :  { %v12670_v11 = vadd.f32 %v9343_v51, %v9321_v9  ;;  %v9350_v48 = vpop.f32.mrf.mxu0  ;;  %v9704_v51 = vld [vmem:[%s13309_s10 + $0x48] ss:$12 sps:$4 sm:$0xff]  }
 0x3fb   :  { %v4792_v36 = vpop.f32.mrf.mxu1 }
 0x3fc   :  { %v12672_v6 = vadd.f32 %v4971_v26, %v4792_v36  ;;  %v5000_v39 = vpop.f32.mrf.mxu0  ;;  %v9706_v26 = vld [vmem:[%s13309_s10 + $0x4c] ss:$12 sps:$4 sm:$0xff]   ;;  %v9708_v36 = vld [vmem:[%s13309_s10 + $0x30] ss:$12 sps:$4 sm:$0xff]   ;;  %9519 = vmatpush3.bf16.msra.mxu1 %v9707_v38 }
 0x3fd   :  { %7637 = vmatprep.subr.bf16.mxu0 %v9706_v26 }
 0x3fe   :  { %v9351_v41 = vpop.f32.mrf.mxu0  ;;  %7638 = vmatpush1.bf16.msra.mxu0 %v9704_v51 }
 0x400   :  { %v5003_v1 = vpop.f32.mrf.mxu0 }
 0x401   :  { %v9324_v17 = vpop.f32.mrf.mxu1 }
 0x402   :  { %v12683_v33 = vadd.f32 %v9346_v45, %v9324_v17 }
 0x403   :  { %v4805_v21 = vpop.f32.mrf.mxu1  ;;  %v9354_v18 = vpop.f32.mrf.mxu0 }
 0x404   :  { %v12691_v58 = vadd.f32 %v4984_v34, %v4805_v21 }
 0x405   :  { %v9325_v25 = vpop.f32.mrf.mxu1  ;;  %v5016_v24 = vpop.f32.mrf.mxu0 }
 0x406   :  { %v12693_v27 = vadd.f32 %v9347_v19, %v9325_v25 }
 0x407   :  { %v4808_v22 = vpop.f32.mrf.mxu1  ;;  %v9355_v10 = vpop.f32.mrf.mxu0 }
 0x408   :  { %v12695_v35 = vadd.f32 %v4987_v44, %v4808_v22  ;;  %v9716_v22 = vld [vmem:[%s13309_s10] ss:$12 sps:$4 sm:$0xff]  }
 0x409   :  { %v5019_v37 = vpop.f32.mrf.mxu0 }
 0x40b   :  { %v9328_v4 = vpop.f32.mrf.mxu1  ;;  %v12697_v59 = vpop.f32.mrf.mxu0 }
 0x40c   :  { %v12699_v31 = vadd.f32 %v9350_v48, %v9328_v4  ;;  %v9710_v48 = vld [vmem:[%s13309_s10 + $0x34] ss:$12 sps:$4 sm:$0xff]  }
 0x40d   :  { %v4821_v32 = vpop.f32.mrf.mxu1  ;;  %v12701_v57 = vpop.f32.mrf.mxu0  ;;  %7639 = vmatprep.subr.bf16.mxu0 %v9710_v48 }
 0x40e   :  { %v12703_v30 = vadd.f32 %v5000_v39, %v4821_v32  ;;  %7640 = vmatpush1.bf16.msra.mxu0 %v9708_v36 }
 0x40f   :  { %v9329_v54 = vpop.f32.mrf.mxu1  ;;  %v12708_v16 = vpop.f32.mrf.mxu0  ;;  %7641 = vmatprep.subr.bf16.mxu0 %v9714_v40 }
 0x410   :  { %v12710_v14 = vadd.f32 %v9351_v41, %v9329_v54 }
 0x411   :  { %v4824_v13 = vpop.f32.mrf.mxu1  ;;  %v12718_v42 = vpop.f32.mrf.mxu0 }
 0x412   :  { %v12720_v5 = vadd.f32 %v5003_v1, %v4824_v13 }
 0x413   :  { %v9332_v3 = vpop.f32.mrf.mxu1  ;;  %v12725_v8 = vpop.f32.mrf.mxu0 }
 0x414   :  { %v12727_v47 = vadd.f32 %v9354_v18, %v9332_v3 }
 0x415   :  { %v4837_v7 = vpop.f32.mrf.mxu1  ;;  %v12735_v50 = vpop.f32.mrf.mxu0 }
 0x416   :  { %v12737_v29 = vadd.f32 %v5016_v24, %v4837_v7 }
 0x417   :  { %v9333_v63 = vpop.f32.mrf.mxu1  ;;  %v12739_v52 = vpop.f32.mrf.mxu0 }
 0x418   :  { %v12744_v0 = vadd.f32 %v9355_v10, %v9333_v63 }
 0x419   :  { %v4840_v45 = vpop.f32.mrf.mxu1  ;;  %v12752_v34 = vpop.f32.mrf.mxu0 }
 0x41a   :  { %v12754_v19 = vadd.f32 %v5019_v37, %v4840_v45 }
 0x41b   :  { %v9364_v56 = vpop.f32.mrf.mxu1  ;;  %v12759_v44 = vpop.f32.mrf.mxu0 }
 0x41c   :  { %v12762_v9 = vadd.f32 %v9364_v56, %v12666_v62  ;;  %v9711_v62 = vld [vmem:[%s13309_s10 + $0x38] ss:$12 sps:$4 sm:$0xff]  }
 0x41d   :  { %v5250_v39 = vpop.f32.mrf.mxu1  ;;  %v12770_v41 = vpop.f32.mrf.mxu0  ;;  %9520 = vmatprep.subr.bf16.mxu1 %v9711_v62 }
 0x41e   :  { %v12773_v60 = vadd.f32 %v5250_v39, %v12668_v46  ;;  %v9712_v46 = vld [vmem:[%s13309_s10 + $0x18] ss:$12 sps:$4 sm:$0xff]   ;;  %9521 = vmatpush3.bf16.msra.mxu1 %v9711_v62 }
 0x41f   :  { %v9365_v23 = vpop.f32.mrf.mxu1  ;;  %v12778_v1 = vpop.f32.mrf.mxu0  ;;  %7642 = vmatpush1.bf16.msra.mxu0 %v9712_v46 }
 0x420   :  { %v12781_v12 = vadd.f32 %v9365_v23, %v12670_v11  ;;  %v9715_v11 = vld [vmem:[%s13309_s10 + $0x20] ss:$12 sps:$4 sm:$0xff]  }
 0x421   :  { %v5253_v17 = vpop.f32.mrf.mxu1  ;;  %v12783_v49 = vpop.f32.mrf.mxu0  ;;  %9522 = vmatprep.subr.bf16.mxu1 %v9715_v11 }
 0x422   :  { %v12792_v21 = vadd.f32 %v5253_v17, %v12672_v6  ;;  %v9718_v6 = vld [vmem:[%s13309_s10 + $0x4] ss:$12 sps:$4 sm:$0xff]   ;;  %9523 = vmatpush3.bf16.msra.mxu1 %v9715_v11 }
 0x423   :  { %v9368_v18 = vpop.f32.mrf.mxu1  ;;  %v12797_v25 = vpop.f32.mrf.mxu0  ;;  %7643 = vmatprep.subr.bf16.mxu0 %v9718_v6 }
 0x424   :  { %v12800_v24 = vadd.f32 %v9368_v18, %v12683_v33  ;;  %v9719_v33 = vld [vmem:[%s13309_s10 + $0x8] ss:$12 sps:$4 sm:$0xff]   ;;  %7644 = vmatpush1.bf16.msra.mxu0 %v9716_v22 }
 0x425   :  { %v5266_v10 = vpop.f32.mrf.mxu1  ;;  %v12808_v37 = vpop.f32.mrf.mxu0  ;;  %9524 = vmatprep.subr.bf16.mxu1 %v9719_v33 }
 0x426   :  { %v12811_v4 = vadd.f32 %v5266_v10, %v12691_v58  ;;  %9525 = vmatpush3.bf16.msra.mxu1 %v9719_v33 }
 0x427   :  { %v9369_v32 = vpop.f32.mrf.mxu1  ;;  %v12816_v20 = vpop.f32.mrf.mxu0 }
 0x428   :  { %v12819_v54 = vadd.f32 %v9369_v32, %v12693_v27 }
 0x429   :  { %v5269_v53 = vpop.f32.mrf.mxu1  ;;  %v12821_v61 = vpop.f32.mrf.mxu0 }
 0x42a   :  { %v12824_v58 = vadd.f32 %v5269_v53, %v12695_v35 }
 0x42b   :  { %v9372_v13 = vpop.f32.mrf.mxu1  ;;  %v12826_v55 = vpop.f32.mrf.mxu0 }
 0x42c   :  { %v12829_v3 = vadd.f32 %v9372_v13, %v12699_v31 }
 0x42d   :  { %v5282_v43 = vpop.f32.mrf.mxu1  ;;  %v12831_v28 = vpop.f32.mrf.mxu0 }
 0x42e   :  { %v12834_v27 = vadd.f32 %v5282_v43, %v12703_v30 }
 0x42f   :  { %v9373_v7 = vpop.f32.mrf.mxu1  ;;  %v12836_v63 = vpop.f32.mrf.mxu0 }
 0x430   :  { %v12839_v15 = vadd.f32 %v9373_v7, %v12710_v14 }
 0x431   :  { %v5285_v35 = vpop.f32.mrf.mxu1  ;;  %v12841_v51 = vpop.f32.mrf.mxu0 }
 0x432   :  { %v12844_v26 = vadd.f32 %v5285_v35, %v12720_v5 }
 0x433   :  { %v9376_v31 = vpop.f32.mrf.mxu1  ;;  %v12846_v45 = vpop.f32.mrf.mxu0 }
 0x434   :  { %v12849_v38 = vadd.f32 %v9376_v31, %v12727_v47 }
 0x435   :  { %v5298_v30 = vpop.f32.mrf.mxu1  ;;  %v12854_v36 = vpop.f32.mrf.mxu0 }
 0x436   :  { %v12852_v56 = vadd.f32 %v5298_v30, %v12737_v29  ;;  %13434 = vst [vmem:[#allocation27_spill] sm:$0xff] %v12854_v36 }
 0x437   :  { %v9377_v14 = vpop.f32.mrf.mxu1  ;;  %v12862_v62 = vpop.f32.mrf.mxu0 }
 0x438   :  { %v12857_v48 = vadd.f32 %v9377_v14, %v12744_v0  ;;  %13435 = vst [vmem:[#allocation28_spill] sm:$0xff] %v12862_v62 }
 0x439   :  { %v5301_v39 = vpop.f32.mrf.mxu1  ;;  %v12864_v47 = vpop.f32.mrf.mxu0 }
 0x43a   :  { %v12860_v5 = vadd.f32 %v5301_v39, %v12754_v19  ;;  %13436 = vst [vmem:[#allocation26_spill] sm:$0xff] %v12864_v47 }
 0x43b   :  { %v9408_v23 = vpop.f32.mrf.mxu1  ;;  %v12866_v29 = vpop.f32.mrf.mxu0 }
 0x43c   :  { %13437 = vst [vmem:[#allocation46_spill] sm:$0xff] %v12866_v29 }
 0x43d   :  { %v5910_v17 = vpop.f32.mrf.mxu1  ;;  %v12868_v22 = vpop.f32.mrf.mxu0 }
 0x43e   :  { %13438 = vst [vmem:[#allocation29_spill] sm:$0xff] %v12868_v22 }
 0x43f   :  { %v9409_v46 = vpop.f32.mrf.mxu1  ;;  %v12874_v19 = vpop.f32.mrf.mxu0 }
 0x440   :  { %13439 = vst [vmem:[#allocation30_spill] sm:$0xff] %v12874_v19 }
 0x441   :  { %v5913_v40 = vpop.f32.mrf.mxu1  ;;  %v12878_v33 = vpop.f32.mrf.mxu0 }
 0x442   :  { %13440 = vst [vmem:[#allocation36_spill] sm:$0xff] %v12878_v33 }
 0x443   :  { %v9412_v11 = vpop.f32.mrf.mxu1  ;;  %v12882_v53 = vpop.f32.mrf.mxu0 }
 0x444   :  { %13441 = vst [vmem:[#allocation31_spill] sm:$0xff] %v12882_v53 }
 0x445   :  { %v5926_v18 = vpop.f32.mrf.mxu1  ;;  %v12886_v43 = vpop.f32.mrf.mxu0 }
 0x446   :  { %13443 = vst [vmem:[#allocation33_spill] sm:$0xff] %v12886_v43 }
 0x447   :  { %v12870_v0 = vpop.f32.mrf.mxu1  ;;  %v12890_v35 = vpop.f32.mrf.mxu0 }
 0x448   :  { %13445 = vst [vmem:[#allocation35_spill] sm:$0xff] %v12890_v35 }
 0x449   :  { %v12872_v6 = vpop.f32.mrf.mxu1  ;;  %v12896_v14 = vpop.f32.mrf.mxu0 }
 0x44a   :  { %13448 = vst [vmem:[#allocation41_spill] sm:$0xff] %v12896_v14 }
 0x44b   :  { %v12876_v10 = vpop.f32.mrf.mxu1 }
 0x44d   :  { %v12880_v32 = vpop.f32.mrf.mxu1 }
 0x44f   :  { %v12884_v13 = vpop.f32.mrf.mxu1 }
 0x450   :  { %13442 = vst [vmem:[#allocation32_spill] sm:$0xff] %v12884_v13 }
 0x451   :  { %v12888_v7 = vpop.f32.mrf.mxu1 }
 0x452   :  { %13444 = vst [vmem:[#allocation47_spill] sm:$0xff] %v12888_v7  ;;  %v5533_v7 = vadd.f32 %v12697_v59, %v12762_v9  ;;  %v5532_v59 = vadd.f32 %v12718_v42, %v12792_v21  ;;  %v5536_v42 = vadd.f32 %v12752_v34, %v12824_v58  ;;  %v5539_v21 = vadd.f32 %v12770_v41, %v12834_v27 }
 0x453   :  { %v5545_v34 = vadd.f32 %v12797_v25, %v12849_v38  ;;  %v5546_v25 = vadd.f32 %v12816_v20, %v12857_v48  ;;  %v12988_v48 = vld [vmem:[#allocation16] ss:$0 sm:$0xff] }
 0x457   :  { %v9474_v33 = vpop.f32.mrf.mxu0 }
 0x459   :  { %v6869_v22 = vpop.f32.mrf.mxu0 }
 0x45a   :  { %v12892_v31 = vpop.f32.mrf.mxu1 }
 0x45b   :  { %13446 = vst [vmem:[#allocation39_spill] sm:$0xff] %v12892_v31  ;;  %v12902_v47 = vpop.f32.mrf.mxu0 }
 0x45c   :  { %v12894_v30 = vpop.f32.mrf.mxu1  ;;  %13451 = vst [vmem:[#allocation51_spill] sm:$0xff] %v12902_v47 }
 0x45d   :  { %13447 = vst [vmem:[#allocation49_spill] sm:$0xff] %v12894_v30  ;;  %v12908_v31 = vpop.f32.mrf.mxu0 }
 0x45e   :  { %v12898_v39 = vpop.f32.mrf.mxu1  ;;  %13454 = vst [vmem:[#allocation42_spill] sm:$0xff] %v12908_v31  ;;  %v5531_v31 = vadd.f32 %v12701_v57, %v12773_v60  ;;  %v5974_v60 = vadd.f32 %v5913_v40, %v5532_v59 }
 0x45f   :  { %13449 = vst [vmem:[#allocation43_spill] sm:$0xff] %v12898_v39 }
 0x460   :  { %v12900_v2 = vpop.f32.mrf.mxu1 }
 0x461   :  { %13450 = vst [vmem:[#allocation37_spill] sm:$0xff] %v12900_v2 }
 0x462   :  { %v9452_v53 = vpop.f32.mrf.mxu1 }
 0x464   :  { %v6427_v19 = vpop.f32.mrf.mxu1 }
 0x465   :  { %v12914_v39 = vpop.f32.mrf.mxu0 }
 0x466   :  { %v9453_v29 = vpop.f32.mrf.mxu1  ;;  %13457 = vst [vmem:[#allocation48_spill] sm:$0xff] %v12914_v39  ;;  %v5534_v39 = vadd.f32 %v12708_v16, %v12781_v12 }
 0x467   :  { %v12922_v47 = vpop.f32.mrf.mxu0 }
 0x468   :  { %v6430_v43 = vpop.f32.mrf.mxu1  ;;  %v5976_v13 = vadd.f32 %v9409_v46, %v5534_v39  ;;  %v5538_v46 = vadd.f32 %v12739_v52, %v12819_v54  ;;  %v5540_v52 = vadd.f32 %v12783_v49, %v12844_v26  ;;  %v12981_v26 = vld [vmem:[#allocation14] ss:$0 sm:$0xff]  ;;  %v13467_v39 = vld [vmem:[#allocation26_spill] sm:$0xff] }
 0x46a   :  { %v12904_v62 = vpop.f32.mrf.mxu1  ;;  %v5980_v54 = vadd.f32 %v12870_v0, %v5538_v46  ;;  %v13469_v46 = vld [vmem:[#allocation42_spill] sm:$0xff] }
 0x46b   :  { %13452 = vst [vmem:[#allocation38_spill] sm:$0xff] %v12904_v62 }
 0x46c   :  { %v12906_v35 = vpop.f32.mrf.mxu1 }
 0x46d   :  { %13453 = vst [vmem:[#allocation40_spill] sm:$0xff] %v12906_v35  ;;  %v5975_v35 = vadd.f32 %v9408_v23, %v5533_v7  ;;  %v5537_v23 = vadd.f32 %v12725_v8, %v12800_v24  ;;  %v5541_v8 = vadd.f32 %v12759_v44, %v12829_v3  ;;  %v5543_v44 = vadd.f32 %v12808_v37, %v12852_v56 }
 0x46e   :  { %v12910_v30 = vpop.f32.mrf.mxu1  ;;  %v12979_v37 = vadd.f32 %v12821_v61, %v12860_v5 }
 0x46f   :  { %13455 = vst [vmem:[#allocation44_spill] sm:$0xff] %v12910_v30  ;;  %v6273_v9 = vadd.f32 %v12826_v55, %v5975_v35  ;;  %v5983_v49 = vadd.f32 %v12876_v10, %v5541_v8  ;;  %v13462_v10 = vld [vmem:[#allocation27_spill] sm:$0xff] }
 0x470   :  { %v12912_v14 = vpop.f32.mrf.mxu1 }
 0x471   :  { %13456 = vst [vmem:[#allocation45_spill] sm:$0xff] %v12912_v14  ;;  %v5973_v14 = vadd.f32 %v5910_v17, %v5531_v31  ;;  %v5535_v17 = vadd.f32 %v12735_v50, %v12811_v4  ;;  %v6492_v16 = vadd.f32 %v9452_v53, %v6273_v9  ;;  %v5979_v50 = vadd.f32 %v9412_v11, %v5537_v23  ;;  %v13468_v9 = vld [vmem:[#allocation46_spill] sm:$0xff] }
 0x472   :  { %v12916_v2 = vpop.f32.mrf.mxu1  ;;  %v5542_v4 = vadd.f32 %v12778_v1, %v12839_v15  ;;  %v6272_v1 = vadd.f32 %v12841_v51, %v5974_v60  ;;  %v5981_v11 = vadd.f32 %v12880_v32, %v5539_v21  ;;  %v13465_v35 = vld [vmem:[#allocation38_spill] sm:$0xff]  ;;  %v6281_v23 = vadd.f32 %v13468_v9, %v5983_v49 }
 0x473   :  { %13458 = vst [vmem:[#allocation34_spill] sm:$0xff] %v12916_v2  ;;  %v12932_v2 = vpop.f32.mrf.mxu0  ;;  %v6271_v12 = vadd.f32 %v12831_v28, %v5973_v14  ;;  %v6274_v28 = vadd.f32 %v12836_v63, %v5976_v13  ;;  %v5977_v40 = vadd.f32 %v5926_v18, %v5535_v17  ;;  %v6934_v27 = vadd.f32 %v9474_v33, %v6492_v16  ;;  %v13460_v18 = vld [vmem:[#allocation32_spill] sm:$0xff] }
 0x474   :  { %v12918_v36 = vpop.f32.mrf.mxu1  ;;  %v5978_v63 = vadd.f32 %v12872_v6, %v5536_v42  ;;  %v6491_v38 = vadd.f32 %v6430_v43, %v6272_v1  ;;  %v6277_v51 = vadd.f32 %v12846_v45, %v5979_v50  ;;  %v5984_v0 = vadd.f32 %v13460_v18, %v5542_v4  ;;  %v13461_v6 = vld [vmem:[#allocation47_spill] sm:$0xff]  ;;  %v13463_v33 = vld [vmem:[#allocation28_spill] sm:$0xff]  ;;  %v13471_v50 = vld [vmem:[#allocation29_spill] sm:$0xff] }
 0x475   :  { %13459 = vst [vmem:[#allocation50_spill] sm:$0xff] %v12918_v36  ;;  %v12946_v7 = vpop.f32.mrf.mxu0  ;;  %v6490_v55 = vadd.f32 %v6427_v19, %v6271_v12  ;;  %v6493_v58 = vadd.f32 %v9453_v29, %v6274_v28  ;;  %v5982_v19 = vadd.f32 %v13461_v6, %v5540_v52  ;;  %v6275_v20 = vadd.f32 %v13462_v10, %v5977_v40  ;;  %v13464_v43 = vld [vmem:[#allocation51_spill] sm:$0xff]  ;;  %v13466_v31 = vld [vmem:[#allocation40_spill] sm:$0xff] }
 0x476   :  { %v12924_v62 = vpop.f32.mrf.mxu1  ;;  %v6278_v53 = vadd.f32 %v13463_v33, %v5980_v54  ;;  %v6496_v32 = vadd.f32 %v13465_v35, %v6277_v51  ;;  %v6276_v59 = vadd.f32 %v13467_v39, %v5978_v63  ;;  %v6933_v42 = vadd.f32 %v13469_v46, %v6491_v38  ;;  %v13470_v8 = vld [vmem:[#allocation44_spill] sm:$0xff] }
 0x477   :  { %v12971_v3 = vpop.f32.mrf.mxu0  ;;  %v6932_v29 = vadd.f32 %v6869_v22, %v6490_v55  ;;  %v6935_v22 = vadd.f32 %v13464_v43, %v6493_v58  ;;  %v6494_v14 = vadd.f32 %v13466_v31, %v6275_v20  ;;  %v6279_v4 = vadd.f32 %v13471_v50, %v5981_v11  ;;  %v13472_v55 = vld [vmem:[#allocation30_spill] sm:$0xff]  ;;  %v13473_v40 = vld [vmem:[#allocation36_spill] sm:$0xff] }
 0x478   :  { %v12928_v30 = vpop.f32.mrf.mxu1  ;;  %v6497_v21 = vadd.f32 %v13470_v8, %v6278_v53  ;;  %v6282_v28 = vadd.f32 %v13472_v55, %v5984_v0  ;;  %v6280_v52 = vadd.f32 %v13473_v40, %v5982_v19 }
 0x479   :  { %v12990_v5 = vpop.f32.mrf.mxu0  ;;  %v6936_v11 = vadd.f32 %v12922_v47, %v6494_v14  ;;  %v13479_v14 = vld [vmem:[#allocation43_spill] sm:$0xff] }
 0x47a   :  { %v12934_v36 = vpop.f32.mrf.mxu1  ;;  %v13478_v53 = vld [vmem:[#allocation34_spill] sm:$0xff]  ;;  %v5988_v39 = vadd.f32 %v13479_v14, %v5546_v25  ;;  %v6501_v8 = vadd.f32 %v12924_v62, %v6282_v28  ;;  %v13483_v62 = vld [vmem:[#allocation33_spill] sm:$0xff] }
 0x47b   :  { %v9483_v58 = vpop.f32.mrf.mxu0 }
 0x47c   :  { %v12941_v57 = vpop.f32.mrf.mxu1  ;;  %v13481_v46 = vld [vmem:[#allocation50_spill] sm:$0xff] }
 0x47e   :  { %v12956_v24 = vpop.f32.mrf.mxu1 }
 0x480   :  { %v12967_v41 = vpop.f32.mrf.mxu1 }
 0x482   :  { %v9496_v15 = vpop.f32.mrf.mxu1 }
 0x483   :  { %v7232_v56 = vadd.f32 %v9496_v15, %v6934_v27  ;;  %v13474_v15 = vld [vmem:[#allocation39_spill] sm:$0xff] }
 0x484   :  { %v7167_v61 = vpop.f32.mrf.mxu1  ;;  %v5987_v51 = vadd.f32 %v13474_v15, %v5545_v34  ;;  %v6939_v34 = vadd.f32 %v12932_v2, %v6497_v21 }
 0x485   :  { %v7255_v13 = vmul.f32 %v12981_v26, %v7232_v56  ;;  %v7230_v45 = vadd.f32 %v7167_v61, %v6932_v29  ;;  %v13475_v56 = vld [vmem:[#allocation45_spill] sm:$0xff]  ;;  %v13476_v29 = vld [vmem:[#allocation48_spill] sm:$0xff] }
 0x486   :  { %v9497_v60 = vpop.f32.mrf.mxu1  ;;  %v6495_v38 = vadd.f32 %v13475_v56, %v6276_v59  ;;  %v6938_v18 = vadd.f32 %v13476_v29, %v6496_v32  ;;  %v13477_v61 = vld [vmem:[#allocation49_spill] sm:$0xff]  ;;  %v13480_v59 = vld [vmem:[#allocation31_spill] sm:$0xff] }
 0x487   :  { %v7278_v17 = vadd.f32 %v12988_v48, %v7255_v13  ;;  %v7253_v16 = vmul.f32 %v12981_v26, %v7230_v45  ;;  %v7233_v12 = vadd.f32 %v9497_v60, %v6935_v22  ;;  %v5985_v33 = vadd.f32 %v13477_v61, %v5543_v44  ;;  %v6904_v22 = vpop.f32.mrf.mxu0 }
 0x488   :  { %v7170_v54 = vpop.f32.mrf.mxu1  ;;  %v6500_v13 = vadd.f32 %v13478_v53, %v6281_v23  ;;  %v6285_v9 = vadd.f32 %v13480_v59, %v5987_v51  ;;  %v6937_v23 = vadd.f32 %v12946_v7, %v6495_v38 }
 0x489   :  { %v7294_v1 = vmax.f32 %v7278_v17, 0.0  ;;  %v7276_v27 = vadd.f32 %v12988_v48, %v7253_v16  ;;  %v7256_v63 = vmul.f32 %v12981_v26, %v7233_v12  ;;  %v7231_v49 = vadd.f32 %v7170_v54, %v6933_v42  ;;  %v9486_v55 = vpop.f32.mrf.mxu0 }
 0x48a   :  { %v9500_v6 = vpop.f32.mrf.mxu1  ;;  %v6498_v42 = vadd.f32 %v13481_v46, %v6279_v4  ;;  %v6942_v50 = vadd.f32 %v12971_v3, %v6500_v13  ;;  %v6499_v4 = vadd.f32 %v12928_v30, %v6280_v52  ;;  %v6283_v28 = vadd.f32 %v13483_v62, %v5985_v33 }
 0x48b   :  { %v8759_v0 = vpack.c.bf16 %v7294_v1, %v7294_v1  ;;  %v7292_v10 = vmax.f32 %v7276_v27, 0.0  ;;  %v7279_v19 = vadd.f32 %v12988_v48, %v7256_v63  ;;  %v7254_v20 = vmul.f32 %v12981_v26, %v7231_v49  ;;  %v13482_v27 = vld [vmem:[#allocation37_spill] sm:$0xff]  ;;  %v6917_v30 = vpop.f32.mrf.mxu0 }
 0x48c   :  { %v7236_v45 = vadd.f32 %v9500_v6, %v6938_v18  ;;  %v7183_v43 = vpop.f32.mrf.mxu1  ;;  %v5986_v63 = vadd.f32 %v13482_v27, %v12979_v37  ;;  %v6504_v29 = vadd.f32 %v12934_v36, %v6285_v9  ;;  %v6940_v6 = vadd.f32 %v12990_v5, %v6498_v42 }
 0x48d   :  { %7374 = vst.msk [vmem:[#allocation4 + $0x8] sm:$0xf] %vm210_vm1, %v8759_v0  ;;  %v8757_v35 = vpack.c.bf16 %v7292_v10, %v7292_v10  ;;  %v7295_v32 = vmax.f32 %v7279_v19, 0.0  ;;  %v7277_v47 = vadd.f32 %v12988_v48, %v7254_v20  ;;  %v7234_v31 = vadd.f32 %v7183_v43, %v6936_v11 }
 0x48e   :  { %v7259_v44 = vmul.f32 %v12981_v26, %v7236_v45  ;;  %v9501_v60 = vpop.f32.mrf.mxu1  ;;  %v6943_v11 = vadd.f32 %v9483_v58, %v6501_v8  ;;  %v6502_v20 = vadd.f32 %v12941_v57, %v6283_v28  ;;  %v6941_v53 = vadd.f32 %v6904_v22, %v6499_v4  ;;  %v13484_v45 = vld [vmem:[#allocation35_spill] sm:$0xff] }
 0x48f   :  { %7372 = vst.msk [vmem:[#allocation4] sm:$0xf] %vm210_vm1, %v8757_v35  ;;  %v8760_v2 = vpack.c.bf16 %v7295_v32, %v7295_v32  ;;  %v7293_v17 = vmax.f32 %v7277_v47, 0.0  ;;  %v7257_v16 = vmul.f32 %v12981_v26, %v7234_v31  ;;  %v7237_v12 = vadd.f32 %v9501_v60, %v6939_v34  ;;  %v13485_v34 = vld [vmem:[#allocation41_spill] sm:$0xff]  ;;  %v9487_v31 = vpop.f32.mrf.mxu0 }
 0x490   :  { %v7282_v25 = vadd.f32 %v12988_v48, %v7259_v44  ;;  %v7186_v21 = vpop.f32.mrf.mxu1  ;;  %v6286_v43 = vadd.f32 %v13484_v45, %v5988_v39  ;;  %v6284_v35 = vadd.f32 %v13485_v34, %v5986_v63  ;;  %v6946_v57 = vadd.f32 %v9486_v55, %v6504_v29 }
 0x491   :  { %7375 = vst.msk [vmem:[#allocation4 + $0xc] sm:$0xf] %vm210_vm1, %v8760_v2  ;;  %v8758_v7 = vpack.c.bf16 %v7293_v17, %v7293_v17  ;;  %v7280_v40 = vadd.f32 %v12988_v48, %v7257_v16  ;;  %v7260_v54 = vmul.f32 %v12981_v26, %v7237_v12  ;;  %v7235_v1 = vadd.f32 %v7186_v21, %v6937_v23 }
 0x492   :  { %v7298_v49 = vmax.f32 %v7282_v25, 0.0  ;;  %v9504_v15 = vpop.f32.mrf.mxu1  ;;  %v6505_v44 = vadd.f32 %v12956_v24, %v6286_v43  ;;  %v6503_v60 = vadd.f32 %v12967_v41, %v6284_v35  ;;  %v6944_v2 = vadd.f32 %v6917_v30, %v6502_v20  ;;  %v6920_v24 = vpop.f32.mrf.mxu0  ;;  %v7436_v43 = vld [vmem:[#allocation17] sm:$0x7] }
 0x493   :  { %7373 = vst.msk [vmem:[#allocation4 + $0x4] sm:$0xf] %vm210_vm1, %v8758_v7  ;;  %v7296_v3 = vmax.f32 %v7280_v40, 0.0  ;;  %v7283_v51 = vadd.f32 %v12988_v48, %v7260_v54  ;;  %v7258_v56 = vmul.f32 %v12981_v26, %v7235_v1  ;;  %v7240_v38 = vadd.f32 %v9504_v15, %v6942_v50 }
 0x494   :  { %v8763_v18 = vpack.c.bf16 %v7298_v49, %v7298_v49  ;;  %v7199_v37 = vpop.f32.mrf.mxu1  ;;  %v13486_v40 = vmov 0   ;;  %v6947_v1 = vadd.f32 %v9487_v31, %v6505_v44  ;;  %v6945_v63 = vadd.f32 %v6920_v24, %v6503_v60 }
 0x495   :  { %v8761_v52 = vpack.c.bf16 %v7296_v3, %v7296_v3  ;;  %v7299_v0 = vmax.f32 %v7283_v51, 0.0  ;;  %v7281_v10 = vadd.f32 %v12988_v48, %v7258_v56  ;;  %v7263_v19 = vmul.f32 %v12981_v26, %v7240_v38 }
 0x496   :  { %7378 = vst.msk [vmem:[#allocation4 + $0x18] sm:$0xf] %vm210_vm1, %v8763_v18  ;;  %v7238_v61 = vadd.f32 %v7199_v37, %v6940_v6  ;;  %v9505_v33 = vpop.f32.mrf.mxu1 }
 0x497   :  { %7376 = vst.msk [vmem:[#allocation4 + $0x10] sm:$0xf] %vm210_vm1, %v8761_v52  ;;  %v8764_v36 = vpack.c.bf16 %v7299_v0, %v7299_v0  ;;  %v7297_v5 = vmax.f32 %v7281_v10, 0.0  ;;  %v7286_v58 = vadd.f32 %v12988_v48, %v7263_v19  ;;  %v7241_v13 = vadd.f32 %v9505_v33, %v6943_v11 }
 0x498   :  { %v7261_v32 = vmul.f32 %v12981_v26, %v7238_v61  ;;  %v7202_v47 = vpop.f32.mrf.mxu1  ;;  %v9721_v8 = vld [vmem:[#allocation4 + $0x8] sm:$0xff]  }
 0x499   :  { %7379 = vst.msk [vmem:[#allocation4 + $0x1c] sm:$0xf] %vm210_vm1, %v8764_v36  ;;  %v8762_v14 = vpack.c.bf16 %v7297_v5, %v7297_v5  ;;  %v7302_v22 = vmax.f32 %v7286_v58, 0.0  ;;  %v7264_v59 = vmul.f32 %v12981_v26, %v7241_v13  ;;  %v7239_v9 = vadd.f32 %v7202_v47, %v6941_v53 }
 0x49a   :  { %v7284_v39 = vadd.f32 %v12988_v48, %v7261_v32  ;;  %v9508_v23 = vpop.f32.mrf.mxu1  ;;  %v9720_v17 = vld [vmem:[#allocation4] sm:$0xff]   ;;  %v7438_v58 = vlaneseq }
 0x49b   :  { %7377 = vst.msk [vmem:[#allocation4 + $0x14] sm:$0xf] %vm210_vm1, %v8762_v14  ;;  %v8767_v16 = vpack.c.bf16 %v7302_v22, %v7302_v22  ;;  %v7287_v12 = vadd.f32 %v12988_v48, %v7264_v59  ;;  %v7262_v46 = vmul.f32 %v12981_v26, %v7239_v9  ;;  %v7244_v42 = vadd.f32 %v9508_v23, %v6946_v57  ;;  %v7887_v59 = vld [vmem:[%s13299_s0] sm:$0xff] }
 0x49c   :  { %v7300_v25 = vmax.f32 %v7284_v39, 0.0  ;;  %v7215_v21 = vpop.f32.mrf.mxu1  ;;  %7662 = vmatmul.mubr.bf16.vlgmr.msra.gmra.mxu0 %v9720_v17  ;;  %9526 = vmatprep.mubr.bf16.mxu1 %v9720_v17  ;;  %v7439_v13 = vshrl.u32 %v7438_v58, 7  ;;  %v7895_v39 = vld [vmem:[%s13299_s0 + $0x40] sm:$0xff] }
 0x49d   :  { %7382 = vst.msk [vmem:[#allocation4 + $0x28] sm:$0xf] %vm210_vm1, %v8767_v16  ;;  %v7303_v41 = vmax.f32 %v7287_v12, 0.0  ;;  %v7285_v50 = vadd.f32 %v12988_v48, %v7262_v46  ;;  %v7267_v55 = vmul.f32 %v12981_v26, %v7244_v42  ;;  %v7242_v7 = vadd.f32 %v7215_v21, %v6944_v2  ;;  %9527 = vmatmul.mubr.bf16.vlgmr.msra.gmra.mxu1 %v9721_v8  ;;  %v7888_v16 = vld [vmem:[%s13299_s0 + $0x8] sm:$0xff] }
 0x49e   :  { %7671 = vmatprep.mubr.bf16.mxu0 %v13486_v40  ;;  %v8765_v54 = vpack.c.bf16 %v7300_v25, %v7300_v25  ;;  %v9509_v27 = vpop.f32.mrf.mxu1  ;;  %v7440_v45 = vsub.s32 0, %v7439_v13  ;;  %v7448_v34 = vsub.s32 2, %v7439_v13  ;;  %v7444_v35 = vsub.s32 1, %v7439_v13  ;;  %v7889_v25 = vld [vmem:[%s13299_s0 + $0x10] sm:$0xff] }
 0x49f   :  { %v8768_v4 = vpack.c.bf16 %v7303_v41, %v7303_v41  ;;  %v7301_v62 = vmax.f32 %v7285_v50, 0.0  ;;  %v7290_v28 = vadd.f32 %v12988_v48, %v7267_v55  ;;  %v7265_v49 = vmul.f32 %v12981_v26, %v7242_v7  ;;  %v7890_v55 = vld [vmem:[%s13299_s0 + $0x18] sm:$0xff] }
 0x4a0   :  { %7380 = vst.msk [vmem:[#allocation4 + $0x20] sm:$0xf] %vm210_vm1, %v8765_v54  ;;  %v7245_v15 = vadd.f32 %v9509_v27, %v6947_v1  ;;  %v7218_v3 = vpop.f32.mrf.mxu1  ;;  %v9723_v52 = vld [vmem:[#allocation4 + $0x18] sm:$0xff]   ;;  %v13082_v32 = vrot.slane %v7436_v43, %v7440_v45  ;;  %v13084_v47 = vrot.slane %v7436_v43, %v7448_v34  ;;  %v13086_v57 = vrot.slane %v7436_v43, %v7444_v35 }
 0x4a1   :  { %7383 = vst.msk [vmem:[#allocation4 + $0x2c] sm:$0xf] %vm210_vm1, %v8768_v4  ;;  %v8766_v51 = vpack.c.bf16 %v7301_v62, %v7301_v62  ;;  %v7306_v56 = vmax.f32 %v7290_v28, 0.0  ;;  %v7288_v38 = vadd.f32 %v12988_v48, %v7265_v49  ;;  %v7243_v29 = vadd.f32 %v7218_v3, %v6945_v63  ;;  %v7898_v63 = vld [vmem:[%s13299_s0 + $0x58] sm:$0xff]  ;;  %v7891_v3 = vld [vmem:[%s13299_s0 + $0x20] sm:$0xff] }
 0x4a2   :  { %v7268_v18 = vmul.f32 %v12981_v26, %v7245_v15  ;;  %v9722_v6 = vld [vmem:[#allocation4 + $0x10] sm:$0xff]   ;;  %v7894_v45 = vld [vmem:[%s13299_s0 + $0x38] sm:$0xff] }
 0x4a3   :  { %7381 = vst.msk [vmem:[#allocation4 + $0x24] sm:$0xf] %vm210_vm1, %v8766_v51  ;;  %v8771_v37 = vpack.c.bf16 %v7306_v56, %v7306_v56  ;;  %v7304_v11 = vmax.f32 %v7288_v38, 0.0  ;;  %v7266_v30 = vmul.f32 %v12981_v26, %v7243_v29  ;;  %9530 = vmatprep.mubr.bf16.mxu1 %v9722_v6 }
 0x4a4   :  { %v7291_v0 = vadd.f32 %v12988_v48, %v7268_v18  ;;  %7672 = vmatmul.mubr.bf16.gmra.mxu0 %v9721_v8 }
 0x4a5   :  { %7386 = vst.msk [vmem:[#allocation4 + $0x38] sm:$0xf] %vm210_vm1, %v8771_v37  ;;  %v8769_v10 = vpack.c.bf16 %v7304_v11, %v7304_v11  ;;  %v7289_v19 = vadd.f32 %v12988_v48, %v7266_v30  ;;  %9531 = vmatmul.mubr.bf16.gmra.mxu1 %v9723_v52  ;;  %7681 = vmatprep.mubr.bf16.mxu0 %v13486_v40 }
 0x4a6   :  { %v7307_v20 = vmax.f32 %v7291_v0, 0.0 }
 0x4a7   :  { %7384 = vst.msk [vmem:[#allocation4 + $0x30] sm:$0xf] %vm210_vm1, %v8769_v10  ;;  %v7305_v61 = vmax.f32 %v7289_v19, 0.0  ;;  %v7893_v10 = vld [vmem:[%s13299_s0 + $0x30] sm:$0xff] }
 0x4a8   :  { %v8772_v33 = vpack.c.bf16 %v7307_v20, %v7307_v20  ;;  %v9725_v36 = vld [vmem:[#allocation4 + $0x28] sm:$0xff]  }
 0x4a9   :  { %v8770_v53 = vpack.c.bf16 %v7305_v61, %v7305_v61 }
 0x4aa   :  { %7387 = vst.msk [vmem:[#allocation4 + $0x3c] sm:$0xf] %vm210_vm1, %v8772_v33  ;;  %v9724_v26 = vld [vmem:[#allocation4 + $0x20] sm:$0xff]  }
 0x4ab   :  { %7385 = vst.msk [vmem:[#allocation4 + $0x34] sm:$0xf] %vm210_vm1, %v8770_v53  ;;  %9534 = vmatprep.mubr.bf16.mxu1 %v9724_v26 }
 0x4ac   :  { %7682 = vmatmul.mubr.bf16.gmra.mxu0 %v9722_v6  ;;  %v7892_v6 = vld [vmem:[%s13299_s0 + $0x28] sm:$0xff] }
 0x4ad   :  { %9535 = vmatmul.mubr.bf16.gmra.mxu1 %v9725_v36  ;;  %7691 = vmatprep.mubr.bf16.mxu0 %v13486_v40 }
 0x4b1   :  { %v9727_v5 = vld [vmem:[#allocation4 + $0x38] sm:$0xff]  }
 0x4b2   :  { %v9726_v48 = vld [vmem:[#allocation4 + $0x30] sm:$0xff]  }
 0x4b3   :  { %9538 = vmatprep.mubr.bf16.mxu1 %v9726_v48 }
 0x4b4   :  { %7692 = vmatmul.mubr.bf16.gmra.mxu0 %v9723_v52 }
 0x4b5   :  { %9539 = vmatmul.mubr.bf16.gmra.mxu1 %v9727_v5  ;;  %7701 = vmatprep.mubr.bf16.mxu0 %v13486_v40 }
 0x4bc   :  { %7702 = vmatmul.mubr.bf16.gmra.mxu0 %v9724_v26  ;;  %v7907_v26 = vld [vmem:[%s13299_s0 + $0xa0] sm:$0xff] }
 0x4bd   :  { %7711 = vmatprep.mubr.bf16.mxu0 %v13486_v40 }
 0x4c4   :  { %7712 = vmatmul.mubr.bf16.gmra.mxu0 %v9725_v36 }
 0x4c5   :  { %7721 = vmatprep.mubr.bf16.mxu0 %v13486_v40 }
 0x4cc   :  { %7722 = vmatmul.mubr.bf16.gmra.mxu0 %v9726_v48 }
 0x4cd   :  { %7731 = vmatprep.mubr.bf16.mxu0 %v13486_v40 }
 0x4d4   :  { %7732 = vmatmul.mubr.bf16.gmra.mxu0 %v9727_v5 }
 0x55c   :  { %v7663_v31 = vpop.f32.mrf.mxu0 }
 0x55d   :  { %v7664_v14 = vadd.f32 %v7663_v31, %v13082_v32  ;;  %v9528_v22 = vpop.f32.mrf.mxu1 }
 0x55e   :  { %v7785_v9 = vadd.f32 %v9528_v22, %v13084_v47  ;;  %v7665_v44 = vpop.f32.mrf.mxu0  ;;  %v7901_v22 = vld [vmem:[%s13299_s0 + $0x70] sm:$0xff] }
 0x55f   :  { %v7839_v60 = vmul.f32 0.17, %v7664_v14  ;;  %v7666_v23 = vadd.f32 %v7665_v44, %v13086_v57  ;;  %v7776_v2 = vpop.f32.mrf.mxu1 }
 0x560   :  { %v7847_v17 = vmul.f32 0.17, %v7785_v9  ;;  %v7777_v12 = vadd.f32 %v7776_v2, %v13084_v47  ;;  %v7667_v46 = vpop.f32.mrf.mxu0 }
 0x561   :  { %v7935_v42 = vadd.f32 %v7887_v59, %v7839_v60  ;;  %v7840_v8 = vmul.f32 0.17, %v7666_v23  ;;  %v7668_v21 = vadd.f32 %v7667_v46, %v13082_v32  ;;  %v9529_v24 = vpop.f32.mrf.mxu1  ;;  %v7896_v23 = vld [vmem:[%s13299_s0 + $0x48] sm:$0xff] }
 0x562   :  { %v7943_v41 = vadd.f32 %v7895_v39, %v7847_v17  ;;  %v7841_v50 = vmul.f32 0.17, %v7777_v12  ;;  %v7788_v7 = vadd.f32 %v9529_v24, %v13084_v47  ;;  %v7669_v40 = vpop.f32.mrf.mxu0 }
 0x563   :  { %v7983_v54 = vmax.f32 %v7935_v42, 0.0  ;;  %v7936_v1 = vadd.f32 %v7888_v16, %v7840_v8  ;;  %v7842_v27 = vmul.f32 0.17, %v7668_v21  ;;  %v7670_v4 = vadd.f32 %v7669_v40, %v13086_v57  ;;  %v7779_v62 = vpop.f32.mrf.mxu1  ;;  %v7910_v42 = vld [vmem:[%s13299_s0 + $0xb8] sm:$0xff] }
 0x564   :  { %v7991_v28 = vmax.f32 %v7943_v41, 0.0  ;;  %v7937_v49 = vadd.f32 %v7889_v25, %v7841_v50  ;;  %v7850_v15 = vmul.f32 0.17, %v7788_v7  ;;  %v7780_v51 = vadd.f32 %v7779_v62, %v13084_v47  ;;  %v7673_v56 = vpop.f32.mrf.mxu0  ;;  %v7897_v50 = vld [vmem:[%s13299_s0 + $0x50] sm:$0xff] }
 0x565   :  { %8031 = vst [vmem:[#allocation19] sm:$0xff] %v7983_v54  ;;  %v7984_v38 = vmax.f32 %v7936_v1, 0.0  ;;  %v7938_v29 = vadd.f32 %v7890_v55, %v7842_v27  ;;  %v7843_v18 = vmul.f32 0.17, %v7670_v4  ;;  %v7674_v37 = vadd.f32 %v7673_v56, %v13082_v32  ;;  %v9532_v11 = vpop.f32.mrf.mxu1  ;;  %v7904_v27 = vld [vmem:[%s13299_s0 + $0x88] sm:$0xff] }
 0x566   :  { %8039 = vst.msk [vmem:[#allocation19 + $0x40] sm:$0xff] %vm454_vm0, %v7991_v28  ;;  %v7985_v30 = vmax.f32 %v7937_v49, 0.0  ;;  %v7946_v52 = vadd.f32 %v7898_v63, %v7850_v15  ;;  %v7844_v0 = vmul.f32 0.17, %v7780_v51  ;;  %v7801_v19 = vadd.f32 %v9532_v11, %v13084_v47  ;;  %v7675_v20 = vpop.f32.mrf.mxu0  ;;  %v7899_v15 = vld [vmem:[%s13299_s0 + $0x60] sm:$0xff] }
 0x567   :  { %8032 = vst [vmem:[#allocation19 + $0x8] sm:$0xff] %v7984_v38  ;;  %v7986_v61 = vmax.f32 %v7938_v29, 0.0  ;;  %v7939_v33 = vadd.f32 %v7891_v3, %v7843_v18  ;;  %v7845_v53 = vmul.f32 0.17, %v7674_v37  ;;  %v7676_v36 = vadd.f32 %v7675_v20, %v13086_v57  ;;  %v7792_v48 = vpop.f32.mrf.mxu1  ;;  %v7919_v18 = vld [vmem:[%s13299_s0 + $0x100] sm:$0xff] }
 0x568   :  { %8033 = vst.msk [vmem:[#allocation19 + $0x10] sm:$0xff] %vm454_vm0, %v7985_v30  ;;  %v7994_v5 = vmax.f32 %v7946_v52, 0.0  ;;  %v7940_v58 = vadd.f32 %v7892_v6, %v7844_v0  ;;  %v7859_v13 = vmul.f32 0.17, %v7801_v19  ;;  %v7793_v43 = vadd.f32 %v7792_v48, %v13084_v47  ;;  %v7677_v34 = vpop.f32.mrf.mxu0  ;;  %v7900_v0 = vld [vmem:[%s13299_s0 + $0x68] sm:$0xff] }
 0x569   :  { %8034 = vst [vmem:[#allocation19 + $0x18] sm:$0xff] %v7986_v61  ;;  %v7987_v35 = vmax.f32 %v7939_v33, 0.0  ;;  %v7941_v31 = vadd.f32 %v7893_v10, %v7845_v53  ;;  %v7846_v14 = vmul.f32 0.17, %v7676_v36  ;;  %v7678_v59 = vadd.f32 %v7677_v34, %v13082_v32  ;;  %v9533_v9 = vpop.f32.mrf.mxu1  ;;  %v7913_v53 = vld [vmem:[%s13299_s0 + $0xd0] sm:$0xff] }
 0x56a   :  { %8042 = vst.msk [vmem:[#allocation19 + $0x58] sm:$0xff] %vm454_vm0, %v7994_v5  ;;  %v7988_v44 = vmax.f32 %v7940_v58, 0.0  ;;  %v7955_v60 = vadd.f32 %v7907_v26, %v7859_v13  ;;  %v7853_v39 = vmul.f32 0.17, %v7793_v43  ;;  %v7804_v2 = vadd.f32 %v9533_v9, %v13084_v47  ;;  %v7679_v17 = vpop.f32.mrf.mxu0  ;;  %v7902_v13 = vld [vmem:[%s13299_s0 + $0x78] sm:$0xff] }
 0x56b   :  { %8035 = vst [vmem:[#allocation19 + $0x20] sm:$0xff] %v7987_v35  ;;  %v7989_v16 = vmax.f32 %v7941_v31, 0.0  ;;  %v7942_v12 = vadd.f32 %v7894_v45, %v7846_v14  ;;  %v7848_v46 = vmul.f32 0.17, %v7678_v59  ;;  %v7680_v8 = vadd.f32 %v7679_v17, %v13086_v57  ;;  %v7795_v25 = vpop.f32.mrf.mxu1  ;;  %v7922_v14 = vld [vmem:[%s13299_s0 + $0x118] sm:$0xff] }
 0x56c   :  { %8036 = vst.msk [vmem:[#allocation19 + $0x28] sm:$0xff] %vm454_vm0, %v7988_v44  ;;  %v8003_v21 = vmax.f32 %v7955_v60, 0.0  ;;  %v7949_v24 = vadd.f32 %v7901_v22, %v7853_v39  ;;  %v7862_v41 = vmul.f32 0.17, %v7804_v2  ;;  %v7796_v55 = vadd.f32 %v7795_v25, %v13084_v47  ;;  %v7683_v7 = vpop.f32.mrf.mxu0  ;;  %v7903_v39 = vld [vmem:[%s13299_s0 + $0x80] sm:$0xff] }
 0x56d   :  { %8037 = vst [vmem:[#allocation19 + $0x30] sm:$0xff] %v7989_v16  ;;  %v7990_v40 = vmax.f32 %v7942_v12, 0.0  ;;  %v7944_v54 = vadd.f32 %v7896_v23, %v7848_v46  ;;  %v7849_v1 = vmul.f32 0.17, %v7680_v8  ;;  %v7684_v63 = vadd.f32 %v7683_v7, %v13082_v32  ;;  %v9536_v4 = vpop.f32.mrf.mxu1  ;;  %v7916_v46 = vld [vmem:[%s13299_s0 + $0xe8] sm:$0xff] }
 0x56e   :  { %8051 = vst.msk [vmem:[#allocation19 + $0xa0] sm:$0xff] %vm454_vm0, %v8003_v21  ;;  %v7997_v62 = vmax.f32 %v7949_v24, 0.0  ;;  %v7958_v28 = vadd.f32 %v7910_v42, %v7862_v41  ;;  %v7856_v49 = vmul.f32 0.17, %v7796_v55  ;;  %v7817_v3 = vadd.f32 %v9536_v4, %v13084_v47  ;;  %v7685_v51 = vpop.f32.mrf.mxu0  ;;  %v7905_v41 = vld [vmem:[%s13299_s0 + $0x90] sm:$0xff] }
 0x56f   :  { %8038 = vst [vmem:[#allocation19 + $0x38] sm:$0xff] %v7990_v40  ;;  %v7992_v56 = vmax.f32 %v7944_v54, 0.0  ;;  %v7945_v38 = vadd.f32 %v7897_v50, %v7849_v1  ;;  %v7851_v29 = vmul.f32 0.17, %v7684_v63  ;;  %v7686_v6 = vadd.f32 %v7685_v51, %v13086_v57  ;;  %v7808_v37 = vpop.f32.mrf.mxu1  ;;  %v7931_v1 = vld [vmem:[%s13299_s0 + $0x160] sm:$0xff] }
 0x570   :  { %8045 = vst.msk [vmem:[#allocation19 + $0x70] sm:$0xff] %vm454_vm0, %v7997_v62  ;;  %v8006_v11 = vmax.f32 %v7958_v28, 0.0  ;;  %v7952_v30 = vadd.f32 %v7904_v27, %v7856_v49  ;;  %v7871_v52 = vmul.f32 0.17, %v7817_v3  ;;  %v7809_v10 = vadd.f32 %v7808_v37, %v13084_v47  ;;  %v7687_v19 = vpop.f32.mrf.mxu0  ;;  %v7906_v49 = vld [vmem:[%s13299_s0 + $0x98] sm:$0xff] }
 0x571   :  { %8040 = vst [vmem:[#allocation19 + $0x48] sm:$0xff] %v7992_v56  ;;  %v7993_v20 = vmax.f32 %v7945_v38, 0.0  ;;  %v7947_v61 = vadd.f32 %v7899_v15, %v7851_v29  ;;  %v7852_v33 = vmul.f32 0.17, %v7686_v6  ;;  %v7688_v26 = vadd.f32 %v7687_v19, %v13082_v32  ;;  %v9537_v36 = vpop.f32.mrf.mxu1  ;;  %v7925_v29 = vld [vmem:[%s13299_s0 + $0x130] sm:$0xff] }
 0x572   :  { %8054 = vst.msk [vmem:[#allocation19 + $0xb8] sm:$0xff] %vm454_vm0, %v8006_v11  ;;  %v8000_v48 = vmax.f32 %v7952_v30, 0.0  ;;  %v7967_v5 = vadd.f32 %v7919_v18, %v7871_v52  ;;  %v7865_v58 = vmul.f32 0.17, %v7809_v10  ;;  %v7820_v45 = vadd.f32 %v9537_v36, %v13084_v47  ;;  %v7689_v43 = vpop.f32.mrf.mxu0  ;;  %v7908_v52 = vld [vmem:[%s13299_s0 + $0xa8] sm:$0xff] }
 0x573   :  { %8041 = vst [vmem:[#allocation19 + $0x50] sm:$0xff] %v7993_v20  ;;  %v7995_v34 = vmax.f32 %v7947_v61, 0.0  ;;  %v7948_v35 = vadd.f32 %v7900_v0, %v7852_v33  ;;  %v7854_v31 = vmul.f32 0.17, %v7688_v26  ;;  %v7690_v22 = vadd.f32 %v7689_v43, %v13086_v57  ;;  %v7811_v59 = vpop.f32.mrf.mxu1  ;;  %v7934_v33 = vld [vmem:[%s13299_s0 + $0x178] sm:$0xff] }
 0x574   :  { %8048 = vst.msk [vmem:[#allocation19 + $0x88] sm:$0xff] %vm454_vm0, %v8000_v48  ;;  %v8015_v9 = vmax.f32 %v7967_v5, 0.0  ;;  %v7961_v44 = vadd.f32 %v7913_v53, %v7865_v58  ;;  %v7874_v60 = vmul.f32 0.17, %v7820_v45  ;;  %v7812_v23 = vadd.f32 %v7811_v59, %v13084_v47  ;;  %v7693_v2 = vpop.f32.mrf.mxu0  ;;  %v7909_v58 = vld [vmem:[%s13299_s0 + $0xb0] sm:$0xff] }
 0x575   :  { %8043 = vst [vmem:[#allocation19 + $0x60] sm:$0xff] %v7995_v34  ;;  %v7996_v17 = vmax.f32 %v7948_v35, 0.0  ;;  %v7950_v16 = vadd.f32 %v7902_v13, %v7854_v31  ;;  %v7855_v12 = vmul.f32 0.17, %v7690_v22  ;;  %v7694_v42 = vadd.f32 %v7693_v2, %v13082_v32  ;;  %v9540_v8 = vpop.f32.mrf.mxu1  ;;  %v7928_v31 = vld [vmem:[%s13299_s0 + $0x148] sm:$0xff] }
 0x576   :  { %8063 = vst.msk [vmem:[#allocation19 + $0x100] sm:$0xff] %vm454_vm0, %v8015_v9  ;;  %v8009_v25 = vmax.f32 %v7961_v44, 0.0  ;;  %v7970_v21 = vadd.f32 %v7922_v14, %v7874_v60  ;;  %v7868_v24 = vmul.f32 0.17, %v7812_v23  ;;  %v7833_v50 = vadd.f32 %v9540_v8, %v13084_v47  ;;  %v7695_v55 = vpop.f32.mrf.mxu0 }
 0x577   :  { %8044 = vst [vmem:[#allocation19 + $0x68] sm:$0xff] %v7996_v17  ;;  %v7998_v7 = vmax.f32 %v7950_v16, 0.0  ;;  %v7951_v40 = vadd.f32 %v7903_v39, %v7855_v12  ;;  %v7857_v54 = vmul.f32 0.17, %v7694_v42  ;;  %v7696_v27 = vadd.f32 %v7695_v55, %v13086_v57  ;;  %v7824_v63 = vpop.f32.mrf.mxu1  ;;  %v7912_v12 = vld [vmem:[%s13299_s0 + $0xc8] sm:$0xff] }
 0x578   :  { %8057 = vst.msk [vmem:[#allocation19 + $0xd0] sm:$0xff] %vm454_vm0, %v8009_v25  ;;  %v8018_v4 = vmax.f32 %v7970_v21, 0.0  ;;  %v7964_v62 = vadd.f32 %v7916_v46, %v7868_v24  ;;  %v7883_v28 = vmul.f32 0.17, %v7833_v50  ;;  %v7825_v15 = vadd.f32 %v7824_v63, %v13084_v47  ;;  %v7697_v3 = vpop.f32.mrf.mxu0 }
 0x579   :  { %8046 = vst [vmem:[#allocation19 + $0x78] sm:$0xff] %v7998_v7  ;;  %v7999_v51 = vmax.f32 %v7951_v40, 0.0  ;;  %v7953_v56 = vadd.f32 %v7905_v41, %v7857_v54  ;;  %v7858_v38 = vmul.f32 0.17, %v7696_v27  ;;  %v7698_v18 = vadd.f32 %v7697_v3, %v13082_v32  ;;  %v9541_v6 = vpop.f32.mrf.mxu1  ;;  %v7914_v41 = vld [vmem:[%s13299_s0 + $0xd8] sm:$0xff] }
 0x57a   :  { %8066 = vst.msk [vmem:[#allocation19 + $0x118] sm:$0xff] %vm454_vm0, %v8018_v4  ;;  %v8012_v37 = vmax.f32 %v7964_v62, 0.0  ;;  %v7979_v11 = vadd.f32 %v7931_v1, %v7883_v28  ;;  %v7877_v30 = vmul.f32 0.17, %v7825_v15  ;;  %v7836_v0 = vadd.f32 %v9541_v6, %v13084_v47  ;;  %v7699_v10 = vpop.f32.mrf.mxu0  ;;  %v7915_v1 = vld [vmem:[%s13299_s0 + $0xe0] sm:$0xff] }
 0x57b   :  { %8047 = vst [vmem:[#allocation19 + $0x80] sm:$0xff] %v7999_v51  ;;  %v8001_v19 = vmax.f32 %v7953_v56, 0.0  ;;  %v7954_v20 = vadd.f32 %v7906_v49, %v7858_v38  ;;  %v7860_v61 = vmul.f32 0.17, %v7698_v18  ;;  %v7700_v53 = vadd.f32 %v7699_v10, %v13086_v57  ;;  %v7827_v26 = vpop.f32.mrf.mxu1  ;;  %v7917_v49 = vld [vmem:[%s13299_s0 + $0xf0] sm:$0xff] }
 0x57c   :  { %8060 = vst.msk [vmem:[#allocation19 + $0xe8] sm:$0xff] %vm454_vm0, %v8012_v37  ;;  %v8027_v36 = vmax.f32 %v7979_v11, 0.0  ;;  %v7973_v48 = vadd.f32 %v7925_v29, %v7877_v30  ;;  %v7886_v5 = vmul.f32 0.17, %v7836_v0  ;;  %v7828_v13 = vadd.f32 %v7827_v26, %v13084_v47  ;;  %v7703_v45 = vpop.f32.mrf.mxu0  ;;  %v7911_v47 = vld [vmem:[%s13299_s0 + $0xc0] sm:$0xff]  ;;  %v7918_v29 = vld [vmem:[%s13299_s0 + $0xf8] sm:$0xff] }
 0x57d   :  { %8049 = vst [vmem:[#allocation19 + $0x90] sm:$0xff] %v8001_v19  ;;  %v8002_v43 = vmax.f32 %v7954_v20, 0.0  ;;  %v7956_v34 = vadd.f32 %v7908_v52, %v7860_v61  ;;  %v7861_v35 = vmul.f32 0.17, %v7700_v53  ;;  %v7704_v14 = vadd.f32 %v7703_v45, %v13082_v32  ;;  %v7920_v52 = vld [vmem:[%s13299_s0 + $0x108] sm:$0xff] }
 0x57e   :  { %8075 = vst.msk [vmem:[#allocation19 + $0x160] sm:$0xff] %vm454_vm0, %v8027_v36  ;;  %v8021_v22 = vmax.f32 %v7973_v48, 0.0  ;;  %v7982_v59 = vadd.f32 %v7934_v33, %v7886_v5  ;;  %v7880_v9 = vmul.f32 0.17, %v7828_v13  ;;  %v7705_v44 = vpop.f32.mrf.mxu0  ;;  %v7921_v33 = vld [vmem:[%s13299_s0 + $0x110] sm:$0xff] }
 0x57f   :  { %8050 = vst [vmem:[#allocation19 + $0x98] sm:$0xff] %v8002_v43  ;;  %v8004_v60 = vmax.f32 %v7956_v34, 0.0  ;;  %v7957_v39 = vadd.f32 %v7909_v58, %v7861_v35  ;;  %v7863_v23 = vmul.f32 0.17, %v7704_v14  ;;  %v7706_v2 = vadd.f32 %v7705_v44, %v13086_v57  ;;  %v7923_v58 = vld [vmem:[%s13299_s0 + $0x120] sm:$0xff]  ;;  %v7926_v44 = vld [vmem:[%s13299_s0 + $0x138] sm:$0xff] }
 0x580   :  { %8069 = vst.msk [vmem:[#allocation19 + $0x130] sm:$0xff] %vm454_vm0, %v8021_v22  ;;  %v8030_v17 = vmax.f32 %v7982_v59, 0.0  ;;  %v7976_v16 = vadd.f32 %v7928_v31, %v7880_v9  ;;  %v7707_v46 = vpop.f32.mrf.mxu0  ;;  %v7924_v31 = vld [vmem:[%s13299_s0 + $0x128] sm:$0xff] }
 0x581   :  { %8052 = vst [vmem:[#allocation19 + $0xa8] sm:$0xff] %v8004_v60  ;;  %v8005_v42 = vmax.f32 %v7957_v39, 0.0  ;;  %v7959_v8 = vadd.f32 %v7911_v47, %v7863_v23  ;;  %v7864_v25 = vmul.f32 0.17, %v7706_v2  ;;  %v7708_v21 = vadd.f32 %v7707_v46, %v13082_v32 }
 0x582   :  { %8078 = vst.msk [vmem:[#allocation19 + $0x178] sm:$0xff] %vm454_vm0, %v8030_v17  ;;  %v8024_v24 = vmax.f32 %v7976_v16, 0.0  ;;  %v7709_v50 = vpop.f32.mrf.mxu0  ;;  %v7927_v16 = vld [vmem:[%s13299_s0 + $0x140] sm:$0xff] }
 0x583   :  { %8053 = vst [vmem:[#allocation19 + $0xb0] sm:$0xff] %v8005_v42  ;;  %v8007_v55 = vmax.f32 %v7959_v8, 0.0  ;;  %v7960_v7 = vadd.f32 %v7912_v12, %v7864_v25  ;;  %v7866_v40 = vmul.f32 0.17, %v7708_v21  ;;  %v7710_v54 = vadd.f32 %v7709_v50, %v13086_v57  ;;  %v7929_v21 = vld [vmem:[%s13299_s0 + $0x150] sm:$0xff] }
 0x584   :  { %8072 = vst.msk [vmem:[#allocation19 + $0x148] sm:$0xff] %vm454_vm0, %v8024_v24  ;;  %v7713_v27 = vpop.f32.mrf.mxu0 }
 0x585   :  { %8055 = vst [vmem:[#allocation19 + $0xc0] sm:$0xff] %v8007_v55  ;;  %v8008_v63 = vmax.f32 %v7960_v7, 0.0  ;;  %v7962_v4 = vadd.f32 %v7914_v41, %v7866_v40  ;;  %v7867_v62 = vmul.f32 0.17, %v7710_v54  ;;  %v7714_v28 = vadd.f32 %v7713_v27, %v13082_v32  ;;  %v7930_v40 = vld [vmem:[%s13299_s0 + $0x158] sm:$0xff] }
 0x586   :  { %v7715_v15 = vpop.f32.mrf.mxu0 }
 0x587   :  { %8056 = vst [vmem:[#allocation19 + $0xc8] sm:$0xff] %v8008_v63  ;;  %v8010_v3 = vmax.f32 %v7962_v4, 0.0  ;;  %v7963_v51 = vadd.f32 %v7915_v1, %v7867_v62  ;;  %v7869_v56 = vmul.f32 0.17, %v7714_v28  ;;  %v7716_v38 = vadd.f32 %v7715_v15, %v13086_v57  ;;  %v7932_v62 = vld [vmem:[%s13299_s0 + $0x168] sm:$0xff] }
 0x588   :  { %v7717_v18 = vpop.f32.mrf.mxu0 }
 0x589   :  { %8058 = vst [vmem:[#allocation19 + $0xd8] sm:$0xff] %v8010_v3  ;;  %v8011_v6 = vmax.f32 %v7963_v51, 0.0  ;;  %v7965_v37 = vadd.f32 %v7917_v49, %v7869_v56  ;;  %v7870_v11 = vmul.f32 0.17, %v7716_v38  ;;  %v7718_v30 = vadd.f32 %v7717_v18, %v13082_v32  ;;  %v7933_v56 = vld [vmem:[%s13299_s0 + $0x170] sm:$0xff] }
 0x58a   :  { %v7719_v0 = vpop.f32.mrf.mxu0 }
 0x58b   :  { %8059 = vst [vmem:[#allocation19 + $0xe0] sm:$0xff] %v8011_v6  ;;  %v8013_v10 = vmax.f32 %v7965_v37, 0.0  ;;  %v7966_v19 = vadd.f32 %v7918_v29, %v7870_v11  ;;  %v7872_v20 = vmul.f32 0.17, %v7718_v30  ;;  %v7720_v61 = vadd.f32 %v7719_v0, %v13086_v57 }
 0x58c   :  { %v7723_v53 = vpop.f32.mrf.mxu0 }
 0x58d   :  { %8061 = vst [vmem:[#allocation19 + $0xf0] sm:$0xff] %v8013_v10  ;;  %v8014_v26 = vmax.f32 %v7966_v19, 0.0  ;;  %v7968_v36 = vadd.f32 %v7920_v52, %v7872_v20  ;;  %v7873_v48 = vmul.f32 0.17, %v7720_v61  ;;  %v7724_v5 = vadd.f32 %v7723_v53, %v13082_v32 }
 0x58e   :  { %v7725_v13 = vpop.f32.mrf.mxu0 }
 0x58f   :  { %8062 = vst [vmem:[#allocation19 + $0xf8] sm:$0xff] %v8014_v26  ;;  %v8016_v45 = vmax.f32 %v7968_v36, 0.0  ;;  %v7969_v43 = vadd.f32 %v7921_v33, %v7873_v48  ;;  %v7875_v34 = vmul.f32 0.17, %v7724_v5  ;;  %v7726_v35 = vadd.f32 %v7725_v13, %v13086_v57 }
 0x590   :  { %v7727_v14 = vpop.f32.mrf.mxu0 }
 0x591   :  { %8064 = vst [vmem:[#allocation19 + $0x108] sm:$0xff] %v8016_v45  ;;  %v8017_v22 = vmax.f32 %v7969_v43, 0.0  ;;  %v7971_v59 = vadd.f32 %v7923_v58, %v7875_v34  ;;  %v7876_v9 = vmul.f32 0.17, %v7726_v35  ;;  %v7728_v47 = vadd.f32 %v7727_v14, %v13082_v32 }
 0x592   :  { %v7729_v60 = vpop.f32.mrf.mxu0 }
 0x593   :  { %8065 = vst [vmem:[#allocation19 + $0x110] sm:$0xff] %v8017_v22  ;;  %v8019_v39 = vmax.f32 %v7971_v59, 0.0  ;;  %v7972_v23 = vadd.f32 %v7924_v31, %v7876_v9  ;;  %v7878_v2 = vmul.f32 0.17, %v7728_v47  ;;  %v7730_v17 = vadd.f32 %v7729_v60, %v13086_v57 }
 0x594   :  { %v7733_v12 = vpop.f32.mrf.mxu0 }
 0x595   :  { %8067 = vst [vmem:[#allocation19 + $0x120] sm:$0xff] %v8019_v39  ;;  %v8020_v46 = vmax.f32 %v7972_v23, 0.0  ;;  %v7974_v42 = vadd.f32 %v7926_v44, %v7878_v2  ;;  %v7879_v8 = vmul.f32 0.17, %v7730_v17  ;;  %v7734_v25 = vadd.f32 %v7733_v12, %v13082_v32 }
 0x596   :  { %v7735_v24 = vpop.f32.mrf.mxu0 }
 0x597   :  { %8068 = vst [vmem:[#allocation19 + $0x128] sm:$0xff] %v8020_v46  ;;  %v8022_v41 = vmax.f32 %v7974_v42, 0.0  ;;  %v7975_v50 = vadd.f32 %v7927_v16, %v7879_v8  ;;  %v7881_v55 = vmul.f32 0.17, %v7734_v25  ;;  %v7736_v7 = vadd.f32 %v7735_v24, %v13086_v57 }
 0x598   :  { %v7737_v54 = vpop.f32.mrf.mxu0 }
 0x599   :  { %8070 = vst [vmem:[#allocation19 + $0x138] sm:$0xff] %v8022_v41  ;;  %v8023_v1 = vmax.f32 %v7975_v50, 0.0  ;;  %v7977_v27 = vadd.f32 %v7929_v21, %v7881_v55  ;;  %v7882_v63 = vmul.f32 0.17, %v7736_v7  ;;  %v7738_v4 = vadd.f32 %v7737_v54, %v13082_v32 }
 0x59a   :  { %v7739_v28 = vpop.f32.mrf.mxu0 }
 0x59b   :  { %8071 = vst [vmem:[#allocation19 + $0x140] sm:$0xff] %v8023_v1  ;;  %v8025_v49 = vmax.f32 %v7977_v27, 0.0  ;;  %v7978_v15 = vadd.f32 %v7930_v40, %v7882_v63  ;;  %v7884_v3 = vmul.f32 0.17, %v7738_v4  ;;  %v7740_v51 = vadd.f32 %v7739_v28, %v13086_v57 }
 0x59d   :  { %8073 = vst [vmem:[#allocation19 + $0x150] sm:$0xff] %v8025_v49  ;;  %v8026_v38 = vmax.f32 %v7978_v15, 0.0  ;;  %v7980_v29 = vadd.f32 %v7932_v62, %v7884_v3  ;;  %v7885_v18 = vmul.f32 0.17, %v7740_v51 }
 0x59f   :  { %8074 = vst [vmem:[#allocation19 + $0x158] sm:$0xff] %v8026_v38  ;;  %v8028_v32 = vmax.f32 %v7980_v29, 0.0  ;;  %v7981_v6 = vadd.f32 %v7933_v56, %v7885_v18 }
 0x5a1   :  { %8076 = vst [vmem:[#allocation19 + $0x168] sm:$0xff] %v8028_v32  ;;  %v8029_v37 = vmax.f32 %v7981_v6, 0.0 }
 0x5a3   :  { %8077 = vst [vmem:[#allocation19 + $0x170] sm:$0xff] %v8029_v37 }
 0x5a4   :  { %9903 = shalt.err (!%p9900_p2)
}
 0x5a5   :  { %s9937_s0 = smov 384   ;;  %s9938_s7 = smov 24  }
 0x5a6   :  { %8090 = dma.vmem_to_hbm [thread:$0]  %s8085_s6, 6144, %s13311_s12, [#allocation7], %s9937_s0, %s9937_s0, %s9938_s7  }
 0x5a7   :  { %9922 = dma.done.wait [#allocation7], 6144  }
 0x5a8   :  { %9923 = vsyncadd [#allocation7], 4294961152 }
 0x5a9   :  { %8094 = vsyncpa [#allocation6], 1 }
 0x5aa   :  { %8095 = vsyncpa [#allocation9], 1 }
 0x5ab   :  { %8096 = vsyncpa [#allocation12], 1 }
 0x5ac   :  { %8097 = vsyncpa [#allocation15], 1 }
 0x5ad   :  { %8098 = vsyncpa [#allocation18], 1 }
 0x5ae   :  { %8099 = vsyncpa [#allocation7], 1 }

</bundles_post_ra>
